<compile_context>
chip_gen: v6e
topology: v6e:2x2x1
jax: 0.10.0
libtpu: 0.0.40
codegen_flags: <defaults>
</compile_context>

<pallas_src>
import functools

import jax
import jax.numpy as jnp
from jax import lax
from jax.experimental import pallas as pl
from jax.experimental.pallas import tpu as pltpu


# Architecture constants of SSSNet (conv kernel sizes and pooling factors).
_K1, _POOL1 = 5, 3          # conv1 5x5 stride 1, maxpool 3x3 stride 3
_K2, _POOL2 = 3, 2          # conv2 3x3 stride 1, maxpool 2x2 stride 2


# --------------------------------------------------------------------------- #
# Fused forward kernel: one image (one grid step) per invocation.              #
# --------------------------------------------------------------------------- #
def _sssnet_kernel(x_ref, t1_ref, b1_ref, t2_ref, b2_ref, wf1_ref, bf1_ref,
                   wfc_ref, bfc_ref, o_ref, s1_ref, a1_ref, s2_ref,
                   *, r1, q1, r2, q2):
    """Ref shapes (h1/h2 = conv channels, h3 = fc1 width, nc = classes):

      x_ref  : (H, W*3)                 image, width*channels interleaved on lanes
      t1_ref : (POOL1*K1, W*3, q1*h1)   width-Toeplitz conv1 weights
      b1_ref : (1, q1*h1)
      t2_ref : (POOL2*K2, q1*h1, q2*h2) width-Toeplitz conv2 weights (bn1 folded)
      b2_ref : (1, q2*h2)               conv2 bias with bn1 shift folded in
      wf1_ref: (q2, q2*h2, h3)          fc1 weights, permuted, bn2 folded
      bf1_ref: (1, h3)    wfc_ref: (h3, nc)    bfc_ref: (1, nc)
      o_ref  : (1, nc)
      s1_ref : (r1, q1*h1)  scratch: conv1 output, width-pooled
      a1_ref : (q1, q1*h1)  scratch: layer-1 pooled/relu'd activations
      s2_ref : (r2, q2*h2)  scratch: conv2 output, width-pooled
    """
    f32 = jnp.float32

    # ---- conv1: width-Toeplitz matmuls; max over the 3 width pool phases ----
    acc = [None] * _POOL1
    for dy in range(_K1):
        a = x_ref[dy:dy + r1, :]                                    # (r1, W*3)
        for dw in range(_POOL1):
            d = jnp.dot(a, t1_ref[dw * _K1 + dy], preferred_element_type=f32)
            acc[dw] = d if acc[dw] is None else acc[dw] + d
    s1 = acc[0]
    for dw in range(1, _POOL1):
        s1 = jnp.maximum(s1, acc[dw])
    s1_ref[...] = s1                                                # (r1, q1*h1)

    # ---- height max-pool (3) + bias + relu  (bn1 folded into conv2) ---------
    b1v = b1_ref[...]
    for yo in range(q1):
        r = s1_ref[_POOL1 * yo:_POOL1 * yo + 1, :]
        for dh in range(1, _POOL1):
            r = jnp.maximum(r, s1_ref[_POOL1 * yo + dh:_POOL1 * yo + dh + 1, :])
        a1_ref[yo:yo + 1, :] = jnp.maximum(r + b1v, 0.0)

    # ---- conv2 (bn1 folded): width-Toeplitz matmuls + width pool phases -----
    acc = [None] * _POOL2
    for dy in range(_K2):
        a = a1_ref[dy:dy + r2, :]                                   # (r2, q1*h1)
        for dw in range(_POOL2):
            d = jnp.dot(a, t2_ref[dw * _K2 + dy], preferred_element_type=f32)
            acc[dw] = d if acc[dw] is None else acc[dw] + d
    s2 = acc[0]
    for dw in range(1, _POOL2):
        s2 = jnp.maximum(s2, acc[dw])
    s2_ref[...] = s2                                                # (r2, q2*h2)

    # ---- height max-pool (2) + bias + relu, fused with fc1 (bn2 folded) -----
    b2v = b2_ref[...]
    f = bf1_ref[...]                                                # (1, h3)
    for yq in range(q2):
        r = s2_ref[_POOL2 * yq:_POOL2 * yq + 1, :]
        for dh in range(1, _POOL2):
            r = jnp.maximum(r, s2_ref[_POOL2 * yq + dh:_POOL2 * yq + dh + 1, :])
        r = jnp.maximum(r + b2v, 0.0)                               # (1, q2*h2)
        f = f + jnp.dot(r, wf1_ref[yq], preferred_element_type=f32)
    f = jnp.maximum(f, 0.0)                                         # relu(fc1)

    # ---- fc2 ------------------------------------------------------------------
    out = jnp.dot(f, wfc_ref[...], preferred_element_type=f32) + bfc_ref[...]
    o_ref[...] = out.astype(o_ref.dtype)                            # (1, nc)


# --------------------------------------------------------------------------- #
# One-time parameter packing (width-Toeplitz conv weights, BN folding).        #
# --------------------------------------------------------------------------- #
def _width_toeplitz(w, w_in, pool, w_out):
    """Banded matmul weights for a stride-1 VALID conv whose output is
    max-pooled along the width with window == stride == `pool`.

    w: (kh, kw, cin, cout) HWIO.  Returns T: (pool*kh, w_in*cin, w_out*cout)
    with  T[dw*kh + dy, xx*cin + c, xp*cout + o] = w[dy, xx - (pool*xp + dw), c, o]
    (zero outside the kernel support), so that summing
    x_rows[dy:dy+rows, :] @ T[dw*kh+dy] over dy gives the conv output at width
    pool-phase dw, ready for an elementwise max over dw (width pooling)."""
    kh, kw, cin, cout = w.shape
    xx = jnp.arange(w_in)
    xp = jnp.arange(w_out)
    blocks = []
    for dw in range(pool):
        dx = xx[:, None] - (pool * xp[None, :] + dw)          # (w_in, w_out)
        valid = (dx >= 0) & (dx < kw)
        g = w[:, jnp.clip(dx, 0, kw - 1), :, :]               # (kh, w_in, w_out, cin, cout)
        g = jnp.where(valid[None, :, :, None, None], g, 0.0)
        t = jnp.transpose(g, (0, 1, 3, 2, 4)).reshape(kh, w_in * cin, w_out * cout)
        blocks.append(t)
    return jnp.concatenate(blocks, axis=0)


def pack_params(p, h_dims=(8, 16, 32), num_classes=3, in_hw=(64, 64)):
    """Pack raw SSSNet parameters into the fused-kernel layout (done once)."""
    h1, h2, h3 = h_dims
    H, W = in_hw
    assert (H, W) == (64, 64), "fc1 hard-codes a 9x9 feature map => 64x64 input"
    q1 = (W - (_K1 - 1)) // _POOL1        # 20
    q2 = (q1 - (_K2 - 1)) // _POOL2       # 9

    # bn1 (eval) folded into conv2; bn2 (eval) folded into fc1 (exact algebra).
    w2e = p["w2"] * p["bn1_scale"][None, None, :, None]
    b2e = p["b2"] + jnp.einsum("yxco,c->o", p["w2"], p["bn1_shift"])
    wf = p["wfc1"].reshape(h2, q2, q2, h3)                    # (c, h, w, j): PyTorch flatten order
    bf1e = p["bfc1"] + jnp.einsum("chwj,c->j", wf, p["bn2_shift"])
    wf = wf * p["bn2_scale"][:, None, None, None]
    wf1 = jnp.transpose(wf, (1, 2, 0, 3)).reshape(q2, q2 * h2, h3)   # (h, w*h2 + c, j)

    return {
        "t1": _width_toeplitz(p["w1"], W, _POOL1, q1),        # (15, W*3, q1*h1)
        "b1": jnp.tile(p["b1"], q1).reshape(1, q1 * h1),
        "t2": _width_toeplitz(w2e, q1, _POOL2, q2),           # (6, q1*h1, q2*h2)
        "b2": jnp.tile(b2e, q2).reshape(1, q2 * h2),
        "wf1": wf1,                                           # (q2, q2*h2, h3)
        "bf1": bf1e.reshape(1, h3),
        "wfc": p["wfc"],                                      # (h3, nc)
        "bfc": p["bfc"].reshape(1, num_classes),
    }


# --------------------------------------------------------------------------- #
# Fused forward wrapper                                                         #
# --------------------------------------------------------------------------- #
def sssnet_forward(x_nchw, packed):
    """SSSNet forward (eval mode), one fused Pallas kernel. x: (B, 3, 64, 64)."""
    B, C, H, W = x_nchw.shape
    assert (C, H, W) == (3, 64, 64), "fc1 hard-codes a 9x9x h2 feature map"
    r1 = H - (_K1 - 1)            # 60 conv1 output rows
    q1 = r1 // _POOL1             # 20 rows after pool1
    r2 = q1 - (_K2 - 1)           # 18 conv2 output rows
    q2 = r2 // _POOL2             # 9 rows after pool2
    n1 = packed["t1"].shape[2]    # q1 * h1 lanes
    n2 = packed["t2"].shape[2]    # q2 * h2 lanes
    nc = packed["wfc"].shape[1]

    # NCHW -> (B, H, W*C): rows on sublanes, width*channels interleaved on lanes.
    xi = jnp.transpose(x_nchw, (0, 2, 3, 1)).astype(jnp.float32).reshape(B, H, W * C)

    kern = functools.partial(_sssnet_kernel, r1=r1, q1=q1, r2=r2, q2=q2)

    def full(a):  # whole (small) array resident in VMEM, same block every step
        return pl.BlockSpec(a.shape, lambda b, _nd=a.ndim: (0,) * _nd)

    out = pl.pallas_call(
        kern,
        out_shape=jax.ShapeDtypeStruct((B, 1, nc), jnp.float32),
        grid=(B,),
        in_specs=[
            pl.BlockSpec((None, H, W * C), lambda b: (b, 0, 0)),
            full(packed["t1"]), full(packed["b1"]),
            full(packed["t2"]), full(packed["b2"]),
            full(packed["wf1"]), full(packed["bf1"]),
            full(packed["wfc"]), full(packed["bfc"]),
        ],
        out_specs=pl.BlockSpec((None, 1, nc), lambda b: (b, 0, 0)),
        scratch_shapes=[
            pltpu.VMEM((r1, n1), jnp.float32),   # conv1 output (width-pooled)
            pltpu.VMEM((q1, n1), jnp.float32),   # layer-1 pooled activations
            pltpu.VMEM((r2, n2), jnp.float32),   # conv2 output (width-pooled)
        ],
        compiler_params=pltpu.CompilerParams(dimension_semantics=("parallel",)),
    )(xi, packed["t1"], packed["b1"], packed["t2"], packed["b2"],
      packed["wf1"], packed["bf1"], packed["wfc"], packed["bfc"])
    return out.reshape(B, nc)


# --------------------------------------------------------------------------- #
# Parameters + pure-JAX reference (XLA conv / reduce_window) for checking.     #
# --------------------------------------------------------------------------- #
def init_params(key, num_classes=3, h_dims=(8, 16, 32)):
    h1, h2, h3 = h_dims
    ks = jax.random.split(key, 16)
    eps = 1e-5

    def bn(kg, kb, km, kv, c):
        gamma = 1.0 + 0.1 * jax.random.normal(kg, (c,), jnp.float32)
        beta = 0.1 * jax.random.normal(kb, (c,), jnp.float32)
        mean = 0.1 * jax.random.normal(km, (c,), jnp.float32)
        var = 1.0 + 0.1 * jax.random.uniform(kv, (c,), jnp.float32)
        scale = gamma / jnp.sqrt(var + eps)
        shift = beta - mean * scale
        return scale, shift

    params = {
        "w1": 0.1 * jax.random.normal(ks[0], (5, 5, 3, h1), jnp.float32),      # HWIO
        "b1": 0.1 * jax.random.normal(ks[1], (h1,), jnp.float32),
        "w2": 0.1 * jax.random.normal(ks[2], (3, 3, h1, h2), jnp.float32),     # HWIO
        "b2": 0.1 * jax.random.normal(ks[3], (h2,), jnp.float32),
        "wfc1": 0.05 * jax.random.normal(ks[4], (9 * 9 * h2, h3), jnp.float32),
        "bfc1": 0.05 * jax.random.normal(ks[5], (h3,), jnp.float32),
        "wfc": 0.1 * jax.random.normal(ks[6], (h3, num_classes), jnp.float32),
        "bfc": 0.1 * jax.random.normal(ks[7], (num_classes,), jnp.float32),
    }
    params["bn1_scale"], params["bn1_shift"] = bn(ks[8], ks[9], ks[10], ks[11], h1)
    params["bn2_scale"], params["bn2_shift"] = bn(ks[12], ks[13], ks[14], ks[15], h2)
    return params


def reference_forward(x_nchw, p, h_dims=(8, 16, 32)):
    B = x_nchw.shape[0]
    x = jnp.transpose(x_nchw, (0, 2, 3, 1)).astype(jnp.float32)
    dn = ("NHWC", "HWIO", "NHWC")
    y = lax.conv_general_dilated(x, p["w1"], (1, 1), "VALID", dimension_numbers=dn) + p["b1"]
    y = jnp.maximum(y, 0.0)
    y = lax.reduce_window(y, -jnp.inf, lax.max, (1, 3, 3, 1), (1, 3, 3, 1), "VALID")
    y = y * p["bn1_scale"] + p["bn1_shift"]
    y = lax.conv_general_dilated(y, p["w2"], (1, 1), "VALID", dimension_numbers=dn) + p["b2"]
    y = jnp.maximum(y, 0.0)
    y = lax.reduce_window(y, -jnp.inf, lax.max, (1, 2, 2, 1), (1, 2, 2, 1), "VALID")
    y = y * p["bn2_scale"] + p["bn2_shift"]
    flat = jnp.transpose(y, (0, 3, 1, 2)).reshape(B, -1)   # PyTorch NCHW flatten order
    f1 = jnp.maximum(flat @ p["wfc1"] + p["bfc1"], 0.0)
    return f1 @ p["wfc"] + p["bfc"]


if __name__ == "__main__":
    num_classes = 3
    h_dims = (8, 16, 32)          # shrunk h_dims (module default is [32, 64, 256])
    B = 2

    key = jax.random.PRNGKey(0)
    kx, kp = jax.random.split(key)
    # Input must be 64x64 so that fc1 sees the 9x9 feature map the module
    # hard-codes via its 9**2 * h2 flatten size.
    x = jax.random.normal(kx, (B, 3, 64, 64), jnp.float32)   # NCHW, like PyTorch
    params = init_params(kp, num_classes, h_dims)

    packed = pack_params(params, h_dims, num_classes)        # one-time weight packing
    fwd = jax.jit(sssnet_forward)

    out = jax.block_until_ready(fwd(x, packed))
    ref = jax.block_until_ready(reference_forward(x, params, h_dims))

    assert out.shape == (B, num_classes), out.shape
    err = float(jnp.max(jnp.abs(out - ref)))
    # Tolerance covers MXU bf16-product rounding differences introduced by
    # folding the BN affines into the conv2/fc1 weights (fold is exact algebra);
    # real indexing/layout bugs would produce O(0.1 - 1) errors.
    assert err < 2e-2, f"mismatch vs reference: {err}"
    print("KERNEL_OK")
</pallas_src>

<mosaic_0001>
module attributes {stable_mosaic.version = 11 : i64} {
  func.func @_sssnet_kernel(%arg0: i32, %arg1: memref<1x64x192xf32, #tpu.memory_space<vmem>>, %arg2: memref<15x192x160xf32, #tpu.memory_space<vmem>>, %arg3: memref<1x160xf32, #tpu.memory_space<vmem>>, %arg4: memref<6x160x144xf32, #tpu.memory_space<vmem>>, %arg5: memref<1x144xf32, #tpu.memory_space<vmem>>, %arg6: memref<9x144x32xf32, #tpu.memory_space<vmem>>, %arg7: memref<1x32xf32, #tpu.memory_space<vmem>>, %arg8: memref<32x3xf32, #tpu.memory_space<vmem>>, %arg9: memref<1x3xf32, #tpu.memory_space<vmem>>, %arg10: memref<1x1x3xf32, #tpu.memory_space<vmem>>, %arg11: memref<60x160xf32, #tpu.memory_space<vmem>>, %arg12: memref<20x160xf32, #tpu.memory_space<vmem>>, %arg13: memref<18x144xf32, #tpu.memory_space<vmem>>) attributes {dimension_semantics = [#tpu.dimension_semantics<parallel>], iteration_bounds = array<i64: 2>, scalar_prefetch = 0 : i64, scratch_operands = 3 : i64, tpu.core_type = #tpu.core_type<tc>, window_params = [{transform_indices = @transform_0, window_bounds = array<i64: 1, 64, 192>}, {pipeline_mode = #tpu.pipeline_mode<synchronous>, transform_indices = @transform_1, window_bounds = array<i64: 15, 192, 160>}, {pipeline_mode = #tpu.pipeline_mode<synchronous>, transform_indices = @transform_2, window_bounds = array<i64: 1, 160>}, {pipeline_mode = #tpu.pipeline_mode<synchronous>, transform_indices = @transform_3, window_bounds = array<i64: 6, 160, 144>}, {pipeline_mode = #tpu.pipeline_mode<synchronous>, transform_indices = @transform_4, window_bounds = array<i64: 1, 144>}, {pipeline_mode = #tpu.pipeline_mode<synchronous>, transform_indices = @transform_5, window_bounds = array<i64: 9, 144, 32>}, {pipeline_mode = #tpu.pipeline_mode<synchronous>, transform_indices = @transform_6, window_bounds = array<i64: 1, 32>}, {pipeline_mode = #tpu.pipeline_mode<synchronous>, transform_indices = @transform_7, window_bounds = array<i64: 32, 3>}, {pipeline_mode = #tpu.pipeline_mode<synchronous>, transform_indices = @transform_8, window_bounds = array<i64: 1, 3>}, {transform_indices = @transform_9, window_bounds = array<i64: 1, 1, 3>}]} {
    %c0 = arith.constant 0 : index
    %c0_0 = arith.constant 0 : index
    %c0_1 = arith.constant 0 : index
    %0 = vector.load %arg1[%c0, %c0_0, %c0_1] : memref<1x64x192xf32, #tpu.memory_space<vmem>>, vector<1x60x192xf32>
    %1 = vector.shape_cast %0 : vector<1x60x192xf32> to vector<60x192xf32>
    %c0_2 = arith.constant 0 : index
    %c0_3 = arith.constant 0 : index
    %c0_4 = arith.constant 0 : index
    %2 = vector.load %arg2[%c0_2, %c0_3, %c0_4] : memref<15x192x160xf32, #tpu.memory_space<vmem>>, vector<1x192x160xf32>
    %3 = vector.shape_cast %2 : vector<1x192x160xf32> to vector<192x160xf32>
    %cst = arith.constant dense<0.000000e+00> : vector<60x160xf32>
    %4 = tpu.matmul %1, %3, %cst {dimension_numbers = #tpu.dot_dimension_numbers<[1], [0], [0], [1], [0, 0, 1, 1], [], []>} : vector<60x192xf32>, vector<192x160xf32>, vector<60x160xf32> -> vector<60x160xf32>
    %c5 = arith.constant 5 : index
    %c0_5 = arith.constant 0 : index
    %c0_6 = arith.constant 0 : index
    %5 = vector.load %arg2[%c5, %c0_5, %c0_6] : memref<15x192x160xf32, #tpu.memory_space<vmem>>, vector<1x192x160xf32>
    %6 = vector.shape_cast %5 : vector<1x192x160xf32> to vector<192x160xf32>
    %cst_7 = arith.constant dense<0.000000e+00> : vector<60x160xf32>
    %7 = tpu.matmul %1, %6, %cst_7 {dimension_numbers = #tpu.dot_dimension_numbers<[1], [0], [0], [1], [0, 0, 1, 1], [], []>} : vector<60x192xf32>, vector<192x160xf32>, vector<60x160xf32> -> vector<60x160xf32>
    %c10 = arith.constant 10 : index
    %c0_8 = arith.constant 0 : index
    %c0_9 = arith.constant 0 : index
    %8 = vector.load %arg2[%c10, %c0_8, %c0_9] : memref<15x192x160xf32, #tpu.memory_space<vmem>>, vector<1x192x160xf32>
    %9 = vector.shape_cast %8 : vector<1x192x160xf32> to vector<192x160xf32>
    %cst_10 = arith.constant dense<0.000000e+00> : vector<60x160xf32>
    %10 = tpu.matmul %1, %9, %cst_10 {dimension_numbers = #tpu.dot_dimension_numbers<[1], [0], [0], [1], [0, 0, 1, 1], [], []>} : vector<60x192xf32>, vector<192x160xf32>, vector<60x160xf32> -> vector<60x160xf32>
    %c0_11 = arith.constant 0 : index
    %c1 = arith.constant 1 : index
    %c0_12 = arith.constant 0 : index
    %11 = vector.load %arg1[%c0_11, %c1, %c0_12] : memref<1x64x192xf32, #tpu.memory_space<vmem>>, vector<1x60x192xf32>
    %12 = vector.shape_cast %11 : vector<1x60x192xf32> to vector<60x192xf32>
    %c1_13 = arith.constant 1 : index
    %c0_14 = arith.constant 0 : index
    %c0_15 = arith.constant 0 : index
    %13 = vector.load %arg2[%c1_13, %c0_14, %c0_15] : memref<15x192x160xf32, #tpu.memory_space<vmem>>, vector<1x192x160xf32>
    %14 = vector.shape_cast %13 : vector<1x192x160xf32> to vector<192x160xf32>
    %cst_16 = arith.constant dense<0.000000e+00> : vector<60x160xf32>
    %15 = tpu.matmul %12, %14, %cst_16 {dimension_numbers = #tpu.dot_dimension_numbers<[1], [0], [0], [1], [0, 0, 1, 1], [], []>} : vector<60x192xf32>, vector<192x160xf32>, vector<60x160xf32> -> vector<60x160xf32>
    %16 = arith.addf %4, %15 : vector<60x160xf32>
    %c6 = arith.constant 6 : index
    %c0_17 = arith.constant 0 : index
    %c0_18 = arith.constant 0 : index
    %17 = vector.load %arg2[%c6, %c0_17, %c0_18] : memref<15x192x160xf32, #tpu.memory_space<vmem>>, vector<1x192x160xf32>
    %18 = vector.shape_cast %17 : vector<1x192x160xf32> to vector<192x160xf32>
    %cst_19 = arith.constant dense<0.000000e+00> : vector<60x160xf32>
    %19 = tpu.matmul %12, %18, %cst_19 {dimension_numbers = #tpu.dot_dimension_numbers<[1], [0], [0], [1], [0, 0, 1, 1], [], []>} : vector<60x192xf32>, vector<192x160xf32>, vector<60x160xf32> -> vector<60x160xf32>
    %20 = arith.addf %7, %19 : vector<60x160xf32>
    %c11 = arith.constant 11 : index
    %c0_20 = arith.constant 0 : index
    %c0_21 = arith.constant 0 : index
    %21 = vector.load %arg2[%c11, %c0_20, %c0_21] : memref<15x192x160xf32, #tpu.memory_space<vmem>>, vector<1x192x160xf32>
    %22 = vector.shape_cast %21 : vector<1x192x160xf32> to vector<192x160xf32>
    %cst_22 = arith.constant dense<0.000000e+00> : vector<60x160xf32>
    %23 = tpu.matmul %12, %22, %cst_22 {dimension_numbers = #tpu.dot_dimension_numbers<[1], [0], [0], [1], [0, 0, 1, 1], [], []>} : vector<60x192xf32>, vector<192x160xf32>, vector<60x160xf32> -> vector<60x160xf32>
    %24 = arith.addf %10, %23 : vector<60x160xf32>
    %c0_23 = arith.constant 0 : index
    %c2 = arith.constant 2 : index
    %c0_24 = arith.constant 0 : index
    %25 = vector.load %arg1[%c0_23, %c2, %c0_24] : memref<1x64x192xf32, #tpu.memory_space<vmem>>, vector<1x60x192xf32>
    %26 = vector.shape_cast %25 : vector<1x60x192xf32> to vector<60x192xf32>
    %c2_25 = arith.constant 2 : index
    %c0_26 = arith.constant 0 : index
    %c0_27 = arith.constant 0 : index
    %27 = vector.load %arg2[%c2_25, %c0_26, %c0_27] : memref<15x192x160xf32, #tpu.memory_space<vmem>>, vector<1x192x160xf32>
    %28 = vector.shape_cast %27 : vector<1x192x160xf32> to vector<192x160xf32>
    %cst_28 = arith.constant dense<0.000000e+00> : vector<60x160xf32>
    %29 = tpu.matmul %26, %28, %cst_28 {dimension_numbers = #tpu.dot_dimension_numbers<[1], [0], [0], [1], [0, 0, 1, 1], [], []>} : vector<60x192xf32>, vector<192x160xf32>, vector<60x160xf32> -> vector<60x160xf32>
    %30 = arith.addf %16, %29 : vector<60x160xf32>
    %c7 = arith.constant 7 : index
    %c0_29 = arith.constant 0 : index
    %c0_30 = arith.constant 0 : index
    %31 = vector.load %arg2[%c7, %c0_29, %c0_30] : memref<15x192x160xf32, #tpu.memory_space<vmem>>, vector<1x192x160xf32>
    %32 = vector.shape_cast %31 : vector<1x192x160xf32> to vector<192x160xf32>
    %cst_31 = arith.constant dense<0.000000e+00> : vector<60x160xf32>
    %33 = tpu.matmul %26, %32, %cst_31 {dimension_numbers = #tpu.dot_dimension_numbers<[1], [0], [0], [1], [0, 0, 1, 1], [], []>} : vector<60x192xf32>, vector<192x160xf32>, vector<60x160xf32> -> vector<60x160xf32>
    %34 = arith.addf %20, %33 : vector<60x160xf32>
    %c12 = arith.constant 12 : index
    %c0_32 = arith.constant 0 : index
    %c0_33 = arith.constant 0 : index
    %35 = vector.load %arg2[%c12, %c0_32, %c0_33] : memref<15x192x160xf32, #tpu.memory_space<vmem>>, vector<1x192x160xf32>
    %36 = vector.shape_cast %35 : vector<1x192x160xf32> to vector<192x160xf32>
    %cst_34 = arith.constant dense<0.000000e+00> : vector<60x160xf32>
    %37 = tpu.matmul %26, %36, %cst_34 {dimension_numbers = #tpu.dot_dimension_numbers<[1], [0], [0], [1], [0, 0, 1, 1], [], []>} : vector<60x192xf32>, vector<192x160xf32>, vector<60x160xf32> -> vector<60x160xf32>
    %38 = arith.addf %24, %37 : vector<60x160xf32>
    %c0_35 = arith.constant 0 : index
    %c3 = arith.constant 3 : index
    %c0_36 = arith.constant 0 : index
    %39 = vector.load %arg1[%c0_35, %c3, %c0_36] : memref<1x64x192xf32, #tpu.memory_space<vmem>>, vector<1x60x192xf32>
    %40 = vector.shape_cast %39 : vector<1x60x192xf32> to vector<60x192xf32>
    %c3_37 = arith.constant 3 : index
    %c0_38 = arith.constant 0 : index
    %c0_39 = arith.constant 0 : index
    %41 = vector.load %arg2[%c3_37, %c0_38, %c0_39] : memref<15x192x160xf32, #tpu.memory_space<vmem>>, vector<1x192x160xf32>
    %42 = vector.shape_cast %41 : vector<1x192x160xf32> to vector<192x160xf32>
    %cst_40 = arith.constant dense<0.000000e+00> : vector<60x160xf32>
    %43 = tpu.matmul %40, %42, %cst_40 {dimension_numbers = #tpu.dot_dimension_numbers<[1], [0], [0], [1], [0, 0, 1, 1], [], []>} : vector<60x192xf32>, vector<192x160xf32>, vector<60x160xf32> -> vector<60x160xf32>
    %44 = arith.addf %30, %43 : vector<60x160xf32>
    %c8 = arith.constant 8 : index
    %c0_41 = arith.constant 0 : index
    %c0_42 = arith.constant 0 : index
    %45 = vector.load %arg2[%c8, %c0_41, %c0_42] : memref<15x192x160xf32, #tpu.memory_space<vmem>>, vector<1x192x160xf32>
    %46 = vector.shape_cast %45 : vector<1x192x160xf32> to vector<192x160xf32>
    %cst_43 = arith.constant dense<0.000000e+00> : vector<60x160xf32>
    %47 = tpu.matmul %40, %46, %cst_43 {dimension_numbers = #tpu.dot_dimension_numbers<[1], [0], [0], [1], [0, 0, 1, 1], [], []>} : vector<60x192xf32>, vector<192x160xf32>, vector<60x160xf32> -> vector<60x160xf32>
    %48 = arith.addf %34, %47 : vector<60x160xf32>
    %c13 = arith.constant 13 : index
    %c0_44 = arith.constant 0 : index
    %c0_45 = arith.constant 0 : index
    %49 = vector.load %arg2[%c13, %c0_44, %c0_45] : memref<15x192x160xf32, #tpu.memory_space<vmem>>, vector<1x192x160xf32>
    %50 = vector.shape_cast %49 : vector<1x192x160xf32> to vector<192x160xf32>
    %cst_46 = arith.constant dense<0.000000e+00> : vector<60x160xf32>
    %51 = tpu.matmul %40, %50, %cst_46 {dimension_numbers = #tpu.dot_dimension_numbers<[1], [0], [0], [1], [0, 0, 1, 1], [], []>} : vector<60x192xf32>, vector<192x160xf32>, vector<60x160xf32> -> vector<60x160xf32>
    %52 = arith.addf %38, %51 : vector<60x160xf32>
    %c0_47 = arith.constant 0 : index
    %c4 = arith.constant 4 : index
    %c0_48 = arith.constant 0 : index
    %53 = vector.load %arg1[%c0_47, %c4, %c0_48] : memref<1x64x192xf32, #tpu.memory_space<vmem>>, vector<1x60x192xf32>
    %54 = vector.shape_cast %53 : vector<1x60x192xf32> to vector<60x192xf32>
    %c4_49 = arith.constant 4 : index
    %c0_50 = arith.constant 0 : index
    %c0_51 = arith.constant 0 : index
    %55 = vector.load %arg2[%c4_49, %c0_50, %c0_51] : memref<15x192x160xf32, #tpu.memory_space<vmem>>, vector<1x192x160xf32>
    %56 = vector.shape_cast %55 : vector<1x192x160xf32> to vector<192x160xf32>
    %cst_52 = arith.constant dense<0.000000e+00> : vector<60x160xf32>
    %57 = tpu.matmul %54, %56, %cst_52 {dimension_numbers = #tpu.dot_dimension_numbers<[1], [0], [0], [1], [0, 0, 1, 1], [], []>} : vector<60x192xf32>, vector<192x160xf32>, vector<60x160xf32> -> vector<60x160xf32>
    %58 = arith.addf %44, %57 : vector<60x160xf32>
    %c9 = arith.constant 9 : index
    %c0_53 = arith.constant 0 : index
    %c0_54 = arith.constant 0 : index
    %59 = vector.load %arg2[%c9, %c0_53, %c0_54] : memref<15x192x160xf32, #tpu.memory_space<vmem>>, vector<1x192x160xf32>
    %60 = vector.shape_cast %59 : vector<1x192x160xf32> to vector<192x160xf32>
    %cst_55 = arith.constant dense<0.000000e+00> : vector<60x160xf32>
    %61 = tpu.matmul %54, %60, %cst_55 {dimension_numbers = #tpu.dot_dimension_numbers<[1], [0], [0], [1], [0, 0, 1, 1], [], []>} : vector<60x192xf32>, vector<192x160xf32>, vector<60x160xf32> -> vector<60x160xf32>
    %62 = arith.addf %48, %61 : vector<60x160xf32>
    %c14 = arith.constant 14 : index
    %c0_56 = arith.constant 0 : index
    %c0_57 = arith.constant 0 : index
    %63 = vector.load %arg2[%c14, %c0_56, %c0_57] : memref<15x192x160xf32, #tpu.memory_space<vmem>>, vector<1x192x160xf32>
    %64 = vector.shape_cast %63 : vector<1x192x160xf32> to vector<192x160xf32>
    %cst_58 = arith.constant dense<0.000000e+00> : vector<60x160xf32>
    %65 = tpu.matmul %54, %64, %cst_58 {dimension_numbers = #tpu.dot_dimension_numbers<[1], [0], [0], [1], [0, 0, 1, 1], [], []>} : vector<60x192xf32>, vector<192x160xf32>, vector<60x160xf32> -> vector<60x160xf32>
    %66 = arith.addf %52, %65 : vector<60x160xf32>
    %67 = arith.maximumf %58, %62 : vector<60x160xf32>
    %68 = arith.maximumf %67, %66 : vector<60x160xf32>
    %c0_59 = arith.constant 0 : index
    %c0_60 = arith.constant 0 : index
    %69 = vector.load %arg11[%c0_59, %c0_60] : memref<60x160xf32, #tpu.memory_space<vmem>>, vector<60x160xf32>
    tpu.vector_store %arg11[%c0_59, %c0_60], %68 {strides = array<i32>} : memref<60x160xf32, #tpu.memory_space<vmem>>, vector<60x160xf32>,
    %c0_61 = arith.constant 0 : index
    %c0_62 = arith.constant 0 : index
    %70 = vector.load %arg3[%c0_61, %c0_62] : memref<1x160xf32, #tpu.memory_space<vmem>>, vector<1x160xf32>
    %c0_63 = arith.constant 0 : index
    %c0_64 = arith.constant 0 : index
    %71 = vector.load %arg11[%c0_63, %c0_64] : memref<60x160xf32, #tpu.memory_space<vmem>>, vector<1x160xf32>
    %c1_65 = arith.constant 1 : index
    %c0_66 = arith.constant 0 : index
    %72 = vector.load %arg11[%c1_65, %c0_66] : memref<60x160xf32, #tpu.memory_space<vmem>>, vector<1x160xf32>
    %73 = arith.maximumf %71, %72 : vector<1x160xf32>
    %c2_67 = arith.constant 2 : index
    %c0_68 = arith.constant 0 : index
    %74 = vector.load %arg11[%c2_67, %c0_68] : memref<60x160xf32, #tpu.memory_space<vmem>>, vector<1x160xf32>
    %75 = arith.maximumf %73, %74 : vector<1x160xf32>
    %76 = arith.addf %75, %70 : vector<1x160xf32>
    %cst_69 = arith.constant 0.000000e+00 : f32
    %77 = vector.broadcast %cst_69 : f32 to vector<1x160xf32>
    %78 = arith.maximumf %76, %77 : vector<1x160xf32>
    %c0_70 = arith.constant 0 : index
    %c0_71 = arith.constant 0 : index
    %79 = vector.load %arg12[%c0_70, %c0_71] : memref<20x160xf32, #tpu.memory_space<vmem>>, vector<1x160xf32>
    tpu.vector_store %arg12[%c0_70, %c0_71], %78 {strides = array<i32>} : memref<20x160xf32, #tpu.memory_space<vmem>>, vector<1x160xf32>,
    %c3_72 = arith.constant 3 : index
    %c0_73 = arith.constant 0 : index
    %80 = vector.load %arg11[%c3_72, %c0_73] : memref<60x160xf32, #tpu.memory_space<vmem>>, vector<1x160xf32>
    %c4_74 = arith.constant 4 : index
    %c0_75 = arith.constant 0 : index
    %81 = vector.load %arg11[%c4_74, %c0_75] : memref<60x160xf32, #tpu.memory_space<vmem>>, vector<1x160xf32>
    %82 = arith.maximumf %80, %81 : vector<1x160xf32>
    %c5_76 = arith.constant 5 : index
    %c0_77 = arith.constant 0 : index
    %83 = vector.load %arg11[%c5_76, %c0_77] : memref<60x160xf32, #tpu.memory_space<vmem>>, vector<1x160xf32>
    %84 = arith.maximumf %82, %83 : vector<1x160xf32>
    %85 = arith.addf %84, %70 : vector<1x160xf32>
    %cst_78 = arith.constant 0.000000e+00 : f32
    %86 = vector.broadcast %cst_78 : f32 to vector<1x160xf32>
    %87 = arith.maximumf %85, %86 : vector<1x160xf32>
    %c1_79 = arith.constant 1 : index
    %c0_80 = arith.constant 0 : index
    %88 = vector.load %arg12[%c1_79, %c0_80] : memref<20x160xf32, #tpu.memory_space<vmem>>, vector<1x160xf32>
    tpu.vector_store %arg12[%c1_79, %c0_80], %87 {strides = array<i32>} : memref<20x160xf32, #tpu.memory_space<vmem>>, vector<1x160xf32>,
    %c6_81 = arith.constant 6 : index
    %c0_82 = arith.constant 0 : index
    %89 = vector.load %arg11[%c6_81, %c0_82] : memref<60x160xf32, #tpu.memory_space<vmem>>, vector<1x160xf32>
    %c7_83 = arith.constant 7 : index
    %c0_84 = arith.constant 0 : index
    %90 = vector.load %arg11[%c7_83, %c0_84] : memref<60x160xf32, #tpu.memory_space<vmem>>, vector<1x160xf32>
    %91 = arith.maximumf %89, %90 : vector<1x160xf32>
    %c8_85 = arith.constant 8 : index
    %c0_86 = arith.constant 0 : index
    %92 = vector.load %arg11[%c8_85, %c0_86] : memref<60x160xf32, #tpu.memory_space<vmem>>, vector<1x160xf32>
    %93 = arith.maximumf %91, %92 : vector<1x160xf32>
    %94 = arith.addf %93, %70 : vector<1x160xf32>
    %cst_87 = arith.constant 0.000000e+00 : f32
    %95 = vector.broadcast %cst_87 : f32 to vector<1x160xf32>
    %96 = arith.maximumf %94, %95 : vector<1x160xf32>
    %c2_88 = arith.constant 2 : index
    %c0_89 = arith.constant 0 : index
    %97 = vector.load %arg12[%c2_88, %c0_89] : memref<20x160xf32, #tpu.memory_space<vmem>>, vector<1x160xf32>
    tpu.vector_store %arg12[%c2_88, %c0_89], %96 {strides = array<i32>} : memref<20x160xf32, #tpu.memory_space<vmem>>, vector<1x160xf32>,
    %c9_90 = arith.constant 9 : index
    %c0_91 = arith.constant 0 : index
    %98 = vector.load %arg11[%c9_90, %c0_91] : memref<60x160xf32, #tpu.memory_space<vmem>>, vector<1x160xf32>
    %c10_92 = arith.constant 10 : index
    %c0_93 = arith.constant 0 : index
    %99 = vector.load %arg11[%c10_92, %c0_93] : memref<60x160xf32, #tpu.memory_space<vmem>>, vector<1x160xf32>
    %100 = arith.maximumf %98, %99 : vector<1x160xf32>
    %c11_94 = arith.constant 11 : index
    %c0_95 = arith.constant 0 : index
    %101 = vector.load %arg11[%c11_94, %c0_95] : memref<60x160xf32, #tpu.memory_space<vmem>>, vector<1x160xf32>
    %102 = arith.maximumf %100, %101 : vector<1x160xf32>
    %103 = arith.addf %102, %70 : vector<1x160xf32>
    %cst_96 = arith.constant 0.000000e+00 : f32
    %104 = vector.broadcast %cst_96 : f32 to vector<1x160xf32>
    %105 = arith.maximumf %103, %104 : vector<1x160xf32>
    %c3_97 = arith.constant 3 : index
    %c0_98 = arith.constant 0 : index
    %106 = vector.load %arg12[%c3_97, %c0_98] : memref<20x160xf32, #tpu.memory_space<vmem>>, vector<1x160xf32>
    tpu.vector_store %arg12[%c3_97, %c0_98], %105 {strides = array<i32>} : memref<20x160xf32, #tpu.memory_space<vmem>>, vector<1x160xf32>,
    %c12_99 = arith.constant 12 : index
    %c0_100 = arith.constant 0 : index
    %107 = vector.load %arg11[%c12_99, %c0_100] : memref<60x160xf32, #tpu.memory_space<vmem>>, vector<1x160xf32>
    %c13_101 = arith.constant 13 : index
    %c0_102 = arith.constant 0 : index
    %108 = vector.load %arg11[%c13_101, %c0_102] : memref<60x160xf32, #tpu.memory_space<vmem>>, vector<1x160xf32>
    %109 = arith.maximumf %107, %108 : vector<1x160xf32>
    %c14_103 = arith.constant 14 : index
    %c0_104 = arith.constant 0 : index
    %110 = vector.load %arg11[%c14_103, %c0_104] : memref<60x160xf32, #tpu.memory_space<vmem>>, vector<1x160xf32>
    %111 = arith.maximumf %109, %110 : vector<1x160xf32>
    %112 = arith.addf %111, %70 : vector<1x160xf32>
    %cst_105 = arith.constant 0.000000e+00 : f32
    %113 = vector.broadcast %cst_105 : f32 to vector<1x160xf32>
    %114 = arith.maximumf %112, %113 : vector<1x160xf32>
    %c4_106 = arith.constant 4 : index
    %c0_107 = arith.constant 0 : index
    %115 = vector.load %arg12[%c4_106, %c0_107] : memref<20x160xf32, #tpu.memory_space<vmem>>, vector<1x160xf32>
    tpu.vector_store %arg12[%c4_106, %c0_107], %114 {strides = array<i32>} : memref<20x160xf32, #tpu.memory_space<vmem>>, vector<1x160xf32>,
    %c15 = arith.constant 15 : index
    %c0_108 = arith.constant 0 : index
    %116 = vector.load %arg11[%c15, %c0_108] : memref<60x160xf32, #tpu.memory_space<vmem>>, vector<1x160xf32>
    %c16 = arith.constant 16 : index
    %c0_109 = arith.constant 0 : index
    %117 = vector.load %arg11[%c16, %c0_109] : memref<60x160xf32, #tpu.memory_space<vmem>>, vector<1x160xf32>
    %118 = arith.maximumf %116, %117 : vector<1x160xf32>
    %c17 = arith.constant 17 : index
    %c0_110 = arith.constant 0 : index
    %119 = vector.load %arg11[%c17, %c0_110] : memref<60x160xf32, #tpu.memory_space<vmem>>, vector<1x160xf32>
    %120 = arith.maximumf %118, %119 : vector<1x160xf32>
    %121 = arith.addf %120, %70 : vector<1x160xf32>
    %cst_111 = arith.constant 0.000000e+00 : f32
    %122 = vector.broadcast %cst_111 : f32 to vector<1x160xf32>
    %123 = arith.maximumf %121, %122 : vector<1x160xf32>
    %c5_112 = arith.constant 5 : index
    %c0_113 = arith.constant 0 : index
    %124 = vector.load %arg12[%c5_112, %c0_113] : memref<20x160xf32, #tpu.memory_space<vmem>>, vector<1x160xf32>
    tpu.vector_store %arg12[%c5_112, %c0_113], %123 {strides = array<i32>} : memref<20x160xf32, #tpu.memory_space<vmem>>, vector<1x160xf32>,
    %c18 = arith.constant 18 : index
    %c0_114 = arith.constant 0 : index
    %125 = vector.load %arg11[%c18, %c0_114] : memref<60x160xf32, #tpu.memory_space<vmem>>, vector<1x160xf32>
    %c19 = arith.constant 19 : index
    %c0_115 = arith.constant 0 : index
    %126 = vector.load %arg11[%c19, %c0_115] : memref<60x160xf32, #tpu.memory_space<vmem>>, vector<1x160xf32>
    %127 = arith.maximumf %125, %126 : vector<1x160xf32>
    %c20 = arith.constant 20 : index
    %c0_116 = arith.constant 0 : index
    %128 = vector.load %arg11[%c20, %c0_116] : memref<60x160xf32, #tpu.memory_space<vmem>>, vector<1x160xf32>
    %129 = arith.maximumf %127, %128 : vector<1x160xf32>
    %130 = arith.addf %129, %70 : vector<1x160xf32>
    %cst_117 = arith.constant 0.000000e+00 : f32
    %131 = vector.broadcast %cst_117 : f32 to vector<1x160xf32>
    %132 = arith.maximumf %130, %131 : vector<1x160xf32>
    %c6_118 = arith.constant 6 : index
    %c0_119 = arith.constant 0 : index
    %133 = vector.load %arg12[%c6_118, %c0_119] : memref<20x160xf32, #tpu.memory_space<vmem>>, vector<1x160xf32>
    tpu.vector_store %arg12[%c6_118, %c0_119], %132 {strides = array<i32>} : memref<20x160xf32, #tpu.memory_space<vmem>>, vector<1x160xf32>,
    %c21 = arith.constant 21 : index
    %c0_120 = arith.constant 0 : index
    %134 = vector.load %arg11[%c21, %c0_120] : memref<60x160xf32, #tpu.memory_space<vmem>>, vector<1x160xf32>
    %c22 = arith.constant 22 : index
    %c0_121 = arith.constant 0 : index
    %135 = vector.load %arg11[%c22, %c0_121] : memref<60x160xf32, #tpu.memory_space<vmem>>, vector<1x160xf32>
    %136 = arith.maximumf %134, %135 : vector<1x160xf32>
    %c23 = arith.constant 23 : index
    %c0_122 = arith.constant 0 : index
    %137 = vector.load %arg11[%c23, %c0_122] : memref<60x160xf32, #tpu.memory_space<vmem>>, vector<1x160xf32>
    %138 = arith.maximumf %136, %137 : vector<1x160xf32>
    %139 = arith.addf %138, %70 : vector<1x160xf32>
    %cst_123 = arith.constant 0.000000e+00 : f32
    %140 = vector.broadcast %cst_123 : f32 to vector<1x160xf32>
    %141 = arith.maximumf %139, %140 : vector<1x160xf32>
    %c7_124 = arith.constant 7 : index
    %c0_125 = arith.constant 0 : index
    %142 = vector.load %arg12[%c7_124, %c0_125] : memref<20x160xf32, #tpu.memory_space<vmem>>, vector<1x160xf32>
    tpu.vector_store %arg12[%c7_124, %c0_125], %141 {strides = array<i32>} : memref<20x160xf32, #tpu.memory_space<vmem>>, vector<1x160xf32>,
    %c24 = arith.constant 24 : index
    %c0_126 = arith.constant 0 : index
    %143 = vector.load %arg11[%c24, %c0_126] : memref<60x160xf32, #tpu.memory_space<vmem>>, vector<1x160xf32>
    %c25 = arith.constant 25 : index
    %c0_127 = arith.constant 0 : index
    %144 = vector.load %arg11[%c25, %c0_127] : memref<60x160xf32, #tpu.memory_space<vmem>>, vector<1x160xf32>
    %145 = arith.maximumf %143, %144 : vector<1x160xf32>
    %c26 = arith.constant 26 : index
    %c0_128 = arith.constant 0 : index
    %146 = vector.load %arg11[%c26, %c0_128] : memref<60x160xf32, #tpu.memory_space<vmem>>, vector<1x160xf32>
    %147 = arith.maximumf %145, %146 : vector<1x160xf32>
    %148 = arith.addf %147, %70 : vector<1x160xf32>
    %cst_129 = arith.constant 0.000000e+00 : f32
    %149 = vector.broadcast %cst_129 : f32 to vector<1x160xf32>
    %150 = arith.maximumf %148, %149 : vector<1x160xf32>
    %c8_130 = arith.constant 8 : index
    %c0_131 = arith.constant 0 : index
    %151 = vector.load %arg12[%c8_130, %c0_131] : memref<20x160xf32, #tpu.memory_space<vmem>>, vector<1x160xf32>
    tpu.vector_store %arg12[%c8_130, %c0_131], %150 {strides = array<i32>} : memref<20x160xf32, #tpu.memory_space<vmem>>, vector<1x160xf32>,
    %c27 = arith.constant 27 : index
    %c0_132 = arith.constant 0 : index
    %152 = vector.load %arg11[%c27, %c0_132] : memref<60x160xf32, #tpu.memory_space<vmem>>, vector<1x160xf32>
    %c28 = arith.constant 28 : index
    %c0_133 = arith.constant 0 : index
    %153 = vector.load %arg11[%c28, %c0_133] : memref<60x160xf32, #tpu.memory_space<vmem>>, vector<1x160xf32>
    %154 = arith.maximumf %152, %153 : vector<1x160xf32>
    %c29 = arith.constant 29 : index
    %c0_134 = arith.constant 0 : index
    %155 = vector.load %arg11[%c29, %c0_134] : memref<60x160xf32, #tpu.memory_space<vmem>>, vector<1x160xf32>
    %156 = arith.maximumf %154, %155 : vector<1x160xf32>
    %157 = arith.addf %156, %70 : vector<1x160xf32>
    %cst_135 = arith.constant 0.000000e+00 : f32
    %158 = vector.broadcast %cst_135 : f32 to vector<1x160xf32>
    %159 = arith.maximumf %157, %158 : vector<1x160xf32>
    %c9_136 = arith.constant 9 : index
    %c0_137 = arith.constant 0 : index
    %160 = vector.load %arg12[%c9_136, %c0_137] : memref<20x160xf32, #tpu.memory_space<vmem>>, vector<1x160xf32>
    tpu.vector_store %arg12[%c9_136, %c0_137], %159 {strides = array<i32>} : memref<20x160xf32, #tpu.memory_space<vmem>>, vector<1x160xf32>,
    %c30 = arith.constant 30 : index
    %c0_138 = arith.constant 0 : index
    %161 = vector.load %arg11[%c30, %c0_138] : memref<60x160xf32, #tpu.memory_space<vmem>>, vector<1x160xf32>
    %c31 = arith.constant 31 : index
    %c0_139 = arith.constant 0 : index
    %162 = vector.load %arg11[%c31, %c0_139] : memref<60x160xf32, #tpu.memory_space<vmem>>, vector<1x160xf32>
    %163 = arith.maximumf %161, %162 : vector<1x160xf32>
    %c32 = arith.constant 32 : index
    %c0_140 = arith.constant 0 : index
    %164 = vector.load %arg11[%c32, %c0_140] : memref<60x160xf32, #tpu.memory_space<vmem>>, vector<1x160xf32>
    %165 = arith.maximumf %163, %164 : vector<1x160xf32>
    %166 = arith.addf %165, %70 : vector<1x160xf32>
    %cst_141 = arith.constant 0.000000e+00 : f32
    %167 = vector.broadcast %cst_141 : f32 to vector<1x160xf32>
    %168 = arith.maximumf %166, %167 : vector<1x160xf32>
    %c10_142 = arith.constant 10 : index
    %c0_143 = arith.constant 0 : index
    %169 = vector.load %arg12[%c10_142, %c0_143] : memref<20x160xf32, #tpu.memory_space<vmem>>, vector<1x160xf32>
    tpu.vector_store %arg12[%c10_142, %c0_143], %168 {strides = array<i32>} : memref<20x160xf32, #tpu.memory_space<vmem>>, vector<1x160xf32>,
    %c33 = arith.constant 33 : index
    %c0_144 = arith.constant 0 : index
    %170 = vector.load %arg11[%c33, %c0_144] : memref<60x160xf32, #tpu.memory_space<vmem>>, vector<1x160xf32>
    %c34 = arith.constant 34 : index
    %c0_145 = arith.constant 0 : index
    %171 = vector.load %arg11[%c34, %c0_145] : memref<60x160xf32, #tpu.memory_space<vmem>>, vector<1x160xf32>
    %172 = arith.maximumf %170, %171 : vector<1x160xf32>
    %c35 = arith.constant 35 : index
    %c0_146 = arith.constant 0 : index
    %173 = vector.load %arg11[%c35, %c0_146] : memref<60x160xf32, #tpu.memory_space<vmem>>, vector<1x160xf32>
    %174 = arith.maximumf %172, %173 : vector<1x160xf32>
    %175 = arith.addf %174, %70 : vector<1x160xf32>
    %cst_147 = arith.constant 0.000000e+00 : f32
    %176 = vector.broadcast %cst_147 : f32 to vector<1x160xf32>
    %177 = arith.maximumf %175, %176 : vector<1x160xf32>
    %c11_148 = arith.constant 11 : index
    %c0_149 = arith.constant 0 : index
    %178 = vector.load %arg12[%c11_148, %c0_149] : memref<20x160xf32, #tpu.memory_space<vmem>>, vector<1x160xf32>
    tpu.vector_store %arg12[%c11_148, %c0_149], %177 {strides = array<i32>} : memref<20x160xf32, #tpu.memory_space<vmem>>, vector<1x160xf32>,
    %c36 = arith.constant 36 : index
    %c0_150 = arith.constant 0 : index
    %179 = vector.load %arg11[%c36, %c0_150] : memref<60x160xf32, #tpu.memory_space<vmem>>, vector<1x160xf32>
    %c37 = arith.constant 37 : index
    %c0_151 = arith.constant 0 : index
    %180 = vector.load %arg11[%c37, %c0_151] : memref<60x160xf32, #tpu.memory_space<vmem>>, vector<1x160xf32>
    %181 = arith.maximumf %179, %180 : vector<1x160xf32>
    %c38 = arith.constant 38 : index
    %c0_152 = arith.constant 0 : index
    %182 = vector.load %arg11[%c38, %c0_152] : memref<60x160xf32, #tpu.memory_space<vmem>>, vector<1x160xf32>
    %183 = arith.maximumf %181, %182 : vector<1x160xf32>
    %184 = arith.addf %183, %70 : vector<1x160xf32>
    %cst_153 = arith.constant 0.000000e+00 : f32
    %185 = vector.broadcast %cst_153 : f32 to vector<1x160xf32>
    %186 = arith.maximumf %184, %185 : vector<1x160xf32>
    %c12_154 = arith.constant 12 : index
    %c0_155 = arith.constant 0 : index
    %187 = vector.load %arg12[%c12_154, %c0_155] : memref<20x160xf32, #tpu.memory_space<vmem>>, vector<1x160xf32>
    tpu.vector_store %arg12[%c12_154, %c0_155], %186 {strides = array<i32>} : memref<20x160xf32, #tpu.memory_space<vmem>>, vector<1x160xf32>,
    %c39 = arith.constant 39 : index
    %c0_156 = arith.constant 0 : index
    %188 = vector.load %arg11[%c39, %c0_156] : memref<60x160xf32, #tpu.memory_space<vmem>>, vector<1x160xf32>
    %c40 = arith.constant 40 : index
    %c0_157 = arith.constant 0 : index
    %189 = vector.load %arg11[%c40, %c0_157] : memref<60x160xf32, #tpu.memory_space<vmem>>, vector<1x160xf32>
    %190 = arith.maximumf %188, %189 : vector<1x160xf32>
    %c41 = arith.constant 41 : index
    %c0_158 = arith.constant 0 : index
    %191 = vector.load %arg11[%c41, %c0_158] : memref<60x160xf32, #tpu.memory_space<vmem>>, vector<1x160xf32>
    %192 = arith.maximumf %190, %191 : vector<1x160xf32>
    %193 = arith.addf %192, %70 : vector<1x160xf32>
    %cst_159 = arith.constant 0.000000e+00 : f32
    %194 = vector.broadcast %cst_159 : f32 to vector<1x160xf32>
    %195 = arith.maximumf %193, %194 : vector<1x160xf32>
    %c13_160 = arith.constant 13 : index
    %c0_161 = arith.constant 0 : index
    %196 = vector.load %arg12[%c13_160, %c0_161] : memref<20x160xf32, #tpu.memory_space<vmem>>, vector<1x160xf32>
    tpu.vector_store %arg12[%c13_160, %c0_161], %195 {strides = array<i32>} : memref<20x160xf32, #tpu.memory_space<vmem>>, vector<1x160xf32>,
    %c42 = arith.constant 42 : index
    %c0_162 = arith.constant 0 : index
    %197 = vector.load %arg11[%c42, %c0_162] : memref<60x160xf32, #tpu.memory_space<vmem>>, vector<1x160xf32>
    %c43 = arith.constant 43 : index
    %c0_163 = arith.constant 0 : index
    %198 = vector.load %arg11[%c43, %c0_163] : memref<60x160xf32, #tpu.memory_space<vmem>>, vector<1x160xf32>
    %199 = arith.maximumf %197, %198 : vector<1x160xf32>
    %c44 = arith.constant 44 : index
    %c0_164 = arith.constant 0 : index
    %200 = vector.load %arg11[%c44, %c0_164] : memref<60x160xf32, #tpu.memory_space<vmem>>, vector<1x160xf32>
    %201 = arith.maximumf %199, %200 : vector<1x160xf32>
    %202 = arith.addf %201, %70 : vector<1x160xf32>
    %cst_165 = arith.constant 0.000000e+00 : f32
    %203 = vector.broadcast %cst_165 : f32 to vector<1x160xf32>
    %204 = arith.maximumf %202, %203 : vector<1x160xf32>
    %c14_166 = arith.constant 14 : index
    %c0_167 = arith.constant 0 : index
    %205 = vector.load %arg12[%c14_166, %c0_167] : memref<20x160xf32, #tpu.memory_space<vmem>>, vector<1x160xf32>
    tpu.vector_store %arg12[%c14_166, %c0_167], %204 {strides = array<i32>} : memref<20x160xf32, #tpu.memory_space<vmem>>, vector<1x160xf32>,
    %c45 = arith.constant 45 : index
    %c0_168 = arith.constant 0 : index
    %206 = vector.load %arg11[%c45, %c0_168] : memref<60x160xf32, #tpu.memory_space<vmem>>, vector<1x160xf32>
    %c46 = arith.constant 46 : index
    %c0_169 = arith.constant 0 : index
    %207 = vector.load %arg11[%c46, %c0_169] : memref<60x160xf32, #tpu.memory_space<vmem>>, vector<1x160xf32>
    %208 = arith.maximumf %206, %207 : vector<1x160xf32>
    %c47 = arith.constant 47 : index
    %c0_170 = arith.constant 0 : index
    %209 = vector.load %arg11[%c47, %c0_170] : memref<60x160xf32, #tpu.memory_space<vmem>>, vector<1x160xf32>
    %210 = arith.maximumf %208, %209 : vector<1x160xf32>
    %211 = arith.addf %210, %70 : vector<1x160xf32>
    %cst_171 = arith.constant 0.000000e+00 : f32
    %212 = vector.broadcast %cst_171 : f32 to vector<1x160xf32>
    %213 = arith.maximumf %211, %212 : vector<1x160xf32>
    %c15_172 = arith.constant 15 : index
    %c0_173 = arith.constant 0 : index
    %214 = vector.load %arg12[%c15_172, %c0_173] : memref<20x160xf32, #tpu.memory_space<vmem>>, vector<1x160xf32>
    tpu.vector_store %arg12[%c15_172, %c0_173], %213 {strides = array<i32>} : memref<20x160xf32, #tpu.memory_space<vmem>>, vector<1x160xf32>,
    %c48 = arith.constant 48 : index
    %c0_174 = arith.constant 0 : index
    %215 = vector.load %arg11[%c48, %c0_174] : memref<60x160xf32, #tpu.memory_space<vmem>>, vector<1x160xf32>
    %c49 = arith.constant 49 : index
    %c0_175 = arith.constant 0 : index
    %216 = vector.load %arg11[%c49, %c0_175] : memref<60x160xf32, #tpu.memory_space<vmem>>, vector<1x160xf32>
    %217 = arith.maximumf %215, %216 : vector<1x160xf32>
    %c50 = arith.constant 50 : index
    %c0_176 = arith.constant 0 : index
    %218 = vector.load %arg11[%c50, %c0_176] : memref<60x160xf32, #tpu.memory_space<vmem>>, vector<1x160xf32>
    %219 = arith.maximumf %217, %218 : vector<1x160xf32>
    %220 = arith.addf %219, %70 : vector<1x160xf32>
    %cst_177 = arith.constant 0.000000e+00 : f32
    %221 = vector.broadcast %cst_177 : f32 to vector<1x160xf32>
    %222 = arith.maximumf %220, %221 : vector<1x160xf32>
    %c16_178 = arith.constant 16 : index
    %c0_179 = arith.constant 0 : index
    %223 = vector.load %arg12[%c16_178, %c0_179] : memref<20x160xf32, #tpu.memory_space<vmem>>, vector<1x160xf32>
    tpu.vector_store %arg12[%c16_178, %c0_179], %222 {strides = array<i32>} : memref<20x160xf32, #tpu.memory_space<vmem>>, vector<1x160xf32>,
    %c51 = arith.constant 51 : index
    %c0_180 = arith.constant 0 : index
    %224 = vector.load %arg11[%c51, %c0_180] : memref<60x160xf32, #tpu.memory_space<vmem>>, vector<1x160xf32>
    %c52 = arith.constant 52 : index
    %c0_181 = arith.constant 0 : index
    %225 = vector.load %arg11[%c52, %c0_181] : memref<60x160xf32, #tpu.memory_space<vmem>>, vector<1x160xf32>
    %226 = arith.maximumf %224, %225 : vector<1x160xf32>
    %c53 = arith.constant 53 : index
    %c0_182 = arith.constant 0 : index
    %227 = vector.load %arg11[%c53, %c0_182] : memref<60x160xf32, #tpu.memory_space<vmem>>, vector<1x160xf32>
    %228 = arith.maximumf %226, %227 : vector<1x160xf32>
    %229 = arith.addf %228, %70 : vector<1x160xf32>
    %cst_183 = arith.constant 0.000000e+00 : f32
    %230 = vector.broadcast %cst_183 : f32 to vector<1x160xf32>
    %231 = arith.maximumf %229, %230 : vector<1x160xf32>
    %c17_184 = arith.constant 17 : index
    %c0_185 = arith.constant 0 : index
    %232 = vector.load %arg12[%c17_184, %c0_185] : memref<20x160xf32, #tpu.memory_space<vmem>>, vector<1x160xf32>
    tpu.vector_store %arg12[%c17_184, %c0_185], %231 {strides = array<i32>} : memref<20x160xf32, #tpu.memory_space<vmem>>, vector<1x160xf32>,
    %c54 = arith.constant 54 : index
    %c0_186 = arith.constant 0 : index
    %233 = vector.load %arg11[%c54, %c0_186] : memref<60x160xf32, #tpu.memory_space<vmem>>, vector<1x160xf32>
    %c55 = arith.constant 55 : index
    %c0_187 = arith.constant 0 : index
    %234 = vector.load %arg11[%c55, %c0_187] : memref<60x160xf32, #tpu.memory_space<vmem>>, vector<1x160xf32>
    %235 = arith.maximumf %233, %234 : vector<1x160xf32>
    %c56 = arith.constant 56 : index
    %c0_188 = arith.constant 0 : index
    %236 = vector.load %arg11[%c56, %c0_188] : memref<60x160xf32, #tpu.memory_space<vmem>>, vector<1x160xf32>
    %237 = arith.maximumf %235, %236 : vector<1x160xf32>
    %238 = arith.addf %237, %70 : vector<1x160xf32>
    %cst_189 = arith.constant 0.000000e+00 : f32
    %239 = vector.broadcast %cst_189 : f32 to vector<1x160xf32>
    %240 = arith.maximumf %238, %239 : vector<1x160xf32>
    %c18_190 = arith.constant 18 : index
    %c0_191 = arith.constant 0 : index
    %241 = vector.load %arg12[%c18_190, %c0_191] : memref<20x160xf32, #tpu.memory_space<vmem>>, vector<1x160xf32>
    tpu.vector_store %arg12[%c18_190, %c0_191], %240 {strides = array<i32>} : memref<20x160xf32, #tpu.memory_space<vmem>>, vector<1x160xf32>,
    %c57 = arith.constant 57 : index
    %c0_192 = arith.constant 0 : index
    %242 = vector.load %arg11[%c57, %c0_192] : memref<60x160xf32, #tpu.memory_space<vmem>>, vector<1x160xf32>
    %c58 = arith.constant 58 : index
    %c0_193 = arith.constant 0 : index
    %243 = vector.load %arg11[%c58, %c0_193] : memref<60x160xf32, #tpu.memory_space<vmem>>, vector<1x160xf32>
    %244 = arith.maximumf %242, %243 : vector<1x160xf32>
    %c59 = arith.constant 59 : index
    %c0_194 = arith.constant 0 : index
    %245 = vector.load %arg11[%c59, %c0_194] : memref<60x160xf32, #tpu.memory_space<vmem>>, vector<1x160xf32>
    %246 = arith.maximumf %244, %245 : vector<1x160xf32>
    %247 = arith.addf %246, %70 : vector<1x160xf32>
    %cst_195 = arith.constant 0.000000e+00 : f32
    %248 = vector.broadcast %cst_195 : f32 to vector<1x160xf32>
    %249 = arith.maximumf %247, %248 : vector<1x160xf32>
    %c19_196 = arith.constant 19 : index
    %c0_197 = arith.constant 0 : index
    %250 = vector.load %arg12[%c19_196, %c0_197] : memref<20x160xf32, #tpu.memory_space<vmem>>, vector<1x160xf32>
    tpu.vector_store %arg12[%c19_196, %c0_197], %249 {strides = array<i32>} : memref<20x160xf32, #tpu.memory_space<vmem>>, vector<1x160xf32>,
    %c0_198 = arith.constant 0 : index
    %c0_199 = arith.constant 0 : index
    %251 = vector.load %arg12[%c0_198, %c0_199] : memref<20x160xf32, #tpu.memory_space<vmem>>, vector<18x160xf32>
    %c0_200 = arith.constant 0 : index
    %c0_201 = arith.constant 0 : index
    %c0_202 = arith.constant 0 : index
    %252 = vector.load %arg4[%c0_200, %c0_201, %c0_202] : memref<6x160x144xf32, #tpu.memory_space<vmem>>, vector<1x160x144xf32>
    %253 = vector.shape_cast %252 : vector<1x160x144xf32> to vector<160x144xf32>
    %cst_203 = arith.constant dense<0.000000e+00> : vector<18x144xf32>
    %254 = tpu.matmul %251, %253, %cst_203 {dimension_numbers = #tpu.dot_dimension_numbers<[1], [0], [0], [1], [0, 0, 1, 1], [], []>} : vector<18x160xf32>, vector<160x144xf32>, vector<18x144xf32> -> vector<18x144xf32>
    %c3_204 = arith.constant 3 : index
    %c0_205 = arith.constant 0 : index
    %c0_206 = arith.constant 0 : index
    %255 = vector.load %arg4[%c3_204, %c0_205, %c0_206] : memref<6x160x144xf32, #tpu.memory_space<vmem>>, vector<1x160x144xf32>
    %256 = vector.shape_cast %255 : vector<1x160x144xf32> to vector<160x144xf32>
    %cst_207 = arith.constant dense<0.000000e+00> : vector<18x144xf32>
    %257 = tpu.matmul %251, %256, %cst_207 {dimension_numbers = #tpu.dot_dimension_numbers<[1], [0], [0], [1], [0, 0, 1, 1], [], []>} : vector<18x160xf32>, vector<160x144xf32>, vector<18x144xf32> -> vector<18x144xf32>
    %c1_208 = arith.constant 1 : index
    %c0_209 = arith.constant 0 : index
    %258 = vector.load %arg12[%c1_208, %c0_209] : memref<20x160xf32, #tpu.memory_space<vmem>>, vector<18x160xf32>
    %c1_210 = arith.constant 1 : index
    %c0_211 = arith.constant 0 : index
    %c0_212 = arith.constant 0 : index
    %259 = vector.load %arg4[%c1_210, %c0_211, %c0_212] : memref<6x160x144xf32, #tpu.memory_space<vmem>>, vector<1x160x144xf32>
    %260 = vector.shape_cast %259 : vector<1x160x144xf32> to vector<160x144xf32>
    %cst_213 = arith.constant dense<0.000000e+00> : vector<18x144xf32>
    %261 = tpu.matmul %258, %260, %cst_213 {dimension_numbers = #tpu.dot_dimension_numbers<[1], [0], [0], [1], [0, 0, 1, 1], [], []>} : vector<18x160xf32>, vector<160x144xf32>, vector<18x144xf32> -> vector<18x144xf32>
    %262 = arith.addf %254, %261 : vector<18x144xf32>
    %c4_214 = arith.constant 4 : index
    %c0_215 = arith.constant 0 : index
    %c0_216 = arith.constant 0 : index
    %263 = vector.load %arg4[%c4_214, %c0_215, %c0_216] : memref<6x160x144xf32, #tpu.memory_space<vmem>>, vector<1x160x144xf32>
    %264 = vector.shape_cast %263 : vector<1x160x144xf32> to vector<160x144xf32>
    %cst_217 = arith.constant dense<0.000000e+00> : vector<18x144xf32>
    %265 = tpu.matmul %258, %264, %cst_217 {dimension_numbers = #tpu.dot_dimension_numbers<[1], [0], [0], [1], [0, 0, 1, 1], [], []>} : vector<18x160xf32>, vector<160x144xf32>, vector<18x144xf32> -> vector<18x144xf32>
    %266 = arith.addf %257, %265 : vector<18x144xf32>
    %c2_218 = arith.constant 2 : index
    %c0_219 = arith.constant 0 : index
    %267 = vector.load %arg12[%c2_218, %c0_219] : memref<20x160xf32, #tpu.memory_space<vmem>>, vector<18x160xf32>
    %c2_220 = arith.constant 2 : index
    %c0_221 = arith.constant 0 : index
    %c0_222 = arith.constant 0 : index
    %268 = vector.load %arg4[%c2_220, %c0_221, %c0_222] : memref<6x160x144xf32, #tpu.memory_space<vmem>>, vector<1x160x144xf32>
    %269 = vector.shape_cast %268 : vector<1x160x144xf32> to vector<160x144xf32>
    %cst_223 = arith.constant dense<0.000000e+00> : vector<18x144xf32>
    %270 = tpu.matmul %267, %269, %cst_223 {dimension_numbers = #tpu.dot_dimension_numbers<[1], [0], [0], [1], [0, 0, 1, 1], [], []>} : vector<18x160xf32>, vector<160x144xf32>, vector<18x144xf32> -> vector<18x144xf32>
    %271 = arith.addf %262, %270 : vector<18x144xf32>
    %c5_224 = arith.constant 5 : index
    %c0_225 = arith.constant 0 : index
    %c0_226 = arith.constant 0 : index
    %272 = vector.load %arg4[%c5_224, %c0_225, %c0_226] : memref<6x160x144xf32, #tpu.memory_space<vmem>>, vector<1x160x144xf32>
    %273 = vector.shape_cast %272 : vector<1x160x144xf32> to vector<160x144xf32>
    %cst_227 = arith.constant dense<0.000000e+00> : vector<18x144xf32>
    %274 = tpu.matmul %267, %273, %cst_227 {dimension_numbers = #tpu.dot_dimension_numbers<[1], [0], [0], [1], [0, 0, 1, 1], [], []>} : vector<18x160xf32>, vector<160x144xf32>, vector<18x144xf32> -> vector<18x144xf32>
    %275 = arith.addf %266, %274 : vector<18x144xf32>
    %276 = arith.maximumf %271, %275 : vector<18x144xf32>
    %c0_228 = arith.constant 0 : index
    %c0_229 = arith.constant 0 : index
    %277 = vector.load %arg13[%c0_228, %c0_229] : memref<18x144xf32, #tpu.memory_space<vmem>>, vector<18x144xf32>
    tpu.vector_store %arg13[%c0_228, %c0_229], %276 {strides = array<i32>} : memref<18x144xf32, #tpu.memory_space<vmem>>, vector<18x144xf32>,
    %c0_230 = arith.constant 0 : index
    %c0_231 = arith.constant 0 : index
    %278 = vector.load %arg5[%c0_230, %c0_231] : memref<1x144xf32, #tpu.memory_space<vmem>>, vector<1x144xf32>
    %c0_232 = arith.constant 0 : index
    %c0_233 = arith.constant 0 : index
    %279 = vector.load %arg7[%c0_232, %c0_233] : memref<1x32xf32, #tpu.memory_space<vmem>>, vector<1x32xf32>
    %c0_234 = arith.constant 0 : index
    %c0_235 = arith.constant 0 : index
    %280 = vector.load %arg13[%c0_234, %c0_235] : memref<18x144xf32, #tpu.memory_space<vmem>>, vector<1x144xf32>
    %c1_236 = arith.constant 1 : index
    %c0_237 = arith.constant 0 : index
    %281 = vector.load %arg13[%c1_236, %c0_237] : memref<18x144xf32, #tpu.memory_space<vmem>>, vector<1x144xf32>
    %282 = arith.maximumf %280, %281 : vector<1x144xf32>
    %283 = arith.addf %282, %278 : vector<1x144xf32>
    %cst_238 = arith.constant 0.000000e+00 : f32
    %284 = vector.broadcast %cst_238 : f32 to vector<1x144xf32>
    %285 = arith.maximumf %283, %284 : vector<1x144xf32>
    %c0_239 = arith.constant 0 : index
    %c0_240 = arith.constant 0 : index
    %c0_241 = arith.constant 0 : index
    %286 = vector.load %arg6[%c0_239, %c0_240, %c0_241] : memref<9x144x32xf32, #tpu.memory_space<vmem>>, vector<1x144x32xf32>
    %287 = vector.shape_cast %286 : vector<1x144x32xf32> to vector<144x32xf32>
    %cst_242 = arith.constant dense<0.000000e+00> : vector<1x32xf32>
    %288 = tpu.matmul %285, %287, %cst_242 {dimension_numbers = #tpu.dot_dimension_numbers<[1], [0], [0], [1], [0, 0, 1, 1], [], []>} : vector<1x144xf32>, vector<144x32xf32>, vector<1x32xf32> -> vector<1x32xf32>
    %289 = arith.addf %279, %288 : vector<1x32xf32>
    %c2_243 = arith.constant 2 : index
    %c0_244 = arith.constant 0 : index
    %290 = vector.load %arg13[%c2_243, %c0_244] : memref<18x144xf32, #tpu.memory_space<vmem>>, vector<1x144xf32>
    %c3_245 = arith.constant 3 : index
    %c0_246 = arith.constant 0 : index
    %291 = vector.load %arg13[%c3_245, %c0_246] : memref<18x144xf32, #tpu.memory_space<vmem>>, vector<1x144xf32>
    %292 = arith.maximumf %290, %291 : vector<1x144xf32>
    %293 = arith.addf %292, %278 : vector<1x144xf32>
    %cst_247 = arith.constant 0.000000e+00 : f32
    %294 = vector.broadcast %cst_247 : f32 to vector<1x144xf32>
    %295 = arith.maximumf %293, %294 : vector<1x144xf32>
    %c1_248 = arith.constant 1 : index
    %c0_249 = arith.constant 0 : index
    %c0_250 = arith.constant 0 : index
    %296 = vector.load %arg6[%c1_248, %c0_249, %c0_250] : memref<9x144x32xf32, #tpu.memory_space<vmem>>, vector<1x144x32xf32>
    %297 = vector.shape_cast %296 : vector<1x144x32xf32> to vector<144x32xf32>
    %cst_251 = arith.constant dense<0.000000e+00> : vector<1x32xf32>
    %298 = tpu.matmul %295, %297, %cst_251 {dimension_numbers = #tpu.dot_dimension_numbers<[1], [0], [0], [1], [0, 0, 1, 1], [], []>} : vector<1x144xf32>, vector<144x32xf32>, vector<1x32xf32> -> vector<1x32xf32>
    %299 = arith.addf %289, %298 : vector<1x32xf32>
    %c4_252 = arith.constant 4 : index
    %c0_253 = arith.constant 0 : index
    %300 = vector.load %arg13[%c4_252, %c0_253] : memref<18x144xf32, #tpu.memory_space<vmem>>, vector<1x144xf32>
    %c5_254 = arith.constant 5 : index
    %c0_255 = arith.constant 0 : index
    %301 = vector.load %arg13[%c5_254, %c0_255] : memref<18x144xf32, #tpu.memory_space<vmem>>, vector<1x144xf32>
    %302 = arith.maximumf %300, %301 : vector<1x144xf32>
    %303 = arith.addf %302, %278 : vector<1x144xf32>
    %cst_256 = arith.constant 0.000000e+00 : f32
    %304 = vector.broadcast %cst_256 : f32 to vector<1x144xf32>
    %305 = arith.maximumf %303, %304 : vector<1x144xf32>
    %c2_257 = arith.constant 2 : index
    %c0_258 = arith.constant 0 : index
    %c0_259 = arith.constant 0 : index
    %306 = vector.load %arg6[%c2_257, %c0_258, %c0_259] : memref<9x144x32xf32, #tpu.memory_space<vmem>>, vector<1x144x32xf32>
    %307 = vector.shape_cast %306 : vector<1x144x32xf32> to vector<144x32xf32>
    %cst_260 = arith.constant dense<0.000000e+00> : vector<1x32xf32>
    %308 = tpu.matmul %305, %307, %cst_260 {dimension_numbers = #tpu.dot_dimension_numbers<[1], [0], [0], [1], [0, 0, 1, 1], [], []>} : vector<1x144xf32>, vector<144x32xf32>, vector<1x32xf32> -> vector<1x32xf32>
    %309 = arith.addf %299, %308 : vector<1x32xf32>
    %c6_261 = arith.constant 6 : index
    %c0_262 = arith.constant 0 : index
    %310 = vector.load %arg13[%c6_261, %c0_262] : memref<18x144xf32, #tpu.memory_space<vmem>>, vector<1x144xf32>
    %c7_263 = arith.constant 7 : index
    %c0_264 = arith.constant 0 : index
    %311 = vector.load %arg13[%c7_263, %c0_264] : memref<18x144xf32, #tpu.memory_space<vmem>>, vector<1x144xf32>
    %312 = arith.maximumf %310, %311 : vector<1x144xf32>
    %313 = arith.addf %312, %278 : vector<1x144xf32>
    %cst_265 = arith.constant 0.000000e+00 : f32
    %314 = vector.broadcast %cst_265 : f32 to vector<1x144xf32>
    %315 = arith.maximumf %313, %314 : vector<1x144xf32>
    %c3_266 = arith.constant 3 : index
    %c0_267 = arith.constant 0 : index
    %c0_268 = arith.constant 0 : index
    %316 = vector.load %arg6[%c3_266, %c0_267, %c0_268] : memref<9x144x32xf32, #tpu.memory_space<vmem>>, vector<1x144x32xf32>
    %317 = vector.shape_cast %316 : vector<1x144x32xf32> to vector<144x32xf32>
    %cst_269 = arith.constant dense<0.000000e+00> : vector<1x32xf32>
    %318 = tpu.matmul %315, %317, %cst_269 {dimension_numbers = #tpu.dot_dimension_numbers<[1], [0], [0], [1], [0, 0, 1, 1], [], []>} : vector<1x144xf32>, vector<144x32xf32>, vector<1x32xf32> -> vector<1x32xf32>
    %319 = arith.addf %309, %318 : vector<1x32xf32>
    %c8_270 = arith.constant 8 : index
    %c0_271 = arith.constant 0 : index
    %320 = vector.load %arg13[%c8_270, %c0_271] : memref<18x144xf32, #tpu.memory_space<vmem>>, vector<1x144xf32>
    %c9_272 = arith.constant 9 : index
    %c0_273 = arith.constant 0 : index
    %321 = vector.load %arg13[%c9_272, %c0_273] : memref<18x144xf32, #tpu.memory_space<vmem>>, vector<1x144xf32>
    %322 = arith.maximumf %320, %321 : vector<1x144xf32>
    %323 = arith.addf %322, %278 : vector<1x144xf32>
    %cst_274 = arith.constant 0.000000e+00 : f32
    %324 = vector.broadcast %cst_274 : f32 to vector<1x144xf32>
    %325 = arith.maximumf %323, %324 : vector<1x144xf32>
    %c4_275 = arith.constant 4 : index
    %c0_276 = arith.constant 0 : index
    %c0_277 = arith.constant 0 : index
    %326 = vector.load %arg6[%c4_275, %c0_276, %c0_277] : memref<9x144x32xf32, #tpu.memory_space<vmem>>, vector<1x144x32xf32>
    %327 = vector.shape_cast %326 : vector<1x144x32xf32> to vector<144x32xf32>
    %cst_278 = arith.constant dense<0.000000e+00> : vector<1x32xf32>
    %328 = tpu.matmul %325, %327, %cst_278 {dimension_numbers = #tpu.dot_dimension_numbers<[1], [0], [0], [1], [0, 0, 1, 1], [], []>} : vector<1x144xf32>, vector<144x32xf32>, vector<1x32xf32> -> vector<1x32xf32>
    %329 = arith.addf %319, %328 : vector<1x32xf32>
    %c10_279 = arith.constant 10 : index
    %c0_280 = arith.constant 0 : index
    %330 = vector.load %arg13[%c10_279, %c0_280] : memref<18x144xf32, #tpu.memory_space<vmem>>, vector<1x144xf32>
    %c11_281 = arith.constant 11 : index
    %c0_282 = arith.constant 0 : index
    %331 = vector.load %arg13[%c11_281, %c0_282] : memref<18x144xf32, #tpu.memory_space<vmem>>, vector<1x144xf32>
    %332 = arith.maximumf %330, %331 : vector<1x144xf32>
    %333 = arith.addf %332, %278 : vector<1x144xf32>
    %cst_283 = arith.constant 0.000000e+00 : f32
    %334 = vector.broadcast %cst_283 : f32 to vector<1x144xf32>
    %335 = arith.maximumf %333, %334 : vector<1x144xf32>
    %c5_284 = arith.constant 5 : index
    %c0_285 = arith.constant 0 : index
    %c0_286 = arith.constant 0 : index
    %336 = vector.load %arg6[%c5_284, %c0_285, %c0_286] : memref<9x144x32xf32, #tpu.memory_space<vmem>>, vector<1x144x32xf32>
    %337 = vector.shape_cast %336 : vector<1x144x32xf32> to vector<144x32xf32>
    %cst_287 = arith.constant dense<0.000000e+00> : vector<1x32xf32>
    %338 = tpu.matmul %335, %337, %cst_287 {dimension_numbers = #tpu.dot_dimension_numbers<[1], [0], [0], [1], [0, 0, 1, 1], [], []>} : vector<1x144xf32>, vector<144x32xf32>, vector<1x32xf32> -> vector<1x32xf32>
    %339 = arith.addf %329, %338 : vector<1x32xf32>
    %c12_288 = arith.constant 12 : index
    %c0_289 = arith.constant 0 : index
    %340 = vector.load %arg13[%c12_288, %c0_289] : memref<18x144xf32, #tpu.memory_space<vmem>>, vector<1x144xf32>
    %c13_290 = arith.constant 13 : index
    %c0_291 = arith.constant 0 : index
    %341 = vector.load %arg13[%c13_290, %c0_291] : memref<18x144xf32, #tpu.memory_space<vmem>>, vector<1x144xf32>
    %342 = arith.maximumf %340, %341 : vector<1x144xf32>
    %343 = arith.addf %342, %278 : vector<1x144xf32>
    %cst_292 = arith.constant 0.000000e+00 : f32
    %344 = vector.broadcast %cst_292 : f32 to vector<1x144xf32>
    %345 = arith.maximumf %343, %344 : vector<1x144xf32>
    %c6_293 = arith.constant 6 : index
    %c0_294 = arith.constant 0 : index
    %c0_295 = arith.constant 0 : index
    %346 = vector.load %arg6[%c6_293, %c0_294, %c0_295] : memref<9x144x32xf32, #tpu.memory_space<vmem>>, vector<1x144x32xf32>
    %347 = vector.shape_cast %346 : vector<1x144x32xf32> to vector<144x32xf32>
    %cst_296 = arith.constant dense<0.000000e+00> : vector<1x32xf32>
    %348 = tpu.matmul %345, %347, %cst_296 {dimension_numbers = #tpu.dot_dimension_numbers<[1], [0], [0], [1], [0, 0, 1, 1], [], []>} : vector<1x144xf32>, vector<144x32xf32>, vector<1x32xf32> -> vector<1x32xf32>
    %349 = arith.addf %339, %348 : vector<1x32xf32>
    %c14_297 = arith.constant 14 : index
    %c0_298 = arith.constant 0 : index
    %350 = vector.load %arg13[%c14_297, %c0_298] : memref<18x144xf32, #tpu.memory_space<vmem>>, vector<1x144xf32>
    %c15_299 = arith.constant 15 : index
    %c0_300 = arith.constant 0 : index
    %351 = vector.load %arg13[%c15_299, %c0_300] : memref<18x144xf32, #tpu.memory_space<vmem>>, vector<1x144xf32>
    %352 = arith.maximumf %350, %351 : vector<1x144xf32>
    %353 = arith.addf %352, %278 : vector<1x144xf32>
    %cst_301 = arith.constant 0.000000e+00 : f32
    %354 = vector.broadcast %cst_301 : f32 to vector<1x144xf32>
    %355 = arith.maximumf %353, %354 : vector<1x144xf32>
    %c7_302 = arith.constant 7 : index
    %c0_303 = arith.constant 0 : index
    %c0_304 = arith.constant 0 : index
    %356 = vector.load %arg6[%c7_302, %c0_303, %c0_304] : memref<9x144x32xf32, #tpu.memory_space<vmem>>, vector<1x144x32xf32>
    %357 = vector.shape_cast %356 : vector<1x144x32xf32> to vector<144x32xf32>
    %cst_305 = arith.constant dense<0.000000e+00> : vector<1x32xf32>
    %358 = tpu.matmul %355, %357, %cst_305 {dimension_numbers = #tpu.dot_dimension_numbers<[1], [0], [0], [1], [0, 0, 1, 1], [], []>} : vector<1x144xf32>, vector<144x32xf32>, vector<1x32xf32> -> vector<1x32xf32>
    %359 = arith.addf %349, %358 : vector<1x32xf32>
    %c16_306 = arith.constant 16 : index
    %c0_307 = arith.constant 0 : index
    %360 = vector.load %arg13[%c16_306, %c0_307] : memref<18x144xf32, #tpu.memory_space<vmem>>, vector<1x144xf32>
    %c17_308 = arith.constant 17 : index
    %c0_309 = arith.constant 0 : index
    %361 = vector.load %arg13[%c17_308, %c0_309] : memref<18x144xf32, #tpu.memory_space<vmem>>, vector<1x144xf32>
    %362 = arith.maximumf %360, %361 : vector<1x144xf32>
    %363 = arith.addf %362, %278 : vector<1x144xf32>
    %cst_310 = arith.constant 0.000000e+00 : f32
    %364 = vector.broadcast %cst_310 : f32 to vector<1x144xf32>
    %365 = arith.maximumf %363, %364 : vector<1x144xf32>
    %c8_311 = arith.constant 8 : index
    %c0_312 = arith.constant 0 : index
    %c0_313 = arith.constant 0 : index
    %366 = vector.load %arg6[%c8_311, %c0_312, %c0_313] : memref<9x144x32xf32, #tpu.memory_space<vmem>>, vector<1x144x32xf32>
    %367 = vector.shape_cast %366 : vector<1x144x32xf32> to vector<144x32xf32>
    %cst_314 = arith.constant dense<0.000000e+00> : vector<1x32xf32>
    %368 = tpu.matmul %365, %367, %cst_314 {dimension_numbers = #tpu.dot_dimension_numbers<[1], [0], [0], [1], [0, 0, 1, 1], [], []>} : vector<1x144xf32>, vector<144x32xf32>, vector<1x32xf32> -> vector<1x32xf32>
    %369 = arith.addf %359, %368 : vector<1x32xf32>
    %cst_315 = arith.constant 0.000000e+00 : f32
    %370 = vector.broadcast %cst_315 : f32 to vector<1x32xf32>
    %371 = arith.maximumf %369, %370 : vector<1x32xf32>
    %c0_316 = arith.constant 0 : index
    %c0_317 = arith.constant 0 : index
    %372 = vector.load %arg8[%c0_316, %c0_317] : memref<32x3xf32, #tpu.memory_space<vmem>>, vector<32x3xf32>
    %cst_318 = arith.constant dense<0.000000e+00> : vector<1x3xf32>
    %373 = tpu.matmul %371, %372, %cst_318 {dimension_numbers = #tpu.dot_dimension_numbers<[1], [0], [0], [1], [0, 0, 1, 1], [], []>} : vector<1x32xf32>, vector<32x3xf32>, vector<1x3xf32> -> vector<1x3xf32>
    %c0_319 = arith.constant 0 : index
    %c0_320 = arith.constant 0 : index
    %374 = vector.load %arg9[%c0_319, %c0_320] : memref<1x3xf32, #tpu.memory_space<vmem>>, vector<1x3xf32>
    %375 = arith.addf %373, %374 : vector<1x3xf32>
    %c0_321 = arith.constant 0 : index
    %c0_322 = arith.constant 0 : index
    %c0_323 = arith.constant 0 : index
    %376 = vector.load %arg10[%c0_321, %c0_322, %c0_323] : memref<1x1x3xf32, #tpu.memory_space<vmem>>, vector<1x1x3xf32>
    %377 = vector.shape_cast %376 : vector<1x1x3xf32> to vector<1x3xf32>
    %378 = vector.shape_cast %375 : vector<1x3xf32> to vector<1x1x3xf32>
    tpu.vector_store %arg10[%c0_321, %c0_322, %c0_323], %378 {strides = array<i32>} : memref<1x1x3xf32, #tpu.memory_space<vmem>>, vector<1x1x3xf32>,
    return
  }
  func.func @transform_0(%arg0: i32) -> (i32, i32, i32) {
    %c0_i32 = arith.constant 0 : i32
    %c0_i32_0 = arith.constant 0 : i32
    %c0_i32_1 = arith.constant 0 : i32
    return %arg0, %c0_i32, %c0_i32_0 : i32, i32, i32
  }
  func.func @transform_1(%arg0: i32) -> (i32, i32, i32) {
    %c0_i32 = arith.constant 0 : i32
    %c0_i32_0 = arith.constant 0 : i32
    %c0_i32_1 = arith.constant 0 : i32
    %c0_i32_2 = arith.constant 0 : i32
    return %c0_i32, %c0_i32_0, %c0_i32_1 : i32, i32, i32
  }
  func.func @transform_2(%arg0: i32) -> (i32, i32) {
    %c0_i32 = arith.constant 0 : i32
    %c0_i32_0 = arith.constant 0 : i32
    %c0_i32_1 = arith.constant 0 : i32
    return %c0_i32, %c0_i32_0 : i32, i32
  }
  func.func @transform_3(%arg0: i32) -> (i32, i32, i32) {
    %c0_i32 = arith.constant 0 : i32
    %c0_i32_0 = arith.constant 0 : i32
    %c0_i32_1 = arith.constant 0 : i32
    %c0_i32_2 = arith.constant 0 : i32
    return %c0_i32, %c0_i32_0, %c0_i32_1 : i32, i32, i32
  }
  func.func @transform_4(%arg0: i32) -> (i32, i32) {
    %c0_i32 = arith.constant 0 : i32
    %c0_i32_0 = arith.constant 0 : i32
    %c0_i32_1 = arith.constant 0 : i32
    return %c0_i32, %c0_i32_0 : i32, i32
  }
  func.func @transform_5(%arg0: i32) -> (i32, i32, i32) {
    %c0_i32 = arith.constant 0 : i32
    %c0_i32_0 = arith.constant 0 : i32
    %c0_i32_1 = arith.constant 0 : i32
    %c0_i32_2 = arith.constant 0 : i32
    return %c0_i32, %c0_i32_0, %c0_i32_1 : i32, i32, i32
  }
  func.func @transform_6(%arg0: i32) -> (i32, i32) {
    %c0_i32 = arith.constant 0 : i32
    %c0_i32_0 = arith.constant 0 : i32
    %c0_i32_1 = arith.constant 0 : i32
    return %c0_i32, %c0_i32_0 : i32, i32
  }
  func.func @transform_7(%arg0: i32) -> (i32, i32) {
    %c0_i32 = arith.constant 0 : i32
    %c0_i32_0 = arith.constant 0 : i32
    %c0_i32_1 = arith.constant 0 : i32
    return %c0_i32, %c0_i32_0 : i32, i32
  }
  func.func @transform_8(%arg0: i32) -> (i32, i32) {
    %c0_i32 = arith.constant 0 : i32
    %c0_i32_0 = arith.constant 0 : i32
    %c0_i32_1 = arith.constant 0 : i32
    return %c0_i32, %c0_i32_0 : i32, i32
  }
  func.func @transform_9(%arg0: i32) -> (i32, i32, i32) {
    %c0_i32 = arith.constant 0 : i32
    %c0_i32_0 = arith.constant 0 : i32
    %c0_i32_1 = arith.constant 0 : i32
    return %arg0, %c0_i32, %c0_i32_0 : i32, i32, i32
  }
}

</mosaic_0001>

<bundles_post_ra>
// kernel: sssnet_forward.1
= control target key start
LH: loop header
LB: loop body
LE: loop exit
PB: predicated region body
PF: predicated region fallthrough
CT: control target
= control target key end

     0   :  { %14 = vsyncpa [#allocation6], 0  ;;  %s12103_s0 = inlined_call_operand.vmem [shape: f32[2,64,192], index: 0, kind: input, shape index: {}]   ;;  %s12104_s1 = inlined_call_operand.vmem [shape: f32[15,192,160], index: 1, kind: input, shape index: {}]   ;;  %s12105_s2 = inlined_call_operand.vmem [shape: f32[1,160], index: 2, kind: input, shape index: {}]   ;;  %s12106_s3 = inlined_call_operand.vmem [shape: f32[6,160,144], index: 3, kind: input, shape index: {}]   ;;  %s12107_s4 = inlined_call_operand.vmem [shape: f32[1,144], index: 4, kind: input, shape index: {}]   ;;  %s12108_s5 = inlined_call_operand.vmem [shape: f32[9,144,32], index: 5, kind: input, shape index: {}]   ;;  %s12109_s6 = inlined_call_operand.vmem [shape: f32[1,32], index: 6, kind: input, shape index: {}]   ;;  %s12110_s7 = inlined_call_operand.vmem [shape: f32[32,3], index: 7, kind: input, shape index: {}]   ;;  %s12111_s8 = inlined_call_operand.vmem [shape: f32[1,3], index: 8, kind: input, shape index: {}]   ;;  %s12112_s9 = inlined_call_operand.hbm [shape: f32[2,1,3], index: 9, kind: output, shape index: {}]  }
   0x1   :  { %16 = vsyncpa [#allocation6 + $0x1], 0  ;;  %s6854_s30 = smov 0   ;;  %s6856_s10 = smov 0  }
   0x2   :  { %s6858_s11 = smov 0   ;;  %s6860_s12 = smov 0  }
   0x3 LB: > { %s6875_s13 = sadd.s32 4294967295, %s6799_s12   ;;  %s5484_s14 = sadd.s32 4294967294, %s6799_s12   ;;  %s6799_s12 = sphi %s6860_s12, %s12276_s12   ;;  %s6795_s11 = sphi %s6858_s11, %s12275_s11   ;;  %s6791_s10 = sphi %s6856_s10, %s12274_s10   ;;  %s6787_s30 = sphi %s6854_s30, %s12273_s30  }
   0x4   : > { %s6879_s15 = sadd.s32 1, %s6799_s12   ;;  %s223_s16 = sadd.s32 1, %s6795_s11 }
   0x5   : > { %s220_s17 = ssub.s32 %s6799_s12, %s6879_s15  ;;  %p233_p0 = scmp.ne.s32.totalorder %s6795_s11, %s6791_s10 }
   0x6   : > { %p221_p1 = scmp.eq.s32.totalorder %s220_s17, 0  ;;  %p234_p2 = scmp.eq.s32.totalorder %s6875_s13, 1 }
   0x7   : > { %p239_p3 = scmp.ne.s32.totalorder %s6791_s10, %s6787_s30  ;;  %p240_p4 = scmp.eq.s32.totalorder %s5484_s14, 1 }
   0x8   : > { %s6890_s18 = scalar_select %p221_p1, %s6795_s11, %s223_s16  }
   0x9   : > { %p6892_p5 = por %p234_p2, %p233_p0  ;;  %p6896_p6 = por %p240_p4, %p239_p3 }
   0xa   : > { %p5487_p7 = scmp.ge.s32.totalorder %s6799_s12, 1  ;;  %p290_p8 = scmp.lt.s32.totalorder %s6799_s12, 3 }
   0xc   : > { %p291_p9 = pnand %p5487_p7, %p290_p8 }
   0xe   : > { %294 = sbr.rel (%p291_p9) target bundleno = 1666 (0x682), region = 56 }
  0x13   : > { %v5617_v0 = vld [vmem:[%s12104_s1 + $0x278] sm:$0xff]  ;;  %v5616_v2 = vld [vmem:[%s12104_s1 + $0x270] sm:$0xff]  ;;  %v5615_v4 = vld [vmem:[%s12104_s1 + $0x268] sm:$0xff]  ;;  %p325_p10 = scmp.lt.s32.totalorder %s6875_s13, 1  ;;  %vm561_vm0 = vcmask 1046528   ;;  %vm600_vm1 = vcmask 523264  }
  0x14   : > { %v377_v1 = vld [vmem:[%s12104_s1 + $0xf8] sm:$0xff]  ;;  %617 = vmatprep.subr.mxu0 %v5617_v0  ;;  %v376_v3 = vld [vmem:[%s12104_s1 + $0xf0] sm:$0xff]  ;;  %v375_v5 = vld [vmem:[%s12104_s1 + $0xe8] sm:$0xff]  ;;  %vm1468_vm2 = vcmask 1045504   ;;  %vm2065_vm3 = vcmask 1044480   ;;  %vm2662_vm4 = vcmask 1043456  }
  0x15   : > { %748 = vmatprep.subr.mxu1 %v377_v1  ;;  %618 = vmatpush1.msra.mxu0 %v5616_v2  ;;  %v5614_v6 = vld [vmem:[%s12104_s1 + $0x260] sm:$0xff]  ;;  %v5613_v8 = vld [vmem:[%s12104_s1 + $0x258] sm:$0xff]  ;;  %v5612_v10 = vld [vmem:[%s12104_s1 + $0x250] sm:$0xff]  ;;  %s7092_s25 = scalar_select %p325_p10, %s6875_s13, 1  ;;  %vm3235_vm5 = vcmask 261120   ;;  %vm3250_vm7 = vcmask 257024  }
  0x16   : > { %749 = vmatpush1.msra.mxu1 %v376_v3  ;;  %v374_v7 = vld [vmem:[%s12104_s1 + $0xe0] sm:$0xff]  ;;  %619 = vmatprep.subr.mxu0 %v5615_v4  ;;  %v373_v9 = vld [vmem:[%s12104_s1 + $0xd8] sm:$0xff]  ;;  %v372_v11 = vld [vmem:[%s12104_s1 + $0xd0] sm:$0xff]  ;;  %vm4347_vm8 = vcmask 130048   ;;  %vm4352_vm9 = vcmask 123904   ;;  %vm6802_vm10 = vmmov 0  }
  0x17   : > { %750 = vmatprep.subr.mxu1 %v375_v5  ;;  %620 = vmatpush1.msra.mxu0 %v5614_v6  ;;  %v5611_v12 = vld [vmem:[%s12104_s1 + $0x248] sm:$0xff]  ;;  %v5610_v14 = vld [vmem:[%s12104_s1 + $0x240] sm:$0xff]  ;;  %v5609_v16 = vld [vmem:[%s12104_s1 + $0x238] sm:$0xff]  ;;  %s6657_s16 = sshll.u32 %s7092_s25, 7  ;;  %s323_s17 = sand.u32 1, %s6791_s10   ;;  %vm5414_vm11 = vcmask 16384  }
  0x18   : > { %751 = vmatpush1.msra.mxu1 %v374_v7  ;;  %v371_v13 = vld [vmem:[%s12104_s1 + $0xc8] sm:$0xff]  ;;  %621 = vmatprep.subr.mxu0 %v5613_v8  ;;  %v370_v15 = vld [vmem:[%s12104_s1 + $0xc0] sm:$0xff]  ;;  %v369_v17 = vld [vmem:[%s12104_s1 + $0xb8] sm:$0xff]  ;;  %s7140_s23 = scalar_lea.vmem %s12103_s0, %s6657_s16  ;;  %s6654_s24 = sshll.u32 %s6875_s13, 4 }
  0x19   : > { %752 = vmatprep.subr.mxu1 %v373_v9  ;;  %622 = vmatpush1.msra.mxu0 %v5612_v10  ;;  %v5608_v18 = vld [vmem:[%s12104_s1 + $0x230] sm:$0xff]  ;;  %v5607_v20 = vld [vmem:[%s12104_s1 + $0x228] sm:$0xff]  ;;  %v5606_v22 = vld [vmem:[%s12104_s1 + $0x220] sm:$0xff]  ;;  %s324_s26 = scalar_lea.vmem [#allocation5], %s323_s17  ;;  %s12068_s29 = scalar_lea.hbm %s12112_s9, %s6654_s24 }
  0x1a   : > { %753 = vmatpush1.msra.mxu1 %v372_v11  ;;  %623 = vmatprep.subr.mxu0 %v5611_v12  ;;  %v368_v19 = vld [vmem:[%s12104_s1 + $0xb0] sm:$0xff]  ;;  %v367_v21 = vld [vmem:[%s12104_s1 + $0xa8] sm:$0xff]  ;;  %v366_v23 = vld [vmem:[%s12104_s1 + $0xa0] sm:$0xff]  ;;  %s5429_s27 = sshll.u32 %s324_s26, 4  ;;  %s5417_s16 = scalar_lea.sflag [#allocation6], %s323_s17  ;;  %s5430_s27 = int_to_ptr.vmem [resolvable:$true] %s5429_s27 }
  0x1b   : > { %754 = vmatprep.subr.mxu1 %v371_v13  ;;  %624 = vmatpush1.msra.mxu0 %v5610_v14  ;;  %v5605_v24 = vld [vmem:[%s12104_s1 + $0x218] sm:$0xff]  ;;  %v5604_v26 = vld [vmem:[%s12104_s1 + $0x210] sm:$0xff]  ;;  %v5603_v28 = vld [vmem:[%s12104_s1 + $0x208] sm:$0xff]  ;;  %s6803_s13 = smov [#allocation5]  }
  0x1c   : > { %755 = vmatpush1.msra.mxu1 %v370_v15  ;;  %625 = vmatprep.subr.mxu0 %v5609_v16  ;;  %v365_v25 = vld [vmem:[%s12104_s1 + $0x98] sm:$0xff]  ;;  %v364_v27 = vld [vmem:[%s12104_s1 + $0x90] sm:$0xff]  ;;  %v363_v29 = vld [vmem:[%s12104_s1 + $0x88] sm:$0xff]  ;;  %s6743_s14 = sshll.u32 %s6803_s13, 4  ;;  %s6744_s14 = int_to_ptr.vmem [resolvable:$false] %s6743_s14 }
  0x1d   : > { %756 = vmatprep.subr.mxu1 %v369_v17  ;;  %626 = vmatpush1.msra.mxu0 %v5608_v18  ;;  %v5602_v30 = vld [vmem:[%s12104_s1 + $0x200] sm:$0xff]  ;;  %v5601_v32 = vld [vmem:[%s12104_s1 + $0x1f8] sm:$0xff]  ;;  %v5600_v34 = vld [vmem:[%s12104_s1 + $0x1f0] sm:$0xff]  ;;  %s6745_s21 = scalar_lea.vmem %s6744_s14, 32  ;;  %p6746_p0 = scmp.lt.s32.totalorder %s5430_s27, %s6744_s14 }
  0x1e   : > { %757 = vmatpush1.msra.mxu1 %v368_v19  ;;  %627 = vmatprep.subr.mxu0 %v5607_v20  ;;  %v362_v31 = vld [vmem:[%s12104_s1 + $0x80] sm:$0xff]  ;;  %v361_v33 = vld [vmem:[%s12104_s1 + $0x78] sm:$0xff]  ;;  %v360_v35 = vld [vmem:[%s12104_s1 + $0x70] sm:$0xff] }
  0x1f   : > { %758 = vmatprep.subr.mxu1 %v367_v21  ;;  %628 = vmatpush1.msra.mxu0 %v5606_v22  ;;  %v5599_v36 = vld [vmem:[%s12104_s1 + $0x1e8] sm:$0xff]  ;;  %v5598_v38 = vld [vmem:[%s12104_s1 + $0x1e0] sm:$0xff]  ;;  %v5597_v40 = vld [vmem:[%s12104_s1 + $0x1d8] sm:$0xff] }
  0x20   : > { %759 = vmatpush1.msra.mxu1 %v366_v23  ;;  %629 = vmatprep.subr.mxu0 %v5605_v24  ;;  %v359_v37 = vld [vmem:[%s12104_s1 + $0x68] sm:$0xff]  ;;  %v358_v39 = vld [vmem:[%s12104_s1 + $0x60] sm:$0xff]  ;;  %v357_v41 = vld [vmem:[%s12104_s1 + $0x58] sm:$0xff] }
  0x21   : > { %760 = vmatprep.subr.mxu1 %v365_v25  ;;  %630 = vmatpush1.msra.mxu0 %v5604_v26  ;;  %v5596_v42 = vld [vmem:[%s12104_s1 + $0x1d0] sm:$0xff]  ;;  %v5595_v44 = vld [vmem:[%s12104_s1 + $0x1c8] sm:$0xff]  ;;  %v5594_v46 = vld [vmem:[%s12104_s1 + $0x1c0] sm:$0xff] }
  0x22   : > { %761 = vmatpush1.msra.mxu1 %v364_v27  ;;  %631 = vmatprep.subr.mxu0 %v5603_v28  ;;  %v356_v43 = vld [vmem:[%s12104_s1 + $0x50] sm:$0xff]  ;;  %v355_v45 = vld [vmem:[%s12104_s1 + $0x48] sm:$0xff]  ;;  %v354_v47 = vld [vmem:[%s12104_s1 + $0x40] sm:$0xff] }
  0x23   : > { %762 = vmatprep.subr.mxu1 %v363_v29  ;;  %632 = vmatpush1.msra.mxu0 %v5602_v30  ;;  %v5593_v48 = vld [vmem:[%s12104_s1 + $0x1b8] sm:$0xff]  ;;  %v5592_v50 = vld [vmem:[%s12104_s1 + $0x1b0] sm:$0xff]  ;;  %v5591_v52 = vld [vmem:[%s12104_s1 + $0x1a8] sm:$0xff] }
  0x24   : > { %763 = vmatpush1.msra.mxu1 %v362_v31  ;;  %633 = vmatprep.subr.mxu0 %v5601_v32  ;;  %v353_v49 = vld [vmem:[%s12104_s1 + $0x38] sm:$0xff]  ;;  %v352_v51 = vld [vmem:[%s12104_s1 + $0x30] sm:$0xff]  ;;  %v351_v53 = vld [vmem:[%s12104_s1 + $0x28] sm:$0xff] }
  0x25   : > { %764 = vmatprep.subr.mxu1 %v361_v33  ;;  %634 = vmatpush1.msra.mxu0 %v5600_v34  ;;  %v5590_v54 = vld [vmem:[%s12104_s1 + $0x1a0] sm:$0xff]  ;;  %v5589_v56 = vld [vmem:[%s12104_s1 + $0x198] sm:$0xff]  ;;  %v5588_v58 = vld [vmem:[%s12104_s1 + $0x190] sm:$0xff] }
  0x26   : > { %765 = vmatpush1.msra.mxu1 %v360_v35  ;;  %635 = vmatprep.subr.mxu0 %v5599_v36  ;;  %v350_v55 = vld [vmem:[%s12104_s1 + $0x20] sm:$0xff]  ;;  %v349_v57 = vld [vmem:[%s12104_s1 + $0x18] sm:$0xff]  ;;  %v348_v59 = vld [vmem:[%s12104_s1 + $0x10] sm:$0xff] }
  0x27   : > { %766 = vmatprep.subr.mxu1 %v359_v37  ;;  %636 = vmatpush1.msra.mxu0 %v5598_v38  ;;  %v5587_v60 = vld [vmem:[%s12104_s1 + $0x188] sm:$0xff]  ;;  %v5586_v62 = vld [vmem:[%s12104_s1 + $0x180] sm:$0xff]  ;;  %v5633_v0 = vld [vmem:[%s12104_s1 + $0x2f8] sm:$0xff] }
  0x28   : > { %767 = vmatpush1.msra.mxu1 %v358_v39  ;;  %637 = vmatprep.subr.mxu0 %v5597_v40  ;;  %v347_v61 = vld [vmem:[%s12104_s1 + $0x8] sm:$0xff]  ;;  %v346_v63 = vld [vmem:[%s12104_s1] sm:$0xff]  ;;  %v393_v1 = vld [vmem:[%s12104_s1 + $0x178] sm:$0xff] }
  0x29   : > { %768 = vmatprep.subr.mxu1 %v357_v41  ;;  %638 = vmatpush1.msra.mxu0 %v5596_v42  ;;  %v5632_v2 = vld [vmem:[%s12104_s1 + $0x2f0] sm:$0xff]  ;;  %v5631_v4 = vld [vmem:[%s12104_s1 + $0x2e8] sm:$0xff]  ;;  %v5630_v6 = vld [vmem:[%s12104_s1 + $0x2e0] sm:$0xff] }
  0x2a   : > { %769 = vmatpush1.msra.mxu1 %v356_v43  ;;  %639 = vmatprep.subr.mxu0 %v5595_v44  ;;  %v392_v3 = vld [vmem:[%s12104_s1 + $0x170] sm:$0xff]  ;;  %v391_v5 = vld [vmem:[%s12104_s1 + $0x168] sm:$0xff]  ;;  %v390_v7 = vld [vmem:[%s12104_s1 + $0x160] sm:$0xff] }
  0x2b   : > { %770 = vmatprep.subr.mxu1 %v355_v45  ;;  %640 = vmatpush1.msra.mxu0 %v5594_v46  ;;  %v5629_v8 = vld [vmem:[%s12104_s1 + $0x2d8] sm:$0xff]  ;;  %v5628_v10 = vld [vmem:[%s12104_s1 + $0x2d0] sm:$0xff]  ;;  %v5627_v12 = vld [vmem:[%s12104_s1 + $0x2c8] sm:$0xff] }
  0x2c   : > { %771 = vmatpush1.msra.mxu1 %v354_v47  ;;  %641 = vmatprep.subr.mxu0 %v5593_v48  ;;  %v389_v9 = vld [vmem:[%s12104_s1 + $0x158] sm:$0xff]  ;;  %v388_v11 = vld [vmem:[%s12104_s1 + $0x150] sm:$0xff]  ;;  %v387_v13 = vld [vmem:[%s12104_s1 + $0x148] sm:$0xff] }
  0x2d   : > { %772 = vmatprep.subr.mxu1 %v353_v49  ;;  %642 = vmatpush1.msra.mxu0 %v5592_v50  ;;  %v5626_v14 = vld [vmem:[%s12104_s1 + $0x2c0] sm:$0xff]  ;;  %v5625_v16 = vld [vmem:[%s12104_s1 + $0x2b8] sm:$0xff]  ;;  %v493_v19 = vld [vmem:[%s7140_s23 + $0x8] sm:$0xfe] }
  0x2e   : > { %773 = vmatpush1.msra.mxu1 %v352_v51  ;;  %643 = vmatprep.subr.mxu0 %v5591_v52  ;;  %v386_v15 = vld [vmem:[%s12104_s1 + $0x140] sm:$0xff]  ;;  %v385_v17 = vld [vmem:[%s12104_s1 + $0x138] sm:$0xff]  ;;  %v5624_v20 = vld [vmem:[%s12104_s1 + $0x2b0] sm:$0xff]  ;;  %v565_v28 = vrot.slane %v493_v19, 1 }
  0x2f   : > { %774 = vmatprep.subr.mxu1 %v351_v53  ;;  %644 = vmatpush1.msra.mxu0 %v5590_v54  ;;  %v7161_v18 = vld [vmem:[%s7140_s23 + $0x18] sm:$0xff]  ;;  %v384_v21 = vld [vmem:[%s12104_s1 + $0x130] sm:$0xff]  ;;  %v5623_v22 = vld [vmem:[%s12104_s1 + $0x2a8] sm:$0xff] }
  0x30   : > { %775 = vmatpush1.msra.mxu1 %v350_v55  ;;  %645 = vmatprep.subr.mxu0 %v5589_v56  ;;  %v383_v23 = vld [vmem:[%s12104_s1 + $0x128] sm:$0xff]  ;;  %v7177_v24 = vld [vmem:[%s7140_s23 + $0x10] sm:$0xff]  ;;  %v492_v25 = vld [vmem:[%s7140_s23] sm:$0xfe]  ;;  %v566_v29 = vrot.slane %v7161_v18, 1 }
  0x31   : > { %776 = vmatprep.subr.mxu1 %v349_v57  ;;  %646 = vmatpush1.msra.mxu0 %v5588_v58  ;;  %v5622_v26 = vld [vmem:[%s12104_s1 + $0x2a0] sm:$0xff]  ;;  %v5621_v30 = vld [vmem:[%s12104_s1 + $0x298] sm:$0xff]  ;;  %v5620_v32 = vld [vmem:[%s12104_s1 + $0x290] sm:$0xff]  ;;  %v562_v34 = vrot.slane %v492_v25, 1  ;;  %v563_v35 = vrot.slane %v7177_v24, 1 }
  0x32   : > { %777 = vmatpush1.msra.mxu1 %v348_v59  ;;  %647 = vmatprep.subr.mxu0 %v5587_v60  ;;  %v382_v27 = vld [vmem:[%s12104_s1 + $0x120] sm:$0xff]  ;;  %v381_v31 = vld [vmem:[%s12104_s1 + $0x118] sm:$0xff]  ;;  %v380_v33 = vld [vmem:[%s12104_s1 + $0x110] sm:$0xff]  ;;  %v7212_v39 = vsel %vm561_vm0, %v565_v28, %v566_v29 }
  0x33   : > { %778 = vmatprep.subr.mxu1 %v347_v61  ;;  %648 = vmatpush1.msra.mxu0 %v5586_v62  ;;  %v5619_v36 = vld [vmem:[%s12104_s1 + $0x288] sm:$0xff]  ;;  %v5618_v38 = vld [vmem:[%s12104_s1 + $0x280] sm:$0xff]  ;;  %v7223_v42 = vsel %vm561_vm0, %v562_v34, %v563_v35  ;;  %v5681_v44 = vld [vmem:[%s12104_s1 + $0x9f8] sm:$0xff] }
  0x34   : > { %779 = vmatpush1.msra.mxu1 %v346_v63  ;;  %665 = vmatprep.subr.mxu0 %v5633_v0  ;;  %v379_v37 = vld [vmem:[%s12104_s1 + $0x108] sm:$0xff]  ;;  %v378_v40 = vld [vmem:[%s12104_s1 + $0x100] sm:$0xff]  ;;  %v5521_v45 = vld [vmem:[%s12104_s1 + $0x878] sm:$0xff] }
  0x35   : > { %796 = vmatprep.subr.mxu1 %v393_v1  ;;  %666 = vmatpush2.msra.mxu0 %v5632_v2  ;;  %v7218_v41 = vld [vmem:[%s7140_s23 + $0x8] sm:$0xff]  ;;  %v7226_v43 = vld [vmem:[%s7140_s23] sm:$0xff]  ;;  %v5680_v46 = vld [vmem:[%s12104_s1 + $0x9f0] sm:$0xff] }
  0x36   : > { %797 = vmatpush2.msra.mxu1 %v392_v3  ;;  %667 = vmatprep.subr.mxu0 %v5631_v4  ;;  %v5520_v47 = vld [vmem:[%s12104_s1 + $0x870] sm:$0xff]  ;;  %v5679_v48 = vld [vmem:[%s12104_s1 + $0x9e8] sm:$0xff]  ;;  %v5678_v50 = vld [vmem:[%s12104_s1 + $0x9e0] sm:$0xff] }
  0x37   : > { %798 = vmatprep.subr.mxu1 %v391_v5  ;;  %668 = vmatpush2.msra.mxu0 %v5630_v6  ;;  %v5519_v49 = vld [vmem:[%s12104_s1 + $0x868] sm:$0xff]  ;;  %v5518_v51 = vld [vmem:[%s12104_s1 + $0x860] sm:$0xff]  ;;  %v5677_v52 = vld [vmem:[%s12104_s1 + $0x9d8] sm:$0xff] }
  0x38   : > { %799 = vmatpush2.msra.mxu1 %v390_v7  ;;  %669 = vmatprep.subr.mxu0 %v5629_v8  ;;  %v5517_v53 = vld [vmem:[%s12104_s1 + $0x858] sm:$0xff]  ;;  %v5676_v54 = vld [vmem:[%s12104_s1 + $0x9d0] sm:$0xff]  ;;  %v5675_v56 = vld [vmem:[%s12104_s1 + $0x9c8] sm:$0xff] }
  0x39   : > { %800 = vmatprep.subr.mxu1 %v389_v9  ;;  %670 = vmatpush2.msra.mxu0 %v5628_v10  ;;  %v5516_v55 = vld [vmem:[%s12104_s1 + $0x850] sm:$0xff]  ;;  %v5515_v57 = vld [vmem:[%s12104_s1 + $0x848] sm:$0xff]  ;;  %v5674_v58 = vld [vmem:[%s12104_s1 + $0x9c0] sm:$0xff] }
  0x3a   : > { %801 = vmatpush2.msra.mxu1 %v388_v11  ;;  %671 = vmatprep.subr.mxu0 %v5627_v12  ;;  %v5514_v59 = vld [vmem:[%s12104_s1 + $0x840] sm:$0xff]  ;;  %v5673_v60 = vld [vmem:[%s12104_s1 + $0x9b8] sm:$0xff]  ;;  %v5672_v62 = vld [vmem:[%s12104_s1 + $0x9b0] sm:$0xff] }
  0x3b   : > { %802 = vmatprep.subr.mxu1 %v387_v13  ;;  %672 = vmatpush2.msra.mxu0 %v5626_v14  ;;  %v5513_v61 = vld [vmem:[%s12104_s1 + $0x838] sm:$0xff]  ;;  %v5512_v63 = vld [vmem:[%s12104_s1 + $0x830] sm:$0xff]  ;;  %v5671_v0 = vld [vmem:[%s12104_s1 + $0x9a8] sm:$0xff] }
  0x3c   : > { %803 = vmatpush2.msra.mxu1 %v386_v15  ;;  %673 = vmatprep.subr.mxu0 %v5625_v16  ;;  %v5511_v1 = vld [vmem:[%s12104_s1 + $0x828] sm:$0xff]  ;;  %v5670_v2 = vld [vmem:[%s12104_s1 + $0x9a0] sm:$0xff]  ;;  %v5669_v5 = vld [vmem:[%s12104_s1 + $0x998] sm:$0xff] }
  0x3d   : > { %804 = vmatprep.subr.mxu1 %v385_v17  ;;  %674 = vmatpush2.msra.mxu0 %v5624_v20  ;;  %v5510_v3 = vld [vmem:[%s12104_s1 + $0x820] sm:$0xff]  ;;  %v7307_v4 = vld [vmem:[%s7140_s23 + $0x28] sm:$0xff]  ;;  %v5509_v6 = vld [vmem:[%s12104_s1 + $0x818] sm:$0xff] }
  0x3e   : > { %805 = vmatpush2.msra.mxu1 %v384_v21  ;;  %675 = vmatprep.subr.mxu0 %v5623_v22  ;;  %v5668_v7 = vld [vmem:[%s12104_s1 + $0x990] sm:$0xff]  ;;  %v7322_v9 = vld [vmem:[%s7140_s23 + $0x20] sm:$0xff]  ;;  %v5667_v10 = vld [vmem:[%s12104_s1 + $0x988] sm:$0xff]  ;;  %v570_v12 = vrot.slane %v7307_v4, 1 }
  0x3f   : > { %806 = vmatprep.subr.mxu1 %v383_v23  ;;  %676 = vmatpush2.msra.mxu0 %v5622_v26  ;;  %v5508_v8 = vld [vmem:[%s12104_s1 + $0x810] sm:$0xff]  ;;  %v5507_v11 = vld [vmem:[%s12104_s1 + $0x808] sm:$0xff]  ;;  %v5666_v13 = vld [vmem:[%s12104_s1 + $0x980] sm:$0xff]  ;;  %v568_v17 = vrot.slane %v7322_v9, 1 }
  0x40   : > { %807 = vmatpush2.msra.mxu1 %v382_v27  ;;  %677 = vmatprep.subr.mxu0 %v5621_v30  ;;  %v5506_v14 = vld [vmem:[%s12104_s1 + $0x800] sm:$0xff]  ;;  %v5665_v15 = vld [vmem:[%s12104_s1 + $0x978] sm:$0xff]  ;;  %v5664_v19 = vld [vmem:[%s12104_s1 + $0x970] sm:$0xff]  ;;  %v7356_v22 = vsel %vm561_vm0, %v566_v29, %v570_v12 }
  0x41   : > { %808 = vmatprep.subr.mxu1 %v381_v31  ;;  %678 = vmatpush2.msra.mxu0 %v5620_v32  ;;  %v5505_v16 = vld [vmem:[%s12104_s1 + $0x7f8] sm:$0xff]  ;;  %v5504_v20 = vld [vmem:[%s12104_s1 + $0x7f0] sm:$0xff]  ;;  %v5663_v23 = vld [vmem:[%s12104_s1 + $0x968] sm:$0xff]  ;;  %v7370_v27 = vsel %vm561_vm0, %v563_v35, %v568_v17 }
  0x42   : > { %809 = vmatpush2.msra.mxu1 %v380_v33  ;;  %679 = vmatprep.subr.mxu0 %v5619_v36  ;;  %v7351_v21 = vld [vmem:[%s7140_s23 + $0x38] sm:$0xff]  ;;  %v5503_v25 = vld [vmem:[%s12104_s1 + $0x7e8] sm:$0xff]  ;;  %v7365_v26 = vld [vmem:[%s7140_s23 + $0x30] sm:$0xff] }
  0x43   : > { %810 = vmatprep.subr.mxu1 %v379_v37  ;;  %680 = vmatpush2.msra.mxu0 %v5618_v38  ;;  %v574_v28 = vrot.slane %v7351_v21, 1  ;;  %v5662_v29 = vld [vmem:[%s12104_s1 + $0x960] sm:$0xff]  ;;  %v5661_v31 = vld [vmem:[%s12104_s1 + $0x958] sm:$0xff]  ;;  %v572_v33 = vrot.slane %v7365_v26, 1  ;;  %v5660_v34 = vld [vmem:[%s12104_s1 + $0x950] sm:$0xff] }
  0x44   : > { %5634 = vmatprep.mubr.msk.f32.mxu0 %vm600_vm1, %v7212_v39  ;;  %811 = vmatpush2.msra.mxu1 %v378_v40  ;;  %v5502_v30 = vld [vmem:[%s12104_s1 + $0x7e0] sm:$0xff]  ;;  %v5501_v32 = vld [vmem:[%s12104_s1 + $0x7d8] sm:$0xff]  ;;  %v5500_v35 = vld [vmem:[%s12104_s1 + $0x7d0] sm:$0xff] }
  0x45   : > { %5642 = vmatprep.mubr.msk.f32.mxu1 %vm600_vm1, %v7218_v41  ;;  %682 = vmatmul.mubr.f32.vlgmr.msra.gmra.mxu0 %v7223_v42  ;;  %v7399_v36 = vld [vmem:[%s7140_s23 + $0x48] sm:$0xff]  ;;  %v7402_v37 = vsel %vm561_vm0, %v570_v12, %v574_v28 }
  0x46   : > { %813 = vmatmul.mubr.f32.vlgmr.msra.gmra.mxu1 %v7226_v43  ;;  %910 = vmatprep.subr.mxu0 %v5681_v44  ;;  %v5659_v38 = vld [vmem:[%s12104_s1 + $0x948] sm:$0xff]  ;;  %v7411_v44 = vld [vmem:[%s7140_s23 + $0x40] sm:$0xff] }
  0x47   : > { %1023 = vmatprep.subr.mxu1 %v5521_v45  ;;  %911 = vmatpush1.msra.mxu0 %v5680_v46  ;;  %v5499_v40 = vld [vmem:[%s12104_s1 + $0x7c8] sm:$0xff]  ;;  %v7414_v45 = vsel %vm561_vm0, %v568_v17, %v572_v33  ;;  %v578_v46 = vrot.slane %v7399_v36, 1 }
  0x48   : > { %1024 = vmatpush1.msra.mxu1 %v5520_v47  ;;  %912 = vmatprep.subr.mxu0 %v5679_v48  ;;  %v5658_v47 = vld [vmem:[%s12104_s1 + $0x940] sm:$0xff] }
  0x49   : > { %1025 = vmatprep.subr.mxu1 %v5519_v49  ;;  %913 = vmatpush1.msra.mxu0 %v5678_v50  ;;  %v5498_v48 = vld [vmem:[%s12104_s1 + $0x7c0] sm:$0xff]  ;;  %v5657_v49 = vld [vmem:[%s12104_s1 + $0x938] sm:$0xff] }
  0x4a   : > { %1026 = vmatpush1.msra.mxu1 %v5518_v51  ;;  %914 = vmatprep.subr.mxu0 %v5677_v52  ;;  %v5497_v50 = vld [vmem:[%s12104_s1 + $0x7b8] sm:$0xff]  ;;  %v576_v51 = vrot.slane %v7411_v44, 1  ;;  %v5656_v52 = vld [vmem:[%s12104_s1 + $0x930] sm:$0xff] }
  0x4b   : > { %1027 = vmatprep.subr.mxu1 %v5517_v53  ;;  %915 = vmatpush1.msra.mxu0 %v5676_v54  ;;  %v5496_v53 = vld [vmem:[%s12104_s1 + $0x7b0] sm:$0xff]  ;;  %v7443_v54 = vld [vmem:[%s7140_s23 + $0x58] sm:$0xff] }
  0x4c   : > { %1028 = vmatpush1.msra.mxu1 %v5516_v55  ;;  %916 = vmatprep.subr.mxu0 %v5675_v56  ;;  %v7446_v55 = vsel %vm561_vm0, %v574_v28, %v578_v46  ;;  %v5655_v56 = vld [vmem:[%s12104_s1 + $0x928] sm:$0xff] }
  0x4d   : > { %1029 = vmatprep.subr.mxu1 %v5515_v57  ;;  %917 = vmatpush1.msra.mxu0 %v5674_v58  ;;  %v5495_v57 = vld [vmem:[%s12104_s1 + $0x7a8] sm:$0xff]  ;;  %v7455_v58 = vld [vmem:[%s7140_s23 + $0x50] sm:$0xff] }
  0x4e   : > { %1030 = vmatpush1.msra.mxu1 %v5514_v59  ;;  %918 = vmatprep.subr.mxu0 %v5673_v60  ;;  %v7458_v59 = vsel %vm561_vm0, %v572_v33, %v576_v51  ;;  %v582_v60 = vrot.slane %v7443_v54, 1  ;;  %v5695_v28 = vld [vmem:[%s12104_s1 + $0xa68] sm:$0xff]  ;;  %v5694_v33 = vld [vmem:[%s12104_s1 + $0xa60] sm:$0xff] }
  0x4f   : > { %1031 = vmatprep.subr.mxu1 %v5513_v61  ;;  %919 = vmatpush1.msra.mxu0 %v5672_v62  ;;  %v5654_v61 = vld [vmem:[%s12104_s1 + $0x920] sm:$0xff] }
  0x50   : > { %1032 = vmatpush1.msra.mxu1 %v5512_v63  ;;  %920 = vmatprep.subr.mxu0 %v5671_v0  ;;  %v5494_v62 = vld [vmem:[%s12104_s1 + $0x7a0] sm:$0xff]  ;;  %v5653_v63 = vld [vmem:[%s12104_s1 + $0x918] sm:$0xff] }
  0x51   : > { %1033 = vmatprep.subr.mxu1 %v5511_v1  ;;  %921 = vmatpush1.msra.mxu0 %v5670_v2  ;;  %v5493_v0 = vld [vmem:[%s12104_s1 + $0x798] sm:$0xff]  ;;  %v580_v1 = vrot.slane %v7455_v58, 1  ;;  %v5652_v2 = vld [vmem:[%s12104_s1 + $0x910] sm:$0xff] }
  0x52   : > { %1034 = vmatpush1.msra.mxu1 %v5510_v3  ;;  %922 = vmatprep.subr.mxu0 %v5669_v5  ;;  %v5492_v3 = vld [vmem:[%s12104_s1 + $0x790] sm:$0xff]  ;;  %v7487_v5 = vld [vmem:[%s7140_s23 + $0x68] sm:$0xff] }
  0x53   : > { %1035 = vmatprep.subr.mxu1 %v5509_v6  ;;  %923 = vmatpush1.msra.mxu0 %v5668_v7  ;;  %v7490_v6 = vsel %vm561_vm0, %v578_v46, %v582_v60  ;;  %v5651_v7 = vld [vmem:[%s12104_s1 + $0x908] sm:$0xff]  ;;  %v586_v12 = vrot.slane %v7487_v5, 1  ;;  %v5692_v46 = vld [vmem:[%s12104_s1 + $0xa50] sm:$0xff] }
  0x54   : > { %1036 = vmatpush1.msra.mxu1 %v5508_v8  ;;  %924 = vmatprep.subr.mxu0 %v5667_v10  ;;  %v5491_v8 = vld [vmem:[%s12104_s1 + $0x788] sm:$0xff]  ;;  %v7499_v10 = vld [vmem:[%s7140_s23 + $0x60] sm:$0xff] }
  0x55   : > { %1037 = vmatprep.subr.mxu1 %v5507_v11  ;;  %925 = vmatpush1.msra.mxu0 %v5666_v13  ;;  %v7502_v11 = vsel %vm561_vm0, %v576_v51, %v580_v1  ;;  %v5650_v13 = vld [vmem:[%s12104_s1 + $0x900] sm:$0xff]  ;;  %v584_v17 = vrot.slane %v7499_v10, 1 }
  0x56   : > { %1038 = vmatpush1.msra.mxu1 %v5506_v14  ;;  %926 = vmatprep.subr.mxu0 %v5665_v15  ;;  %v5490_v14 = vld [vmem:[%s12104_s1 + $0x780] sm:$0xff]  ;;  %v5697_v15 = vld [vmem:[%s12104_s1 + $0xa78] sm:$0xff] }
  0x57   : > { %1039 = vmatprep.subr.mxu1 %v5505_v16  ;;  %927 = vmatpush1.msra.mxu0 %v5664_v19  ;;  %v5537_v16 = vld [vmem:[%s12104_s1 + $0x8f8] sm:$0xff]  ;;  %v5696_v19 = vld [vmem:[%s12104_s1 + $0xa70] sm:$0xff] }
  0x58   : > { %1040 = vmatpush1.msra.mxu1 %v5504_v20  ;;  %5635 = vmatprep.mubr.msk.f32.mxu0 %vm600_vm1, %v7356_v22  ;;  %v5536_v20 = vld [vmem:[%s12104_s1 + $0x8f0] sm:$0xff] }
  0x59   : > { %5643 = vmatprep.mubr.msk.f32.mxu1 %vm600_vm1, %v7161_v18  ;;  %928 = vmatprep.subr.mxu0 %v5663_v23  ;;  %v495_v23 = vld [vmem:[%s7140_s23 + $0x78] sm:$0x1f] }
  0x5a   : > { %1041 = vmatprep.subr.mxu1 %v5503_v25  ;;  %688 = vmatmul.mubr.f32.gmra.mxu0 %v7370_v27  ;;  %v7532_v25 = vsel %vm561_vm0, %v582_v60, %v586_v12  ;;  %v5688_v60 = vld [vmem:[%s12104_s1 + $0xa30] sm:$0xff] }
  0x5b   : > { %819 = vmatmul.mubr.f32.gmra.mxu1 %v7177_v24  ;;  %929 = vmatpush1.msra.mxu0 %v5662_v29  ;;  %v5535_v29 = vld [vmem:[%s12104_s1 + $0x8e8] sm:$0xff] }
  0x5c   : > { %1042 = vmatpush1.msra.mxu1 %v5502_v30  ;;  %930 = vmatprep.subr.mxu0 %v5661_v31  ;;  %v494_v30 = vld [vmem:[%s7140_s23 + $0x70] sm:$0x1f]  ;;  %v7542_v31 = vsel %vm561_vm0, %v580_v1, %v584_v17 }
  0x5d   : > { %1043 = vmatprep.subr.mxu1 %v5501_v32  ;;  %931 = vmatpush1.msra.mxu0 %v5660_v34  ;;  %v7544_v32 = vrot.slane %v495_v23, 1  ;;  %v5534_v34 = vld [vmem:[%s12104_s1 + $0x8e0] sm:$0xff]  ;;  %v7620_v1 = vld [vmem:[%s7140_s23 + $0x70] sm:$0xf] }
  0x5e   : > { %1044 = vmatpush1.msra.mxu1 %v5500_v35  ;;  %5636 = vmatprep.mubr.msk.f32.mxu0 %vm600_vm1, %v7402_v37  ;;  %v5693_v35 = vld [vmem:[%s12104_s1 + $0xa58] sm:$0xff]  ;;  %v5744_v23 = vld [vmem:[%s12104_s1 + $0x1170] sm:$0xff] }
  0x5f   : > { %5644 = vmatprep.mubr.msk.f32.mxu1 %vm600_vm1, %v7307_v4  ;;  %932 = vmatprep.subr.mxu0 %v5659_v38  ;;  %v5533_v38 = vld [vmem:[%s12104_s1 + $0x8d8] sm:$0xff] }
  0x60   : > { %1045 = vmatprep.subr.mxu1 %v5499_v40  ;;  %694 = vmatmul.mubr.f32.gmra.mxu0 %v7414_v45  ;;  %v7562_v40 = vrot.slane %v494_v30, 1  ;;  %v5567_v30 = vld [vmem:[%s12104_s1 + $0xfe8] sm:$0xff] }
  0x61   : > { %825 = vmatmul.mubr.f32.gmra.mxu1 %v7322_v9  ;;  %933 = vmatpush1.msra.mxu0 %v5658_v47  ;;  %v5532_v47 = vld [vmem:[%s12104_s1 + $0x8d0] sm:$0xff] }
  0x62   : > { %1046 = vmatpush1.msra.mxu1 %v5498_v48  ;;  %934 = vmatprep.subr.mxu0 %v5657_v49  ;;  %v7574_v48 = vsel %vm561_vm0, %v586_v12, %v7544_v32  ;;  %v5691_v49 = vld [vmem:[%s12104_s1 + $0xa48] sm:$0xff]  ;;  %v7584_v51 = vsel %vm561_vm0, %v584_v17, %v7562_v40  ;;  %v5684_v12 = vld [vmem:[%s12104_s1 + $0xa10] sm:$0xff]  ;;  %v5522_v17 = vld [vmem:[%s12104_s1 + $0x880] sm:$0xff] }
  0x63   : > { %1047 = vmatprep.subr.mxu1 %v5497_v50  ;;  %935 = vmatpush1.msra.mxu0 %v5656_v52  ;;  %v5531_v50 = vld [vmem:[%s12104_s1 + $0x8c8] sm:$0xff]  ;;  %v5690_v52 = vld [vmem:[%s12104_s1 + $0xa40] sm:$0xff] }
  0x64   : > { %1048 = vmatpush1.msra.mxu1 %v5496_v53  ;;  %5637 = vmatprep.mubr.msk.f32.mxu0 %vm600_vm1, %v7446_v55  ;;  %v5530_v53 = vld [vmem:[%s12104_s1 + $0x8c0] sm:$0xff] }
  0x65   : > { %5645 = vmatprep.mubr.msk.f32.mxu1 %vm600_vm1, %v7351_v21  ;;  %936 = vmatprep.subr.mxu0 %v5655_v56  ;;  %v5689_v56 = vld [vmem:[%s12104_s1 + $0xa38] sm:$0xff] }
  0x66   : > { %1049 = vmatprep.subr.mxu1 %v5495_v57  ;;  %700 = vmatmul.mubr.f32.gmra.mxu0 %v7458_v59  ;;  %v5529_v57 = vld [vmem:[%s12104_s1 + $0x8b8] sm:$0xff] }
  0x67   : > { %831 = vmatmul.mubr.f32.gmra.mxu1 %v7365_v26  ;;  %937 = vmatpush1.msra.mxu0 %v5654_v61  ;;  %v5528_v61 = vld [vmem:[%s12104_s1 + $0x8b0] sm:$0xff] }
  0x68   : > { %1050 = vmatpush1.msra.mxu1 %v5494_v62  ;;  %938 = vmatprep.subr.mxu0 %v5653_v63  ;;  %v7611_v62 = vld [vmem:[%s7140_s23 + $0x78] sm:$0xf]  ;;  %v5687_v63 = vld [vmem:[%s12104_s1 + $0xa28] sm:$0xff] }
  0x69   : > { %1051 = vmatprep.subr.mxu1 %v5493_v0  ;;  %939 = vmatpush1.msra.mxu0 %v5652_v2  ;;  %v5527_v0 = vld [vmem:[%s12104_s1 + $0x8a8] sm:$0xff]  ;;  %v5686_v2 = vld [vmem:[%s12104_s1 + $0xa20] sm:$0xff] }
  0x6a   : > { %1052 = vmatpush1.msra.mxu1 %v5492_v3  ;;  %5638 = vmatprep.mubr.msk.f32.mxu0 %vm600_vm1, %v7490_v6  ;;  %v5526_v3 = vld [vmem:[%s12104_s1 + $0x8a0] sm:$0xff] }
  0x6b   : > { %5646 = vmatprep.mubr.msk.f32.mxu1 %vm600_vm1, %v7399_v36  ;;  %940 = vmatprep.subr.mxu0 %v5651_v7  ;;  %v5685_v7 = vld [vmem:[%s12104_s1 + $0xa18] sm:$0xff] }
  0x6c   : > { %1053 = vmatprep.subr.mxu1 %v5491_v8  ;;  %706 = vmatmul.mubr.f32.gmra.mxu0 %v7502_v11  ;;  %v5525_v8 = vld [vmem:[%s12104_s1 + $0x898] sm:$0xff] }
  0x6d   : > { %837 = vmatmul.mubr.f32.gmra.mxu1 %v7411_v44  ;;  %941 = vmatpush1.msra.mxu0 %v5650_v13  ;;  %v5524_v13 = vld [vmem:[%s12104_s1 + $0x890] sm:$0xff] }
  0x6e   : > { %1054 = vmatpush1.msra.mxu1 %v5490_v14  ;;  %958 = vmatprep.subr.mxu0 %v5697_v15  ;;  %v5683_v14 = vld [vmem:[%s12104_s1 + $0xa08] sm:$0xff] }
  0x6f   : > { %1071 = vmatprep.subr.mxu1 %v5537_v16  ;;  %959 = vmatpush2.msra.mxu0 %v5696_v19  ;;  %v5523_v15 = vld [vmem:[%s12104_s1 + $0x888] sm:$0xff]  ;;  %v5682_v16 = vld [vmem:[%s12104_s1 + $0xa00] sm:$0xff]  ;;  %v5745_v19 = vld [vmem:[%s12104_s1 + $0x1178] sm:$0xff] }
  0x70   : > { %1072 = vmatpush2.msra.mxu1 %v5536_v20  ;;  %5639 = vmatprep.mubr.msk.f32.mxu0 %vm600_vm1, %v7532_v25  ;;  %v5569_v20 = vld [vmem:[%s12104_s1 + $0xff8] sm:$0xff] }
  0x71   : > { %5647 = vmatprep.mubr.msk.f32.mxu1 %vm600_vm1, %v7443_v54  ;;  %960 = vmatprep.subr.mxu0 %v5695_v28  ;;  %v5568_v28 = vld [vmem:[%s12104_s1 + $0xff0] sm:$0xff] }
  0x72   : > { %1073 = vmatprep.subr.mxu1 %v5535_v29  ;;  %712 = vmatmul.mubr.f32.gmra.mxu0 %v7542_v31  ;;  %v5743_v29 = vld [vmem:[%s12104_s1 + $0x1168] sm:$0xff] }
  0x73   : > { %843 = vmatmul.mubr.f32.gmra.mxu1 %v7455_v58  ;;  %961 = vmatpush2.msra.mxu0 %v5694_v33  ;;  %v5742_v33 = vld [vmem:[%s12104_s1 + $0x1160] sm:$0xff] }
  0x74   : > { %1074 = vmatpush2.msra.mxu1 %v5534_v34  ;;  %962 = vmatprep.subr.mxu0 %v5693_v35  ;;  %v5566_v34 = vld [vmem:[%s12104_s1 + $0xfe0] sm:$0xff]  ;;  %v5741_v35 = vld [vmem:[%s12104_s1 + $0x1158] sm:$0xff] }
  0x75   : > { %1075 = vmatprep.subr.mxu1 %v5533_v38  ;;  %963 = vmatpush2.msra.mxu0 %v5692_v46  ;;  %v5565_v38 = vld [vmem:[%s12104_s1 + $0xfd8] sm:$0xff]  ;;  %v5740_v46 = vld [vmem:[%s12104_s1 + $0x1150] sm:$0xff] }
  0x76   : > { %1076 = vmatpush2.msra.mxu1 %v5532_v47  ;;  %5640 = vmatprep.mubr.msk.f32.mxu0 %vm600_vm1, %v7574_v48  ;;  %v5564_v47 = vld [vmem:[%s12104_s1 + $0xfd0] sm:$0xff] }
  0x77   : > { %5648 = vmatprep.mubr.msk.f32.mxu1 %vm600_vm1, %v7487_v5  ;;  %964 = vmatprep.subr.mxu0 %v5691_v49  ;;  %v5739_v49 = vld [vmem:[%s12104_s1 + $0x1148] sm:$0xff] }
  0x78   : > { %1077 = vmatprep.subr.mxu1 %v5531_v50  ;;  %718 = vmatmul.mubr.f32.gmra.mxu0 %v7584_v51  ;;  %v5563_v50 = vld [vmem:[%s12104_s1 + $0xfc8] sm:$0xff] }
  0x79   : > { %849 = vmatmul.mubr.f32.gmra.mxu1 %v7499_v10  ;;  %965 = vmatpush2.msra.mxu0 %v5690_v52  ;;  %v5738_v52 = vld [vmem:[%s12104_s1 + $0x1140] sm:$0xff] }
  0x7a   : > { %1078 = vmatpush2.msra.mxu1 %v5530_v53  ;;  %966 = vmatprep.subr.mxu0 %v5689_v56  ;;  %v5562_v53 = vld [vmem:[%s12104_s1 + $0xfc0] sm:$0xff]  ;;  %v5737_v56 = vld [vmem:[%s12104_s1 + $0x1138] sm:$0xff] }
  0x7b   : > { %1079 = vmatprep.subr.mxu1 %v5529_v57  ;;  %967 = vmatpush2.msra.mxu0 %v5688_v60  ;;  %v5561_v57 = vld [vmem:[%s12104_s1 + $0xfb8] sm:$0xff]  ;;  %v5736_v60 = vld [vmem:[%s12104_s1 + $0x1130] sm:$0xff] }
  0x7c   : > { %1080 = vmatpush2.msra.mxu1 %v5528_v61  ;;  %5641 = vmatprep.mubr.msk.f32.mxu0 %vm600_vm1, %v7544_v32  ;;  %v5560_v61 = vld [vmem:[%s12104_s1 + $0xfb0] sm:$0xff] }
  0x7d   : > { %5649 = vmatprep.mubr.msk.f32.mxu1 %vm600_vm1, %v7611_v62  ;;  %968 = vmatprep.subr.mxu0 %v5687_v63  ;;  %v5735_v63 = vld [vmem:[%s12104_s1 + $0x1128] sm:$0xff] }
  0x7e   : > { %1081 = vmatprep.subr.mxu1 %v5527_v0  ;;  %724 = vmatmul.mubr.f32.gmra.mxu0 %v7562_v40  ;;  %v5559_v0 = vld [vmem:[%s12104_s1 + $0xfa8] sm:$0xff] }
  0x7f   : > { %855 = vmatmul.mubr.f32.gmra.mxu1 %v7620_v1  ;;  %969 = vmatpush2.msra.mxu0 %v5686_v2  ;;  %v5734_v2 = vld [vmem:[%s12104_s1 + $0x1120] sm:$0xff] }
  0x80   : > { %1082 = vmatpush2.msra.mxu1 %v5526_v3  ;;  %970 = vmatprep.subr.mxu0 %v5685_v7  ;;  %v5558_v3 = vld [vmem:[%s12104_s1 + $0xfa0] sm:$0xff]  ;;  %v5733_v7 = vld [vmem:[%s12104_s1 + $0x1118] sm:$0xff] }
  0x81   : > { %1083 = vmatprep.subr.mxu1 %v5525_v8  ;;  %971 = vmatpush2.msra.mxu0 %v5684_v12  ;;  %v5557_v8 = vld [vmem:[%s12104_s1 + $0xf98] sm:$0xff]  ;;  %v5732_v12 = vld [vmem:[%s12104_s1 + $0x1110] sm:$0xff] }
  0x82   : > { %1084 = vmatpush2.msra.mxu1 %v5524_v13  ;;  %972 = vmatprep.subr.mxu0 %v5683_v14  ;;  %v5556_v13 = vld [vmem:[%s12104_s1 + $0xf90] sm:$0xff]  ;;  %v5731_v14 = vld [vmem:[%s12104_s1 + $0x1108] sm:$0xff] }
  0x83   : > { %1085 = vmatprep.subr.mxu1 %v5523_v15  ;;  %973 = vmatpush2.msra.mxu0 %v5682_v16  ;;  %v5555_v15 = vld [vmem:[%s12104_s1 + $0xf88] sm:$0xff]  ;;  %v5730_v16 = vld [vmem:[%s12104_s1 + $0x1100] sm:$0xff] }
  0x84   : > { %5698 = vmatprep.mubr.msk.f32.mxu0 %vm600_vm1, %v7212_v39  ;;  %1086 = vmatpush2.msra.mxu1 %v5522_v17  ;;  %v5554_v17 = vld [vmem:[%s12104_s1 + $0xf80] sm:$0xff] }
  0x85   : > { %5706 = vmatprep.mubr.msk.f32.mxu1 %vm600_vm1, %v7218_v41  ;;  %975 = vmatmul.mubr.f32.vlgmr.msra.gmra.mxu0 %v7223_v42 }
  0x86   : > { %1088 = vmatmul.mubr.f32.vlgmr.msra.gmra.mxu1 %v7226_v43  ;;  %1185 = vmatprep.subr.mxu0 %v5745_v19  ;;  %v5729_v19 = vld [vmem:[%s12104_s1 + $0x10f8] sm:$0xff] }
  0x87   : > { %1298 = vmatprep.subr.mxu1 %v5569_v20  ;;  %1186 = vmatpush1.msra.mxu0 %v5744_v23  ;;  %v5553_v20 = vld [vmem:[%s12104_s1 + $0xf78] sm:$0xff]  ;;  %v5728_v23 = vld [vmem:[%s12104_s1 + $0x10f0] sm:$0xff] }
  0x88   : > { %1299 = vmatpush1.msra.mxu1 %v5568_v28  ;;  %1187 = vmatprep.subr.mxu0 %v5743_v29  ;;  %v5552_v28 = vld [vmem:[%s12104_s1 + $0xf70] sm:$0xff]  ;;  %v5727_v29 = vld [vmem:[%s12104_s1 + $0x10e8] sm:$0xff] }
  0x89   : > { %1300 = vmatprep.subr.mxu1 %v5567_v30  ;;  %1188 = vmatpush1.msra.mxu0 %v5742_v33  ;;  %v5551_v30 = vld [vmem:[%s12104_s1 + $0xf68] sm:$0xff]  ;;  %v5726_v33 = vld [vmem:[%s12104_s1 + $0x10e0] sm:$0xff] }
  0x8a   : > { %1301 = vmatpush1.msra.mxu1 %v5566_v34  ;;  %1189 = vmatprep.subr.mxu0 %v5741_v35  ;;  %v5550_v34 = vld [vmem:[%s12104_s1 + $0xf60] sm:$0xff]  ;;  %v5725_v35 = vld [vmem:[%s12104_s1 + $0x10d8] sm:$0xff] }
  0x8b   : > { %1302 = vmatprep.subr.mxu1 %v5565_v38  ;;  %1190 = vmatpush1.msra.mxu0 %v5740_v46  ;;  %v5549_v38 = vld [vmem:[%s12104_s1 + $0xf58] sm:$0xff]  ;;  %v5548_v46 = vld [vmem:[%s12104_s1 + $0xf50] sm:$0xff] }
  0x8c   : > { %1303 = vmatpush1.msra.mxu1 %v5564_v47  ;;  %1191 = vmatprep.subr.mxu0 %v5739_v49  ;;  %v5723_v47 = vld [vmem:[%s12104_s1 + $0x10c8] sm:$0xff]  ;;  %v5722_v49 = vld [vmem:[%s12104_s1 + $0x10c0] sm:$0xff] }
  0x8d   : > { %1304 = vmatprep.subr.mxu1 %v5563_v50  ;;  %1192 = vmatpush1.msra.mxu0 %v5738_v52  ;;  %v5546_v50 = vld [vmem:[%s12104_s1 + $0xf40] sm:$0xff]  ;;  %v5721_v52 = vld [vmem:[%s12104_s1 + $0x10b8] sm:$0xff] }
  0x8e   : > { %1305 = vmatpush1.msra.mxu1 %v5562_v53  ;;  %1193 = vmatprep.subr.mxu0 %v5737_v56  ;;  %v5545_v53 = vld [vmem:[%s12104_s1 + $0xf38] sm:$0xff]  ;;  %v5544_v56 = vld [vmem:[%s12104_s1 + $0xf30] sm:$0xff] }
  0x8f   : > { %1306 = vmatprep.subr.mxu1 %v5561_v57  ;;  %1194 = vmatpush1.msra.mxu0 %v5736_v60  ;;  %v5719_v57 = vld [vmem:[%s12104_s1 + $0x10a8] sm:$0xff]  ;;  %v5718_v60 = vld [vmem:[%s12104_s1 + $0x10a0] sm:$0xff] }
  0x90   : > { %1307 = vmatpush1.msra.mxu1 %v5560_v61  ;;  %1195 = vmatprep.subr.mxu0 %v5735_v63  ;;  %v5542_v61 = vld [vmem:[%s12104_s1 + $0xf20] sm:$0xff]  ;;  %v5717_v63 = vld [vmem:[%s12104_s1 + $0x1098] sm:$0xff] }
  0x91   : > { %1308 = vmatprep.subr.mxu1 %v5559_v0  ;;  %1196 = vmatpush1.msra.mxu0 %v5734_v2  ;;  %v5541_v0 = vld [vmem:[%s12104_s1 + $0xf18] sm:$0xff]  ;;  %v5540_v2 = vld [vmem:[%s12104_s1 + $0xf10] sm:$0xff] }
  0x92   : > { %1309 = vmatpush1.msra.mxu1 %v5558_v3  ;;  %1197 = vmatprep.subr.mxu0 %v5733_v7  ;;  %v5715_v3 = vld [vmem:[%s12104_s1 + $0x1088] sm:$0xff]  ;;  %v5714_v7 = vld [vmem:[%s12104_s1 + $0x1080] sm:$0xff] }
  0x93   : > { %1310 = vmatprep.subr.mxu1 %v5557_v8  ;;  %1198 = vmatpush1.msra.mxu0 %v5732_v12  ;;  %v5538_v8 = vld [vmem:[%s12104_s1 + $0xf00] sm:$0xff]  ;;  %v5761_v12 = vld [vmem:[%s12104_s1 + $0x11f8] sm:$0xff] }
  0x94   : > { %1311 = vmatpush1.msra.mxu1 %v5556_v13  ;;  %1199 = vmatprep.subr.mxu0 %v5731_v14  ;;  %v5585_v13 = vld [vmem:[%s12104_s1 + $0x1078] sm:$0xff]  ;;  %v5584_v14 = vld [vmem:[%s12104_s1 + $0x1070] sm:$0xff] }
  0x95   : > { %1312 = vmatprep.subr.mxu1 %v5555_v15  ;;  %1200 = vmatpush1.msra.mxu0 %v5730_v16  ;;  %v5759_v15 = vld [vmem:[%s12104_s1 + $0x11e8] sm:$0xff]  ;;  %v5758_v16 = vld [vmem:[%s12104_s1 + $0x11e0] sm:$0xff] }
  0x96   : > { %1313 = vmatpush1.msra.mxu1 %v5554_v17  ;;  %1201 = vmatprep.subr.mxu0 %v5729_v19  ;;  %v5582_v17 = vld [vmem:[%s12104_s1 + $0x1060] sm:$0xff]  ;;  %v5757_v19 = vld [vmem:[%s12104_s1 + $0x11d8] sm:$0xff] }
  0x97   : > { %1314 = vmatprep.subr.mxu1 %v5553_v20  ;;  %1202 = vmatpush1.msra.mxu0 %v5728_v23  ;;  %v5581_v20 = vld [vmem:[%s12104_s1 + $0x1058] sm:$0xff]  ;;  %v5580_v23 = vld [vmem:[%s12104_s1 + $0x1050] sm:$0xff] }
  0x98   : > { %1315 = vmatpush1.msra.mxu1 %v5552_v28  ;;  %5699 = vmatprep.mubr.msk.f32.mxu0 %vm600_vm1, %v7356_v22  ;;  %v5755_v28 = vld [vmem:[%s12104_s1 + $0x11c8] sm:$0xff] }
  0x99   : > { %5707 = vmatprep.mubr.msk.f32.mxu1 %vm600_vm1, %v7161_v18  ;;  %1203 = vmatprep.subr.mxu0 %v5727_v29  ;;  %v5724_v18 = vld [vmem:[%s12104_s1 + $0x10d0] sm:$0xff]  ;;  %v5754_v29 = vld [vmem:[%s12104_s1 + $0x11c0] sm:$0xff] }
  0x9a   : > { %1316 = vmatprep.subr.mxu1 %v5551_v30  ;;  %981 = vmatmul.mubr.f32.gmra.mxu0 %v7370_v27  ;;  %v5578_v30 = vld [vmem:[%s12104_s1 + $0x1040] sm:$0xff] }
  0x9b   : > { %1094 = vmatmul.mubr.f32.gmra.mxu1 %v7177_v24  ;;  %1204 = vmatpush1.msra.mxu0 %v5726_v33  ;;  %v5547_v24 = vld [vmem:[%s12104_s1 + $0xf48] sm:$0xff]  ;;  %v5753_v33 = vld [vmem:[%s12104_s1 + $0x11b8] sm:$0xff] }
  0x9c   : > { %1317 = vmatpush1.msra.mxu1 %v5550_v34  ;;  %1205 = vmatprep.subr.mxu0 %v5725_v35  ;;  %v5577_v34 = vld [vmem:[%s12104_s1 + $0x1038] sm:$0xff]  ;;  %v5576_v35 = vld [vmem:[%s12104_s1 + $0x1030] sm:$0xff] }
  0x9d   : > { %1318 = vmatprep.subr.mxu1 %v5549_v38  ;;  %1206 = vmatpush1.msra.mxu0 %v5724_v18  ;;  %v5751_v38 = vld [vmem:[%s12104_s1 + $0x11a8] sm:$0xff]  ;;  %v5750_v18 = vld [vmem:[%s12104_s1 + $0x11a0] sm:$0xff] }
  0x9e   : > { %1319 = vmatpush1.msra.mxu1 %v5548_v46  ;;  %5700 = vmatprep.mubr.msk.f32.mxu0 %vm600_vm1, %v7402_v37  ;;  %v5574_v46 = vld [vmem:[%s12104_s1 + $0x1020] sm:$0xff] }
  0x9f   : > { %5708 = vmatprep.mubr.msk.f32.mxu1 %vm600_vm1, %v7307_v4  ;;  %1207 = vmatprep.subr.mxu0 %v5723_v47  ;;  %v5720_v4 = vld [vmem:[%s12104_s1 + $0x10b0] sm:$0xff]  ;;  %v5749_v47 = vld [vmem:[%s12104_s1 + $0x1198] sm:$0xff] }
  0xa0   : > { %1320 = vmatprep.subr.mxu1 %v5547_v24  ;;  %987 = vmatmul.mubr.f32.gmra.mxu0 %v7414_v45  ;;  %v5573_v24 = vld [vmem:[%s12104_s1 + $0x1018] sm:$0xff] }
  0xa1   : > { %1100 = vmatmul.mubr.f32.gmra.mxu1 %v7322_v9  ;;  %1208 = vmatpush1.msra.mxu0 %v5722_v49  ;;  %v5543_v9 = vld [vmem:[%s12104_s1 + $0xf28] sm:$0xff]  ;;  %v5748_v49 = vld [vmem:[%s12104_s1 + $0x1190] sm:$0xff] }
  0xa2   : > { %1321 = vmatpush1.msra.mxu1 %v5546_v50  ;;  %1209 = vmatprep.subr.mxu0 %v5721_v52  ;;  %v5572_v50 = vld [vmem:[%s12104_s1 + $0x1010] sm:$0xff]  ;;  %v5747_v52 = vld [vmem:[%s12104_s1 + $0x1188] sm:$0xff] }
  0xa3   : > { %1322 = vmatprep.subr.mxu1 %v5545_v53  ;;  %1210 = vmatpush1.msra.mxu0 %v5720_v4  ;;  %v5571_v53 = vld [vmem:[%s12104_s1 + $0x1008] sm:$0xff]  ;;  %v5746_v4 = vld [vmem:[%s12104_s1 + $0x1180] sm:$0xff] }
  0xa4   : > { %1323 = vmatpush1.msra.mxu1 %v5544_v56  ;;  %5701 = vmatprep.mubr.msk.f32.mxu0 %vm600_vm1, %v7446_v55  ;;  %v5570_v56 = vld [vmem:[%s12104_s1 + $0x1000] sm:$0xff] }
  0xa5   : > { %5709 = vmatprep.mubr.msk.f32.mxu1 %vm600_vm1, %v7351_v21  ;;  %1211 = vmatprep.subr.mxu0 %v5719_v57  ;;  %v5716_v21 = vld [vmem:[%s12104_s1 + $0x1090] sm:$0xff]  ;;  %v5809_v57 = vld [vmem:[%s12104_s1 + $0x3f8] sm:$0xff] }
  0xa6   : > { %1324 = vmatprep.subr.mxu1 %v5543_v9  ;;  %993 = vmatmul.mubr.f32.gmra.mxu0 %v7458_v59  ;;  %v5865_v9 = vld [vmem:[%s12104_s1 + $0xb78] sm:$0xff] }
  0xa7   : > { %1106 = vmatmul.mubr.f32.gmra.mxu1 %v7365_v26  ;;  %1212 = vmatpush1.msra.mxu0 %v5718_v60  ;;  %v5539_v26 = vld [vmem:[%s12104_s1 + $0xf08] sm:$0xff]  ;;  %v5808_v60 = vld [vmem:[%s12104_s1 + $0x3f0] sm:$0xff] }
  0xa8   : > { %1325 = vmatpush1.msra.mxu1 %v5542_v61  ;;  %1213 = vmatprep.subr.mxu0 %v5717_v63  ;;  %v5807_v61 = vld [vmem:[%s12104_s1 + $0x3e8] sm:$0xff]  ;;  %v5806_v63 = vld [vmem:[%s12104_s1 + $0x3e0] sm:$0xff] }
  0xa9   : > { %1326 = vmatprep.subr.mxu1 %v5541_v0  ;;  %1214 = vmatpush1.msra.mxu0 %v5716_v21  ;;  %v5861_v0 = vld [vmem:[%s12104_s1 + $0xb58] sm:$0xff]  ;;  %v5804_v21 = vld [vmem:[%s12104_s1 + $0x3d0] sm:$0xff] }
  0xaa   : > { %1327 = vmatpush1.msra.mxu1 %v5540_v2  ;;  %5702 = vmatprep.mubr.msk.f32.mxu0 %vm600_vm1, %v7490_v6  ;;  %v5860_v2 = vld [vmem:[%s12104_s1 + $0xb50] sm:$0xff] }
  0xab   : > { %5710 = vmatprep.mubr.msk.f32.mxu1 %vm600_vm1, %v7399_v36  ;;  %1215 = vmatprep.subr.mxu0 %v5715_v3  ;;  %v5760_v36 = vld [vmem:[%s12104_s1 + $0x11f0] sm:$0xff]  ;;  %v5803_v3 = vld [vmem:[%s12104_s1 + $0x3c8] sm:$0xff] }
  0xac   : > { %1328 = vmatprep.subr.mxu1 %v5539_v26  ;;  %999 = vmatmul.mubr.f32.gmra.mxu0 %v7502_v11  ;;  %v5859_v26 = vld [vmem:[%s12104_s1 + $0xb48] sm:$0xff] }
  0xad   : > { %1112 = vmatmul.mubr.f32.gmra.mxu1 %v7411_v44  ;;  %1216 = vmatpush1.msra.mxu0 %v5714_v7  ;;  %v5583_v44 = vld [vmem:[%s12104_s1 + $0x1068] sm:$0xff]  ;;  %v5802_v7 = vld [vmem:[%s12104_s1 + $0x3c0] sm:$0xff] }
  0xae   : > { %1329 = vmatpush1.msra.mxu1 %v5538_v8  ;;  %1233 = vmatprep.subr.mxu0 %v5761_v12  ;;  %v5858_v8 = vld [vmem:[%s12104_s1 + $0xb40] sm:$0xff]  ;;  %v5801_v12 = vld [vmem:[%s12104_s1 + $0x3b8] sm:$0xff] }
  0xaf   : > { %1346 = vmatprep.subr.mxu1 %v5585_v13  ;;  %1234 = vmatpush2.msra.mxu0 %v5760_v36  ;;  %v5857_v13 = vld [vmem:[%s12104_s1 + $0xb38] sm:$0xff]  ;;  %v5800_v36 = vld [vmem:[%s12104_s1 + $0x3b0] sm:$0xff] }
  0xb0   : > { %1347 = vmatpush2.msra.mxu1 %v5584_v14  ;;  %5703 = vmatprep.mubr.msk.f32.mxu0 %vm600_vm1, %v7532_v25  ;;  %v5856_v14 = vld [vmem:[%s12104_s1 + $0xb30] sm:$0xff] }
  0xb1   : > { %5711 = vmatprep.mubr.msk.f32.mxu1 %vm600_vm1, %v7443_v54  ;;  %1235 = vmatprep.subr.mxu0 %v5759_v15  ;;  %v5756_v54 = vld [vmem:[%s12104_s1 + $0x11d0] sm:$0xff]  ;;  %v5799_v15 = vld [vmem:[%s12104_s1 + $0x3a8] sm:$0xff] }
  0xb2   : > { %1348 = vmatprep.subr.mxu1 %v5583_v44  ;;  %1005 = vmatmul.mubr.f32.gmra.mxu0 %v7542_v31  ;;  %v5855_v44 = vld [vmem:[%s12104_s1 + $0xb28] sm:$0xff] }
  0xb3   : > { %1118 = vmatmul.mubr.f32.gmra.mxu1 %v7455_v58  ;;  %1236 = vmatpush2.msra.mxu0 %v5758_v16  ;;  %v5579_v58 = vld [vmem:[%s12104_s1 + $0x1048] sm:$0xff]  ;;  %v5798_v16 = vld [vmem:[%s12104_s1 + $0x3a0] sm:$0xff] }
  0xb4   : > { %1349 = vmatpush2.msra.mxu1 %v5582_v17  ;;  %1237 = vmatprep.subr.mxu0 %v5757_v19  ;;  %v5854_v17 = vld [vmem:[%s12104_s1 + $0xb20] sm:$0xff]  ;;  %v5797_v19 = vld [vmem:[%s12104_s1 + $0x398] sm:$0xff] }
  0xb5   : > { %1350 = vmatprep.subr.mxu1 %v5581_v20  ;;  %1238 = vmatpush2.msra.mxu0 %v5756_v54  ;;  %v5853_v20 = vld [vmem:[%s12104_s1 + $0xb18] sm:$0xff]  ;;  %v5796_v54 = vld [vmem:[%s12104_s1 + $0x390] sm:$0xff] }
  0xb6   : > { %1351 = vmatpush2.msra.mxu1 %v5580_v23  ;;  %5704 = vmatprep.mubr.msk.f32.mxu0 %vm600_vm1, %v7574_v48  ;;  %v5852_v23 = vld [vmem:[%s12104_s1 + $0xb10] sm:$0xff] }
  0xb7   : > { %5712 = vmatprep.mubr.msk.f32.mxu1 %vm600_vm1, %v7487_v5  ;;  %1239 = vmatprep.subr.mxu0 %v5755_v28  ;;  %v5752_v5 = vld [vmem:[%s12104_s1 + $0x11b0] sm:$0xff]  ;;  %v5795_v28 = vld [vmem:[%s12104_s1 + $0x388] sm:$0xff] }
  0xb8   : > { %1352 = vmatprep.subr.mxu1 %v5579_v58  ;;  %1011 = vmatmul.mubr.f32.gmra.mxu0 %v7584_v51  ;;  %v5851_v58 = vld [vmem:[%s12104_s1 + $0xb08] sm:$0xff] }
  0xb9   : > { %1124 = vmatmul.mubr.f32.gmra.mxu1 %v7499_v10  ;;  %1240 = vmatpush2.msra.mxu0 %v5754_v29  ;;  %v5575_v10 = vld [vmem:[%s12104_s1 + $0x1028] sm:$0xff]  ;;  %v5794_v29 = vld [vmem:[%s12104_s1 + $0x380] sm:$0xff] }
  0xba   : > { %1353 = vmatpush2.msra.mxu1 %v5578_v30  ;;  %1241 = vmatprep.subr.mxu0 %v5753_v33  ;;  %v5850_v30 = vld [vmem:[%s12104_s1 + $0xb00] sm:$0xff]  ;;  %v5793_v33 = vld [vmem:[%s12104_s1 + $0x378] sm:$0xff] }
  0xbb   : > { %1354 = vmatprep.subr.mxu1 %v5577_v34  ;;  %1242 = vmatpush2.msra.mxu0 %v5752_v5  ;;  %v5849_v34 = vld [vmem:[%s12104_s1 + $0xaf8] sm:$0xff]  ;;  %v5792_v5 = vld [vmem:[%s12104_s1 + $0x370] sm:$0xff] }
  0xbc   : > { %1355 = vmatpush2.msra.mxu1 %v5576_v35  ;;  %5705 = vmatprep.mubr.msk.f32.mxu0 %vm600_vm1, %v7544_v32  ;;  %v5848_v35 = vld [vmem:[%s12104_s1 + $0xaf0] sm:$0xff] }
  0xbd   : > { %5713 = vmatprep.mubr.msk.f32.mxu1 %vm600_vm1, %v7611_v62  ;;  %1243 = vmatprep.subr.mxu0 %v5751_v38  ;;  %v5791_v38 = vld [vmem:[%s12104_s1 + $0x368] sm:$0xff] }
  0xbe   : > { %1356 = vmatprep.subr.mxu1 %v5575_v10  ;;  %1017 = vmatmul.mubr.f32.gmra.mxu0 %v7562_v40  ;;  %v5847_v10 = vld [vmem:[%s12104_s1 + $0xae8] sm:$0xff] }
  0xbf   : > { %1130 = vmatmul.mubr.f32.gmra.mxu1 %v7620_v1  ;;  %1244 = vmatpush2.msra.mxu0 %v5750_v18  ;;  %v8117_v18 = vld [vmem:[%s7140_s23 + $0x18] sm:$0xff] }
  0xc0   : > { %1357 = vmatpush2.msra.mxu1 %v5574_v46  ;;  %1245 = vmatprep.subr.mxu0 %v5749_v47  ;;  %v5790_v46 = vld [vmem:[%s12104_s1 + $0x360] sm:$0xff] }
  0xc1   : > { %1358 = vmatprep.subr.mxu1 %v5573_v24  ;;  %1246 = vmatpush2.msra.mxu0 %v5748_v49  ;;  %v5846_v47 = vld [vmem:[%s12104_s1 + $0xae0] sm:$0xff]  ;;  %v5789_v24 = vld [vmem:[%s12104_s1 + $0x358] sm:$0xff]  ;;  %v8135_v49 = vld [vmem:[%s7140_s23 + $0x10] sm:$0xff] }
  0xc2   : > { %1359 = vmatpush2.msra.mxu1 %v5572_v50  ;;  %1247 = vmatprep.subr.mxu0 %v5747_v52  ;;  %v5788_v50 = vld [vmem:[%s12104_s1 + $0x350] sm:$0xff] }
  0xc3   : > { %1360 = vmatprep.subr.mxu1 %v5571_v53  ;;  %1248 = vmatpush2.msra.mxu0 %v5746_v4  ;;  %v5844_v52 = vld [vmem:[%s12104_s1 + $0xad0] sm:$0xff]  ;;  %v5843_v53 = vld [vmem:[%s12104_s1 + $0xac8] sm:$0xff] }
  0xc4   : > { %5762 = vmatprep.mubr.msk.f32.mxu0 %vm600_vm1, %v7212_v39  ;;  %1361 = vmatpush2.msra.mxu1 %v5570_v56  ;;  %v5864_v39 = vld [vmem:[%s12104_s1 + $0xb70] sm:$0xff]  ;;  %v8153_v4 = vld [vmem:[%s7140_s23 + $0x28] sm:$0xff]  ;;  %v5786_v56 = vld [vmem:[%s12104_s1 + $0x340] sm:$0xff] }
  0xc5   : > { %5770 = vmatprep.mubr.msk.f32.mxu1 %vm600_vm1, %v7218_v41  ;;  %1250 = vmatmul.mubr.f32.vlgmr.msra.gmra.mxu0 %v7223_v42  ;;  %v5863_v41 = vld [vmem:[%s12104_s1 + $0xb68] sm:$0xff]  ;;  %v5862_v42 = vld [vmem:[%s12104_s1 + $0xb60] sm:$0xff] }
  0xc6   : > { %1363 = vmatmul.mubr.f32.vlgmr.msra.gmra.mxu1 %v7226_v43  ;;  %1523 = vmatprep.subr.mxu0 %v5809_v57  ;;  %v5805_v43 = vld [vmem:[%s12104_s1 + $0x3d8] sm:$0xff]  ;;  %v5842_v57 = vld [vmem:[%s12104_s1 + $0xac0] sm:$0xff] }
  0xc7   : > { %1701 = vmatprep.subr.mxu1 %v5865_v9  ;;  %1524 = vmatpush1.msra.mxu0 %v5808_v60  ;;  %v5785_v9 = vld [vmem:[%s12104_s1 + $0x338] sm:$0xff]  ;;  %v8171_v60 = vld [vmem:[%s7140_s23 + $0x20] sm:$0xff] }
  0xc8   : > { %1702 = vmatpush1.msra.mxu1 %v5864_v39  ;;  %1525 = vmatprep.subr.mxu0 %v5807_v61  ;;  %v5784_v39 = vld [vmem:[%s12104_s1 + $0x330] sm:$0xff] }
  0xc9   : > { %1703 = vmatprep.subr.mxu1 %v5863_v41  ;;  %1526 = vmatpush1.msra.mxu0 %v5806_v63  ;;  %v5840_v61 = vld [vmem:[%s12104_s1 + $0xab0] sm:$0xff]  ;;  %v5839_v41 = vld [vmem:[%s12104_s1 + $0xaa8] sm:$0xff]  ;;  %v8189_v63 = vld [vmem:[%s7140_s23 + $0x38] sm:$0xff] }
  0xca   : > { %1704 = vmatpush1.msra.mxu1 %v5862_v42  ;;  %1527 = vmatprep.subr.mxu0 %v5805_v43  ;;  %v5782_v42 = vld [vmem:[%s12104_s1 + $0x320] sm:$0xff] }
  0xcb   : > { %1705 = vmatprep.subr.mxu1 %v5861_v0  ;;  %1528 = vmatpush1.msra.mxu0 %v5804_v21  ;;  %v5838_v43 = vld [vmem:[%s12104_s1 + $0xaa0] sm:$0xff]  ;;  %v5781_v0 = vld [vmem:[%s12104_s1 + $0x318] sm:$0xff]  ;;  %v8207_v21 = vld [vmem:[%s7140_s23 + $0x30] sm:$0xff] }
  0xcc   : > { %1706 = vmatpush1.msra.mxu1 %v5860_v2  ;;  %1529 = vmatprep.subr.mxu0 %v5803_v3  ;;  %v5780_v2 = vld [vmem:[%s12104_s1 + $0x310] sm:$0xff] }
  0xcd   : > { %1707 = vmatprep.subr.mxu1 %v5859_v26  ;;  %1530 = vmatpush1.msra.mxu0 %v5802_v7  ;;  %v5836_v3 = vld [vmem:[%s12104_s1 + $0xa90] sm:$0xff]  ;;  %v5835_v26 = vld [vmem:[%s12104_s1 + $0xa88] sm:$0xff] }
  0xce   : > { %1708 = vmatpush1.msra.mxu1 %v5858_v8  ;;  %1531 = vmatprep.subr.mxu0 %v5801_v12  ;;  %v8225_v7 = vld [vmem:[%s7140_s23 + $0x48] sm:$0xff]  ;;  %v5778_v8 = vld [vmem:[%s12104_s1 + $0x300] sm:$0xff] }
  0xcf   : > { %1709 = vmatprep.subr.mxu1 %v5857_v13  ;;  %1532 = vmatpush1.msra.mxu0 %v5800_v36  ;;  %v5834_v12 = vld [vmem:[%s12104_s1 + $0xa80] sm:$0xff]  ;;  %v5825_v13 = vld [vmem:[%s12104_s1 + $0x478] sm:$0xff] }
  0xd0   : > { %1710 = vmatpush1.msra.mxu1 %v5856_v14  ;;  %1533 = vmatprep.subr.mxu0 %v5799_v15  ;;  %v8243_v36 = vld [vmem:[%s7140_s23 + $0x40] sm:$0xff]  ;;  %v5824_v14 = vld [vmem:[%s12104_s1 + $0x470] sm:$0xff] }
  0xd1   : > { %1711 = vmatprep.subr.mxu1 %v5855_v44  ;;  %1534 = vmatpush1.msra.mxu0 %v5798_v16  ;;  %v5880_v15 = vld [vmem:[%s12104_s1 + $0xbf0] sm:$0xff]  ;;  %v5879_v44 = vld [vmem:[%s12104_s1 + $0xbe8] sm:$0xff]  ;;  %v8261_v16 = vld [vmem:[%s7140_s23 + $0x58] sm:$0xff] }
  0xd2   : > { %1712 = vmatpush1.msra.mxu1 %v5854_v17  ;;  %1535 = vmatprep.subr.mxu0 %v5797_v19  ;;  %v5822_v17 = vld [vmem:[%s12104_s1 + $0x460] sm:$0xff] }
  0xd3   : > { %1713 = vmatprep.subr.mxu1 %v5853_v20  ;;  %1536 = vmatpush1.msra.mxu0 %v5796_v54  ;;  %v5878_v19 = vld [vmem:[%s12104_s1 + $0xbe0] sm:$0xff]  ;;  %v5821_v20 = vld [vmem:[%s12104_s1 + $0x458] sm:$0xff]  ;;  %v8279_v54 = vld [vmem:[%s7140_s23 + $0x50] sm:$0xff] }
  0xd4   : > { %1714 = vmatpush1.msra.mxu1 %v5852_v23  ;;  %1537 = vmatprep.subr.mxu0 %v5795_v28  ;;  %v5820_v23 = vld [vmem:[%s12104_s1 + $0x450] sm:$0xff] }
  0xd5   : > { %1715 = vmatprep.subr.mxu1 %v5851_v58  ;;  %1538 = vmatpush1.msra.mxu0 %v5794_v29  ;;  %v5876_v28 = vld [vmem:[%s12104_s1 + $0xbd0] sm:$0xff]  ;;  %v5875_v58 = vld [vmem:[%s12104_s1 + $0xbc8] sm:$0xff] }
  0xd6   : > { %1716 = vmatpush1.msra.mxu1 %v5850_v30  ;;  %1539 = vmatprep.subr.mxu0 %v5793_v33  ;;  %v8297_v29 = vld [vmem:[%s7140_s23 + $0x68] sm:$0xff]  ;;  %v5818_v30 = vld [vmem:[%s12104_s1 + $0x440] sm:$0xff] }
  0xd7   : > { %1717 = vmatprep.subr.mxu1 %v5849_v34  ;;  %1540 = vmatpush1.msra.mxu0 %v5792_v5  ;;  %v5874_v33 = vld [vmem:[%s12104_s1 + $0xbc0] sm:$0xff]  ;;  %v5873_v34 = vld [vmem:[%s12104_s1 + $0xbb8] sm:$0xff] }
  0xd8   : > { %1718 = vmatpush1.msra.mxu1 %v5848_v35  ;;  %5763 = vmatprep.mubr.msk.f32.mxu0 %vm600_vm1, %v7356_v22  ;;  %v5845_v22 = vld [vmem:[%s12104_s1 + $0xad8] sm:$0xff]  ;;  %v8315_v5 = vld [vmem:[%s7140_s23 + $0x60] sm:$0xff]  ;;  %v5816_v35 = vld [vmem:[%s12104_s1 + $0x430] sm:$0xff] }
  0xd9   : > { %5771 = vmatprep.mubr.msk.f32.mxu1 %vm600_vm1, %v8117_v18  ;;  %1541 = vmatprep.subr.mxu0 %v5791_v38  ;;  %v5872_v38 = vld [vmem:[%s12104_s1 + $0xbb0] sm:$0xff] }
  0xda   : > { %1719 = vmatprep.subr.mxu1 %v5847_v10  ;;  %1256 = vmatmul.mubr.f32.gmra.mxu0 %v7370_v27  ;;  %v5787_v27 = vld [vmem:[%s12104_s1 + $0x348] sm:$0xff] }
  0xdb   : > { %1369 = vmatmul.mubr.f32.gmra.mxu1 %v8135_v49  ;;  %1542 = vmatpush1.msra.mxu0 %v5790_v46  ;;  %v1412_v10 = vld [vmem:[%s7140_s23 + $0x8] sm:$0xfc] }
  0xdc   : > { %1720 = vmatpush1.msra.mxu1 %v5846_v47  ;;  %1543 = vmatprep.subr.mxu0 %v5789_v24  ;;  %v5871_v46 = vld [vmem:[%s12104_s1 + $0xba8] sm:$0xff]  ;;  %v1411_v47 = vld [vmem:[%s7140_s23] sm:$0xfc] }
  0xdd   : > { %1721 = vmatprep.subr.mxu1 %v5845_v22  ;;  %1544 = vmatpush1.msra.mxu0 %v5788_v50  ;;  %v5814_v24 = vld [vmem:[%s12104_s1 + $0x420] sm:$0xff]  ;;  %v1472_v50 = vrot.slane %v1412_v10, 2  ;;  %v1483_v10 = vrot.slane %v8243_v36, 2 }
  0xde   : > { %1722 = vmatpush1.msra.mxu1 %v5844_v52  ;;  %5764 = vmatprep.mubr.msk.f32.mxu0 %vm600_vm1, %v7402_v37  ;;  %v5841_v37 = vld [vmem:[%s12104_s1 + $0xab8] sm:$0xff]  ;;  %v5870_v22 = vld [vmem:[%s12104_s1 + $0xba0] sm:$0xff]  ;;  %v1473_v52 = vrot.slane %v8117_v18, 2 }
  0xdf   : > { %5772 = vmatprep.mubr.msk.f32.mxu1 %vm600_vm1, %v8153_v4  ;;  %1545 = vmatprep.subr.mxu0 %v5787_v27  ;;  %v5812_v27 = vld [vmem:[%s12104_s1 + $0x410] sm:$0xff] }
  0xe0   : > { %1723 = vmatprep.subr.mxu1 %v5843_v53  ;;  %1262 = vmatmul.mubr.f32.gmra.mxu0 %v7414_v45  ;;  %v5783_v45 = vld [vmem:[%s12104_s1 + $0x328] sm:$0xff]  ;;  %v5868_v53 = vld [vmem:[%s12104_s1 + $0xb90] sm:$0xff] }
  0xe1   : > { %1375 = vmatmul.mubr.f32.gmra.mxu1 %v8171_v60  ;;  %1546 = vmatpush1.msra.mxu0 %v5786_v56  ;;  %v1469_v56 = vrot.slane %v1411_v47, 2 }
  0xe2   : > { %1724 = vmatpush1.msra.mxu1 %v5842_v57  ;;  %1547 = vmatprep.subr.mxu0 %v5785_v9  ;;  %v1470_v57 = vrot.slane %v8135_v49, 2  ;;  %v5811_v9 = vld [vmem:[%s12104_s1 + $0x408] sm:$0xff] }
  0xe3   : > { %1725 = vmatprep.subr.mxu1 %v5841_v37  ;;  %1548 = vmatpush1.msra.mxu0 %v5784_v39  ;;  %v8368_v37 = vsel %vm1468_vm2, %v1472_v50, %v1473_v52  ;;  %v5866_v39 = vld [vmem:[%s12104_s1 + $0xb80] sm:$0xff] }
  0xe4   : > { %1726 = vmatpush1.msra.mxu1 %v5840_v61  ;;  %5765 = vmatprep.mubr.msk.f32.mxu0 %vm600_vm1, %v7446_v55  ;;  %v5837_v55 = vld [vmem:[%s12104_s1 + $0xa98] sm:$0xff]  ;;  %v8374_v61 = vsel %vm1468_vm2, %v1469_v56, %v1470_v57  ;;  %v1487_v56 = vrot.slane %v8279_v54, 2 }
  0xe5   : > { %5773 = vmatprep.mubr.msk.f32.mxu1 %vm600_vm1, %v8189_v63  ;;  %1549 = vmatprep.subr.mxu0 %v5783_v45  ;;  %v1477_v45 = vrot.slane %v8153_v4, 2 }
  0xe6   : > { %1727 = vmatprep.subr.mxu1 %v5839_v41  ;;  %1268 = vmatmul.mubr.f32.gmra.mxu0 %v7458_v59  ;;  %v5779_v59 = vld [vmem:[%s12104_s1 + $0x308] sm:$0xff]  ;;  %v5921_v41 = vld [vmem:[%s12104_s1 + $0x12f8] sm:$0xff] }
  0xe7   : > { %1381 = vmatmul.mubr.f32.gmra.mxu1 %v8207_v21  ;;  %1550 = vmatpush1.msra.mxu0 %v5782_v42  ;;  %v5977_v42 = vld [vmem:[%s12104_s1 + $0x578] sm:$0xff] }
  0xe8   : > { %1728 = vmatpush1.msra.mxu1 %v5838_v43  ;;  %1551 = vmatprep.subr.mxu0 %v5781_v0  ;;  %v5920_v43 = vld [vmem:[%s12104_s1 + $0x12f0] sm:$0xff] }
  0xe9   : > { %1729 = vmatprep.subr.mxu1 %v5837_v55  ;;  %1552 = vmatpush1.msra.mxu0 %v5780_v2  ;;  %v5976_v0 = vld [vmem:[%s12104_s1 + $0x570] sm:$0xff]  ;;  %v1475_v55 = vrot.slane %v8171_v60, 2  ;;  %v5919_v2 = vld [vmem:[%s12104_s1 + $0x12e8] sm:$0xff] }
  0xea   : > { %1730 = vmatpush1.msra.mxu1 %v5836_v3  ;;  %5766 = vmatprep.mubr.msk.f32.mxu0 %vm600_vm1, %v7490_v6  ;;  %v5881_v6 = vld [vmem:[%s12104_s1 + $0xbf8] sm:$0xff]  ;;  %v5975_v3 = vld [vmem:[%s12104_s1 + $0x568] sm:$0xff] }
  0xeb   : > { %5774 = vmatprep.mubr.msk.f32.mxu1 %vm600_vm1, %v8225_v7  ;;  %1553 = vmatprep.subr.mxu0 %v5779_v59 }
  0xec   : > { %1731 = vmatprep.subr.mxu1 %v5835_v26  ;;  %1274 = vmatmul.mubr.f32.gmra.mxu0 %v7502_v11  ;;  %v5823_v11 = vld [vmem:[%s12104_s1 + $0x468] sm:$0xff] }
  0xed   : > { %1387 = vmatmul.mubr.f32.gmra.mxu1 %v8243_v36  ;;  %1554 = vmatpush1.msra.mxu0 %v5778_v8  ;;  %v8403_v8 = vsel %vm1468_vm2, %v1473_v52, %v1477_v45  ;;  %v1489_v52 = vrot.slane %v8261_v16, 2 }
  0xee   : > { %1732 = vmatpush1.msra.mxu1 %v5834_v12  ;;  %1571 = vmatprep.subr.mxu0 %v5825_v13  ;;  %v5918_v13 = vld [vmem:[%s12104_s1 + $0x12e0] sm:$0xff] }
  0xef   : > { %1749 = vmatprep.subr.mxu1 %v5881_v6  ;;  %1572 = vmatpush2.msra.mxu0 %v5824_v14  ;;  %v5974_v6 = vld [vmem:[%s12104_s1 + $0x560] sm:$0xff]  ;;  %v8414_v14 = vsel %vm1468_vm2, %v1470_v57, %v1475_v55  ;;  %v5907_v57 = vld [vmem:[%s12104_s1 + $0x1288] sm:$0xff] }
  0xf0   : > { %1750 = vmatpush2.msra.mxu1 %v5880_v15  ;;  %5767 = vmatprep.mubr.msk.f32.mxu0 %vm600_vm1, %v7532_v25  ;;  %v5877_v25 = vld [vmem:[%s12104_s1 + $0xbd8] sm:$0xff]  ;;  %v1481_v15 = vrot.slane %v8189_v63, 2 }
  0xf1   : > { %5775 = vmatprep.mubr.msk.f32.mxu1 %vm600_vm1, %v8261_v16  ;;  %1573 = vmatprep.subr.mxu0 %v5823_v11  ;;  %v5917_v11 = vld [vmem:[%s12104_s1 + $0x12d8] sm:$0xff] }
  0xf2   : > { %1751 = vmatprep.subr.mxu1 %v5879_v44  ;;  %1280 = vmatmul.mubr.f32.gmra.mxu0 %v7542_v31  ;;  %v5819_v31 = vld [vmem:[%s12104_s1 + $0x448] sm:$0xff]  ;;  %v5973_v44 = vld [vmem:[%s12104_s1 + $0x558] sm:$0xff] }
  0xf3   : > { %1393 = vmatmul.mubr.f32.gmra.mxu1 %v8279_v54  ;;  %1574 = vmatpush2.msra.mxu0 %v5822_v17  ;;  %v5916_v17 = vld [vmem:[%s12104_s1 + $0x12d0] sm:$0xff] }
  0xf4   : > { %1752 = vmatpush2.msra.mxu1 %v5878_v19  ;;  %1575 = vmatprep.subr.mxu0 %v5821_v20  ;;  %v5972_v19 = vld [vmem:[%s12104_s1 + $0x550] sm:$0xff]  ;;  %v1479_v20 = vrot.slane %v8207_v21, 2 }
  0xf5   : > { %1753 = vmatprep.subr.mxu1 %v5877_v25  ;;  %1576 = vmatpush2.msra.mxu0 %v5820_v23  ;;  %v5915_v25 = vld [vmem:[%s12104_s1 + $0x12c8] sm:$0xff] }
  0xf6   : > { %1754 = vmatpush2.msra.mxu1 %v5876_v28  ;;  %5768 = vmatprep.mubr.msk.f32.mxu0 %vm600_vm1, %v7574_v48  ;;  %v5817_v48 = vld [vmem:[%s12104_s1 + $0x438] sm:$0xff]  ;;  %v5971_v23 = vld [vmem:[%s12104_s1 + $0x548] sm:$0xff]  ;;  %v8443_v28 = vsel %vm1468_vm2, %v1477_v45, %v1481_v15  ;;  %v8490_v50 = vsel %vm1468_vm2, %v1479_v20, %v1483_v10  ;;  %v5906_v45 = vld [vmem:[%s12104_s1 + $0x1280] sm:$0xff] }
  0xf7   : > { %5776 = vmatprep.mubr.msk.f32.mxu1 %vm600_vm1, %v8297_v29  ;;  %1577 = vmatprep.subr.mxu0 %v5819_v31  ;;  %v5914_v31 = vld [vmem:[%s12104_s1 + $0x12c0] sm:$0xff] }
  0xf8   : > { %1755 = vmatprep.subr.mxu1 %v5875_v58  ;;  %1286 = vmatmul.mubr.f32.gmra.mxu0 %v7584_v51  ;;  %v5815_v51 = vld [vmem:[%s12104_s1 + $0x428] sm:$0xff]  ;;  %v5970_v58 = vld [vmem:[%s12104_s1 + $0x540] sm:$0xff] }
  0xf9   : > { %1399 = vmatmul.mubr.f32.gmra.mxu1 %v8315_v5  ;;  %1578 = vmatpush2.msra.mxu0 %v5818_v30  ;;  %v8452_v30 = vsel %vm1468_vm2, %v1475_v55, %v1479_v20 }
  0xfa   : > { %1756 = vmatpush2.msra.mxu1 %v5874_v33  ;;  %1579 = vmatprep.subr.mxu0 %v5817_v48  ;;  %v1485_v33 = vrot.slane %v8225_v7, 2  ;;  %v5913_v48 = vld [vmem:[%s12104_s1 + $0x12b8] sm:$0xff] }
  0xfb   : > { %1757 = vmatprep.subr.mxu1 %v5873_v34  ;;  %1580 = vmatpush2.msra.mxu0 %v5816_v35  ;;  %v5969_v34 = vld [vmem:[%s12104_s1 + $0x538] sm:$0xff]  ;;  %v5912_v35 = vld [vmem:[%s12104_s1 + $0x12b0] sm:$0xff] }
  0xfc   : > { %1758 = vmatpush2.msra.mxu1 %v5872_v38  ;;  %5769 = vmatprep.mubr.msk.f32.mxu0 %vm600_vm1, %v7544_v32  ;;  %v5813_v32 = vld [vmem:[%s12104_s1 + $0x418] sm:$0xff]  ;;  %v5968_v38 = vld [vmem:[%s12104_s1 + $0x530] sm:$0xff]  ;;  %v8481_v47 = vsel %vm1468_vm2, %v1481_v15, %v1485_v33 }
  0xfd   : > { %5777 = vmatprep.mubr.msk.f32.mxu1 %vm600_vm1, %v7611_v62  ;;  %1581 = vmatprep.subr.mxu0 %v5815_v51  ;;  %v5869_v62 = vld [vmem:[%s12104_s1 + $0xb98] sm:$0xff]  ;;  %v5911_v51 = vld [vmem:[%s12104_s1 + $0x12a8] sm:$0xff] }
  0xfe   : > { %1759 = vmatprep.subr.mxu1 %v5871_v46  ;;  %1292 = vmatmul.mubr.f32.gmra.mxu0 %v7562_v40  ;;  %v5867_v40 = vld [vmem:[%s12104_s1 + $0xb88] sm:$0xff] }
  0xff   : > { %1405 = vmatmul.mubr.f32.gmra.mxu1 %v7620_v1  ;;  %1582 = vmatpush2.msra.mxu0 %v5814_v24  ;;  %v5810_v1 = vld [vmem:[%s12104_s1 + $0x400] sm:$0xff]  ;;  %v5967_v46 = vld [vmem:[%s12104_s1 + $0x528] sm:$0xff] }
 0x100   : > { %1760 = vmatpush2.msra.mxu1 %v5870_v22  ;;  %1583 = vmatprep.subr.mxu0 %v5813_v32  ;;  %v5910_v24 = vld [vmem:[%s12104_s1 + $0x12a0] sm:$0xff]  ;;  %v5909_v32 = vld [vmem:[%s12104_s1 + $0x1298] sm:$0xff] }
 0x101   : > { %1761 = vmatprep.subr.mxu1 %v5869_v62  ;;  %1584 = vmatpush2.msra.mxu0 %v5812_v27  ;;  %v5966_v22 = vld [vmem:[%s12104_s1 + $0x520] sm:$0xff]  ;;  %v5965_v62 = vld [vmem:[%s12104_s1 + $0x518] sm:$0xff]  ;;  %v5908_v27 = vld [vmem:[%s12104_s1 + $0x1290] sm:$0xff] }
 0x102   : > { %1762 = vmatpush2.msra.mxu1 %v5868_v53  ;;  %1585 = vmatprep.subr.mxu0 %v5811_v9  ;;  %v5964_v53 = vld [vmem:[%s12104_s1 + $0x510] sm:$0xff]  ;;  %v5963_v9 = vld [vmem:[%s12104_s1 + $0x508] sm:$0xff] }
 0x103   : > { %1763 = vmatprep.subr.mxu1 %v5867_v40  ;;  %1586 = vmatpush2.msra.mxu0 %v5810_v1  ;;  %v8519_v40 = vsel %vm1468_vm2, %v1485_v33, %v1489_v52 }
 0x104   : > { %5826 = vmatprep.mubr.msk.f32.mxu0 %vm600_vm1, %v8368_v37  ;;  %1764 = vmatpush2.msra.mxu1 %v5866_v39 }
 0x105   : > { %5882 = vmatprep.mubr.msk.f32.mxu1 %vm600_vm1, %v8368_v37  ;;  %1588 = vmatmul.mubr.f32.vlgmr.msra.gmra.mxu0 %v8374_v61  ;;  %v683_v59 = vpop.f32.mrf.mxu0 }
 0x106   : > { %1766 = vmatmul.mubr.f32.vlgmr.msra.gmra.mxu1 %v8374_v61  ;;  %v814_v26 = vpop.f32.mrf.mxu1  ;;  %1879 = vmatprep.subr.mxu0 %v5921_v41  ;;  %v5962_v41 = vld [vmem:[%s12104_s1 + $0x500] sm:$0xff] }
 0x107   : > { %2120 = vmatprep.subr.mxu1 %v5977_v42  ;;  %v8405_v12 = vadd.f32 %v814_v26, %v683_v59  ;;  %1880 = vmatpush1.msra.mxu0 %v5920_v43  ;;  %v8521_v1 = vpop.f32.mrf.mxu0  ;;  %v8532_v42 = vsel %vm1468_vm2, %v1483_v10, %v1487_v56  ;;  %v1493_v43 = vrot.slane %v8297_v29, 2  ;;  %v5904_v26 = vld [vmem:[%s12104_s1 + $0x1270] sm:$0xff] }
 0x108   : > { %2121 = vmatpush1.msra.mxu1 %v5976_v0  ;;  %1881 = vmatprep.subr.mxu0 %v5919_v2  ;;  %v8523_v39 = vpop.f32.mrf.mxu1  ;;  %v5905_v2 = vld [vmem:[%s12104_s1 + $0x1278] sm:$0xff] }
 0x109   : > { %2122 = vmatprep.subr.mxu1 %v5975_v3  ;;  %5827 = vmatprep.mubr.msk.f32.mxu0 %vm600_vm1, %v8403_v8  ;;  %v5961_v3 = vld [vmem:[%s12104_s1 + $0x4f8] sm:$0xff]  ;;  %v8568_v20 = vsel %vm1468_vm2, %v1489_v52, %v1493_v43 }
 0x10a   : > { %5883 = vmatprep.mubr.msk.f32.mxu1 %vm600_vm1, %v8403_v8  ;;  %1882 = vmatpush1.msra.mxu0 %v5918_v13  ;;  %v5960_v13 = vld [vmem:[%s12104_s1 + $0x4f0] sm:$0xff] }
 0x10b   : > { %2123 = vmatpush1.msra.mxu1 %v5974_v6  ;;  %1594 = vmatmul.mubr.f32.gmra.mxu0 %v8414_v14  ;;  %v1491_v6 = vrot.slane %v8315_v5, 2 }
 0x10c   : > { %1772 = vmatmul.mubr.f32.gmra.mxu1 %v8414_v14  ;;  %1883 = vmatprep.subr.mxu0 %v5917_v11 }
 0x10d   : > { %2124 = vmatprep.subr.mxu1 %v5973_v44  ;;  %1884 = vmatpush1.msra.mxu0 %v5916_v17  ;;  %v5903_v44 = vld [vmem:[%s12104_s1 + $0x1268] sm:$0xff] }
 0x10e   : > { %2125 = vmatpush1.msra.mxu1 %v5972_v19  ;;  %1885 = vmatprep.subr.mxu0 %v5915_v25  ;;  %v5959_v17 = vld [vmem:[%s12104_s1 + $0x4e8] sm:$0xff]  ;;  %v1414_v19 = vld [vmem:[%s7140_s23 + $0x78] sm:$0x3f]  ;;  %v5902_v25 = vld [vmem:[%s12104_s1 + $0x1260] sm:$0xff] }
 0x10f   : > { %2126 = vmatprep.subr.mxu1 %v5971_v23  ;;  %5828 = vmatprep.mubr.msk.f32.mxu0 %vm600_vm1, %v8443_v28  ;;  %v5958_v23 = vld [vmem:[%s12104_s1 + $0x4e0] sm:$0xff]  ;;  %v8580_v33 = vrot.slane %v1414_v19, 2 }
 0x110   : > { %5884 = vmatprep.mubr.msk.f32.mxu1 %vm600_vm1, %v8443_v28  ;;  %1886 = vmatpush1.msra.mxu0 %v5914_v31  ;;  %v1413_v31 = vld [vmem:[%s7140_s23 + $0x70] sm:$0x3f] }
 0x111   : > { %2127 = vmatpush1.msra.mxu1 %v5970_v58  ;;  %1600 = vmatmul.mubr.f32.gmra.mxu0 %v8452_v30  ;;  %v8578_v58 = vsel %vm1468_vm2, %v1487_v56, %v1491_v6  ;;  %v5954_v56 = vld [vmem:[%s12104_s1 + $0x4c0] sm:$0xff] }
 0x112   : > { %1778 = vmatmul.mubr.f32.gmra.mxu1 %v8452_v30  ;;  %1887 = vmatprep.subr.mxu0 %v5913_v48 }
 0x113   : > { %2128 = vmatprep.subr.mxu1 %v5969_v34  ;;  %1888 = vmatpush1.msra.mxu0 %v5912_v35  ;;  %v5901_v35 = vld [vmem:[%s12104_s1 + $0x1258] sm:$0xff] }
 0x114   : > { %2129 = vmatpush1.msra.mxu1 %v5968_v38  ;;  %1889 = vmatprep.subr.mxu0 %v5911_v51  ;;  %v5957_v38 = vld [vmem:[%s12104_s1 + $0x4d8] sm:$0xff]  ;;  %v5900_v51 = vld [vmem:[%s12104_s1 + $0x1250] sm:$0xff] }
 0x115   : > { %2130 = vmatprep.subr.mxu1 %v5967_v46  ;;  %5829 = vmatprep.mubr.msk.f32.mxu0 %vm600_vm1, %v8481_v47  ;;  %v5956_v46 = vld [vmem:[%s12104_s1 + $0x4d0] sm:$0xff] }
 0x116   : > { %5885 = vmatprep.mubr.msk.f32.mxu1 %vm600_vm1, %v8481_v47  ;;  %1890 = vmatpush1.msra.mxu0 %v5910_v24  ;;  %v8600_v24 = vrot.slane %v1413_v31, 2  ;;  %v5949_v31 = vld [vmem:[%s12104_s1 + $0x498] sm:$0xff] }
 0x117   : > { %2131 = vmatpush1.msra.mxu1 %v5966_v22  ;;  %1606 = vmatmul.mubr.f32.gmra.mxu0 %v8490_v50 }
 0x118   : > { %1784 = vmatmul.mubr.f32.gmra.mxu1 %v8490_v50  ;;  %1891 = vmatprep.subr.mxu0 %v5909_v32  ;;  %v5899_v32 = vld [vmem:[%s12104_s1 + $0x1248] sm:$0xff] }
 0x119   : > { %2132 = vmatprep.subr.mxu1 %v5965_v62  ;;  %1892 = vmatpush1.msra.mxu0 %v5908_v27  ;;  %v5955_v62 = vld [vmem:[%s12104_s1 + $0x4c8] sm:$0xff]  ;;  %v8616_v27 = vsel %vm1468_vm2, %v1493_v43, %v8580_v33  ;;  %v5953_v43 = vld [vmem:[%s12104_s1 + $0x4b8] sm:$0xff] }
 0x11a   : > { %2133 = vmatpush1.msra.mxu1 %v5964_v53  ;;  %1893 = vmatprep.subr.mxu0 %v5907_v57  ;;  %v689_v0 = vpop.f32.mrf.mxu0  ;;  %v5898_v53 = vld [vmem:[%s12104_s1 + $0x1240] sm:$0xff]  ;;  %v8626_v57 = vsel %vm1468_vm2, %v1491_v6, %v8600_v24  ;;  %v5951_v6 = vld [vmem:[%s12104_s1 + $0x4a8] sm:$0xff] }
 0x11b   : > { %2134 = vmatprep.subr.mxu1 %v5963_v9  ;;  %v820_v55 = vpop.f32.mrf.mxu1  ;;  %5830 = vmatprep.mubr.msk.f32.mxu0 %vm600_vm1, %v8519_v40 }
 0x11c   : > { %5886 = vmatprep.mubr.msk.f32.mxu1 %vm600_vm1, %v8519_v40  ;;  %v8545_v59 = vadd.f32 %v820_v55, %v689_v0  ;;  %1894 = vmatpush1.msra.mxu0 %v5906_v45  ;;  %v8554_v15 = vpop.f32.mrf.mxu0  ;;  %v5896_v55 = vld [vmem:[%s12104_s1 + $0x1230] sm:$0xff] }
 0x11d   : > { %2135 = vmatpush1.msra.mxu1 %v5962_v41  ;;  %12115 = vst [vmem:[#allocation8_spill] sm:$0xff] %v8554_v15  ;;  %v8556_v11 = vpop.f32.mrf.mxu1  ;;  %1612 = vmatmul.mubr.f32.gmra.mxu0 %v8532_v42  ;;  %v5897_v41 = vld [vmem:[%s12104_s1 + $0x1238] sm:$0xff] }
 0x11e   : > { %12116 = vst [vmem:[#allocation9_spill] sm:$0xff] %v8556_v11  ;;  %1790 = vmatmul.mubr.f32.gmra.mxu1 %v8532_v42  ;;  %1895 = vmatprep.subr.mxu0 %v5905_v2  ;;  %v5952_v2 = vld [vmem:[%s12104_s1 + $0x4b0] sm:$0xff] }
 0x11f   : > { %2136 = vmatprep.subr.mxu1 %v5961_v3  ;;  %1896 = vmatpush1.msra.mxu0 %v5904_v26 }
 0x120   : > { %2137 = vmatpush1.msra.mxu1 %v5960_v13  ;;  %1897 = vmatprep.subr.mxu0 %v5903_v44  ;;  %v695_v48 = vpop.f32.mrf.mxu0  ;;  %v5895_v13 = vld [vmem:[%s12104_s1 + $0x1228] sm:$0xff]  ;;  %v5894_v44 = vld [vmem:[%s12104_s1 + $0x1220] sm:$0xff] }
 0x121   : > { %2138 = vmatprep.subr.mxu1 %v5959_v17  ;;  %v826_v34 = vpop.f32.mrf.mxu1  ;;  %5831 = vmatprep.mubr.msk.f32.mxu0 %vm600_vm1, %v8568_v20  ;;  %v5950_v17 = vld [vmem:[%s12104_s1 + $0x4a0] sm:$0xff] }
 0x122   : > { %5887 = vmatprep.mubr.msk.f32.mxu1 %vm600_vm1, %v8568_v20  ;;  %v8592_v10 = vadd.f32 %v826_v34, %v695_v48  ;;  %1898 = vmatpush1.msra.mxu0 %v5902_v25  ;;  %v8602_v22 = vpop.f32.mrf.mxu0  ;;  %v5892_v34 = vld [vmem:[%s12104_s1 + $0x1210] sm:$0xff] }
 0x123   : > { %2139 = vmatpush1.msra.mxu1 %v5958_v23  ;;  %12117 = vst [vmem:[#allocation10_spill] sm:$0xff] %v8602_v22  ;;  %v8604_v52 = vpop.f32.mrf.mxu1  ;;  %1618 = vmatmul.mubr.f32.gmra.mxu0 %v8578_v58  ;;  %v5893_v23 = vld [vmem:[%s12104_s1 + $0x1218] sm:$0xff] }
 0x124   : > { %12118 = vst [vmem:[#allocation11_spill] sm:$0xff] %v8604_v52  ;;  %1796 = vmatmul.mubr.f32.gmra.mxu1 %v8578_v58  ;;  %1899 = vmatprep.subr.mxu0 %v5901_v35  ;;  %v5948_v35 = vld [vmem:[%s12104_s1 + $0x490] sm:$0xff] }
 0x125   : > { %2140 = vmatprep.subr.mxu1 %v5957_v38  ;;  %1900 = vmatpush1.msra.mxu0 %v5900_v51 }
 0x126   : > { %2141 = vmatpush1.msra.mxu1 %v5956_v46  ;;  %1901 = vmatprep.subr.mxu0 %v5899_v32  ;;  %v701_v9 = vpop.f32.mrf.mxu0  ;;  %v5891_v46 = vld [vmem:[%s12104_s1 + $0x1208] sm:$0xff] }
 0x127   : > { %2142 = vmatprep.subr.mxu1 %v5955_v62  ;;  %v832_v45 = vpop.f32.mrf.mxu1  ;;  %5832 = vmatprep.mubr.msk.f32.mxu0 %vm600_vm1, %v8616_v27  ;;  %v5947_v32 = vld [vmem:[%s12104_s1 + $0x488] sm:$0xff]  ;;  %v5890_v62 = vld [vmem:[%s12104_s1 + $0x1200] sm:$0xff] }
 0x128   : > { %5888 = vmatprep.mubr.msk.f32.mxu1 %vm600_vm1, %v8616_v27  ;;  %v8638_v0 = vadd.f32 %v832_v45, %v701_v9  ;;  %1902 = vmatpush1.msra.mxu0 %v5898_v53  ;;  %v8646_v3 = vpop.f32.mrf.mxu0  ;;  %v5946_v53 = vld [vmem:[%s12104_s1 + $0x480] sm:$0xff]  ;;  %v5993_v9 = vld [vmem:[%s12104_s1 + $0x5f8] sm:$0xff]  ;;  %v5936_v45 = vld [vmem:[%s12104_s1 + $0x1370] sm:$0xff] }
 0x129   : > { %2143 = vmatpush1.msra.mxu1 %v5954_v56  ;;  %12119 = vst [vmem:[#allocation12_spill] sm:$0xff] %v8646_v3  ;;  %v8648_v26 = vpop.f32.mrf.mxu1  ;;  %1624 = vmatmul.mubr.f32.gmra.mxu0 %v8626_v57  ;;  %v5937_v56 = vld [vmem:[%s12104_s1 + $0x1378] sm:$0xff] }
 0x12a   : > { %12120 = vst [vmem:[#allocation13_spill] sm:$0xff] %v8648_v26  ;;  %1802 = vmatmul.mubr.f32.gmra.mxu1 %v8626_v57  ;;  %1903 = vmatprep.subr.mxu0 %v5897_v41  ;;  %v5992_v41 = vld [vmem:[%s12104_s1 + $0x5f0] sm:$0xff] }
 0x12b   : > { %2144 = vmatprep.subr.mxu1 %v5953_v43  ;;  %1904 = vmatpush1.msra.mxu0 %v5896_v55 }
 0x12c   : > { %2145 = vmatpush1.msra.mxu1 %v5952_v2  ;;  %1905 = vmatprep.subr.mxu0 %v5895_v13  ;;  %v707_v19 = vpop.f32.mrf.mxu0  ;;  %v5935_v2 = vld [vmem:[%s12104_s1 + $0x1368] sm:$0xff] }
 0x12d   : > { %2146 = vmatprep.subr.mxu1 %v5951_v6  ;;  %v838_v25 = vpop.f32.mrf.mxu1  ;;  %5833 = vmatprep.mubr.msk.f32.mxu0 %vm600_vm1, %v8580_v33  ;;  %v5991_v13 = vld [vmem:[%s12104_s1 + $0x5e8] sm:$0xff] }
 0x12e   : > { %5889 = vmatprep.mubr.msk.f32.mxu1 %vm600_vm1, %v8580_v33  ;;  %v8674_v48 = vadd.f32 %v838_v25, %v707_v19  ;;  %1906 = vmatpush1.msra.mxu0 %v5894_v44  ;;  %v8682_v38 = vpop.f32.mrf.mxu0  ;;  %v5934_v44 = vld [vmem:[%s12104_s1 + $0x1360] sm:$0xff] }
 0x12f   : > { %2147 = vmatpush1.msra.mxu1 %v5950_v17  ;;  %12121 = vst [vmem:[#allocation14_spill] sm:$0xff] %v8682_v38  ;;  %v8684_v51 = vpop.f32.mrf.mxu1  ;;  %1630 = vmatmul.mubr.f32.gmra.mxu0 %v8600_v24  ;;  %v5990_v17 = vld [vmem:[%s12104_s1 + $0x5e0] sm:$0xff] }
 0x130   : > { %12122 = vst [vmem:[#allocation15_spill] sm:$0xff] %v8684_v51  ;;  %1808 = vmatmul.mubr.f32.gmra.mxu1 %v8600_v24  ;;  %1907 = vmatprep.subr.mxu0 %v5893_v23  ;;  %v5933_v23 = vld [vmem:[%s12104_s1 + $0x1358] sm:$0xff] }
 0x131   : > { %2148 = vmatprep.subr.mxu1 %v5949_v31  ;;  %1908 = vmatpush1.msra.mxu0 %v5892_v34  ;;  %v5989_v31 = vld [vmem:[%s12104_s1 + $0x5d8] sm:$0xff]  ;;  %v5932_v34 = vld [vmem:[%s12104_s1 + $0x1350] sm:$0xff] }
 0x132   : > { %2149 = vmatpush1.msra.mxu1 %v5948_v35  ;;  %1909 = vmatprep.subr.mxu0 %v5891_v46  ;;  %v713_v43 = vpop.f32.mrf.mxu0  ;;  %v5988_v35 = vld [vmem:[%s12104_s1 + $0x5d0] sm:$0xff]  ;;  %v5931_v46 = vld [vmem:[%s12104_s1 + $0x1348] sm:$0xff]  ;;  %v6727_v51 = vld [vmem:[%s7140_s23 + $0x18] sm:$0xff] }
 0x133   : > { %2150 = vmatprep.subr.mxu1 %v5947_v32  ;;  %v844_v55 = vpop.f32.mrf.mxu1  ;;  %1910 = vmatpush1.msra.mxu0 %v5890_v62  ;;  %v5987_v32 = vld [vmem:[%s12104_s1 + $0x5c8] sm:$0xff]  ;;  %v5930_v62 = vld [vmem:[%s12104_s1 + $0x1340] sm:$0xff]  ;;  %v2667_v38 = vrot.slane %v6727_v51, 4  ;;  %v6204_v51 = vld [vmem:[%s12104_s1 + $0xe90] sm:$0xff] }
 0x134   : > { %2151 = vmatpush1.msra.mxu1 %v5946_v53  ;;  %v8718_v6 = vadd.f32 %v844_v55, %v713_v43  ;;  %1927 = vmatprep.subr.mxu0 %v5937_v56  ;;  %v8726_v19 = vpop.f32.mrf.mxu0  ;;  %v5986_v53 = vld [vmem:[%s12104_s1 + $0x5c0] sm:$0xff]  ;;  %v5928_v55 = vld [vmem:[%s12104_s1 + $0x1330] sm:$0xff] }
 0x135   : > { %2168 = vmatprep.subr.mxu1 %v5993_v9  ;;  %12123 = vst [vmem:[#allocation16_spill] sm:$0xff] %v8726_v19  ;;  %v8728_v25 = vpop.f32.mrf.mxu1  ;;  %1928 = vmatpush2.msra.mxu0 %v5936_v45  ;;  %v5929_v45 = vld [vmem:[%s12104_s1 + $0x1338] sm:$0xff]  ;;  %v6040_v19 = vld [vmem:[%s12104_s1 + $0xd30] sm:$0xff] }
 0x136   : > { %12124 = vst [vmem:[#allocation17_spill] sm:$0xff] %v8728_v25  ;;  %2169 = vmatpush2.msra.mxu1 %v5992_v41  ;;  %1929 = vmatprep.subr.mxu0 %v5935_v2  ;;  %v5985_v41 = vld [vmem:[%s12104_s1 + $0x5b8] sm:$0xff]  ;;  %v5984_v2 = vld [vmem:[%s12104_s1 + $0x5b0] sm:$0xff] }
 0x137   : > { %2170 = vmatprep.subr.mxu1 %v5991_v13  ;;  %1930 = vmatpush2.msra.mxu0 %v5934_v44  ;;  %v2009_v13 = vld [vmem:[%s7140_s23 + $0x8] sm:$0xf8]  ;;  %v6041_v25 = vld [vmem:[%s12104_s1 + $0xd38] sm:$0xff] }
 0x138   : > { %2171 = vmatpush2.msra.mxu1 %v5990_v17  ;;  %1931 = vmatprep.subr.mxu0 %v5933_v23  ;;  %v719_v56 = vpop.f32.mrf.mxu0  ;;  %v5927_v23 = vld [vmem:[%s12104_s1 + $0x1328] sm:$0xff] }
 0x139   : > { %2172 = vmatprep.subr.mxu1 %v5989_v31  ;;  %v850_v9 = vpop.f32.mrf.mxu1  ;;  %1932 = vmatpush2.msra.mxu0 %v5932_v34  ;;  %v5983_v31 = vld [vmem:[%s12104_s1 + $0x5a8] sm:$0xff]  ;;  %v2008_v34 = vld [vmem:[%s7140_s23] sm:$0xf8] }
 0x13a   : > { %2173 = vmatpush2.msra.mxu1 %v5988_v35  ;;  %v8760_v43 = vadd.f32 %v850_v9, %v719_v56  ;;  %1933 = vmatprep.subr.mxu0 %v5931_v46  ;;  %v8769_v44 = vpop.f32.mrf.mxu0  ;;  %v5926_v35 = vld [vmem:[%s12104_s1 + $0x1320] sm:$0xff]  ;;  %v2070_v56 = vrot.slane %v8117_v18, 3  ;;  %v5924_v9 = vld [vmem:[%s12104_s1 + $0x1310] sm:$0xff]  ;;  %v5923_v18 = vld [vmem:[%s12104_s1 + $0x1308] sm:$0xff] }
 0x13b   : > { %2174 = vmatprep.subr.mxu1 %v5987_v32  ;;  %12125 = vst [vmem:[#allocation18_spill] sm:$0xff] %v8769_v44  ;;  %v8771_v17 = vpop.f32.mrf.mxu1  ;;  %1934 = vmatpush2.msra.mxu0 %v5930_v62  ;;  %v5982_v46 = vld [vmem:[%s12104_s1 + $0x5a0] sm:$0xff]  ;;  %v5925_v32 = vld [vmem:[%s12104_s1 + $0x1318] sm:$0xff] }
 0x13c   : > { %12126 = vst [vmem:[#allocation19_spill] sm:$0xff] %v8771_v17  ;;  %2175 = vmatpush2.msra.mxu1 %v5986_v53  ;;  %1935 = vmatprep.subr.mxu0 %v5929_v45  ;;  %v5981_v62 = vld [vmem:[%s12104_s1 + $0x598] sm:$0xff]  ;;  %v2069_v53 = vrot.slane %v2009_v13, 3  ;;  %v5980_v45 = vld [vmem:[%s12104_s1 + $0x590] sm:$0xff]  ;;  %v5979_v13 = vld [vmem:[%s12104_s1 + $0x588] sm:$0xff] }
 0x13d   : > { %2176 = vmatprep.subr.mxu1 %v5985_v41  ;;  %1936 = vmatpush2.msra.mxu0 %v5928_v55  ;;  %v2066_v41 = vrot.slane %v2008_v34, 3  ;;  %v2067_v55 = vrot.slane %v8135_v49, 3  ;;  %v5922_v49 = vld [vmem:[%s12104_s1 + $0x1300] sm:$0xff] }
 0x13e   : > { %2177 = vmatpush2.msra.mxu1 %v5984_v2  ;;  %1937 = vmatprep.subr.mxu0 %v5927_v23  ;;  %v725_v2 = vpop.f32.mrf.mxu0  ;;  %v8815_v34 = vsel %vm2065_vm3, %v2069_v53, %v2070_v56  ;;  %v6089_v53 = vld [vmem:[%s12104_s1 + $0x1478] sm:$0xff] }
 0x13f   : > { %2178 = vmatprep.subr.mxu1 %v5983_v31  ;;  %v856_v17 = vpop.f32.mrf.mxu1  ;;  %1938 = vmatpush2.msra.mxu0 %v5926_v35  ;;  %v5978_v31 = vld [vmem:[%s12104_s1 + $0x580] sm:$0xff] }
 0x140   : > { %2179 = vmatpush2.msra.mxu1 %v5982_v46  ;;  %v8806_v23 = vadd.f32 %v856_v17, %v725_v2  ;;  %1939 = vmatprep.subr.mxu0 %v5925_v32  ;;  %v8817_v35 = vpop.f32.mrf.mxu0  ;;  %v8822_v17 = vsel %vm2065_vm3, %v2066_v41, %v2067_v55  ;;  %v2074_v32 = vrot.slane %v8153_v4, 3  ;;  %v6032_v4 = vld [vmem:[%s12104_s1 + $0xcf0] sm:$0xff]  ;;  %v6087_v41 = vld [vmem:[%s12104_s1 + $0x1468] sm:$0xff] }
 0x141   : > { %2180 = vmatprep.subr.mxu1 %v5981_v62  ;;  %1940 = vmatpush2.msra.mxu0 %v5924_v9  ;;  %12127 = vst [vmem:[#allocation20_spill] sm:$0xff] %v8817_v35  ;;  %v8819_v46 = vpop.f32.mrf.mxu1  ;;  %v6033_v62 = vld [vmem:[%s12104_s1 + $0xcf8] sm:$0xff]  ;;  %v2072_v9 = vrot.slane %v8171_v60, 3  ;;  %v6046_v35 = vld [vmem:[%s12104_s1 + $0xd60] sm:$0xff] }
 0x142   : > { %2181 = vmatpush2.msra.mxu1 %v5980_v45  ;;  %12128 = vst [vmem:[#allocation21_spill] sm:$0xff] %v8819_v46  ;;  %1941 = vmatprep.subr.mxu0 %v5923_v18  ;;  %v6031_v45 = vld [vmem:[%s12104_s1 + $0xce8] sm:$0xff] }
 0x143   : > { %2182 = vmatprep.subr.mxu1 %v5979_v13  ;;  %1942 = vmatpush2.msra.mxu0 %v5922_v49  ;;  %v8851_v13 = vsel %vm2065_vm3, %v2070_v56, %v2074_v32  ;;  %v6086_v49 = vld [vmem:[%s12104_s1 + $0x1460] sm:$0xff]  ;;  %v2078_v56 = vrot.slane %v8189_v63, 3  ;;  %v6028_v63 = vld [vmem:[%s12104_s1 + $0xcd0] sm:$0xff]  ;;  %v6047_v46 = vld [vmem:[%s12104_s1 + $0xd68] sm:$0xff] }
 0x144   : > { %5938 = vmatprep.mubr.msk.f32.mxu0 %vm600_vm1, %v8368_v37  ;;  %2183 = vmatpush2.msra.mxu1 %v5978_v31  ;;  %v6088_v37 = vld [vmem:[%s12104_s1 + $0x1470] sm:$0xff]  ;;  %v8862_v31 = vsel %vm2065_vm3, %v2067_v55, %v2072_v9  ;;  %v2076_v55 = vrot.slane %v8207_v21, 3  ;;  %v6026_v21 = vld [vmem:[%s12104_s1 + $0xcc0] sm:$0xff] }
 0x145   : > { %5994 = vmatprep.mubr.msk.f32.mxu1 %vm600_vm1, %v8815_v34  ;;  %1944 = vmatmul.mubr.f32.vlgmr.msra.gmra.mxu0 %v8374_v61  ;;  %v976_v2 = vpop.f32.mrf.mxu0  ;;  %v6030_v61 = vld [vmem:[%s12104_s1 + $0xce0] sm:$0xff] }
 0x146   : > { %2185 = vmatmul.mubr.f32.vlgmr.msra.gmra.mxu1 %v8822_v17  ;;  %v1089_v18 = vpop.f32.mrf.mxu1  ;;  %2298 = vmatprep.subr.mxu0 %v6033_v62  ;;  %v6029_v62 = vld [vmem:[%s12104_s1 + $0xcd8] sm:$0xff] }
 0x147   : > { %2476 = vmatprep.subr.mxu1 %v6089_v53  ;;  %v8853_v60 = vadd.f32 %v1089_v18, %v976_v2  ;;  %2299 = vmatpush1.msra.mxu0 %v6032_v4  ;;  %v6085_v53 = vld [vmem:[%s12104_s1 + $0x1458] sm:$0xff]  ;;  %v6027_v4 = vld [vmem:[%s12104_s1 + $0xcc8] sm:$0xff]  ;;  %v2082_v2 = vrot.slane %v8225_v7, 3  ;;  %v6024_v7 = vld [vmem:[%s12104_s1 + $0xcb0] sm:$0xff] }
 0x148   : > { %2477 = vmatpush1.msra.mxu1 %v6088_v37  ;;  %2300 = vmatprep.subr.mxu0 %v6031_v45  ;;  %v6083_v37 = vld [vmem:[%s12104_s1 + $0x1448] sm:$0xff]  ;;  %v8891_v45 = vsel %vm2065_vm3, %v2074_v32, %v2078_v56  ;;  %v6025_v32 = vld [vmem:[%s12104_s1 + $0xcb8] sm:$0xff] }
 0x149   : > { %2478 = vmatprep.subr.mxu1 %v6087_v41  ;;  %5939 = vmatprep.mubr.msk.f32.mxu0 %vm600_vm1, %v8403_v8  ;;  %v6084_v8 = vld [vmem:[%s12104_s1 + $0x1450] sm:$0xff]  ;;  %v8900_v41 = vsel %vm2065_vm3, %v2072_v9, %v2076_v55  ;;  %v6081_v18 = vld [vmem:[%s12104_s1 + $0x1438] sm:$0xff]  ;;  %v2080_v9 = vrot.slane %v8243_v36, 3  ;;  %v6022_v36 = vld [vmem:[%s12104_s1 + $0xca0] sm:$0xff] }
 0x14a   : > { %5995 = vmatprep.mubr.msk.f32.mxu1 %vm600_vm1, %v8851_v13  ;;  %2301 = vmatpush1.msra.mxu0 %v6030_v61  ;;  %v6023_v61 = vld [vmem:[%s12104_s1 + $0xca8] sm:$0xff] }
 0x14b   : > { %2479 = vmatpush1.msra.mxu1 %v6086_v49  ;;  %1950 = vmatmul.mubr.f32.gmra.mxu0 %v8414_v14  ;;  %v6082_v14 = vld [vmem:[%s12104_s1 + $0x1440] sm:$0xff]  ;;  %v6079_v49 = vld [vmem:[%s12104_s1 + $0x1428] sm:$0xff] }
 0x14c   : > { %2191 = vmatmul.mubr.f32.gmra.mxu1 %v8862_v31  ;;  %2302 = vmatprep.subr.mxu0 %v6029_v62  ;;  %v8929_v62 = vsel %vm2065_vm3, %v2078_v56, %v2082_v2  ;;  %v6021_v56 = vld [vmem:[%s12104_s1 + $0xc98] sm:$0xff] }
 0x14d   : > { %2480 = vmatprep.subr.mxu1 %v6085_v53  ;;  %2303 = vmatpush1.msra.mxu0 %v6028_v63  ;;  %v8938_v53 = vsel %vm2065_vm3, %v2076_v55, %v2080_v9  ;;  %v2086_v63 = vrot.slane %v8261_v16, 3  ;;  %v6020_v16 = vld [vmem:[%s12104_s1 + $0xc90] sm:$0xff]  ;;  %v2084_v55 = vrot.slane %v8279_v54, 3  ;;  %v8971_v54 = vpop.f32.mrf.mxu1 }
 0x14e   : > { %2481 = vmatpush1.msra.mxu1 %v6084_v8  ;;  %2304 = vmatprep.subr.mxu0 %v6027_v4  ;;  %v6077_v8 = vld [vmem:[%s12104_s1 + $0x1418] sm:$0xff]  ;;  %v6019_v4 = vld [vmem:[%s12104_s1 + $0xc88] sm:$0xff] }
 0x14f   : > { %2482 = vmatprep.subr.mxu1 %v6083_v37  ;;  %5940 = vmatprep.mubr.msk.f32.mxu0 %vm600_vm1, %v8443_v28  ;;  %v6080_v28 = vld [vmem:[%s12104_s1 + $0x1430] sm:$0xff]  ;;  %v6075_v37 = vld [vmem:[%s12104_s1 + $0x1408] sm:$0xff] }
 0x150   : > { %5996 = vmatprep.mubr.msk.f32.mxu1 %vm600_vm1, %v8891_v45  ;;  %2305 = vmatpush1.msra.mxu0 %v6026_v21  ;;  %v8967_v21 = vsel %vm2065_vm3, %v2082_v2, %v2086_v63  ;;  %v2090_v2 = vrot.slane %v8297_v29, 3  ;;  %v6016_v29 = vld [vmem:[%s12104_s1 + $0xc70] sm:$0xff] }
 0x151   : > { %2483 = vmatpush1.msra.mxu1 %v6082_v14  ;;  %1956 = vmatmul.mubr.f32.gmra.mxu0 %v8452_v30  ;;  %v6078_v30 = vld [vmem:[%s12104_s1 + $0x1420] sm:$0xff]  ;;  %v8969_v14 = vpop.f32.mrf.mxu0 }
 0x152   : > { %2197 = vmatmul.mubr.f32.gmra.mxu1 %v8900_v41  ;;  %2306 = vmatprep.subr.mxu0 %v6025_v32  ;;  %v6074_v32 = vld [vmem:[%s12104_s1 + $0x1400] sm:$0xff] }
 0x153   : > { %2484 = vmatprep.subr.mxu1 %v6081_v18  ;;  %2307 = vmatpush1.msra.mxu0 %v6024_v7  ;;  %v8980_v18 = vsel %vm2065_vm3, %v2080_v9, %v2084_v55  ;;  %v6073_v9 = vld [vmem:[%s12104_s1 + $0x13f8] sm:$0xff] }
 0x154   : > { %2485 = vmatpush1.msra.mxu1 %v6080_v28  ;;  %2308 = vmatprep.subr.mxu0 %v6023_v61  ;;  %v6017_v61 = vld [vmem:[%s12104_s1 + $0xc78] sm:$0xff] }
 0x155   : > { %2486 = vmatprep.subr.mxu1 %v6079_v49  ;;  %5941 = vmatprep.mubr.msk.f32.mxu0 %vm600_vm1, %v8481_v47  ;;  %v6076_v47 = vld [vmem:[%s12104_s1 + $0x1410] sm:$0xff] }
 0x156   : > { %5997 = vmatprep.mubr.msk.f32.mxu1 %vm600_vm1, %v8929_v62  ;;  %2309 = vmatpush1.msra.mxu0 %v6022_v36  ;;  %v2088_v36 = vrot.slane %v8315_v5, 3  ;;  %v9016_v5 = vsel %vm2065_vm3, %v2086_v63, %v2090_v2 }
 0x157   : > { %2487 = vmatpush1.msra.mxu1 %v6078_v30  ;;  %1962 = vmatmul.mubr.f32.gmra.mxu0 %v8490_v50  ;;  %v6018_v50 = vld [vmem:[%s12104_s1 + $0xc80] sm:$0xff] }
 0x158   : > { %2203 = vmatmul.mubr.f32.gmra.mxu1 %v8938_v53  ;;  %2310 = vmatprep.subr.mxu0 %v6021_v56 }
 0x159   : > { %2488 = vmatprep.subr.mxu1 %v6077_v8  ;;  %2311 = vmatpush1.msra.mxu0 %v6020_v16  ;;  %v6015_v8 = vld [vmem:[%s12104_s1 + $0xc68] sm:$0xff] }
 0x15a   : > { %2489 = vmatpush1.msra.mxu1 %v6076_v47  ;;  %2312 = vmatprep.subr.mxu0 %v6019_v4  ;;  %v982_v7 = vpop.f32.mrf.mxu0  ;;  %v6071_v16 = vld [vmem:[%s12104_s1 + $0x13e8] sm:$0xff]  ;;  %v2011_v47 = vld [vmem:[%s7140_s23 + $0x78] sm:$0x7f]  ;;  %v6070_v4 = vld [vmem:[%s12104_s1 + $0x13e0] sm:$0xff] }
 0x15b   : > { %2490 = vmatprep.subr.mxu1 %v6075_v37  ;;  %v1095_v28 = vpop.f32.mrf.mxu1  ;;  %5942 = vmatprep.mubr.msk.f32.mxu0 %vm600_vm1, %v8519_v40  ;;  %v6072_v40 = vld [vmem:[%s12104_s1 + $0x13f0] sm:$0xff] }
 0x15c   : > { %5998 = vmatprep.mubr.msk.f32.mxu1 %vm600_vm1, %v8967_v21  ;;  %v8993_v49 = vadd.f32 %v1095_v28, %v982_v7  ;;  %2313 = vmatpush1.msra.mxu0 %v6018_v50  ;;  %v9002_v30 = vpop.f32.mrf.mxu0  ;;  %v2010_v37 = vld [vmem:[%s7140_s23 + $0x70] sm:$0x7f]  ;;  %v9026_v50 = vsel %vm2065_vm3, %v2084_v55, %v2088_v36  ;;  %v6013_v28 = vld [vmem:[%s12104_s1 + $0xc58] sm:$0xff] }
 0x15d   : > { %2491 = vmatpush1.msra.mxu1 %v6074_v32  ;;  %12129 = vst [vmem:[#allocation22_spill] sm:$0xff] %v9002_v30  ;;  %v9004_v56 = vpop.f32.mrf.mxu1  ;;  %1968 = vmatmul.mubr.f32.gmra.mxu0 %v8532_v42  ;;  %v6014_v42 = vld [vmem:[%s12104_s1 + $0xc60] sm:$0xff]  ;;  %v9028_v32 = vrot.slane %v2011_v47, 3  ;;  %v6067_v47 = vld [vmem:[%s12104_s1 + $0x13c8] sm:$0xff] }
 0x15e   : > { %12130 = vst [vmem:[#allocation23_spill] sm:$0xff] %v9004_v56  ;;  %2209 = vmatmul.mubr.f32.gmra.mxu1 %v8980_v18  ;;  %2314 = vmatprep.subr.mxu0 %v6017_v61  ;;  %v6069_v61 = vld [vmem:[%s12104_s1 + $0x13d8] sm:$0xff]  ;;  %v2607_v56 = vld [vmem:[%s7140_s23 + $0x70] sm:$0xff] }
 0x15f   : > { %2492 = vmatprep.subr.mxu1 %v6073_v9  ;;  %2315 = vmatpush1.msra.mxu0 %v6016_v29  ;;  %v6012_v9 = vld [vmem:[%s12104_s1 + $0xc50] sm:$0xff]  ;;  %v9048_v29 = vrot.slane %v2010_v37, 3 }
 0x160   : > { %2493 = vmatpush1.msra.mxu1 %v6072_v40  ;;  %2316 = vmatprep.subr.mxu0 %v6015_v8  ;;  %v988_v63 = vpop.f32.mrf.mxu0 }
 0x161   : > { %2494 = vmatprep.subr.mxu1 %v6071_v16  ;;  %v1101_v7 = vpop.f32.mrf.mxu1  ;;  %5943 = vmatprep.mubr.msk.f32.mxu0 %vm600_vm1, %v8568_v20  ;;  %v6068_v20 = vld [vmem:[%s12104_s1 + $0x13d0] sm:$0xff]  ;;  %v6011_v16 = vld [vmem:[%s12104_s1 + $0xc48] sm:$0xff]  ;;  %v9074_v37 = vsel %vm2065_vm3, %v2088_v36, %v9048_v29 }
 0x162   : > { %5999 = vmatprep.mubr.msk.f32.mxu1 %vm600_vm1, %v9016_v5  ;;  %v9040_v55 = vadd.f32 %v1101_v7, %v988_v63  ;;  %2317 = vmatpush1.msra.mxu0 %v6014_v42  ;;  %v9050_v40 = vpop.f32.mrf.mxu0  ;;  %v9064_v42 = vsel %vm2065_vm3, %v2090_v2, %v9028_v32  ;;  %v6009_v2 = vld [vmem:[%s12104_s1 + $0xc38] sm:$0xff]  ;;  %v6008_v36 = vld [vmem:[%s12104_s1 + $0xc30] sm:$0xff] }
 0x163   : > { %2495 = vmatpush1.msra.mxu1 %v6070_v4  ;;  %12131 = vst [vmem:[#allocation24_spill] sm:$0xff] %v9050_v40  ;;  %v9052_v8 = vpop.f32.mrf.mxu1  ;;  %1974 = vmatmul.mubr.f32.gmra.mxu0 %v8578_v58  ;;  %v6010_v58 = vld [vmem:[%s12104_s1 + $0xc40] sm:$0xff] }
 0x164   : > { %12132 = vst [vmem:[#allocation25_spill] sm:$0xff] %v9052_v8  ;;  %2215 = vmatmul.mubr.f32.gmra.mxu1 %v9026_v50  ;;  %2318 = vmatprep.subr.mxu0 %v6013_v28  ;;  %v6066_v4 = vld [vmem:[%s12104_s1 + $0x13c0] sm:$0xff]  ;;  %v6065_v28 = vld [vmem:[%s12104_s1 + $0x13b8] sm:$0xff] }
 0x165   : > { %2496 = vmatprep.subr.mxu1 %v6069_v61  ;;  %2319 = vmatpush1.msra.mxu0 %v6012_v9 }
 0x166   : > { %2497 = vmatpush1.msra.mxu1 %v6068_v20  ;;  %2320 = vmatprep.subr.mxu0 %v6011_v16  ;;  %v994_v63 = vpop.f32.mrf.mxu0  ;;  %v6007_v16 = vld [vmem:[%s12104_s1 + $0xc28] sm:$0xff] }
 0x167   : > { %2498 = vmatprep.subr.mxu1 %v6067_v47  ;;  %v1107_v7 = vpop.f32.mrf.mxu1  ;;  %5944 = vmatprep.mubr.msk.f32.mxu0 %vm600_vm1, %v8616_v27  ;;  %v6064_v27 = vld [vmem:[%s12104_s1 + $0x13b0] sm:$0xff]  ;;  %v6063_v47 = vld [vmem:[%s12104_s1 + $0x13a8] sm:$0xff] }
 0x168   : > { %6000 = vmatprep.mubr.msk.f32.mxu1 %vm600_vm1, %v9064_v42  ;;  %v9086_v61 = vadd.f32 %v1107_v7, %v994_v63  ;;  %2321 = vmatpush1.msra.mxu0 %v6010_v58  ;;  %v9094_v9 = vpop.f32.mrf.mxu0  ;;  %v6006_v58 = vld [vmem:[%s12104_s1 + $0xc20] sm:$0xff]  ;;  %v6005_v7 = vld [vmem:[%s12104_s1 + $0xc18] sm:$0xff] }
 0x169   : > { %2499 = vmatpush1.msra.mxu1 %v6066_v4  ;;  %12133 = vst [vmem:[#allocation26_spill] sm:$0xff] %v9094_v9  ;;  %v9096_v20 = vpop.f32.mrf.mxu1  ;;  %1980 = vmatmul.mubr.f32.gmra.mxu0 %v8626_v57  ;;  %v6062_v57 = vld [vmem:[%s12104_s1 + $0x13a0] sm:$0xff] }
 0x16a   : > { %12134 = vst [vmem:[#allocation27_spill] sm:$0xff] %v9096_v20  ;;  %2221 = vmatmul.mubr.f32.gmra.mxu1 %v9074_v37  ;;  %2322 = vmatprep.subr.mxu0 %v6009_v2  ;;  %v6061_v2 = vld [vmem:[%s12104_s1 + $0x1398] sm:$0xff] }
 0x16b   : > { %2500 = vmatprep.subr.mxu1 %v6065_v28  ;;  %2323 = vmatpush1.msra.mxu0 %v6008_v36  ;;  %v6004_v36 = vld [vmem:[%s12104_s1 + $0xc10] sm:$0xff] }
 0x16c   : > { %2501 = vmatpush1.msra.mxu1 %v6064_v27  ;;  %2324 = vmatprep.subr.mxu0 %v6007_v16  ;;  %v1000_v4 = vpop.f32.mrf.mxu0 }
 0x16d   : > { %2502 = vmatprep.subr.mxu1 %v6063_v47  ;;  %v1113_v63 = vpop.f32.mrf.mxu1  ;;  %5945 = vmatprep.mubr.msk.f32.mxu0 %vm600_vm1, %v8580_v33  ;;  %v6060_v33 = vld [vmem:[%s12104_s1 + $0x1390] sm:$0xff]  ;;  %v6003_v47 = vld [vmem:[%s12104_s1 + $0xc08] sm:$0xff] }
 0x16e   : > { %6001 = vmatprep.mubr.msk.f32.mxu1 %vm600_vm1, %v9028_v32  ;;  %v9122_v28 = vadd.f32 %v1113_v63, %v1000_v4  ;;  %2325 = vmatpush1.msra.mxu0 %v6006_v58  ;;  %v9130_v27 = vpop.f32.mrf.mxu0  ;;  %v6059_v58 = vld [vmem:[%s12104_s1 + $0x1388] sm:$0xff]  ;;  %v6049_v4 = vld [vmem:[%s12104_s1 + $0xd78] sm:$0xff] }
 0x16f   : > { %2503 = vmatpush1.msra.mxu1 %v6062_v57  ;;  %12135 = vst [vmem:[#allocation28_spill] sm:$0xff] %v9130_v27  ;;  %v9132_v16 = vpop.f32.mrf.mxu1  ;;  %1986 = vmatmul.mubr.f32.gmra.mxu0 %v8600_v24  ;;  %v6002_v57 = vld [vmem:[%s12104_s1 + $0xc00] sm:$0xff]  ;;  %v6105_v63 = vld [vmem:[%s12104_s1 + $0x14f8] sm:$0xff]  ;;  %v6729_v27 = vld [vmem:[%s7140_s23 + $0x28] sm:$0xff] }
 0x170   : > { %12136 = vst [vmem:[#allocation29_spill] sm:$0xff] %v9132_v16  ;;  %2227 = vmatmul.mubr.f32.gmra.mxu1 %v9048_v29  ;;  %2326 = vmatprep.subr.mxu0 %v6005_v7  ;;  %v6058_v24 = vld [vmem:[%s12104_s1 + $0x1380] sm:$0xff]  ;;  %v6048_v7 = vld [vmem:[%s12104_s1 + $0xd70] sm:$0xff]  ;;  %v2671_v26 = vrot.slane %v6729_v27, 4 }
 0x171   : > { %2504 = vmatprep.subr.mxu1 %v6061_v2  ;;  %2327 = vmatpush1.msra.mxu0 %v6004_v36  ;;  %v6104_v2 = vld [vmem:[%s12104_s1 + $0x14f0] sm:$0xff]  ;;  %v6202_v27 = vld [vmem:[%s12104_s1 + $0xe80] sm:$0xff] }
 0x172   : > { %2505 = vmatpush1.msra.mxu1 %v6060_v33  ;;  %2328 = vmatprep.subr.mxu0 %v6003_v47  ;;  %v1006_v36 = vpop.f32.mrf.mxu0  ;;  %v6103_v47 = vld [vmem:[%s12104_s1 + $0x14e8] sm:$0xff] }
 0x173   : > { %2506 = vmatprep.subr.mxu1 %v6059_v58  ;;  %v1119_v33 = vpop.f32.mrf.mxu1  ;;  %2329 = vmatpush1.msra.mxu0 %v6002_v57  ;;  %v6102_v57 = vld [vmem:[%s12104_s1 + $0x14e0] sm:$0xff] }
 0x174   : > { %2507 = vmatpush1.msra.mxu1 %v6058_v24  ;;  %v9166_v58 = vadd.f32 %v1119_v33, %v1006_v36  ;;  %2346 = vmatprep.subr.mxu0 %v6049_v4  ;;  %v9174_v24 = vpop.f32.mrf.mxu0  ;;  %v6045_v36 = vld [vmem:[%s12104_s1 + $0xd58] sm:$0xff]  ;;  %v6100_v33 = vld [vmem:[%s12104_s1 + $0x14d0] sm:$0xff] }
 0x175   : > { %2524 = vmatprep.subr.mxu1 %v6105_v63  ;;  %12137 = vst [vmem:[#allocation30_spill] sm:$0xff] %v9174_v24  ;;  %v9176_v44 = vpop.f32.mrf.mxu1  ;;  %2347 = vmatpush2.msra.mxu0 %v6048_v7  ;;  %v6101_v4 = vld [vmem:[%s12104_s1 + $0x14d8] sm:$0xff]  ;;  %v6044_v63 = vld [vmem:[%s12104_s1 + $0xd50] sm:$0xff]  ;;  %v6043_v7 = vld [vmem:[%s12104_s1 + $0xd48] sm:$0xff] }
 0x176   : > { %12138 = vst [vmem:[#allocation31_spill] sm:$0xff] %v9176_v44  ;;  %2525 = vmatpush2.msra.mxu1 %v6104_v2  ;;  %2348 = vmatprep.subr.mxu0 %v6047_v46  ;;  %v6099_v2 = vld [vmem:[%s12104_s1 + $0x14c8] sm:$0xff]  ;;  %v6042_v46 = vld [vmem:[%s12104_s1 + $0xd40] sm:$0xff] }
 0x177   : > { %2526 = vmatprep.subr.mxu1 %v6103_v47  ;;  %2349 = vmatpush2.msra.mxu0 %v6046_v35  ;;  %v6098_v47 = vld [vmem:[%s12104_s1 + $0x14c0] sm:$0xff] }
 0x178   : > { %2527 = vmatpush2.msra.mxu1 %v6102_v57  ;;  %2350 = vmatprep.subr.mxu0 %v6045_v36  ;;  %v1012_v35 = vpop.f32.mrf.mxu0  ;;  %v6097_v36 = vld [vmem:[%s12104_s1 + $0x14b8] sm:$0xff] }
 0x179   : > { %2528 = vmatprep.subr.mxu1 %v6101_v4  ;;  %v1125_v57 = vpop.f32.mrf.mxu1  ;;  %2351 = vmatpush2.msra.mxu0 %v6044_v63  ;;  %v6096_v63 = vld [vmem:[%s12104_s1 + $0x14b0] sm:$0xff] }
 0x17a   : > { %2529 = vmatpush2.msra.mxu1 %v6100_v33  ;;  %v9208_v4 = vadd.f32 %v1125_v57, %v1012_v35  ;;  %2352 = vmatprep.subr.mxu0 %v6043_v7  ;;  %v9216_v33 = vpop.f32.mrf.mxu0  ;;  %v6039_v35 = vld [vmem:[%s12104_s1 + $0xd28] sm:$0xff]  ;;  %v6094_v57 = vld [vmem:[%s12104_s1 + $0x14a0] sm:$0xff] }
 0x17b   : > { %2530 = vmatprep.subr.mxu1 %v6099_v2  ;;  %12139 = vst [vmem:[#allocation32_spill] sm:$0xff] %v9216_v33  ;;  %v9218_v44 = vpop.f32.mrf.mxu1  ;;  %2353 = vmatpush2.msra.mxu0 %v6042_v46  ;;  %v6095_v7 = vld [vmem:[%s12104_s1 + $0x14a8] sm:$0xff]  ;;  %v6038_v2 = vld [vmem:[%s12104_s1 + $0xd20] sm:$0xff]  ;;  %v6037_v46 = vld [vmem:[%s12104_s1 + $0xd18] sm:$0xff] }
 0x17c   : > { %12140 = vst [vmem:[#allocation33_spill] sm:$0xff] %v9218_v44  ;;  %2531 = vmatpush2.msra.mxu1 %v6098_v47  ;;  %2354 = vmatprep.subr.mxu0 %v6041_v25  ;;  %v6093_v47 = vld [vmem:[%s12104_s1 + $0x1498] sm:$0xff]  ;;  %v6036_v25 = vld [vmem:[%s12104_s1 + $0xd10] sm:$0xff]  ;;  %v6035_v44 = vld [vmem:[%s12104_s1 + $0xd08] sm:$0xff] }
 0x17d   : > { %2532 = vmatprep.subr.mxu1 %v6097_v36  ;;  %2355 = vmatpush2.msra.mxu0 %v6040_v19  ;;  %v6092_v36 = vld [vmem:[%s12104_s1 + $0x1490] sm:$0xff]  ;;  %v6034_v33 = vld [vmem:[%s12104_s1 + $0xd00] sm:$0xff] }
 0x17e   : > { %2533 = vmatpush2.msra.mxu1 %v6096_v63  ;;  %2356 = vmatprep.subr.mxu0 %v6039_v35  ;;  %v1018_v19 = vpop.f32.mrf.mxu0  ;;  %v6091_v35 = vld [vmem:[%s12104_s1 + $0x1488] sm:$0xff] }
 0x17f   : > { %2534 = vmatprep.subr.mxu1 %v6095_v7  ;;  %v1131_v63 = vpop.f32.mrf.mxu1  ;;  %2357 = vmatpush2.msra.mxu0 %v6038_v2  ;;  %v6090_v2 = vld [vmem:[%s12104_s1 + $0x1480] sm:$0xff] }
 0x180   : > { %2535 = vmatpush2.msra.mxu1 %v6094_v57  ;;  %v9250_v7 = vadd.f32 %v1131_v63, %v1018_v19  ;;  %2358 = vmatprep.subr.mxu0 %v6037_v46  ;;  %v9258_v57 = vpop.f32.mrf.mxu0  ;;  %v6145_v46 = vld [vmem:[%s12104_s1 + $0x6f8] sm:$0xff] }
 0x181   : > { %2536 = vmatprep.subr.mxu1 %v6093_v47  ;;  %2359 = vmatpush2.msra.mxu0 %v6036_v25  ;;  %12141 = vst [vmem:[#allocation34_spill] sm:$0xff] %v9258_v57  ;;  %v9260_v24 = vpop.f32.mrf.mxu1  ;;  %v6201_v47 = vld [vmem:[%s12104_s1 + $0xe78] sm:$0xff]  ;;  %v6143_v25 = vld [vmem:[%s12104_s1 + $0x6e8] sm:$0xff]  ;;  %v6150_v57 = vld [vmem:[%s12104_s1 + $0x720] sm:$0xff] }
 0x182   : > { %2537 = vmatpush2.msra.mxu1 %v6092_v36  ;;  %12142 = vst [vmem:[#allocation35_spill] sm:$0xff] %v9260_v24  ;;  %2360 = vmatprep.subr.mxu0 %v6035_v44  ;;  %v6144_v44 = vld [vmem:[%s12104_s1 + $0x6f0] sm:$0xff] }
 0x183   : > { %2538 = vmatprep.subr.mxu1 %v6091_v35  ;;  %2361 = vmatpush2.msra.mxu0 %v6034_v33  ;;  %v6200_v33 = vld [vmem:[%s12104_s1 + $0xe70] sm:$0xff]  ;;  %v6198_v35 = vld [vmem:[%s12104_s1 + $0xe60] sm:$0xff] }
 0x184   : > { %6050 = vmatprep.mubr.msk.f32.mxu0 %vm600_vm1, %v8815_v34  ;;  %2539 = vmatpush2.msra.mxu1 %v6090_v2  ;;  %v6141_v2 = vld [vmem:[%s12104_s1 + $0x6d8] sm:$0xff] }
 0x185   : > { %6106 = vmatprep.mubr.msk.f32.mxu1 %vm600_vm1, %v8815_v34  ;;  %2363 = vmatmul.mubr.f32.vlgmr.msra.gmra.mxu0 %v8822_v17  ;;  %v6199_v34 = vld [vmem:[%s12104_s1 + $0xe68] sm:$0xff]  ;;  %v1251_v36 = vpop.f32.mrf.mxu0 }
 0x186   : > { %2541 = vmatmul.mubr.f32.vlgmr.msra.gmra.mxu1 %v8822_v17  ;;  %v1364_v19 = vpop.f32.mrf.mxu1  ;;  %2717 = vmatprep.subr.mxu0 %v6145_v46  ;;  %v6142_v17 = vld [vmem:[%s12104_s1 + $0x6e0] sm:$0xff]  ;;  %v6197_v46 = vld [vmem:[%s12104_s1 + $0xe58] sm:$0xff] }
 0x187   : > { %2895 = vmatprep.subr.mxu1 %v6201_v47  ;;  %v9286_v63 = vadd.f32 %v1364_v19, %v1251_v36  ;;  %2718 = vmatpush1.msra.mxu0 %v6144_v44  ;;  %v6140_v47 = vld [vmem:[%s12104_s1 + $0x6d0] sm:$0xff]  ;;  %v6193_v36 = vld [vmem:[%s12104_s1 + $0xe38] sm:$0xff] }
 0x188   : > { %2896 = vmatpush1.msra.mxu1 %v6200_v33  ;;  %2719 = vmatprep.subr.mxu0 %v6143_v25  ;;  %v6196_v44 = vld [vmem:[%s12104_s1 + $0xe50] sm:$0xff]  ;;  %v6195_v33 = vld [vmem:[%s12104_s1 + $0xe48] sm:$0xff]  ;;  %v6138_v25 = vld [vmem:[%s12104_s1 + $0x6c0] sm:$0xff] }
 0x189   : > { %2897 = vmatprep.subr.mxu1 %v6199_v34  ;;  %6051 = vmatprep.mubr.msk.f32.mxu0 %vm600_vm1, %v8851_v13  ;;  %v6137_v34 = vld [vmem:[%s12104_s1 + $0x6b8] sm:$0xff]  ;;  %v6136_v19 = vld [vmem:[%s12104_s1 + $0x6b0] sm:$0xff] }
 0x18a   : > { %6107 = vmatprep.mubr.msk.f32.mxu1 %vm600_vm1, %v8851_v13  ;;  %2720 = vmatpush1.msra.mxu0 %v6142_v17  ;;  %v6139_v13 = vld [vmem:[%s12104_s1 + $0x6c8] sm:$0xff]  ;;  %v6192_v17 = vld [vmem:[%s12104_s1 + $0xe30] sm:$0xff] }
 0x18b   : > { %2898 = vmatpush1.msra.mxu1 %v6198_v35  ;;  %2369 = vmatmul.mubr.f32.gmra.mxu0 %v8862_v31  ;;  %v6191_v35 = vld [vmem:[%s12104_s1 + $0xe28] sm:$0xff] }
 0x18c   : > { %2547 = vmatmul.mubr.f32.gmra.mxu1 %v8862_v31  ;;  %2721 = vmatprep.subr.mxu0 %v6141_v2  ;;  %v6194_v31 = vld [vmem:[%s12104_s1 + $0xe40] sm:$0xff] }
 0x18d   : > { %2899 = vmatprep.subr.mxu1 %v6197_v46  ;;  %2722 = vmatpush1.msra.mxu0 %v6140_v47  ;;  %v6134_v2 = vld [vmem:[%s12104_s1 + $0x6a0] sm:$0xff]  ;;  %v6133_v46 = vld [vmem:[%s12104_s1 + $0x698] sm:$0xff] }
 0x18e   : > { %2900 = vmatpush1.msra.mxu1 %v6196_v44  ;;  %2723 = vmatprep.subr.mxu0 %v6139_v13  ;;  %v6189_v47 = vld [vmem:[%s12104_s1 + $0xe18] sm:$0xff]  ;;  %v6132_v44 = vld [vmem:[%s12104_s1 + $0x690] sm:$0xff] }
 0x18f   : > { %2901 = vmatprep.subr.mxu1 %v6195_v33  ;;  %6052 = vmatprep.mubr.msk.f32.mxu0 %vm600_vm1, %v8891_v45  ;;  %v6188_v13 = vld [vmem:[%s12104_s1 + $0xe10] sm:$0xff]  ;;  %v6187_v33 = vld [vmem:[%s12104_s1 + $0xe08] sm:$0xff] }
 0x190   : > { %6108 = vmatprep.mubr.msk.f32.mxu1 %vm600_vm1, %v8891_v45  ;;  %2724 = vmatpush1.msra.mxu0 %v6138_v25  ;;  %v6135_v45 = vld [vmem:[%s12104_s1 + $0x6a8] sm:$0xff]  ;;  %v9378_v25 = vpop.f32.mrf.mxu0 }
 0x191   : > { %2902 = vmatpush1.msra.mxu1 %v6194_v31  ;;  %2375 = vmatmul.mubr.f32.gmra.mxu0 %v8900_v41  ;;  %12143 = vst [vmem:[#allocation36_spill] sm:$0xff] %v9378_v25  ;;  %v9380_v31 = vpop.f32.mrf.mxu1 }
 0x192   : > { %2553 = vmatmul.mubr.f32.gmra.mxu1 %v8900_v41  ;;  %2725 = vmatprep.subr.mxu0 %v6137_v34  ;;  %v6190_v41 = vld [vmem:[%s12104_s1 + $0xe20] sm:$0xff]  ;;  %12144 = vst [vmem:[#allocation37_spill] sm:$0xff] %v9380_v31  ;;  %v6157_v31 = vld [vmem:[%s12104_s1 + $0x758] sm:$0xff] }
 0x193   : > { %2903 = vmatprep.subr.mxu1 %v6193_v36  ;;  %2726 = vmatpush1.msra.mxu0 %v6136_v19  ;;  %v6186_v34 = vld [vmem:[%s12104_s1 + $0xe00] sm:$0xff] }
 0x194   : > { %2904 = vmatpush1.msra.mxu1 %v6192_v17  ;;  %2727 = vmatprep.subr.mxu0 %v6135_v45  ;;  %v6129_v17 = vld [vmem:[%s12104_s1 + $0x678] sm:$0xff] }
 0x195   : > { %2905 = vmatprep.subr.mxu1 %v6191_v35  ;;  %6053 = vmatprep.mubr.msk.f32.mxu0 %vm600_vm1, %v8929_v62  ;;  %v6185_v45 = vld [vmem:[%s12104_s1 + $0xdf8] sm:$0xff] }
 0x196   : > { %6109 = vmatprep.mubr.msk.f32.mxu1 %vm600_vm1, %v8929_v62  ;;  %2728 = vmatpush1.msra.mxu0 %v6134_v2  ;;  %v6131_v62 = vld [vmem:[%s12104_s1 + $0x688] sm:$0xff]  ;;  %v6128_v2 = vld [vmem:[%s12104_s1 + $0x670] sm:$0xff] }
 0x197   : > { %2906 = vmatpush1.msra.mxu1 %v6190_v41  ;;  %2381 = vmatmul.mubr.f32.gmra.mxu0 %v8938_v53 }
 0x198   : > { %2559 = vmatmul.mubr.f32.gmra.mxu1 %v8938_v53  ;;  %2729 = vmatprep.subr.mxu0 %v6133_v46  ;;  %v6130_v53 = vld [vmem:[%s12104_s1 + $0x680] sm:$0xff] }
 0x199   : > { %2907 = vmatprep.subr.mxu1 %v6189_v47  ;;  %2730 = vmatpush1.msra.mxu0 %v6132_v44  ;;  %v6127_v47 = vld [vmem:[%s12104_s1 + $0x668] sm:$0xff] }
 0x19a   : > { %2908 = vmatpush1.msra.mxu1 %v6188_v13  ;;  %2731 = vmatprep.subr.mxu0 %v6131_v62  ;;  %v1257_v36 = vpop.f32.mrf.mxu0  ;;  %v6183_v44 = vld [vmem:[%s12104_s1 + $0xde8] sm:$0xff]  ;;  %v6126_v13 = vld [vmem:[%s12104_s1 + $0x660] sm:$0xff] }
 0x19b   : > { %2909 = vmatprep.subr.mxu1 %v6187_v33  ;;  %v1370_v19 = vpop.f32.mrf.mxu1  ;;  %6054 = vmatprep.mubr.msk.f32.mxu0 %vm600_vm1, %v8967_v21 }
 0x19c   : > { %6110 = vmatprep.mubr.msk.f32.mxu1 %vm600_vm1, %v8967_v21  ;;  %v9398_v35 = vadd.f32 %v1370_v19, %v1257_v36  ;;  %2732 = vmatpush1.msra.mxu0 %v6130_v53  ;;  %v6184_v21 = vld [vmem:[%s12104_s1 + $0xdf0] sm:$0xff]  ;;  %v9406_v41 = vpop.f32.mrf.mxu0  ;;  %v6125_v53 = vld [vmem:[%s12104_s1 + $0x658] sm:$0xff] }
 0x19d   : > { %2910 = vmatpush1.msra.mxu1 %v6186_v34  ;;  %v9408_v46 = vpop.f32.mrf.mxu1  ;;  %2387 = vmatmul.mubr.f32.gmra.mxu0 %v8980_v18  ;;  %v6181_v34 = vld [vmem:[%s12104_s1 + $0xdd8] sm:$0xff]  ;;  %v6124_v19 = vld [vmem:[%s12104_s1 + $0x650] sm:$0xff] }
 0x19e   : > { %2565 = vmatmul.mubr.f32.gmra.mxu1 %v8980_v18  ;;  %2733 = vmatprep.subr.mxu0 %v6129_v17  ;;  %v6182_v18 = vld [vmem:[%s12104_s1 + $0xde0] sm:$0xff] }
 0x19f   : > { %2911 = vmatprep.subr.mxu1 %v6185_v45  ;;  %2734 = vmatpush1.msra.mxu0 %v6128_v2  ;;  %v6123_v2 = vld [vmem:[%s12104_s1 + $0x648] sm:$0xff] }
 0x1a0   : > { %2912 = vmatpush1.msra.mxu1 %v6184_v21  ;;  %2735 = vmatprep.subr.mxu0 %v6127_v47  ;;  %v1263_v62 = vpop.f32.mrf.mxu0  ;;  %v6179_v21 = vld [vmem:[%s12104_s1 + $0xdc8] sm:$0xff]  ;;  %v6122_v47 = vld [vmem:[%s12104_s1 + $0x640] sm:$0xff] }
 0x1a1   : > { %2913 = vmatprep.subr.mxu1 %v6183_v44  ;;  %v1376_v33 = vpop.f32.mrf.mxu1  ;;  %6055 = vmatprep.mubr.msk.f32.mxu0 %vm600_vm1, %v9016_v5 }
 0x1a2   : > { %6111 = vmatprep.mubr.msk.f32.mxu1 %vm600_vm1, %v9016_v5  ;;  %v9434_v36 = vadd.f32 %v1376_v33, %v1263_v62  ;;  %2736 = vmatpush1.msra.mxu0 %v6126_v13  ;;  %v6180_v5 = vld [vmem:[%s12104_s1 + $0xdd0] sm:$0xff]  ;;  %v9442_v17 = vpop.f32.mrf.mxu0  ;;  %v6177_v62 = vld [vmem:[%s12104_s1 + $0xdb8] sm:$0xff] }
 0x1a3   : > { %2914 = vmatpush1.msra.mxu1 %v6182_v18  ;;  %v9444_v45 = vpop.f32.mrf.mxu1  ;;  %2393 = vmatmul.mubr.f32.gmra.mxu0 %v9026_v50  ;;  %v6121_v18 = vld [vmem:[%s12104_s1 + $0x638] sm:$0xff] }
 0x1a4   : > { %2571 = vmatmul.mubr.f32.gmra.mxu1 %v9026_v50  ;;  %2737 = vmatprep.subr.mxu0 %v6125_v53  ;;  %v6178_v50 = vld [vmem:[%s12104_s1 + $0xdc0] sm:$0xff]  ;;  %v6120_v53 = vld [vmem:[%s12104_s1 + $0x630] sm:$0xff] }
 0x1a5   : > { %2915 = vmatprep.subr.mxu1 %v6181_v34  ;;  %2738 = vmatpush1.msra.mxu0 %v6124_v19 }
 0x1a6   : > { %2916 = vmatpush1.msra.mxu1 %v6180_v5  ;;  %2739 = vmatprep.subr.mxu0 %v6123_v2  ;;  %v1269_v44 = vpop.f32.mrf.mxu0  ;;  %v6119_v5 = vld [vmem:[%s12104_s1 + $0x628] sm:$0xff] }
 0x1a7   : > { %2917 = vmatprep.subr.mxu1 %v6179_v21  ;;  %v1382_v13 = vpop.f32.mrf.mxu1  ;;  %6056 = vmatprep.mubr.msk.f32.mxu0 %vm600_vm1, %v9064_v42  ;;  %v6175_v2 = vld [vmem:[%s12104_s1 + $0xda8] sm:$0xff] }
 0x1a8   : > { %6112 = vmatprep.mubr.msk.f32.mxu1 %vm600_vm1, %v9064_v42  ;;  %v9470_v33 = vadd.f32 %v1382_v13, %v1269_v44  ;;  %2740 = vmatpush1.msra.mxu0 %v6122_v47  ;;  %v6176_v42 = vld [vmem:[%s12104_s1 + $0xdb0] sm:$0xff]  ;;  %v1271_v34 = vpop.f32.mrf.mxu0  ;;  %v6118_v47 = vld [vmem:[%s12104_s1 + $0x620] sm:$0xff]  ;;  %v6117_v13 = vld [vmem:[%s12104_s1 + $0x618] sm:$0xff] }
 0x1a9   : > { %2918 = vmatpush1.msra.mxu1 %v6178_v50  ;;  %v1384_v19 = vpop.f32.mrf.mxu1  ;;  %2399 = vmatmul.mubr.f32.gmra.mxu0 %v9074_v37 }
 0x1aa   : > { %2577 = vmatmul.mubr.f32.gmra.mxu1 %v9074_v37  ;;  %v9486_v21 = vadd.f32 %v1384_v19, %v1271_v34  ;;  %2741 = vmatprep.subr.mxu0 %v6121_v18  ;;  %v6174_v37 = vld [vmem:[%s12104_s1 + $0xda0] sm:$0xff]  ;;  %v6173_v18 = vld [vmem:[%s12104_s1 + $0xd98] sm:$0xff]  ;;  %v6115_v19 = vld [vmem:[%s12104_s1 + $0x608] sm:$0xff] }
 0x1ab   : > { %2919 = vmatprep.subr.mxu1 %v6177_v62  ;;  %2742 = vmatpush1.msra.mxu0 %v6120_v53  ;;  %v6116_v53 = vld [vmem:[%s12104_s1 + $0x610] sm:$0xff] }
 0x1ac   : > { %2920 = vmatpush1.msra.mxu1 %v6176_v42  ;;  %2743 = vmatprep.subr.mxu0 %v6119_v5  ;;  %v1275_v50 = vpop.f32.mrf.mxu0  ;;  %v6171_v5 = vld [vmem:[%s12104_s1 + $0xd88] sm:$0xff] }
 0x1ad   : > { %2921 = vmatprep.subr.mxu1 %v6175_v2  ;;  %v1388_v44 = vpop.f32.mrf.mxu1  ;;  %6057 = vmatprep.mubr.msk.f32.mxu0 %vm600_vm1, %v9028_v32 }
 0x1ae   : > { %6113 = vmatprep.mubr.msk.f32.mxu1 %vm600_vm1, %v9028_v32  ;;  %v9504_v62 = vadd.f32 %v1388_v44, %v1275_v50  ;;  %2744 = vmatpush1.msra.mxu0 %v6118_v47  ;;  %v6172_v32 = vld [vmem:[%s12104_s1 + $0xd90] sm:$0xff]  ;;  %v1277_v42 = vpop.f32.mrf.mxu0  ;;  %v6114_v47 = vld [vmem:[%s12104_s1 + $0x600] sm:$0xff]  ;;  %v6217_v50 = vld [vmem:[%s12104_s1 + $0xef8] sm:$0xff] }
 0x1af   : > { %2922 = vmatpush1.msra.mxu1 %v6174_v37  ;;  %v1390_v34 = vpop.f32.mrf.mxu1  ;;  %2405 = vmatmul.mubr.f32.gmra.mxu0 %v9048_v29  ;;  %v6161_v37 = vld [vmem:[%s12104_s1 + $0x778] sm:$0xff]  ;;  %v6160_v44 = vld [vmem:[%s12104_s1 + $0x770] sm:$0xff] }
 0x1b0   : > { %2583 = vmatmul.mubr.f32.gmra.mxu1 %v9048_v29  ;;  %v9520_v2 = vadd.f32 %v1390_v34, %v1277_v42  ;;  %2745 = vmatprep.subr.mxu0 %v6117_v13  ;;  %v6170_v29 = vld [vmem:[%s12104_s1 + $0xd80] sm:$0xff]  ;;  %v6216_v13 = vld [vmem:[%s12104_s1 + $0xef0] sm:$0xff]  ;;  %v6215_v42 = vld [vmem:[%s12104_s1 + $0xee8] sm:$0xff] }
 0x1b1   : > { %2923 = vmatprep.subr.mxu1 %v6173_v18  ;;  %2746 = vmatpush1.msra.mxu0 %v6116_v53 }
 0x1b2   : > { %2924 = vmatpush1.msra.mxu1 %v6172_v32  ;;  %2747 = vmatprep.subr.mxu0 %v6115_v19  ;;  %v1281_v18 = vpop.f32.mrf.mxu0  ;;  %v6159_v32 = vld [vmem:[%s12104_s1 + $0x768] sm:$0xff]  ;;  %v6158_v19 = vld [vmem:[%s12104_s1 + $0x760] sm:$0xff] }
 0x1b3   : > { %2925 = vmatprep.subr.mxu1 %v6171_v5  ;;  %v1394_v53 = vpop.f32.mrf.mxu1  ;;  %2748 = vmatpush1.msra.mxu0 %v6114_v47  ;;  %v6214_v5 = vld [vmem:[%s12104_s1 + $0xee0] sm:$0xff] }
 0x1b4   : > { %2926 = vmatpush1.msra.mxu1 %v6170_v29  ;;  %v9546_v34 = vadd.f32 %v1394_v53, %v1281_v18  ;;  %2765 = vmatprep.subr.mxu0 %v6161_v37  ;;  %v1283_v47 = vpop.f32.mrf.mxu0  ;;  %v6213_v37 = vld [vmem:[%s12104_s1 + $0xed8] sm:$0xff]  ;;  %v6156_v18 = vld [vmem:[%s12104_s1 + $0x750] sm:$0xff]  ;;  %v6211_v53 = vld [vmem:[%s12104_s1 + $0xec8] sm:$0xff] }
 0x1b5   : > { %2943 = vmatprep.subr.mxu1 %v6217_v50  ;;  %v1396_v29 = vpop.f32.mrf.mxu1  ;;  %2766 = vmatpush2.msra.mxu0 %v6160_v44  ;;  %v6212_v44 = vld [vmem:[%s12104_s1 + $0xed0] sm:$0xff] }
 0x1b6   : > { %2944 = vmatpush2.msra.mxu1 %v6216_v13  ;;  %v9560_v50 = vadd.f32 %v1396_v29, %v1283_v47  ;;  %2767 = vmatprep.subr.mxu0 %v6159_v32  ;;  %v6155_v13 = vld [vmem:[%s12104_s1 + $0x748] sm:$0xff]  ;;  %v6154_v32 = vld [vmem:[%s12104_s1 + $0x740] sm:$0xff]  ;;  %v6153_v47 = vld [vmem:[%s12104_s1 + $0x738] sm:$0xff] }
 0x1b7   : > { %2945 = vmatprep.subr.mxu1 %v6215_v42  ;;  %2768 = vmatpush2.msra.mxu0 %v6158_v19  ;;  %v6210_v42 = vld [vmem:[%s12104_s1 + $0xec0] sm:$0xff]  ;;  %v2606_v29 = vld [vmem:[%s7140_s23 + $0x8] sm:$0xf0] }
 0x1b8   : > { %2946 = vmatpush2.msra.mxu1 %v6214_v5  ;;  %2769 = vmatprep.subr.mxu0 %v6157_v31  ;;  %v1287_v19 = vpop.f32.mrf.mxu0  ;;  %v6209_v31 = vld [vmem:[%s12104_s1 + $0xeb8] sm:$0xff] }
 0x1b9   : > { %2947 = vmatprep.subr.mxu1 %v6213_v37  ;;  %v1400_v5 = vpop.f32.mrf.mxu1  ;;  %2770 = vmatpush2.msra.mxu0 %v6156_v18  ;;  %v6152_v18 = vld [vmem:[%s12104_s1 + $0x730] sm:$0xff] }
 0x1ba   : > { %2948 = vmatpush2.msra.mxu1 %v6212_v44  ;;  %v9587_v37 = vadd.f32 %v1400_v5, %v1287_v19  ;;  %2771 = vmatprep.subr.mxu0 %v6155_v13  ;;  %v6208_v44 = vld [vmem:[%s12104_s1 + $0xeb0] sm:$0xff]  ;;  %v1289_v25 = vpop.f32.mrf.mxu0  ;;  %v6151_v19 = vld [vmem:[%s12104_s1 + $0x728] sm:$0xff] }
 0x1bb   : > { %2949 = vmatprep.subr.mxu1 %v6211_v53  ;;  %v1402_v24 = vpop.f32.mrf.mxu1  ;;  %2772 = vmatpush2.msra.mxu0 %v6154_v32  ;;  %v6207_v13 = vld [vmem:[%s12104_s1 + $0xea8] sm:$0xff]  ;;  %v2605_v53 = vld [vmem:[%s7140_s23] sm:$0xf0] }
 0x1bc   : > { %2950 = vmatpush2.msra.mxu1 %v6210_v42  ;;  %v9602_v5 = vadd.f32 %v1402_v24, %v1289_v25  ;;  %2773 = vmatprep.subr.mxu0 %v6153_v47  ;;  %v6206_v32 = vld [vmem:[%s12104_s1 + $0xea0] sm:$0xff]  ;;  %v2666_v42 = vrot.slane %v2606_v29, 4  ;;  %v6149_v24 = vld [vmem:[%s12104_s1 + $0x718] sm:$0xff]  ;;  %v6148_v47 = vld [vmem:[%s12104_s1 + $0x710] sm:$0xff] }
 0x1bd   : > { %2951 = vmatprep.subr.mxu1 %v6209_v31  ;;  %2774 = vmatpush2.msra.mxu0 %v6152_v18  ;;  %v6205_v25 = vld [vmem:[%s12104_s1 + $0xe98] sm:$0xff]  ;;  %v2663_v31 = vrot.slane %v2605_v53, 4  ;;  %v6728_v29 = vld [vmem:[%s7140_s23 + $0x10] sm:$0xff] }
 0x1be   : > { %2952 = vmatpush2.msra.mxu1 %v6208_v44  ;;  %2775 = vmatprep.subr.mxu0 %v6151_v19  ;;  %v2664_v18 = vrot.slane %v6728_v29, 4  ;;  %v1293_v44 = vpop.f32.mrf.mxu0  ;;  %v6147_v19 = vld [vmem:[%s12104_s1 + $0x708] sm:$0xff]  ;;  %v9637_v53 = vsel %vm2662_vm4, %v2666_v42, %v2667_v38  ;;  %v6257_v42 = vld [vmem:[%s12104_s1 + $0x15f8] sm:$0xff] }
 0x1bf   : > { %2953 = vmatprep.subr.mxu1 %v6207_v13  ;;  %v1406_v16 = vpop.f32.mrf.mxu1  ;;  %2776 = vmatpush2.msra.mxu0 %v6150_v57  ;;  %v6203_v13 = vld [vmem:[%s12104_s1 + $0xe88] sm:$0xff]  ;;  %v6146_v57 = vld [vmem:[%s12104_s1 + $0x700] sm:$0xff] }
 0x1c0   : > { %2954 = vmatpush2.msra.mxu1 %v6206_v32  ;;  %v9631_v3 = vadd.f32 %v1406_v16, %v1293_v44  ;;  %2777 = vmatprep.subr.mxu0 %v6149_v24  ;;  %v1295_v32 = vpop.f32.mrf.mxu0  ;;  %v9645_v24 = vsel %vm2662_vm4, %v2663_v31, %v2664_v18  ;;  %v6731_v31 = vld [vmem:[%s7140_s23 + $0x38] sm:$0xff] }
 0x1c1   : > { %2955 = vmatprep.subr.mxu1 %v6205_v25  ;;  %v1408_v29 = vpop.f32.mrf.mxu1  ;;  %2778 = vmatpush2.msra.mxu0 %v6148_v47  ;;  %v6730_v25 = vld [vmem:[%s7140_s23 + $0x20] sm:$0xff]  ;;  %v9654_v47 = vsel %vm2662_vm4, %v2667_v38, %v2671_v26 }
 0x1c2   : > { %2956 = vmatpush2.msra.mxu1 %v6204_v51  ;;  %v9642_v16 = vadd.f32 %v1408_v29, %v1295_v32  ;;  %2779 = vmatprep.subr.mxu0 %v6147_v19  ;;  %v2669_v44 = vrot.slane %v6730_v25, 4  ;;  %v6256_v51 = vld [vmem:[%s12104_s1 + $0x15f0] sm:$0xff]  ;;  %v2675_v19 = vrot.slane %v6731_v31, 4  ;;  %v6254_v32 = vld [vmem:[%s12104_s1 + $0x15e0] sm:$0xff] }
 0x1c3   : > { %2957 = vmatprep.subr.mxu1 %v6203_v13  ;;  %2780 = vmatpush2.msra.mxu0 %v6146_v57  ;;  %v6255_v13 = vld [vmem:[%s12104_s1 + $0x15e8] sm:$0xff] }
 0x1c4   : > { %6162 = vmatprep.mubr.msk.f32.mxu0 %vm600_vm1, %v9637_v53  ;;  %2958 = vmatpush2.msra.mxu1 %v6202_v27  ;;  %v9673_v29 = vsel %vm2662_vm4, %v2664_v18, %v2669_v44  ;;  %v6732_v27 = vld [vmem:[%s7140_s23 + $0x30] sm:$0xff] }
 0x1c5   : > { %6218 = vmatprep.mubr.msk.f32.mxu1 %vm600_vm1, %v9637_v53  ;;  %2782 = vmatmul.mubr.f32.vlgmr.msra.gmra.mxu0 %v9645_v24  ;;  %v1589_v38 = vpop.f32.mrf.mxu0  ;;  %v2673_v25 = vrot.slane %v6732_v27, 4  ;;  %v6734_v27 = vld [vmem:[%s7140_s23 + $0x40] sm:$0xff] }
 0x1c6   : > { %2960 = vmatmul.mubr.f32.vlgmr.msra.gmra.mxu1 %v9645_v24  ;;  %v1767_v57 = vpop.f32.mrf.mxu1  ;;  %3073 = vmatprep.subr.mxu0 %v6257_v42  ;;  %v9677_v31 = vadd.f32 %v1589_v38, %v8405_v12  ;;  %v6253_v42 = vld [vmem:[%s12104_s1 + $0x15d8] sm:$0xff]  ;;  %v6252_v12 = vld [vmem:[%s12104_s1 + $0x15d0] sm:$0xff] }
 0x1c7   : > { %6163 = vmatprep.mubr.msk.f32.mxu0 %vm600_vm1, %v9654_v47  ;;  %v9680_v20 = vadd.f32 %v1767_v57, %v8853_v60  ;;  %3074 = vmatpush1.msra.mxu0 %v6256_v51  ;;  %v9687_v9 = vpop.f32.mrf.mxu0  ;;  %v9695_v60 = vsel %vm2662_vm4, %v2671_v26, %v2675_v19  ;;  %v6733_v51 = vld [vmem:[%s7140_s23 + $0x48] sm:$0xff]  ;;  %v9707_v26 = vsel %vm2662_vm4, %v2669_v44, %v2673_v25  ;;  %v6248_v44 = vld [vmem:[%s12104_s1 + $0x15b0] sm:$0xff] }
 0x1c8   : > { %6219 = vmatprep.mubr.msk.f32.mxu1 %vm600_vm1, %v9654_v47  ;;  %v9689_v18 = vpop.f32.mrf.mxu1  ;;  %3075 = vmatprep.subr.mxu0 %v6255_v13  ;;  %v2679_v38 = vrot.slane %v6733_v51, 4  ;;  %v6251_v57 = vld [vmem:[%s12104_s1 + $0x15c8] sm:$0xff]  ;;  %v6250_v13 = vld [vmem:[%s12104_s1 + $0x15c0] sm:$0xff]  ;;  %v2677_v51 = vrot.slane %v6734_v27, 4 }
 0x1c9   : > { %3076 = vmatpush1.msra.mxu0 %v6254_v32  ;;  %v6249_v32 = vld [vmem:[%s12104_s1 + $0x15b8] sm:$0xff] }
 0x1ca   : > { %2966 = vmatmul.mubr.f32.gmra.mxu1 %v9673_v29  ;;  %2788 = vmatmul.mubr.f32.gmra.mxu0 %v9673_v29 }
 0x1cb   : > { %3077 = vmatprep.subr.mxu0 %v6253_v42  ;;  %6164 = vmatprep.mubr.msk.f32.mxu0 %vm600_vm1, %v9695_v60  ;;  %v1595_v52 = vpop.f32.mrf.mxu0  ;;  %v9721_v42 = vsel %vm2662_vm4, %v2675_v19, %v2679_v38 }
 0x1cc   : > { %3078 = vmatpush1.msra.mxu0 %v6252_v12  ;;  %v1773_v22 = vpop.f32.mrf.mxu1  ;;  %6220 = vmatprep.mubr.msk.f32.mxu1 %vm600_vm1, %v9695_v60  ;;  %v6735_v12 = vld [vmem:[%s7140_s23 + $0x58] sm:$0xff]  ;;  %v9725_v8 = vadd.f32 %v1595_v52, %v8545_v59  ;;  %v6246_v59 = vld [vmem:[%s12104_s1 + $0x15a0] sm:$0xff]  ;;  %v6736_v52 = vld [vmem:[%s7140_s23 + $0x50] sm:$0xff] }
 0x1cd   : > { %3079 = vmatprep.subr.mxu0 %v6251_v57  ;;  %v2683_v27 = vrot.slane %v6735_v12, 4  ;;  %v9728_v40 = vadd.f32 %v1773_v22, %v8993_v49  ;;  %v6247_v57 = vld [vmem:[%s12104_s1 + $0x15a8] sm:$0xff]  ;;  %v9734_v11 = vpop.f32.mrf.mxu0  ;;  %v9743_v22 = vsel %vm2662_vm4, %v2673_v25, %v2677_v51  ;;  %v2681_v49 = vrot.slane %v6736_v52, 4  ;;  %v6244_v25 = vld [vmem:[%s12104_s1 + $0x1590] sm:$0xff]  ;;  %v2608_v52 = vld [vmem:[%s7140_s23 + $0x78] sm:$0xff] }
 0x1ce   : > { %12145 = vst [vmem:[#allocation38_spill] sm:$0xff] %v9725_v8  ;;  %3080 = vmatpush1.msra.mxu0 %v6250_v13  ;;  %2972 = vmatmul.mubr.f32.gmra.mxu1 %v9707_v26  ;;  %12147 = vst [vmem:[#allocation40_spill] sm:$0xff] %v9734_v11  ;;  %v9736_v19 = vpop.f32.mrf.mxu1  ;;  %v6245_v13 = vld [vmem:[%s12104_s1 + $0x1598] sm:$0xff] }
 0x1cf   : > { %12146 = vst [vmem:[#allocation39_spill] sm:$0xff] %v9728_v40  ;;  %12148 = vst [vmem:[#allocation41_spill] sm:$0xff] %v9736_v19  ;;  %2794 = vmatmul.mubr.f32.gmra.mxu0 %v9707_v26  ;;  %3081 = vmatprep.subr.mxu0 %v6249_v32  ;;  %v9757_v32 = vsel %vm2662_vm4, %v2679_v38, %v2683_v27  ;;  %v6242_v38 = vld [vmem:[%s12104_s1 + $0x1580] sm:$0xff] }
 0x1d0   : > { %3082 = vmatpush1.msra.mxu0 %v6248_v44  ;;  %6165 = vmatprep.mubr.msk.f32.mxu0 %vm600_vm1, %v9721_v42  ;;  %v6737_v44 = vld [vmem:[%s7140_s23 + $0x68] sm:$0xff] }
 0x1d1   : > { %3083 = vmatprep.subr.mxu0 %v6247_v57  ;;  %6221 = vmatprep.mubr.msk.f32.mxu1 %vm600_vm1, %v9721_v42  ;;  %v2687_v12 = vrot.slane %v6737_v44, 4  ;;  %v6243_v57 = vld [vmem:[%s12104_s1 + $0x1588] sm:$0xff]  ;;  %v1601_v8 = vpop.f32.mrf.mxu0  ;;  %v9770_v44 = vsel %vm2662_vm4, %v2677_v51, %v2681_v49 }
 0x1d2   : > { %3084 = vmatpush1.msra.mxu0 %v6246_v59  ;;  %2978 = vmatmul.mubr.f32.gmra.mxu1 %v9743_v22  ;;  %v1779_v11 = vpop.f32.mrf.mxu1  ;;  %v6738_v59 = vld [vmem:[%s7140_s23 + $0x60] sm:$0xff]  ;;  %v9774_v19 = vadd.f32 %v1601_v8, %v8592_v10  ;;  %v6239_v8 = vld [vmem:[%s12104_s1 + $0x1568] sm:$0xff]  ;;  %s6739_s23 = scalar_lea.vmem %s5430_s27, 16 }
 0x1d3   : > { %2800 = vmatmul.mubr.f32.gmra.mxu0 %v9743_v22  ;;  %3085 = vmatprep.subr.mxu0 %v6245_v13  ;;  %v2685_v40 = vrot.slane %v6738_v59, 4  ;;  %v9777_v15 = vadd.f32 %v1779_v11, %v9040_v55  ;;  %v6241_v13 = vld [vmem:[%s12104_s1 + $0x1578] sm:$0xff]  ;;  %v9785_v30 = vpop.f32.mrf.mxu0  ;;  %v6240_v11 = vld [vmem:[%s12104_s1 + $0x1570] sm:$0xff]  ;;  %v9795_v10 = vsel %vm2662_vm4, %v2683_v27, %v2687_v12  ;;  %v9797_v55 = vrot.slane %v2608_v52, 4  ;;  %p6740_p11 = scmp.ne.s32.totalorder %s5430_s27, %s6739_s23  ;;  %p6747_p1 = scmp.lt.s32.totalorder %s6745_s21, %s6739_s23 }
 0x1d4   : > { %12149 = vst [vmem:[#allocation42_spill] sm:$0xff] %v9774_v19  ;;  %3086 = vmatpush1.msra.mxu0 %v6244_v25  ;;  %6166 = vmatprep.mubr.msk.f32.mxu0 %vm600_vm1, %v9757_v32  ;;  %12150 = vst [vmem:[#allocation43_spill] sm:$0xff] %v9785_v30  ;;  %v9787_v51 = vpop.f32.mrf.mxu1  ;;  %v6238_v25 = vld [vmem:[%s12104_s1 + $0x1560] sm:$0xff]  ;;  %v9810_v27 = vrot.slane %v2607_v56, 4  ;;  %v6237_v52 = vld [vmem:[%s12104_s1 + $0x1558] sm:$0xff] }
 0x1d5   : > { %3087 = vmatprep.subr.mxu0 %v6243_v57  ;;  %6222 = vmatprep.mubr.msk.f32.mxu1 %vm600_vm1, %v9757_v32  ;;  %v9808_v57 = vsel %vm2662_vm4, %v2681_v49, %v2685_v40  ;;  %v6236_v49 = vld [vmem:[%s12104_s1 + $0x1550] sm:$0xff]  ;;  %v9824_v56 = vsel %vm2662_vm4, %v2687_v12, %v9797_v55  ;;  %v6233_v12 = vld [vmem:[%s12104_s1 + $0x1538] sm:$0xff]  ;;  %p6741_p12 = pnand %p6740_p11, %p6892_p5  ;;  %p6748_p2 = por %p6747_p1, %p6746_p0 }
 0x1d6   : > { %3088 = vmatpush1.msra.mxu0 %v6242_v38  ;;  %2984 = vmatmul.mubr.f32.gmra.mxu1 %v9770_v44 }
 0x1d7   : > { %2806 = vmatmul.mubr.f32.gmra.mxu0 %v9770_v44  ;;  %3089 = vmatprep.subr.mxu0 %v6241_v13  ;;  %v1607_v38 = vpop.f32.mrf.mxu0  ;;  %p6742_p13 = pneg %p6741_p12 }
 0x1d8   : > { %3090 = vmatpush1.msra.mxu0 %v6240_v11  ;;  %6167 = vmatprep.mubr.msk.f32.mxu0 %vm600_vm1, %v9795_v10  ;;  %v1785_v59 = vpop.f32.mrf.mxu1  ;;  %v9827_v13 = vadd.f32 %v1607_v38, %v8638_v0  ;;  %v6234_v0 = vld [vmem:[%s12104_s1 + $0x1540] sm:$0xff] }
 0x1d9   : > { %3091 = vmatprep.subr.mxu0 %v6239_v8  ;;  %6223 = vmatprep.mubr.msk.f32.mxu1 %vm600_vm1, %v9795_v10  ;;  %v9830_v11 = vadd.f32 %v1785_v59, %v9086_v61  ;;  %v6235_v8 = vld [vmem:[%s12104_s1 + $0x1548] sm:$0xff]  ;;  %v9836_v19 = vpop.f32.mrf.mxu0  ;;  %v9846_v61 = vsel %vm2662_vm4, %v2685_v40, %v9810_v27  ;;  %v6230_v59 = vld [vmem:[%s12104_s1 + $0x1520] sm:$0xff]  ;;  %p6749_p3 = pnand %p6748_p2, %p6742_p13 }
 0x1da   : > { %12151 = vst [vmem:[#allocation44_spill] sm:$0xff] %v9827_v13  ;;  %3092 = vmatpush1.msra.mxu0 %v6238_v25  ;;  %2990 = vmatmul.mubr.f32.gmra.mxu1 %v9808_v57  ;;  %v9838_v30 = vpop.f32.mrf.mxu1  ;;  %v6232_v25 = vld [vmem:[%s12104_s1 + $0x1530] sm:$0xff]  ;;  %v6231_v40 = vld [vmem:[%s12104_s1 + $0x1528] sm:$0xff] }
 0x1db   : > { %2812 = vmatmul.mubr.f32.gmra.mxu0 %v9808_v57  ;;  %3093 = vmatprep.subr.mxu0 %v6237_v52 }
 0x1dc   : > { %3094 = vmatpush1.msra.mxu0 %v6236_v49  ;;  %6168 = vmatprep.mubr.msk.f32.mxu0 %vm600_vm1, %v9824_v56 }
 0x1dd   : > { %3095 = vmatprep.subr.mxu0 %v6235_v8  ;;  %6224 = vmatprep.mubr.msk.f32.mxu1 %vm600_vm1, %v9824_v56  ;;  %v1613_v52 = vpop.f32.mrf.mxu0 }
 0x1de   : > { %3096 = vmatpush1.msra.mxu0 %v6234_v0  ;;  %2996 = vmatmul.mubr.f32.gmra.mxu1 %v9846_v61  ;;  %v1791_v38 = vpop.f32.mrf.mxu1  ;;  %v9867_v49 = vadd.f32 %v1613_v52, %v8674_v48  ;;  %v6229_v0 = vld [vmem:[%s12104_s1 + $0x1518] sm:$0xff]  ;;  %v6228_v48 = vld [vmem:[%s12104_s1 + $0x1510] sm:$0xff] }
 0x1df   : > { %2818 = vmatmul.mubr.f32.gmra.mxu0 %v9846_v61  ;;  %3097 = vmatprep.subr.mxu0 %v6233_v12  ;;  %v9870_v8 = vadd.f32 %v1791_v38, %v9122_v28  ;;  %v9877_v13 = vpop.f32.mrf.mxu0  ;;  %v6227_v28 = vld [vmem:[%s12104_s1 + $0x1508] sm:$0xff] }
 0x1e0   : > { %12152 = vst [vmem:[#allocation45_spill] sm:$0xff] %v9867_v49  ;;  %3098 = vmatpush1.msra.mxu0 %v6232_v25  ;;  %6169 = vmatprep.mubr.msk.f32.mxu0 %vm600_vm1, %v9797_v55  ;;  %12153 = vst [vmem:[#allocation46_spill] sm:$0xff] %v9877_v13  ;;  %v9879_v12 = vpop.f32.mrf.mxu1  ;;  %v6226_v25 = vld [vmem:[%s12104_s1 + $0x1500] sm:$0xff] }
 0x1e1   : > { %3099 = vmatprep.subr.mxu0 %v6231_v40  ;;  %6225 = vmatprep.mubr.msk.f32.mxu1 %vm600_vm1, %v9797_v55  ;;  %v6273_v40 = vld [vmem:[%s12104_s1 + $0x1678] sm:$0xff] }
 0x1e2   : > { %3100 = vmatpush1.msra.mxu0 %v6230_v59  ;;  %3002 = vmatmul.mubr.f32.gmra.mxu1 %v9810_v27  ;;  %v6272_v59 = vld [vmem:[%s12104_s1 + $0x1670] sm:$0xff] }
 0x1e3   : > { %2824 = vmatmul.mubr.f32.gmra.mxu0 %v9810_v27  ;;  %3101 = vmatprep.subr.mxu0 %v6229_v0  ;;  %v1619_v52 = vpop.f32.mrf.mxu0 }
 0x1e4   : > { %3102 = vmatpush1.msra.mxu0 %v6228_v48  ;;  %6274 = vmatprep.mubr.msk.f32.mxu0 %vm600_vm1, %v9637_v53  ;;  %v1797_v38 = vpop.f32.mrf.mxu1  ;;  %v9903_v0 = vadd.f32 %v1619_v52, %v8718_v6  ;;  %v6271_v48 = vld [vmem:[%s12104_s1 + $0x1668] sm:$0xff]  ;;  %v6269_v6 = vld [vmem:[%s12104_s1 + $0x1658] sm:$0xff] }
 0x1e5   : > { %3103 = vmatprep.subr.mxu0 %v6227_v28  ;;  %v9906_v49 = vadd.f32 %v1797_v38, %v9166_v58  ;;  %v9911_v13 = vpop.f32.mrf.mxu0  ;;  %v6270_v28 = vld [vmem:[%s12104_s1 + $0x1660] sm:$0xff]  ;;  %v6268_v58 = vld [vmem:[%s12104_s1 + $0x1650] sm:$0xff] }
 0x1e6   : > { %12154 = vst [vmem:[#allocation47_spill] sm:$0xff] %v9903_v0  ;;  %3104 = vmatpush1.msra.mxu0 %v6226_v25  ;;  %12155 = vst [vmem:[#allocation48_spill] sm:$0xff] %v9911_v13  ;;  %v9913_v53 = vpop.f32.mrf.mxu1  ;;  %v6267_v25 = vld [vmem:[%s12104_s1 + $0x1648] sm:$0xff]  ;;  %v6266_v38 = vld [vmem:[%s12104_s1 + $0x1640] sm:$0xff] }
 0x1e7   : > { %3121 = vmatprep.subr.mxu0 %v6273_v40 }
 0x1e8   : > { %3122 = vmatpush2.msra.mxu0 %v6272_v59 }
 0x1e9   : > { %3123 = vmatprep.subr.mxu0 %v6271_v48  ;;  %v1625_v40 = vpop.f32.mrf.mxu0 }
 0x1ea   : > { %3124 = vmatpush2.msra.mxu0 %v6270_v28  ;;  %v1803_v52 = vpop.f32.mrf.mxu1  ;;  %v9931_v59 = vadd.f32 %v1625_v40, %v8760_v43  ;;  %v6265_v28 = vld [vmem:[%s12104_s1 + $0x1638] sm:$0xff]  ;;  %v6263_v43 = vld [vmem:[%s12104_s1 + $0x1628] sm:$0xff] }
 0x1eb   : > { %3125 = vmatprep.subr.mxu0 %v6269_v6  ;;  %v9934_v48 = vadd.f32 %v1803_v52, %v9208_v4  ;;  %v9939_v0 = vpop.f32.mrf.mxu0  ;;  %v6264_v6 = vld [vmem:[%s12104_s1 + $0x1630] sm:$0xff]  ;;  %v6262_v4 = vld [vmem:[%s12104_s1 + $0x1620] sm:$0xff] }
 0x1ec   : > { %3126 = vmatpush2.msra.mxu0 %v6268_v58  ;;  %v9941_v13 = vpop.f32.mrf.mxu1  ;;  %v6261_v58 = vld [vmem:[%s12104_s1 + $0x1618] sm:$0xff]  ;;  %v6260_v52 = vld [vmem:[%s12104_s1 + $0x1610] sm:$0xff] }
 0x1ed   : > { %3127 = vmatprep.subr.mxu0 %v6267_v25 }
 0x1ee   : > { %3128 = vmatpush2.msra.mxu0 %v6266_v38 }
 0x1ef   : > { %3129 = vmatprep.subr.mxu0 %v6265_v28  ;;  %v1631_v25 = vpop.f32.mrf.mxu0 }
 0x1f0   : > { %3130 = vmatpush2.msra.mxu0 %v6264_v6  ;;  %v1809_v40 = vpop.f32.mrf.mxu1  ;;  %v9959_v38 = vadd.f32 %v1631_v25, %v8806_v23  ;;  %v6259_v6 = vld [vmem:[%s12104_s1 + $0x1608] sm:$0xff] }
 0x1f1   : > { %3131 = vmatprep.subr.mxu0 %v6263_v43  ;;  %v9962_v28 = vadd.f32 %v1809_v40, %v9250_v7  ;;  %v6258_v43 = vld [vmem:[%s12104_s1 + $0x1600] sm:$0xff]  ;;  %v9982_v23 = vpop.f32.mrf.mxu0 }
 0x1f2   : > { %12156 = vst [vmem:[#allocation49_spill] sm:$0xff] %v9959_v38  ;;  %3132 = vmatpush2.msra.mxu0 %v6262_v4 }
 0x1f3   : > { %3133 = vmatprep.subr.mxu0 %v6261_v58 }
 0x1f4   : > { %3134 = vmatpush2.msra.mxu0 %v6260_v52 }
 0x1f5   : > { %3135 = vmatprep.subr.mxu0 %v6259_v6 }
 0x1f6   : > { %3136 = vmatpush2.msra.mxu0 %v6258_v43 }
 0x1f7   : > { %3138 = vmatmul.mubr.f32.vlgmr.msra.gmra.mxu0 %v9645_v24 }
 0x1f8   : > { %6275 = vmatprep.mubr.msk.f32.mxu0 %vm600_vm1, %v9654_v47  ;;  %v9990_v47 = vpop.f32.mrf.mxu1 }
 0x1fb   : > { %3144 = vmatmul.mubr.f32.gmra.mxu0 %v9673_v29 }
 0x1fc   : > { %6276 = vmatprep.mubr.msk.f32.mxu0 %vm600_vm1, %v9695_v60 }
 0x1ff   : > { %3150 = vmatmul.mubr.f32.gmra.mxu0 %v9707_v26 }
 0x200   : > { %6277 = vmatprep.mubr.msk.f32.mxu0 %vm600_vm1, %v9721_v42  ;;  %v1373_v42 = vadd.f32 %v9408_v46, %v9406_v41 }
 0x203   : > { %3156 = vmatmul.mubr.f32.gmra.mxu0 %v9743_v22 }
 0x204   : > { %6278 = vmatprep.mubr.msk.f32.mxu0 %vm600_vm1, %v9757_v32 }
 0x205   : > { %v1945_v7 = vpop.f32.mrf.mxu0 }
 0x206   : > { %v9986_v24 = vadd.f32 %v1945_v7, %v9286_v63  ;;  %v9994_v60 = vpop.f32.mrf.mxu1 }
 0x207   : > { %3162 = vmatmul.mubr.f32.gmra.mxu0 %v9770_v44  ;;  %v9992_v29 = vpop.f32.mrf.mxu0 }
 0x208   : > { %12157 = vst [vmem:[#allocation50_spill] sm:$0xff] %v9986_v24  ;;  %6279 = vmatprep.mubr.msk.f32.mxu0 %vm600_vm1, %v9795_v10  ;;  %12158 = vst [vmem:[#allocation51_spill] sm:$0xff] %v9992_v29  ;;  %v10004_v22 = vpop.f32.mrf.mxu1  ;;  %v817_v29 = vadd.f32 %v8523_v39, %v8521_v1 }
 0x20b   : > { %3168 = vmatmul.mubr.f32.gmra.mxu0 %v9808_v57  ;;  %v1951_v26 = vpop.f32.mrf.mxu0 }
 0x20c   : > { %6280 = vmatprep.mubr.msk.f32.mxu0 %vm600_vm1, %v9824_v56  ;;  %v10002_v63 = vadd.f32 %v1951_v26, %v9398_v35  ;;  %v10011_v10 = vpop.f32.mrf.mxu1  ;;  %v1379_v56 = vadd.f32 %v9444_v45, %v9442_v17 }
 0x20d   : > { %v1953_v32 = vpop.f32.mrf.mxu0 }
 0x20e   : > { %12159 = vst [vmem:[#allocation52_spill] sm:$0xff] %v10002_v63  ;;  %v10007_v44 = vadd.f32 %v1953_v32, %v1373_v42 }
 0x20f   : > { %3174 = vmatmul.mubr.f32.gmra.mxu0 %v9846_v61  ;;  %v10021_v61 = vpop.f32.mrf.mxu1 }
 0x210   : > { %12160 = vst [vmem:[#allocation53_spill] sm:$0xff] %v10007_v44  ;;  %6281 = vmatprep.mubr.msk.f32.mxu0 %vm600_vm1, %v9797_v55  ;;  %v6359_v44 = vld [vmem:[%s12106_s3 + $0x268] sm:$0xff] }
 0x211   : > { %v1957_v57 = vpop.f32.mrf.mxu0 }
 0x212   : > { %v10017_v35 = vadd.f32 %v1957_v57, %v9434_v36  ;;  %v10026_v55 = vpop.f32.mrf.mxu1 }
 0x213   : > { %3180 = vmatmul.mubr.f32.gmra.mxu0 %v9810_v27  ;;  %v1959_v41 = vpop.f32.mrf.mxu0 }
 0x214   : > { %12161 = vst [vmem:[#allocation54_spill] sm:$0xff] %v10017_v35  ;;  %v10019_v46 = vadd.f32 %v1959_v41, %v1379_v56  ;;  %v10031_v17 = vpop.f32.mrf.mxu1  ;;  %v6327_v35 = vld [vmem:[%s12106_s3 + $0x168] sm:$0xff] }
 0x216   : > { %12162 = vst [vmem:[#allocation55_spill] sm:$0xff] %v10019_v46  ;;  %v6335_v46 = vld [vmem:[%s12106_s3 + $0x1a8] sm:$0xff] }
 0x217   : > { %v1963_v4 = vpop.f32.mrf.mxu0 }
 0x218   : > { %v10024_v58 = vadd.f32 %v1963_v4, %v9470_v33  ;;  %v10039_v6 = vpop.f32.mrf.mxu1 }
 0x219   : > { %v1965_v25 = vpop.f32.mrf.mxu0 }
 0x21a   : > { %12163 = vst [vmem:[#allocation56_spill] sm:$0xff] %v10024_v58  ;;  %v10029_v40 = vadd.f32 %v1965_v25, %v9486_v21  ;;  %v10044_v7 = vpop.f32.mrf.mxu1  ;;  %v6339_v58 = vld [vmem:[%s12106_s3 + $0x1c8] sm:$0xff] }
 0x21c   : > { %12164 = vst [vmem:[#allocation57_spill] sm:$0xff] %v10029_v40  ;;  %v6387_v40 = vld [vmem:[%s12106_s3 + $0x598] sm:$0xff] }
 0x21d   : > { %v1969_v45 = vpop.f32.mrf.mxu0 }
 0x21e   : > { %v10034_v36 = vadd.f32 %v1969_v45, %v9504_v62  ;;  %v10049_v42 = vpop.f32.mrf.mxu1 }
 0x21f   : > { %v1971_v27 = vpop.f32.mrf.mxu0 }
 0x220   : > { %12165 = vst [vmem:[#allocation58_spill] sm:$0xff] %v10034_v36  ;;  %v10037_v52 = vadd.f32 %v1971_v27, %v9520_v2  ;;  %v10057_v56 = vpop.f32.mrf.mxu1  ;;  %v6342_v36 = vld [vmem:[%s12106_s3 + $0x1e0] sm:$0xff] }
 0x222   : > { %12166 = vst [vmem:[#allocation59_spill] sm:$0xff] %v10037_v52  ;;  %v6390_v52 = vld [vmem:[%s12106_s3 + $0x5b0] sm:$0xff] }
 0x223   : > { %v1975_v33 = vpop.f32.mrf.mxu0 }
 0x224   : > { %v10042_v43 = vadd.f32 %v1975_v33, %v9546_v34  ;;  %v10062_v4 = vpop.f32.mrf.mxu1 }
 0x225   : > { %v1977_v21 = vpop.f32.mrf.mxu0 }
 0x226   : > { %12167 = vst [vmem:[#allocation60_spill] sm:$0xff] %v10042_v43  ;;  %v10047_v26 = vadd.f32 %v1977_v21, %v9560_v50  ;;  %v10067_v45 = vpop.f32.mrf.mxu1  ;;  %v6345_v43 = vld [vmem:[%s12106_s3 + $0x1f8] sm:$0xff] }
 0x228   : > { %12168 = vst [vmem:[#allocation61_spill] sm:$0xff] %v10047_v26  ;;  %v6393_v26 = vld [vmem:[%s12106_s3 + $0x5c8] sm:$0xff] }
 0x229   : > { %v1981_v62 = vpop.f32.mrf.mxu0 }
 0x22a   : > { %v10052_v32 = vadd.f32 %v1981_v62, %v9587_v37  ;;  %v10069_v37 = vpop.f32.mrf.mxu1  ;;  %v6353_v62 = vld [vmem:[%s12106_s3 + $0x238] sm:$0xff] }
 0x22b   : > { %v1983_v2 = vpop.f32.mrf.mxu0  ;;  %3672 = vmatprep.subr.mxu1 %v6353_v62  ;;  %v6397_v62 = vld [vmem:[%s12106_s3 + $0x5e8] sm:$0xff] }
 0x22c   : > { %12169 = vst [vmem:[#allocation62_spill] sm:$0xff] %v10052_v32  ;;  %v10055_v57 = vadd.f32 %v1983_v2, %v9602_v5  ;;  %v10071_v27 = vpop.f32.mrf.mxu1  ;;  %v6352_v2 = vld [vmem:[%s12106_s3 + $0x230] sm:$0xff]  ;;  %v6349_v32 = vld [vmem:[%s12106_s3 + $0x218] sm:$0xff] }
 0x22d   : > { %3673 = vmatpush1.msra.mxu1 %v6352_v2 }
 0x22e   : > { %12170 = vst [vmem:[#allocation63_spill] sm:$0xff] %v10055_v57  ;;  %v6396_v57 = vld [vmem:[%s12106_s3 + $0x5e0] sm:$0xff] }
 0x22f   : > { %v1987_v34 = vpop.f32.mrf.mxu0 }
 0x230   : > { %v10060_v41 = vadd.f32 %v1987_v34, %v9631_v3  ;;  %v10073_v5 = vpop.f32.mrf.mxu1  ;;  %v6398_v34 = vld [vmem:[%s12106_s3 + $0x5f0] sm:$0xff] }
 0x231   : > { %v1989_v50 = vpop.f32.mrf.mxu0  ;;  %12173 = vst [vmem:[#allocation66_spill] sm:$0xff] %v10073_v5  ;;  %v12193_v5 = vld [vmem:[#allocation23_spill] sm:$0xff] }
 0x232   : > { %12171 = vst [vmem:[#allocation64_spill] sm:$0xff] %v10060_v41  ;;  %v10065_v25 = vadd.f32 %v1989_v50, %v9642_v16  ;;  %v10075_v33 = vpop.f32.mrf.mxu1  ;;  %v6399_v16 = vld [vmem:[%s12106_s3 + $0x5f8] sm:$0xff]  ;;  %v6351_v41 = vld [vmem:[%s12106_s3 + $0x228] sm:$0xff] }
 0x233   : > { %12174 = vst [vmem:[#allocation67_spill] sm:$0xff] %v10075_v33  ;;  %3887 = vmatprep.subr.mxu0 %v6399_v16  ;;  %3674 = vmatprep.subr.mxu1 %v6351_v41  ;;  %v6350_v16 = vld [vmem:[%s12106_s3 + $0x220] sm:$0xff]  ;;  %v6395_v41 = vld [vmem:[%s12106_s3 + $0x5d8] sm:$0xff] }
 0x234   : > { %12172 = vst [vmem:[#allocation65_spill] sm:$0xff] %v10065_v25  ;;  %3888 = vmatpush1.msra.mxu0 %v6398_v34  ;;  %3675 = vmatpush1.msra.mxu1 %v6350_v16  ;;  %v6347_v16 = vld [vmem:[%s12106_s3 + $0x208] sm:$0xff]  ;;  %v12192_v33 = vld [vmem:[#allocation22_spill] sm:$0xff] }
 0x235   : > { %3889 = vmatprep.subr.mxu0 %v6397_v62  ;;  %3676 = vmatprep.subr.mxu1 %v6349_v32  ;;  %v6348_v62 = vld [vmem:[%s12106_s3 + $0x210] sm:$0xff]  ;;  %v6346_v32 = vld [vmem:[%s12106_s3 + $0x200] sm:$0xff]  ;;  %v1098_v1 = vadd.f32 %v12193_v5, %v12192_v33 }
 0x236   : > { %3890 = vmatpush1.msra.mxu0 %v6396_v57  ;;  %v6394_v57 = vld [vmem:[%s12106_s3 + $0x5d0] sm:$0xff]  ;;  %3677 = vmatpush1.msra.mxu1 %v6348_v62 }
 0x237   : > { %3891 = vmatprep.subr.mxu0 %v6395_v41  ;;  %3678 = vmatprep.subr.mxu1 %v6347_v16  ;;  %v6392_v41 = vld [vmem:[%s12106_s3 + $0x5c0] sm:$0xff]  ;;  %v6344_v16 = vld [vmem:[%s12106_s3 + $0x1f0] sm:$0xff] }
 0x238   : > { %3892 = vmatpush1.msra.mxu0 %v6394_v57  ;;  %3679 = vmatpush1.msra.mxu1 %v6346_v32  ;;  %v6343_v32 = vld [vmem:[%s12106_s3 + $0x1e8] sm:$0xff] }
 0x239   : > { %3893 = vmatprep.subr.mxu0 %v6393_v26  ;;  %v6391_v26 = vld [vmem:[%s12106_s3 + $0x5b8] sm:$0xff]  ;;  %3680 = vmatprep.subr.mxu1 %v6345_v43 }
 0x23a   : > { %3894 = vmatpush1.msra.mxu0 %v6392_v41  ;;  %3681 = vmatpush1.msra.mxu1 %v6344_v16  ;;  %v6389_v41 = vld [vmem:[%s12106_s3 + $0x5a8] sm:$0xff]  ;;  %v6341_v16 = vld [vmem:[%s12106_s3 + $0x1d8] sm:$0xff] }
 0x23b   : > { %3895 = vmatprep.subr.mxu0 %v6391_v26  ;;  %3682 = vmatprep.subr.mxu1 %v6343_v32  ;;  %v6340_v32 = vld [vmem:[%s12106_s3 + $0x1d0] sm:$0xff] }
 0x23c   : > { %3896 = vmatpush1.msra.mxu0 %v6390_v52  ;;  %v6388_v52 = vld [vmem:[%s12106_s3 + $0x5a0] sm:$0xff]  ;;  %3683 = vmatpush1.msra.mxu1 %v6342_v36 }
 0x23d   : > { %3897 = vmatprep.subr.mxu0 %v6389_v41  ;;  %3684 = vmatprep.subr.mxu1 %v6341_v16  ;;  %v6386_v41 = vld [vmem:[%s12106_s3 + $0x590] sm:$0xff]  ;;  %v6338_v16 = vld [vmem:[%s12106_s3 + $0x1c0] sm:$0xff] }
 0x23e   : > { %3898 = vmatpush1.msra.mxu0 %v6388_v52  ;;  %3685 = vmatpush1.msra.mxu1 %v6340_v32  ;;  %v6337_v32 = vld [vmem:[%s12106_s3 + $0x1b8] sm:$0xff] }
 0x23f   : > { %3899 = vmatprep.subr.mxu0 %v6387_v40  ;;  %v6385_v40 = vld [vmem:[%s12106_s3 + $0x588] sm:$0xff]  ;;  %3686 = vmatprep.subr.mxu1 %v6339_v58  ;;  %v6336_v58 = vld [vmem:[%s12106_s3 + $0x1b0] sm:$0xff] }
 0x240   : > { %3900 = vmatpush1.msra.mxu0 %v6386_v41  ;;  %3687 = vmatpush1.msra.mxu1 %v6338_v16  ;;  %v6383_v41 = vld [vmem:[%s12106_s3 + $0x578] sm:$0xff] }
 0x241   : > { %3901 = vmatprep.subr.mxu0 %v6385_v40  ;;  %3688 = vmatprep.subr.mxu1 %v6337_v32  ;;  %v6382_v40 = vld [vmem:[%s12106_s3 + $0x570] sm:$0xff]  ;;  %v6381_v32 = vld [vmem:[%s12106_s3 + $0x568] sm:$0xff] }
 0x242   : > { %3689 = vmatpush1.msra.mxu1 %v6336_v58  ;;  %v6333_v58 = vld [vmem:[%s12106_s3 + $0x198] sm:$0xff] }
 0x243   : > { %3690 = vmatprep.subr.mxu1 %v6335_v46  ;;  %v6332_v46 = vld [vmem:[%s12106_s3 + $0x190] sm:$0xff] }
 0x245   : > { %v10077_v21 = vpop.f32.mrf.mxu0 }
 0x246   : > { %v10079_v3 = vpop.f32.mrf.mxu1 }
 0x247   : > { %12175 = vst [vmem:[#allocation68_spill] sm:$0xff] %v10079_v3  ;;  %v10093_v50 = vpop.f32.mrf.mxu0 }
 0x248   : > { %v10095_v25 = vpop.f32.mrf.mxu1 }
 0x249   : > { %12176 = vst [vmem:[#allocation69_spill] sm:$0xff] %v10095_v25  ;;  %v3552_v25 = vld [vmem:[%s12106_s3 + $0xf8] sm:$0xff] }
 0x24b   : > { %v10109_v2 = vpop.f32.mrf.mxu0 }
 0x24c   : > { %v10111_v34 = vpop.f32.mrf.mxu1 }
 0x24d   : > { %12177 = vst [vmem:[#allocation70_spill] sm:$0xff] %v10111_v34  ;;  %v10137_v62 = vpop.f32.mrf.mxu0 }
 0x24e   : > { %v10139_v57 = vpop.f32.mrf.mxu1 }
 0x24f   : > { %12178 = vst [vmem:[#allocation71_spill] sm:$0xff] %v10139_v57  ;;  %v6323_v57 = vld [vmem:[%s12106_s3 + $0x148] sm:$0xff] }
 0x251   : > { %v10159_v43 = vpop.f32.mrf.mxu0 }
 0x252   : > { %v10161_v26 = vpop.f32.mrf.mxu1 }
 0x253   : > { %12179 = vst [vmem:[#allocation72_spill] sm:$0xff] %v10161_v26  ;;  %v10181_v36 = vpop.f32.mrf.mxu0  ;;  %v6331_v26 = vld [vmem:[%s12106_s3 + $0x188] sm:$0xff] }
 0x254   : > { %v10183_v52 = vpop.f32.mrf.mxu1 }
 0x255   : > { %12180 = vst [vmem:[#allocation73_spill] sm:$0xff] %v10183_v52  ;;  %v6384_v52 = vld [vmem:[%s12106_s3 + $0x580] sm:$0xff] }
 0x256   : > { %3902 = vmatpush1.msra.mxu0 %v6384_v52 }
 0x257   : > { %3903 = vmatprep.subr.mxu0 %v6383_v41  ;;  %v10209_v16 = vpop.f32.mrf.mxu0  ;;  %v6334_v41 = vld [vmem:[%s12106_s3 + $0x1a0] sm:$0xff] }
 0x258   : > { %v10211_v52 = vpop.f32.mrf.mxu1  ;;  %3904 = vmatpush1.msra.mxu0 %v6382_v40  ;;  %3691 = vmatpush1.msra.mxu1 %v6334_v41  ;;  %v6379_v40 = vld [vmem:[%s12106_s3 + $0x558] sm:$0xff] }
 0x259   : > { %12181 = vst [vmem:[#allocation74_spill] sm:$0xff] %v10211_v52  ;;  %3905 = vmatprep.subr.mxu0 %v6381_v32  ;;  %v6380_v52 = vld [vmem:[%s12106_s3 + $0x560] sm:$0xff]  ;;  %3692 = vmatprep.subr.mxu1 %v6333_v58  ;;  %v6378_v32 = vld [vmem:[%s12106_s3 + $0x550] sm:$0xff]  ;;  %v10237_v41 = vpop.f32.mrf.mxu0  ;;  %v6377_v58 = vld [vmem:[%s12106_s3 + $0x548] sm:$0xff] }
 0x25a   : > { %3906 = vmatpush1.msra.mxu0 %v6380_v52  ;;  %v10239_v52 = vpop.f32.mrf.mxu1  ;;  %3693 = vmatpush1.msra.mxu1 %v6332_v46  ;;  %v6329_v46 = vld [vmem:[%s12106_s3 + $0x178] sm:$0xff] }
 0x25b   : > { %3907 = vmatprep.subr.mxu0 %v6379_v40  ;;  %12182 = vst [vmem:[#allocation75_spill] sm:$0xff] %v10239_v52  ;;  %3694 = vmatprep.subr.mxu1 %v6331_v26  ;;  %v6330_v40 = vld [vmem:[%s12106_s3 + $0x180] sm:$0xff]  ;;  %v6328_v26 = vld [vmem:[%s12106_s3 + $0x170] sm:$0xff] }
 0x25c   : > { %3908 = vmatpush1.msra.mxu0 %v6378_v32  ;;  %v6376_v52 = vld [vmem:[%s12106_s3 + $0x540] sm:$0xff]  ;;  %3695 = vmatpush1.msra.mxu1 %v6330_v40  ;;  %v6375_v32 = vld [vmem:[%s12106_s3 + $0x538] sm:$0xff] }
 0x25d   : > { %3909 = vmatprep.subr.mxu0 %v6377_v58  ;;  %3696 = vmatprep.subr.mxu1 %v6329_v46  ;;  %v6374_v58 = vld [vmem:[%s12106_s3 + $0x530] sm:$0xff]  ;;  %v10265_v40 = vpop.f32.mrf.mxu0  ;;  %v6373_v46 = vld [vmem:[%s12106_s3 + $0x528] sm:$0xff] }
 0x25e   : > { %3910 = vmatpush1.msra.mxu0 %v6376_v52  ;;  %v10267_v52 = vpop.f32.mrf.mxu1  ;;  %3697 = vmatpush1.msra.mxu1 %v6328_v26  ;;  %v6325_v26 = vld [vmem:[%s12106_s3 + $0x158] sm:$0xff] }
 0x25f   : > { %3911 = vmatprep.subr.mxu0 %v6375_v32  ;;  %12183 = vst [vmem:[#allocation76_spill] sm:$0xff] %v10267_v52  ;;  %3698 = vmatprep.subr.mxu1 %v6327_v35  ;;  %v6326_v32 = vld [vmem:[%s12106_s3 + $0x160] sm:$0xff]  ;;  %v6324_v35 = vld [vmem:[%s12106_s3 + $0x150] sm:$0xff] }
 0x260   : > { %3912 = vmatpush1.msra.mxu0 %v6374_v58  ;;  %v6372_v52 = vld [vmem:[%s12106_s3 + $0x520] sm:$0xff]  ;;  %3699 = vmatpush1.msra.mxu1 %v6326_v32  ;;  %v6371_v58 = vld [vmem:[%s12106_s3 + $0x518] sm:$0xff]  ;;  %v10293_v32 = vpop.f32.mrf.mxu0 }
 0x261   : > { %3913 = vmatprep.subr.mxu0 %v6373_v46  ;;  %3700 = vmatprep.subr.mxu1 %v6325_v26  ;;  %v6370_v46 = vld [vmem:[%s12106_s3 + $0x510] sm:$0xff]  ;;  %v6369_v26 = vld [vmem:[%s12106_s3 + $0x508] sm:$0xff] }
 0x262   : > { %3914 = vmatpush1.msra.mxu0 %v6372_v52  ;;  %v10295_v52 = vpop.f32.mrf.mxu1  ;;  %3701 = vmatpush1.msra.mxu1 %v6324_v35  ;;  %v6361_v35 = vld [vmem:[%s12106_s3 + $0x278] sm:$0xff] }
 0x263   : > { %3915 = vmatprep.subr.mxu0 %v6371_v58  ;;  %12184 = vst [vmem:[#allocation77_spill] sm:$0xff] %v10295_v52  ;;  %3702 = vmatprep.subr.mxu1 %v6323_v57  ;;  %v6322_v58 = vld [vmem:[%s12106_s3 + $0x140] sm:$0xff]  ;;  %v6360_v57 = vld [vmem:[%s12106_s3 + $0x270] sm:$0xff] }
 0x264   : > { %3916 = vmatpush1.msra.mxu0 %v6370_v46  ;;  %v6368_v52 = vld [vmem:[%s12106_s3 + $0x500] sm:$0xff]  ;;  %3703 = vmatpush1.msra.mxu1 %v6322_v58  ;;  %v6407_v46 = vld [vmem:[%s12106_s3 + $0x638] sm:$0xff]  ;;  %v10321_v58 = vpop.f32.mrf.mxu0 }
 0x265   : > { %3917 = vmatprep.subr.mxu0 %v6369_v26  ;;  %3728 = vmatprep.subr.mxu1 %v6361_v35  ;;  %v6406_v26 = vld [vmem:[%s12106_s3 + $0x630] sm:$0xff]  ;;  %v6405_v35 = vld [vmem:[%s12106_s3 + $0x628] sm:$0xff] }
 0x266   : > { %3918 = vmatpush1.msra.mxu0 %v6368_v52  ;;  %v10323_v52 = vpop.f32.mrf.mxu1  ;;  %3729 = vmatpush2.msra.mxu1 %v6360_v57  ;;  %v6357_v57 = vld [vmem:[%s12106_s3 + $0x258] sm:$0xff]  ;;  %v10355_v34 = vpop.f32.mrf.mxu0 }
 0x267   : > { %3943 = vmatprep.subr.mxu0 %v6407_v46  ;;  %12185 = vst [vmem:[#allocation78_spill] sm:$0xff] %v10323_v52  ;;  %3730 = vmatprep.subr.mxu1 %v6359_v44  ;;  %v6358_v46 = vld [vmem:[%s12106_s3 + $0x260] sm:$0xff]  ;;  %v6356_v44 = vld [vmem:[%s12106_s3 + $0x250] sm:$0xff] }
 0x268   : > { %3944 = vmatpush2.msra.mxu0 %v6406_v26  ;;  %v6404_v52 = vld [vmem:[%s12106_s3 + $0x620] sm:$0xff]  ;;  %3731 = vmatpush2.msra.mxu1 %v6358_v46  ;;  %v6403_v26 = vld [vmem:[%s12106_s3 + $0x618] sm:$0xff]  ;;  %v6401_v46 = vld [vmem:[%s12106_s3 + $0x608] sm:$0xff]  ;;  %v10357_v63 = vpop.f32.mrf.mxu1 }
 0x269   : > { %3945 = vmatprep.subr.mxu0 %v6405_v35  ;;  %3732 = vmatprep.subr.mxu1 %v6357_v57  ;;  %v6402_v35 = vld [vmem:[%s12106_s3 + $0x610] sm:$0xff]  ;;  %12186 = vst [vmem:[#allocation79_spill] sm:$0xff] %v10357_v63  ;;  %v6354_v57 = vld [vmem:[%s12106_s3 + $0x240] sm:$0xff]  ;;  %v6445_v63 = vld [vmem:[%s12106_s3 + $0x378] sm:$0xff] }
 0x26a   : > { %3946 = vmatpush2.msra.mxu0 %v6404_v52  ;;  %v6355_v52 = vld [vmem:[%s12106_s3 + $0x248] sm:$0xff]  ;;  %3733 = vmatpush2.msra.mxu1 %v6356_v44  ;;  %v10371_v44 = vpop.f32.mrf.mxu0 }
 0x26b   : > { %3947 = vmatprep.subr.mxu0 %v6403_v26  ;;  %v6400_v26 = vld [vmem:[%s12106_s3 + $0x600] sm:$0xff]  ;;  %3734 = vmatprep.subr.mxu1 %v6355_v52 }
 0x26c   : > { %3948 = vmatpush2.msra.mxu0 %v6402_v35  ;;  %3735 = vmatpush2.msra.mxu1 %v6354_v57  ;;  %v10373_v35 = vpop.f32.mrf.mxu1  ;;  %v10375_v3 = vpop.f32.mrf.mxu0  ;;  %v1092_v57 = vadd.f32 %v8971_v54, %v8969_v14 }
 0x26d   : > { %3949 = vmatprep.subr.mxu0 %v6401_v46  ;;  %3763 = vmatprep.subr.mxu1 %v3552_v25  ;;  %12187 = vst [vmem:[#allocation80_spill] sm:$0xff] %v10373_v35 }
 0x26e   : > { %3950 = vmatpush2.msra.mxu0 %v6400_v26  ;;  %v10377_v52 = vpop.f32.mrf.mxu1  ;;  %v1637_v26 = vadd.f32 %v9687_v9, %v817_v29  ;;  %v1815_v35 = vadd.f32 %v9689_v18, %v1092_v57  ;;  %v12194_v18 = vld [vmem:[#allocation8_spill] sm:$0xff]  ;;  %v12195_v29 = vld [vmem:[#allocation9_spill] sm:$0xff] }
 0x26f   : > { %4121 = vmatprep.subr.mxu0 %v6445_v63  ;;  %12188 = vst [vmem:[#allocation81_spill] sm:$0xff] %v10377_v52  ;;  %v10379_v46 = vpop.f32.mrf.mxu0  ;;  %v2233_v52 = vadd.f32 %v9994_v60, %v9677_v31  ;;  %v823_v57 = vadd.f32 %v12195_v29, %v12194_v18  ;;  %v12196_v31 = vld [vmem:[#allocation41_spill] sm:$0xff] }
 0x270   : > { %v10381_v24 = vpop.f32.mrf.mxu1  ;;  %v2234_v14 = vadd.f32 %v10004_v22, %v1637_v26  ;;  %v2412_v54 = vadd.f32 %v10093_v50, %v1815_v35  ;;  %v1817_v60 = vadd.f32 %v12196_v31, %v1098_v1  ;;  %v12198_v35 = vld [vmem:[#allocation40_spill] sm:$0xff]  ;;  %v12201_v1 = vld [vmem:[#allocation25_spill] sm:$0xff] }
 0x271   : > { %12189 = vst [vmem:[#allocation82_spill] sm:$0xff] %v10381_v24  ;;  %v10387_v25 = vpop.f32.mrf.mxu0  ;;  %v2411_v24 = vadd.f32 %v10077_v21, %v9680_v20  ;;  %v12197_v21 = vld [vmem:[#allocation39_spill] sm:$0xff] }
 0x272   : > { %12190 = vst [vmem:[#allocation83_spill] sm:$0xff] %v10387_v25  ;;  %v10389_v63 = vpop.f32.mrf.mxu1  ;;  %v2413_v5 = vadd.f32 %v10109_v2, %v12197_v21  ;;  %v2414_v29 = vadd.f32 %v10137_v62, %v1817_v60 }
 0x273   : > { %12191 = vst [vmem:[#allocation84_spill] sm:$0xff] %v10389_v63 }
 0x285   : > { %v2783_v39 = vpop.f32.mrf.mxu0 }
 0x286   : > { %v2961_v38 = vpop.f32.mrf.mxu1  ;;  %v10401_v63 = vadd.f32 %v2783_v39, %v2233_v52  ;;  %v12200_v39 = vld [vmem:[#allocation24_spill] sm:$0xff] }
 0x287   : > { %v10403_v9 = vadd.f32 %v2961_v38, %v2411_v24  ;;  %v2785_v25 = vpop.f32.mrf.mxu0  ;;  %v1639_v38 = vadd.f32 %v12198_v35, %v823_v57  ;;  %v12199_v24 = vld [vmem:[#allocation38_spill] sm:$0xff]  ;;  %v1104_v18 = vadd.f32 %v12201_v1, %v12200_v39  ;;  %v12204_v39 = vld [vmem:[#allocation43_spill] sm:$0xff] }
 0x288   : > { %v2963_v20 = vpop.f32.mrf.mxu1  ;;  %v10412_v22 = vadd.f32 %v2785_v25, %v2234_v14  ;;  %v2235_v52 = vadd.f32 %v10011_v10, %v12199_v24  ;;  %v12202_v25 = vld [vmem:[#allocation10_spill] sm:$0xff]  ;;  %v12203_v14 = vld [vmem:[#allocation11_spill] sm:$0xff]  ;;  %v2415_v24 = vadd.f32 %v10159_v43, %v9777_v15 }
 0x289   : > { %v3202_v33 = vmax.f32 %v10401_v63, %v10403_v9  ;;  %v10414_v50 = vadd.f32 %v2963_v20, %v2412_v54  ;;  %v829_v54 = vadd.f32 %v12203_v14, %v12202_v25  ;;  %v2236_v57 = vadd.f32 %v10021_v61, %v1639_v38  ;;  %v12209_v14 = vld [vmem:[#allocation13_spill] sm:$0xff] }
 0x28a   : > { %v2967_v26 = vpop.f32.mrf.mxu1  ;;  %v2789_v31 = vpop.f32.mrf.mxu0  ;;  %v1819_v35 = vadd.f32 %v9787_v51, %v1104_v18 }
 0x28b   : > { %v3203_v2 = vmax.f32 %v10412_v22, %v10414_v50  ;;  %v10424_v21 = vadd.f32 %v2967_v26, %v2413_v5  ;;  %v10429_v20 = vadd.f32 %v2789_v31, %v2235_v52  ;;  %v1641_v1 = vadd.f32 %v12204_v39, %v829_v54  ;;  %v12205_v5 = vld [vmem:[#allocation42_spill] sm:$0xff]  ;;  %v12207_v31 = vld [vmem:[#allocation27_spill] sm:$0xff] }
 0x28c   : > { %v2969_v10 = vpop.f32.mrf.mxu1  ;;  %v2791_v62 = vpop.f32.mrf.mxu0  ;;  %v2237_v26 = vadd.f32 %v10026_v55, %v12205_v5  ;;  %v12206_v52 = vld [vmem:[#allocation26_spill] sm:$0xff]  ;;  %v2416_v18 = vadd.f32 %v10181_v36, %v1819_v35  ;;  %v2417_v5 = vadd.f32 %v10209_v16, %v9830_v11 }
 0x28d   : > { %v10434_v60 = vadd.f32 %v2969_v10, %v2414_v29  ;;  %v3204_v25 = vmax.f32 %v10429_v20, %v10424_v21  ;;  %v10441_v61 = vadd.f32 %v2791_v62, %v2236_v57  ;;  %v1110_v51 = vadd.f32 %v12207_v31, %v12206_v52  ;;  %v12208_v29 = vld [vmem:[#allocation12_spill] sm:$0xff] }
 0x28e   : > { %v2973_v38 = vpop.f32.mrf.mxu1  ;;  %v835_v54 = vadd.f32 %v12209_v14, %v12208_v29  ;;  %v2238_v10 = vadd.f32 %v10031_v17, %v1641_v1  ;;  %v12211_v31 = vld [vmem:[#allocation28_spill] sm:$0xff]  ;;  %v12214_v29 = vld [vmem:[#allocation15_spill] sm:$0xff] }
 0x28f   : > { %v2795_v15 = vpop.f32.mrf.mxu0  ;;  %v10446_v43 = vadd.f32 %v2973_v38, %v2415_v24  ;;  %v3205_v55 = vmax.f32 %v10441_v61, %v10434_v60  ;;  %v1821_v62 = vadd.f32 %v9838_v30, %v1110_v51  ;;  %v12210_v38 = vld [vmem:[#allocation44_spill] sm:$0xff] }
 0x290   : > { %v10453_v39 = vadd.f32 %v2795_v15, %v2237_v26  ;;  %v2975_v57 = vpop.f32.mrf.mxu1  ;;  %v1643_v24 = vadd.f32 %v9836_v19, %v835_v54  ;;  %v2239_v52 = vadd.f32 %v10039_v6, %v12210_v38  ;;  %v12212_v15 = vld [vmem:[#allocation29_spill] sm:$0xff] }
 0x291   : > { %v2797_v36 = vpop.f32.mrf.mxu0  ;;  %v10458_v35 = vadd.f32 %v2975_v57, %v2416_v18  ;;  %v1116_v30 = vadd.f32 %v12212_v15, %v12211_v31  ;;  %v2418_v51 = vadd.f32 %v10237_v41, %v1821_v62  ;;  %v12213_v18 = vld [vmem:[#allocation14_spill] sm:$0xff] }
 0x292   : > { %v3206_v17 = vmax.f32 %v10453_v39, %v10446_v43  ;;  %v10465_v1 = vadd.f32 %v2797_v36, %v2238_v10  ;;  %v2979_v26 = vpop.f32.mrf.mxu1  ;;  %v841_v19 = vadd.f32 %v12214_v29, %v12213_v18  ;;  %v2240_v14 = vadd.f32 %v10044_v7, %v1643_v24  ;;  %v12217_v15 = vld [vmem:[#allocation30_spill] sm:$0xff]  ;;  %v12220_v18 = vld [vmem:[#allocation17_spill] sm:$0xff]  ;;  %v12256_v39 = vld [vmem:[#allocation76_spill] sm:$0xff] }
 0x293   : > { %v2801_v11 = vpop.f32.mrf.mxu0  ;;  %v10470_v16 = vadd.f32 %v2979_v26, %v2417_v5  ;;  %v1823_v57 = vadd.f32 %v9879_v12, %v1116_v30  ;;  %v2419_v36 = vadd.f32 %v10265_v40, %v9870_v8  ;;  %v12215_v5 = vld [vmem:[#allocation46_spill] sm:$0xff]  ;;  %v12216_v26 = vld [vmem:[#allocation45_spill] sm:$0xff] }
 0x294   : > { %v3207_v6 = vmax.f32 %v10465_v1, %v10458_v35  ;;  %v10477_v54 = vadd.f32 %v2801_v11, %v2239_v52  ;;  %v2981_v10 = vpop.f32.mrf.mxu1  ;;  %v1645_v38 = vadd.f32 %v12215_v5, %v841_v19  ;;  %v2241_v31 = vadd.f32 %v10049_v42, %v12216_v26  ;;  %v12218_v11 = vld [vmem:[#allocation31_spill] sm:$0xff]  ;;  %v12255_v43 = vld [vmem:[#allocation58_spill] sm:$0xff] }
 0x295   : > { %v2803_v41 = vpop.f32.mrf.mxu0  ;;  %v10482_v62 = vadd.f32 %v2981_v10, %v2418_v51  ;;  %v1122_v12 = vadd.f32 %v12218_v11, %v12217_v15  ;;  %v2420_v30 = vadd.f32 %v10293_v32, %v1823_v57  ;;  %v12219_v51 = vld [vmem:[#allocation16_spill] sm:$0xff]  ;;  %v2421_v5 = vadd.f32 %v10321_v58, %v9906_v49 }
 0x296   : > { %v3208_v7 = vmax.f32 %v10477_v54, %v10470_v16  ;;  %v10489_v24 = vadd.f32 %v2803_v41, %v2240_v14  ;;  %v2985_v52 = vpop.f32.mrf.mxu1  ;;  %v847_v29 = vadd.f32 %v12220_v18, %v12219_v51  ;;  %v2242_v19 = vadd.f32 %v10057_v56, %v1645_v38  ;;  %v12223_v11 = vld [vmem:[#allocation32_spill] sm:$0xff]  ;;  %v12226_v51 = vld [vmem:[#allocation19_spill] sm:$0xff] }
 0x297   : > { %v2807_v8 = vpop.f32.mrf.mxu0  ;;  %v10494_v40 = vadd.f32 %v2985_v52, %v2419_v36  ;;  %v1825_v41 = vadd.f32 %v9913_v53, %v1122_v12  ;;  %v12221_v36 = vld [vmem:[#allocation48_spill] sm:$0xff]  ;;  %v12222_v52 = vld [vmem:[#allocation47_spill] sm:$0xff] }
 0x298   : > { %v3209_v42 = vmax.f32 %v10489_v24, %v10482_v62  ;;  %v10501_v10 = vadd.f32 %v2807_v8, %v2241_v31  ;;  %v2987_v14 = vpop.f32.mrf.mxu1  ;;  %v1647_v26 = vadd.f32 %v12221_v36, %v847_v29  ;;  %v2243_v15 = vadd.f32 %v10062_v4, %v12222_v52  ;;  %v12224_v8 = vld [vmem:[#allocation33_spill] sm:$0xff] }
 0x299   : > { %v2809_v32 = vpop.f32.mrf.mxu0  ;;  %v10506_v57 = vadd.f32 %v2987_v14, %v2420_v30  ;;  %v1128_v53 = vadd.f32 %v12224_v8, %v12223_v11  ;;  %v2422_v12 = vadd.f32 %v10355_v34, %v1825_v41  ;;  %v12225_v30 = vld [vmem:[#allocation18_spill] sm:$0xff]  ;;  %v2423_v36 = vadd.f32 %v10371_v44, %v9934_v48  ;;  %v12228_v11 = vld [vmem:[#allocation35_spill] sm:$0xff] }
 0x29a   : > { %v3210_v56 = vmax.f32 %v10501_v10, %v10494_v40  ;;  %v10513_v38 = vadd.f32 %v2809_v32, %v2242_v19  ;;  %v2991_v31 = vpop.f32.mrf.mxu1  ;;  %v853_v18 = vadd.f32 %v12226_v51, %v12225_v30  ;;  %v2244_v29 = vadd.f32 %v10067_v45, %v1647_v26  ;;  %v12261_v10 = vld [vmem:[#allocation61_spill] sm:$0xff] }
 0x29b   : > { %v2813_v49 = vpop.f32.mrf.mxu0  ;;  %v10518_v58 = vadd.f32 %v2991_v31, %v2421_v5  ;;  %v1827_v32 = vadd.f32 %v9941_v13, %v1128_v53  ;;  %v2245_v52 = vadd.f32 %v10069_v37, %v9931_v59  ;;  %v12227_v31 = vld [vmem:[#allocation34_spill] sm:$0xff]  ;;  %v12229_v53 = vld [vmem:[#allocation20_spill] sm:$0xff] }
 0x29c   : > { %v3211_v4 = vmax.f32 %v10513_v38, %v10506_v57  ;;  %v10525_v14 = vadd.f32 %v2813_v49, %v2243_v15  ;;  %v2993_v19 = vpop.f32.mrf.mxu1  ;;  %v1649_v5 = vadd.f32 %v9939_v0, %v853_v18  ;;  %v1134_v13 = vadd.f32 %v12228_v11, %v12227_v31 }
 0x29d   : > { %v2815_v34 = vpop.f32.mrf.mxu0  ;;  %v10530_v41 = vadd.f32 %v2993_v19, %v2422_v12  ;;  %v2424_v8 = vadd.f32 %v10375_v3, %v1827_v32  ;;  %v12230_v12 = vld [vmem:[#allocation21_spill] sm:$0xff]  ;;  %v2425_v18 = vadd.f32 %v10379_v46, %v9962_v28  ;;  %v12234_v28 = vld [vmem:[#allocation67_spill] sm:$0xff] }
 0x29e   : > { %v3212_v45 = vmax.f32 %v10525_v14, %v10518_v58  ;;  %v10537_v26 = vadd.f32 %v2815_v34, %v2244_v29  ;;  %v2997_v15 = vpop.f32.mrf.mxu1  ;;  %v859_v0 = vadd.f32 %v12230_v12, %v12229_v53  ;;  %v2246_v49 = vadd.f32 %v10071_v27, %v1649_v5  ;;  %v12231_v32 = vld [vmem:[#allocation49_spill] sm:$0xff]  ;;  %v12242_v12 = vld [vmem:[#allocation70_spill] sm:$0xff]  ;;  %v12265_v58 = vld [vmem:[#allocation63_spill] sm:$0xff] }
 0x29f   : > { %v2819_v48 = vpop.f32.mrf.mxu0  ;;  %v10542_v44 = vadd.f32 %v2997_v15, %v2423_v36  ;;  %v1829_v51 = vadd.f32 %v9990_v47, %v1134_v13  ;;  %v12232_v36 = vld [vmem:[#allocation66_spill] sm:$0xff]  ;;  %v12233_v15 = vld [vmem:[#allocation83_spill] sm:$0xff]  ;;  %v12266_v14 = vld [vmem:[#allocation81_spill] sm:$0xff] }
 0x2a0   : > { %v3213_v59 = vmax.f32 %v10537_v26, %v10530_v41  ;;  %v10549_v37 = vadd.f32 %v2819_v48, %v2245_v52  ;;  %v2999_v30 = vpop.f32.mrf.mxu1  ;;  %v1651_v19 = vadd.f32 %v9982_v23, %v859_v0  ;;  %v2247_v34 = vadd.f32 %v12232_v36, %v12231_v32  ;;  %v12238_v32 = vld [vmem:[#allocation50_spill] sm:$0xff]  ;;  %v12239_v36 = vld [vmem:[#allocation68_spill] sm:$0xff] }
 0x2a1   : > { %v2821_v3 = vpop.f32.mrf.mxu0  ;;  %v10554_v29 = vadd.f32 %v2999_v30, %v2424_v8  ;;  %v2426_v31 = vadd.f32 %v12233_v15, %v1829_v51  ;;  %v12235_v30 = vld [vmem:[#allocation36_spill] sm:$0xff]  ;;  %v12236_v51 = vld [vmem:[#allocation37_spill] sm:$0xff] }
 0x2a2   : > { %v3214_v27 = vmax.f32 %v10549_v37, %v10542_v44  ;;  %v10561_v5 = vadd.f32 %v2821_v3, %v2246_v49  ;;  %v3003_v52 = vpop.f32.mrf.mxu1  ;;  %v2248_v46 = vadd.f32 %v12234_v28, %v1651_v19  ;;  %v12237_v3 = vld [vmem:[#allocation51_spill] sm:$0xff]  ;;  %v12240_v15 = vld [vmem:[#allocation69_spill] sm:$0xff] }
 0x2a3   : > { %v2825_v47 = vpop.f32.mrf.mxu0  ;;  %v10564_v11 = vadd.f32 %v3003_v52, %v2425_v18  ;;  %v1367_v18 = vadd.f32 %v12236_v51, %v12235_v30  ;;  %v12243_v51 = vld [vmem:[#allocation53_spill] sm:$0xff] }
 0x2a4   : > { %v3215_v13 = vmax.f32 %v10561_v5, %v10554_v29  ;;  %v10569_v23 = vadd.f32 %v2825_v47, %v2247_v34  ;;  %v3005_v8 = vpop.f32.mrf.mxu1  ;;  %v2589_v34 = vadd.f32 %v12239_v36, %v12238_v32 }
 0x2a5   : > { %v2827_v48 = vpop.f32.mrf.mxu0  ;;  %v10571_v53 = vadd.f32 %v3005_v8, %v2426_v31  ;;  %v1993_v19 = vadd.f32 %v12237_v3, %v1367_v18  ;;  %v12241_v8 = vld [vmem:[#allocation52_spill] sm:$0xff]  ;;  %v12244_v18 = vld [vmem:[#allocation71_spill] sm:$0xff] }
 0x2a6   : > { %v10575_v0 = vadd.f32 %v2827_v48, %v2248_v46  ;;  %v2591_v46 = vadd.f32 %v12242_v12, %v12241_v8  ;;  %v2592_v3 = vadd.f32 %v12244_v18, %v12243_v51  ;;  %v12250_v8 = vld [vmem:[#allocation74_spill] sm:$0xff] }
 0x2a7   : > { %v2590_v31 = vadd.f32 %v12240_v15, %v1993_v19  ;;  %v12247_v15 = vld [vmem:[#allocation55_spill] sm:$0xff] }
 0x2b7   : > { %v3139_v52 = vpop.f32.mrf.mxu0 }
 0x2b8   : > { %v3186_v47 = vadd.f32 %v3139_v52, %v2589_v34  ;;  %v12245_v34 = vld [vmem:[#allocation54_spill] sm:$0xff]  ;;  %v12246_v52 = vld [vmem:[#allocation72_spill] sm:$0xff] }
 0x2b9   : > { %v3141_v28 = vpop.f32.mrf.mxu0  ;;  %v2593_v12 = vadd.f32 %v12246_v52, %v12245_v34  ;;  %v12257_v52 = vld [vmem:[#allocation59_spill] sm:$0xff] }
 0x2ba   : > { %v3218_v48 = vmax.f32 %v3202_v33, %v3186_v47  ;;  %v3187_v49 = vadd.f32 %v3141_v28, %v2590_v31  ;;  %v12248_v31 = vld [vmem:[#allocation73_spill] sm:$0xff]  ;;  %v12249_v28 = vld [vmem:[#allocation56_spill] sm:$0xff] }
 0x2bb   : > { %v3145_v30 = vpop.f32.mrf.mxu0  ;;  %v2594_v47 = vadd.f32 %v12248_v31, %v12247_v15 }
 0x2bc   : > { %3234 = vst [vmem:[#allocation2] sm:$0xff] %v3218_v48  ;;  %v3219_v19 = vmax.f32 %v3203_v2, %v3187_v49  ;;  %v3188_v32 = vadd.f32 %v3145_v30, %v2591_v46  ;;  %v3262_v49 = vlaneseq  ;;  %v2595_v46 = vadd.f32 %v12250_v8, %v12249_v28  ;;  %v12251_v48 = vld [vmem:[#allocation57_spill] sm:$0xff]  ;;  %v12252_v30 = vld [vmem:[#allocation75_spill] sm:$0xff] }
 0x2bd   : > { %v3147_v36 = vpop.f32.mrf.mxu0  ;;  %v2596_v51 = vadd.f32 %v12252_v30, %v12251_v48 }
 0x2be   : > { %3236 = vst.msk [vmem:[#allocation2 + $0x8] sm:$0xff] %vm3235_vm5, %v3219_v19  ;;  %v3220_v63 = vmax.f32 %v3204_v25, %v3188_v32  ;;  %v3189_v9 = vadd.f32 %v3147_v36, %v2592_v3  ;;  %vm10618_vm6 = vcmp.lt.s32.totalorder %v3262_v49, 160  ;;  %v10627_v32 = vld [vmem:[%s12105_s2] sm:$0x3]  ;;  %v3550_v19 = vld [vmem:[%s12106_s3 + $0xe8] sm:$0xff] }
 0x2bf   : > { %v3151_v33 = vpop.f32.mrf.mxu0 }
 0x2c0   : > { %3237 = vst [vmem:[#allocation2 + $0x10] sm:$0xff] %v3220_v63  ;;  %v3221_v22 = vmax.f32 %v3205_v55, %v3189_v9  ;;  %v3190_v50 = vadd.f32 %v3151_v33, %v2593_v12  ;;  %v12258_v12 = vld [vmem:[#allocation77_spill] sm:$0xff] }
 0x2c1   : > { %v3153_v2 = vpop.f32.mrf.mxu0  ;;  %v2598_v63 = vadd.f32 %v12258_v12, %v12257_v52 }
 0x2c2   : > { %3238 = vst.msk [vmem:[#allocation2 + $0x18] sm:$0xff] %vm3235_vm5, %v3221_v22  ;;  %v3222_v21 = vmax.f32 %v3206_v17, %v3190_v50  ;;  %v3191_v20 = vadd.f32 %v3153_v2, %v2594_v47  ;;  %v2597_v17 = vadd.f32 %v12256_v39, %v12255_v43 }
 0x2c3   : > { %v3157_v25 = vpop.f32.mrf.mxu0 }
 0x2c4   : > { %3239 = vst [vmem:[#allocation2 + $0x20] sm:$0xff] %v3222_v21  ;;  %v3223_v60 = vmax.f32 %v3207_v6, %v3191_v20  ;;  %v3192_v61 = vadd.f32 %v3157_v25, %v2595_v46  ;;  %v12259_v46 = vld [vmem:[#allocation60_spill] sm:$0xff]  ;;  %v12260_v21 = vld [vmem:[#allocation78_spill] sm:$0xff] }
 0x2c5   : > { %v3253_v55 = vld [vmem:[#allocation2] ss:$8 sm:$0x3]  ;;  %v3255_v18 = vld [vmem:[#allocation2 + $0x1] ss:$8 sm:$0x3]  ;;  %v3159_v3 = vpop.f32.mrf.mxu0  ;;  %v2599_v20 = vadd.f32 %v12260_v21, %v12259_v46 }
 0x2c6   : > { %v3256_v36 = vmax.f32 %v3253_v55, %v3255_v18  ;;  %v3258_v35 = vld [vmem:[#allocation2 + $0x2] ss:$8 sm:$0x3]  ;;  %v3269_v1 = vld [vmem:[#allocation2 + $0x3] ss:$8 sm:$0x3]  ;;  %v3224_v6 = vmax.f32 %v3208_v7, %v3192_v61  ;;  %v3193_v34 = vadd.f32 %v3159_v3, %v2596_v51 }
 0x2c7   : > { %3240 = vst.msk [vmem:[#allocation2 + $0x28] sm:$0xff] %vm3235_vm5, %v3223_v60  ;;  %v3271_v9 = vld [vmem:[#allocation2 + $0x4] ss:$8 sm:$0x3]  ;;  %v3163_v15 = vpop.f32.mrf.mxu0 }
 0x2c8   : > { %v3274_v33 = vld [vmem:[#allocation2 + $0x5] ss:$8 sm:$0x3]  ;;  %v3259_v31 = vmax.f32 %v3256_v36, %v3258_v35  ;;  %v3272_v47 = vmax.f32 %v3269_v1, %v3271_v9  ;;  %v3282_v22 = vld [vmem:[#allocation2 + $0x6] ss:$8 sm:$0x3]  ;;  %v3225_v2 = vmax.f32 %v3209_v42, %v3193_v34  ;;  %v3194_v28 = vadd.f32 %v3163_v15, %v2597_v17 }
 0x2c9   : > { %v3284_v50 = vld [vmem:[#allocation2 + $0x7] ss:$8 sm:$0x3]  ;;  %3241 = vst [vmem:[#allocation2 + $0x30] sm:$0xff] %v3224_v6  ;;  %v3165_v7 = vpop.f32.mrf.mxu0  ;;  %v12263_v1 = vld [vmem:[#allocation62_spill] sm:$0xff] }
 0x2ca   : > { %v3285_v8 = vmax.f32 %v3282_v22, %v3284_v50  ;;  %v3287_v16 = vld [vmem:[#allocation2 + $0x10] ss:$8 sm:$0x3]  ;;  %v3295_v54 = vld [vmem:[#allocation2 + $0x11] ss:$8 sm:$0x3]  ;;  %v3275_v25 = vmax.f32 %v3272_v47, %v3274_v33  ;;  %v3226_v51 = vmax.f32 %v3210_v56, %v3194_v28  ;;  %v3195_v60 = vadd.f32 %v3165_v7, %v2598_v63 }
 0x2cb   : > { %v3297_v48 = vld [vmem:[#allocation2 + $0x12] ss:$8 sm:$0x3]  ;;  %v3300_v30 = vld [vmem:[#allocation2 + $0x13] ss:$8 sm:$0x3]  ;;  %v3169_v55 = vpop.f32.mrf.mxu0  ;;  %v3260_v18 = vadd.f32 %v3259_v31, %v10627_v32 }
 0x2cc   : > { %3242 = vst.msk [vmem:[#allocation2 + $0x38] sm:$0xff] %vm3235_vm5, %v3225_v2  ;;  %v3288_v62 = vmax.f32 %v3285_v8, %v3287_v16  ;;  %v3298_v24 = vmax.f32 %v3295_v54, %v3297_v48  ;;  %v3308_v42 = vld [vmem:[#allocation2 + $0x14] ss:$8 sm:$0x3]  ;;  %v3276_v3 = vadd.f32 %v3275_v25, %v10627_v32  ;;  %3243 = vst [vmem:[#allocation2 + $0x40] sm:$0xff] %v3226_v51  ;;  %v12264_v6 = vld [vmem:[#allocation80_spill] sm:$0xff] }
 0x2cd   : > { %v3310_v61 = vld [vmem:[#allocation2 + $0x15] ss:$8 sm:$0x3]  ;;  %v3313_v39 = vld [vmem:[#allocation2 + $0x16] ss:$8 sm:$0x3]  ;;  %v3227_v36 = vmax.f32 %v3211_v4, %v3195_v60  ;;  %v3196_v40 = vadd.f32 %v3169_v55, %v2599_v20  ;;  %v2601_v34 = vadd.f32 %v12264_v6, %v12263_v1  ;;  %v3171_v33 = vpop.f32.mrf.mxu0 }
 0x2ce   : > { %v3311_v43 = vmax.f32 %v3308_v42, %v3310_v61  ;;  %v3321_v17 = vld [vmem:[#allocation2 + $0x17] ss:$8 sm:$0x3]  ;;  %v3289_v52 = vadd.f32 %v3288_v62, %v10627_v32  ;;  %v3301_v12 = vmax.f32 %v3298_v24, %v3300_v30  ;;  %v3323_v63 = vld [vmem:[#allocation2 + $0x20] ss:$8 sm:$0x3] }
 0x2cf   : > { %v12262_v56 = vld [vmem:[#allocation79_spill] sm:$0xff]  ;;  %v3277_v15 = vmax.f32 %v3276_v3, 0.0  ;;  %v3324_v47 = vmax.f32 %v3321_v17, %v3323_v63  ;;  %v3334_v22 = vld [vmem:[#allocation2 + $0x22] ss:$8 sm:$0x3]  ;;  %3244 = vst.msk [vmem:[#allocation2 + $0x48] sm:$0xff] %vm3235_vm5, %v3227_v36  ;;  %v3228_v57 = vmax.f32 %v3212_v45, %v3196_v40  ;;  %v3175_v28 = vpop.f32.mrf.mxu0  ;;  %v2602_v45 = vadd.f32 %v12266_v14, %v12265_v58 }
 0x2d0   : > { %v2600_v35 = vadd.f32 %v12262_v56, %v12261_v10  ;;  %v3326_v9 = vld [vmem:[#allocation2 + $0x21] ss:$8 sm:$0x3]  ;;  %v3314_v31 = vmax.f32 %v3311_v43, %v3313_v39  ;;  %v3290_v38 = vmax.f32 %v3289_v52, 0.0  ;;  %v3302_v4 = vadd.f32 %v3301_v12, %v10627_v32 }
 0x2d1   : > { %v3336_v50 = vld [vmem:[#allocation2 + $0x23] ss:$8 sm:$0x3]  ;;  %v3261_v8 = vmax.f32 %v3260_v18, 0.0  ;;  %v3327_v54 = vmax.f32 %v3324_v47, %v3326_v9  ;;  %3245 = vst [vmem:[#allocation2 + $0x50] sm:$0xff] %v3228_v57  ;;  %v3198_v20 = vadd.f32 %v3175_v28, %v2601_v34  ;;  %v3177_v51 = vpop.f32.mrf.mxu0  ;;  %v12268_v18 = vld [vmem:[#allocation82_spill] sm:$0xff] }
 0x2d2   : > { %v3197_v2 = vadd.f32 %v3171_v33, %v2600_v35  ;;  %v3315_v16 = vadd.f32 %v3314_v31, %v10627_v32  ;;  %v3337_v7 = vmax.f32 %v3334_v22, %v3336_v50  ;;  %v3339_v46 = vld [vmem:[#allocation2 + $0x24] ss:$8 sm:$0x3]  ;;  %v3347_v21 = vld [vmem:[#allocation2 + $0x25] ss:$8 sm:$0x3]  ;;  %v3199_v26 = vadd.f32 %v3177_v51, %v2602_v45 }
 0x2d3   : > { %3279 = vst.msk [vmem:[#allocation3 + $0x1] ss:$8 sm:$0x3] %vm10618_vm6, %v3277_v15  ;;  %v3303_v25 = vmax.f32 %v3302_v4, 0.0  ;;  %v3328_v62 = vadd.f32 %v3327_v54, %v10627_v32  ;;  %v12267_v55 = vld [vmem:[#allocation64_spill] sm:$0xff]  ;;  %v3230_v41 = vmax.f32 %v3214_v27, %v3198_v20  ;;  %v12269_v35 = vld [vmem:[#allocation65_spill] sm:$0xff]  ;;  %v12271_v22 = vmax.f32 %v10569_v23, %v10564_v11 }
 0x2d4   : > { %v3349_v48 = vld [vmem:[#allocation2 + $0x26] ss:$8 sm:$0x3]  ;;  %3292 = vst.msk [vmem:[#allocation3 + $0x2] ss:$8 sm:$0x3] %vm10618_vm6, %v3290_v38  ;;  %v3229_v30 = vmax.f32 %v3213_v59, %v3197_v2  ;;  %v3340_v24 = vmax.f32 %v3337_v7, %v3339_v46  ;;  %v2603_v3 = vadd.f32 %v12268_v18, %v12267_v55  ;;  %v3181_v59 = vpop.f32.mrf.mxu0  ;;  %v3231_v44 = vmax.f32 %v3215_v13, %v3199_v26 }
 0x2d5   : > { %3266 = vst.msk [vmem:[#allocation3] ss:$8 sm:$0x3] %vm10618_vm6, %v3261_v8  ;;  %v3316_v60 = vmax.f32 %v3315_v16, 0.0  ;;  %v3350_v42 = vmax.f32 %v3347_v21, %v3349_v48  ;;  %v3329_v17 = vmax.f32 %v3328_v62, 0.0  ;;  %v12270_v1 = vld [vmem:[#allocation84_spill] sm:$0xff]  ;;  %v12272_v8 = vmax.f32 %v10575_v0, %v10571_v53 }
 0x2d6   : > { %v3352_v61 = vld [vmem:[#allocation2 + $0x27] ss:$8 sm:$0x3]  ;;  %v3360_v43 = vld [vmem:[#allocation2 + $0x30] ss:$8 sm:$0x3]  ;;  %v3341_v36 = vadd.f32 %v3340_v24, %v10627_v32  ;;  %v2604_v6 = vadd.f32 %v12270_v1, %v12269_v35  ;;  %v3200_v37 = vadd.f32 %v3181_v59, %v2603_v3  ;;  %v3183_v27 = vpop.f32.mrf.mxu0 }
 0x2d7   : > { %v3362_v39 = vld [vmem:[#allocation2 + $0x31] ss:$8 sm:$0x3]  ;;  %3305 = vst.msk [vmem:[#allocation3 + $0x3] ss:$8 sm:$0x3] %vm10618_vm6, %v3303_v25  ;;  %v3353_v40 = vmax.f32 %v3350_v42, %v3352_v61 }
 0x2d8   : > { %3246 = vst.msk [vmem:[#allocation2 + $0x58] sm:$0xff] %vm3235_vm5, %v3229_v30  ;;  %v3363_v10 = vmax.f32 %v3360_v43, %v3362_v39  ;;  %v3365_v56 = vld [vmem:[#allocation2 + $0x32] ss:$8 sm:$0x3]  ;;  %3247 = vst [vmem:[#allocation2 + $0x60] sm:$0xff] %v3230_v41  ;;  %v3342_v12 = vmax.f32 %v3341_v36, 0.0  ;;  %v3232_v29 = vmax.f32 %v12271_v22, %v3200_v37  ;;  %v3201_v5 = vadd.f32 %v3183_v27, %v2604_v6 }
 0x2d9   : > { %3318 = vst.msk [vmem:[#allocation3 + $0x4] ss:$8 sm:$0x3] %vm10618_vm6, %v3316_v60  ;;  %v3373_v34 = vld [vmem:[#allocation2 + $0x33] ss:$8 sm:$0x3]  ;;  %v3354_v63 = vadd.f32 %v3353_v40, %v10627_v32 }
 0x2da   : > { %v3375_v52 = vld [vmem:[#allocation2 + $0x34] ss:$8 sm:$0x3]  ;;  %v3366_v9 = vmax.f32 %v3363_v10, %v3365_v56  ;;  %v3378_v15 = vld [vmem:[#allocation2 + $0x35] ss:$8 sm:$0x3]  ;;  %v3233_v16 = vmax.f32 %v12272_v8, %v3201_v5 }
 0x2db   : > { %v3376_v33 = vmax.f32 %v3373_v34, %v3375_v52  ;;  %3331 = vst.msk [vmem:[#allocation3 + $0x5] ss:$8 sm:$0x3] %vm10618_vm6, %v3329_v17  ;;  %v3386_v31 = vld [vmem:[#allocation2 + $0x36] ss:$8 sm:$0x3] }
 0x2dc   : > { %v3388_v47 = vld [vmem:[#allocation2 + $0x37] ss:$8 sm:$0x3]  ;;  %3248 = vst.msk [vmem:[#allocation2 + $0x68] sm:$0xff] %vm3235_vm5, %v3231_v44  ;;  %v3355_v13 = vmax.f32 %v3354_v63, 0.0  ;;  %v3367_v57 = vadd.f32 %v3366_v9, %v10627_v32 }
 0x2dd   : > { %v3379_v38 = vmax.f32 %v3376_v33, %v3378_v15  ;;  %v3389_v4 = vmax.f32 %v3386_v31, %v3388_v47  ;;  %3344 = vst.msk [vmem:[#allocation3 + $0x6] ss:$8 sm:$0x3] %vm10618_vm6, %v3342_v12  ;;  %v3391_v50 = vld [vmem:[#allocation2 + $0x40] ss:$8 sm:$0x3] }
 0x2de   : > { %v3399_v2 = vld [vmem:[#allocation2 + $0x41] ss:$8 sm:$0x3]  ;;  %v3401_v28 = vld [vmem:[#allocation2 + $0x42] ss:$8 sm:$0x3] }
 0x2df   : > { %3249 = vst [vmem:[#allocation2 + $0x70] sm:$0xf] %v3232_v29  ;;  %v3368_v54 = vmax.f32 %v3367_v57, 0.0  ;;  %v3380_v11 = vadd.f32 %v3379_v38, %v10627_v32  ;;  %3357 = vst.msk [vmem:[#allocation3 + $0x7] ss:$8 sm:$0x3] %vm10618_vm6, %v3355_v13  ;;  %v3392_v23 = vmax.f32 %v3389_v4, %v3391_v50  ;;  %v3402_v7 = vmax.f32 %v3399_v2, %v3401_v28 }
 0x2e0   : > { %v3404_v46 = vld [vmem:[#allocation2 + $0x43] ss:$8 sm:$0x3]  ;;  %v3412_v21 = vld [vmem:[#allocation2 + $0x44] ss:$8 sm:$0x3] }
 0x2e1   : > { %v3414_v20 = vld [vmem:[#allocation2 + $0x45] ss:$8 sm:$0x3]  ;;  %3251 = vst.msk [vmem:[#allocation2 + $0x78] sm:$0xf] %vm3250_vm7, %v3233_v16  ;;  %v3381_v58 = vmax.f32 %v3380_v11, 0.0  ;;  %v3393_v53 = vadd.f32 %v3392_v23, %v10627_v32  ;;  %v3405_v0 = vmax.f32 %v3402_v7, %v3404_v46 }
 0x2e2   : > { %3370 = vst.msk [vmem:[#allocation3 + $0x10] ss:$8 sm:$0x3] %vm10618_vm6, %v3368_v54  ;;  %v3415_v14 = vmax.f32 %v3412_v21, %v3414_v20  ;;  %v3417_v45 = vld [vmem:[#allocation2 + $0x46] ss:$8 sm:$0x3] }
 0x2e3   : > { %v3425_v25 = vld [vmem:[#allocation2 + $0x47] ss:$8 sm:$0x3]  ;;  %v3427_v48 = vld [vmem:[#allocation2 + $0x50] ss:$8 sm:$0x3]  ;;  %v3406_v51 = vadd.f32 %v3405_v0, %v10627_v32 }
 0x2e4   : > { %3383 = vst.msk [vmem:[#allocation3 + $0x11] ss:$8 sm:$0x3] %vm10618_vm6, %v3381_v58  ;;  %v3394_v30 = vmax.f32 %v3393_v53, 0.0  ;;  %v3418_v60 = vmax.f32 %v3415_v14, %v3417_v45  ;;  %v3428_v62 = vmax.f32 %v3425_v25, %v3427_v48 }
 0x2e5   : > { %v3430_v24 = vld [vmem:[#allocation2 + $0x51] ss:$8 sm:$0x3]  ;;  %v3438_v42 = vld [vmem:[#allocation2 + $0x52] ss:$8 sm:$0x3] }
 0x2e6   : > { %v3440_v61 = vld [vmem:[#allocation2 + $0x53] ss:$8 sm:$0x3]  ;;  %3396 = vst.msk [vmem:[#allocation3 + $0x12] ss:$8 sm:$0x3] %vm10618_vm6, %v3394_v30  ;;  %v3419_v18 = vadd.f32 %v3418_v60, %v10627_v32  ;;  %v3431_v3 = vmax.f32 %v3428_v62, %v3430_v24 }
 0x2e7   : > { %v3407_v55 = vmax.f32 %v3406_v51, 0.0  ;;  %v3441_v43 = vmax.f32 %v3438_v42, %v3440_v61  ;;  %v3443_v39 = vld [vmem:[#allocation2 + $0x54] ss:$8 sm:$0x3]  ;;  %v3603_v21 = vld [vmem:[#allocation3 + $0x8] sm:$0xfe] }
 0x2e8   : > { %v3451_v41 = vld [vmem:[#allocation2 + $0x55] ss:$8 sm:$0x3]  ;;  %v3453_v26 = vld [vmem:[#allocation2 + $0x56] ss:$8 sm:$0x3]  ;;  %v3432_v17 = vadd.f32 %v3431_v3, %v10627_v32 }
 0x2e9   : > { %3409 = vst.msk [vmem:[#allocation3 + $0x13] ss:$8 sm:$0x3] %vm10618_vm6, %v3407_v55  ;;  %v3420_v59 = vmax.f32 %v3419_v18, 0.0  ;;  %v3444_v36 = vmax.f32 %v3441_v43, %v3443_v39  ;;  %v3454_v40 = vmax.f32 %v3451_v41, %v3453_v26  ;;  %v3602_v20 = vld [vmem:[#allocation3] sm:$0xfe] }
 0x2ea   : > { %v3456_v10 = vld [vmem:[#allocation2 + $0x57] ss:$8 sm:$0x3]  ;;  %v3464_v56 = vld [vmem:[#allocation2 + $0x60] ss:$8 sm:$0x3] }
 0x2eb   : > { %v3466_v35 = vld [vmem:[#allocation2 + $0x61] ss:$8 sm:$0x3]  ;;  %3422 = vst.msk [vmem:[#allocation3 + $0x14] ss:$8 sm:$0x3] %vm10618_vm6, %v3420_v59  ;;  %v3445_v6 = vadd.f32 %v3444_v36, %v10627_v32  ;;  %v3457_v34 = vmax.f32 %v3454_v40, %v3456_v10 }
 0x2ec   : > { %v3433_v1 = vmax.f32 %v3432_v17, 0.0  ;;  %v3467_v52 = vmax.f32 %v3464_v56, %v3466_v35  ;;  %v3469_v44 = vld [vmem:[#allocation2 + $0x62] ss:$8 sm:$0x3]  ;;  %v3656_v14 = vrot.slane %v3603_v21, 1  ;;  %v3653_v25 = vrot.slane %v3602_v20, 1 }
 0x2ed   : > { %v3477_v37 = vld [vmem:[#allocation2 + $0x63] ss:$8 sm:$0x3]  ;;  %v3479_v27 = vld [vmem:[#allocation2 + $0x64] ss:$8 sm:$0x3]  ;;  %v3458_v63 = vadd.f32 %v3457_v34, %v10627_v32 }
 0x2ee   : > { %3435 = vst.msk [vmem:[#allocation3 + $0x15] ss:$8 sm:$0x3] %vm10618_vm6, %v3433_v1  ;;  %v3446_v12 = vmax.f32 %v3445_v6, 0.0  ;;  %v3470_v9 = vmax.f32 %v3467_v52, %v3469_v44  ;;  %v3480_v33 = vmax.f32 %v3477_v37, %v3479_v27  ;;  %v3551_v51 = vld [vmem:[%s12106_s3 + $0xf0] sm:$0xff]  ;;  %v6443_v62 = vld [vmem:[%s12106_s3 + $0x368] sm:$0xff] }
 0x2ef   : > { %v3482_v15 = vld [vmem:[#allocation2 + $0x65] ss:$8 sm:$0x3]  ;;  %v3490_v31 = vld [vmem:[#allocation2 + $0x66] ss:$8 sm:$0x3] }
 0x2f0   : > { %v3492_v47 = vld [vmem:[#allocation2 + $0x67] ss:$8 sm:$0x3]  ;;  %3448 = vst.msk [vmem:[#allocation3 + $0x16] ss:$8 sm:$0x3] %vm10618_vm6, %v3446_v12  ;;  %v3471_v29 = vadd.f32 %v3470_v9, %v10627_v32  ;;  %v3483_v5 = vmax.f32 %v3480_v33, %v3482_v15 }
 0x2f1   : > { %v3459_v22 = vmax.f32 %v3458_v63, 0.0  ;;  %v3493_v13 = vmax.f32 %v3490_v31, %v3492_v47  ;;  %v3495_v57 = vld [vmem:[#allocation2 + $0x70] ss:$8 sm:$0x3]  ;;  %v3549_v24 = vld [vmem:[%s12106_s3 + $0xe0] sm:$0xff]  ;;  %v3546_v59 = vld [vmem:[%s12106_s3 + $0xc8] sm:$0xff] }
 0x2f2   : > { %v3503_v38 = vld [vmem:[#allocation2 + $0x71] ss:$8 sm:$0x3]  ;;  %v3505_v4 = vld [vmem:[#allocation2 + $0x72] ss:$8 sm:$0x3]  ;;  %v3484_v2 = vadd.f32 %v3483_v5, %v10627_v32 }
 0x2f3   : > { %3461 = vst.msk [vmem:[#allocation3 + $0x17] ss:$8 sm:$0x3] %vm10618_vm6, %v3459_v22  ;;  %v3472_v50 = vmax.f32 %v3471_v29, 0.0  ;;  %v3496_v28 = vmax.f32 %v3493_v13, %v3495_v57  ;;  %v3506_v8 = vmax.f32 %v3503_v38, %v3505_v4  ;;  %v6444_v60 = vld [vmem:[%s12106_s3 + $0x370] sm:$0xff]  ;;  %v6442_v42 = vld [vmem:[%s12106_s3 + $0x360] sm:$0xff] }
 0x2f4   : > { %v3508_v16 = vld [vmem:[#allocation2 + $0x73] ss:$8 sm:$0x3]  ;;  %v3485_v54 = vmax.f32 %v3484_v2, 0.0  ;;  %v6439_v36 = vld [vmem:[%s12106_s3 + $0x348] sm:$0xff]  ;;  %v3545_v10 = vld [vmem:[%s12106_s3 + $0xc0] sm:$0xff] }
 0x2f5   : > { %3474 = vst.msk [vmem:[#allocation3 + $0x20] ss:$8 sm:$0x3] %vm10618_vm6, %v3472_v50  ;;  %v3497_v11 = vadd.f32 %v3496_v28, %v10627_v32  ;;  %v3509_v23 = vmax.f32 %v3506_v8, %v3508_v16  ;;  %v3548_v61 = vld [vmem:[%s12106_s3 + $0xd8] sm:$0xff]  ;;  %v3547_v43 = vld [vmem:[%s12106_s3 + $0xd0] sm:$0xff]  ;;  %v6438_v56 = vld [vmem:[%s12106_s3 + $0x340] sm:$0xff] }
 0x2f6   : > { %3487 = vst.msk [vmem:[#allocation3 + $0x21] ss:$8 sm:$0x3] %vm10618_vm6, %v3485_v54  ;;  %v6441_v55 = vld [vmem:[%s12106_s3 + $0x358] sm:$0xff]  ;;  %v6440_v39 = vld [vmem:[%s12106_s3 + $0x350] sm:$0xff]  ;;  %v3542_v52 = vld [vmem:[%s12106_s3 + $0xa8] sm:$0xff] }
 0x2f7   : > { %v3498_v7 = vmax.f32 %v3497_v11, 0.0  ;;  %v3510_v46 = vadd.f32 %v3509_v23, %v10627_v32  ;;  %v3544_v35 = vld [vmem:[%s12106_s3 + $0xb8] sm:$0xff]  ;;  %v3543_v6 = vld [vmem:[%s12106_s3 + $0xb0] sm:$0xff]  ;;  %v6435_v44 = vld [vmem:[%s12106_s3 + $0x328] sm:$0xff] }
 0x2f8   : > { %v6437_v1 = vld [vmem:[%s12106_s3 + $0x338] sm:$0xff]  ;;  %v6436_v34 = vld [vmem:[%s12106_s3 + $0x330] sm:$0xff]  ;;  %v4054_v37 = vld [vmem:[#allocation3 + $0x8] sm:$0xfc] }
 0x2f9   : > { %v3511_v58 = vmax.f32 %v3510_v46, 0.0  ;;  %3500 = vst.msk [vmem:[#allocation3 + $0x22] ss:$8 sm:$0x3] %vm10618_vm6, %v3498_v7  ;;  %v3541_v27 = vld [vmem:[%s12106_s3 + $0xa0] sm:$0xff]  ;;  %v3540_v9 = vld [vmem:[%s12106_s3 + $0x98] sm:$0xff] }
 0x2fa   : > { %v10737_v53 = vld [vmem:[#allocation3 + $0x18] sm:$0xff]  ;;  %v10739_v0 = vld [vmem:[#allocation3 + $0x10] sm:$0xff]  ;;  %v6434_v12 = vld [vmem:[%s12106_s3 + $0x320] sm:$0xff]  ;;  %v4105_v15 = vrot.slane %v4054_v37, 2 }
 0x2fb   : > { %3513 = vst.msk [vmem:[#allocation3 + $0x23] ss:$8 sm:$0x3] %vm10618_vm6, %v3511_v58  ;;  %v3657_v45 = vrot.slane %v10737_v53, 1  ;;  %v3654_v48 = vrot.slane %v10739_v0, 1  ;;  %v4106_v63 = vrot.slane %v10737_v53, 2 }
 0x2fc   : > { %v6433_v33 = vld [vmem:[%s12106_s3 + $0x318] sm:$0xff]  ;;  %v10828_v31 = vld [vmem:[#allocation3 + $0x8] sm:$0xff]  ;;  %v3539_v47 = vld [vmem:[%s12106_s3 + $0x90] sm:$0xff] }
 0x2fd   : > { %v3658_v32 = vsel %vm561_vm0, %v3656_v14, %v3657_v45  ;;  %v3655_v30 = vsel %vm561_vm0, %v3653_v25, %v3654_v48  ;;  %v6432_v22 = vld [vmem:[%s12106_s3 + $0x310] sm:$0xff]  ;;  %v10841_v29 = vsel %vm1468_vm2, %v4105_v15, %v4106_v63  ;;  %v3538_v5 = vld [vmem:[%s12106_s3 + $0x88] sm:$0xff]  ;;  %v3537_v57 = vld [vmem:[%s12106_s3 + $0x80] sm:$0xff] }
 0x2fe   : > { %6362 = vmatprep.mubr.msk.f32.mxu1 %vm3235_vm5, %v3658_v32  ;;  %6408 = vmatprep.mubr.msk.f32.mxu0 %vm3235_vm5, %v3658_v32  ;;  %v6431_v13 = vld [vmem:[%s12106_s3 + $0x308] sm:$0xff]  ;;  %v6430_v38 = vld [vmem:[%s12106_s3 + $0x300] sm:$0xff]  ;;  %v3536_v4 = vld [vmem:[%s12106_s3 + $0x78] sm:$0xff] }
 0x2ff   : > { %3737 = vmatmul.mubr.f32.vlgmr.msra.gmra.mxu1 %v3655_v30  ;;  %3952 = vmatmul.mubr.f32.vlgmr.msra.gmra.mxu0 %v3655_v30  ;;  %v6429_v50 = vld [vmem:[%s12106_s3 + $0x2f8] sm:$0xff]  ;;  %v3535_v2 = vld [vmem:[%s12106_s3 + $0x70] sm:$0xff]  ;;  %v3534_v8 = vld [vmem:[%s12106_s3 + $0x68] sm:$0xff] }
 0x300   : > { %3764 = vmatpush1.msra.mxu1 %v3551_v51  ;;  %4122 = vmatpush1.msra.mxu0 %v6444_v60  ;;  %v3605_v18 = vld [vmem:[#allocation3 + $0x28] sm:$0x7]  ;;  %v3604_v3 = vld [vmem:[#allocation3 + $0x20] sm:$0x7]  ;;  %v6428_v28 = vld [vmem:[%s12106_s3 + $0x2f0] sm:$0xff] }
 0x301   : > { %3765 = vmatprep.subr.mxu1 %v3550_v19  ;;  %4123 = vmatprep.subr.mxu0 %v6443_v62  ;;  %v3661_v41 = vrot.slane %v3605_v18, 1  ;;  %v3659_v26 = vrot.slane %v3604_v3, 1  ;;  %v6427_v16 = vld [vmem:[%s12106_s3 + $0x2e8] sm:$0xff]  ;;  %v3533_v54 = vld [vmem:[%s12106_s3 + $0x60] sm:$0xff]  ;;  %v3532_v23 = vld [vmem:[%s12106_s3 + $0x58] sm:$0xff] }
 0x302   : > { %3766 = vmatpush1.msra.mxu1 %v3549_v24  ;;  %4124 = vmatpush1.msra.mxu0 %v6442_v42  ;;  %v6426_v11 = vld [vmem:[%s12106_s3 + $0x2e0] sm:$0xff]  ;;  %v6425_v7 = vld [vmem:[%s12106_s3 + $0x2d8] sm:$0xff]  ;;  %v3531_v46 = vld [vmem:[%s12106_s3 + $0x50] sm:$0xff] }
 0x303   : > { %3767 = vmatprep.subr.mxu1 %v3548_v61  ;;  %4125 = vmatprep.subr.mxu0 %v6441_v55  ;;  %v3662_v17 = vsel %vm561_vm0, %v3657_v45, %v3661_v41  ;;  %v3660_v40 = vsel %vm561_vm0, %v3654_v48, %v3659_v26  ;;  %v6424_v21 = vld [vmem:[%s12106_s3 + $0x2d0] sm:$0xff]  ;;  %v3530_v20 = vld [vmem:[%s12106_s3 + $0x48] sm:$0xff]  ;;  %v3529_v14 = vld [vmem:[%s12106_s3 + $0x40] sm:$0xff] }
 0x304   : > { %3768 = vmatpush1.msra.mxu1 %v3547_v43  ;;  %4126 = vmatpush1.msra.mxu0 %v6440_v39  ;;  %v6423_v58 = vld [vmem:[%s12106_s3 + $0x2c8] sm:$0xff]  ;;  %v6422_v45 = vld [vmem:[%s12106_s3 + $0x2c0] sm:$0xff]  ;;  %v3528_v25 = vld [vmem:[%s12106_s3 + $0x38] sm:$0xff] }
 0x305   : > { %6363 = vmatprep.mubr.msk.f32.mxu1 %vm3235_vm5, %v3662_v17  ;;  %3769 = vmatprep.subr.mxu1 %v3546_v59  ;;  %v6421_v48 = vld [vmem:[%s12106_s3 + $0x2b8] sm:$0xff]  ;;  %v3527_v32 = vld [vmem:[%s12106_s3 + $0x30] sm:$0xff]  ;;  %v3526_v51 = vld [vmem:[%s12106_s3 + $0x28] sm:$0xff] }
 0x306   : > { %6409 = vmatprep.mubr.msk.f32.mxu0 %vm3235_vm5, %v3662_v17  ;;  %4127 = vmatprep.subr.mxu0 %v6439_v36  ;;  %v6420_v30 = vld [vmem:[%s12106_s3 + $0x2b0] sm:$0xff]  ;;  %v6419_v60 = vld [vmem:[%s12106_s3 + $0x2a8] sm:$0xff]  ;;  %v3525_v19 = vld [vmem:[%s12106_s3 + $0x20] sm:$0xff] }
 0x307   : > { %3743 = vmatmul.mubr.f32.gmra.mxu1 %v3660_v40  ;;  %3958 = vmatmul.mubr.f32.gmra.mxu0 %v3660_v40  ;;  %v6418_v62 = vld [vmem:[%s12106_s3 + $0x2a0] sm:$0xff]  ;;  %v3524_v24 = vld [vmem:[%s12106_s3 + $0x18] sm:$0xff]  ;;  %v3523_v61 = vld [vmem:[%s12106_s3 + $0x10] sm:$0xff] }
 0x308   : > { %3770 = vmatpush1.msra.mxu1 %v3545_v10  ;;  %4128 = vmatpush1.msra.mxu0 %v6438_v56  ;;  %v6417_v42 = vld [vmem:[%s12106_s3 + $0x298] sm:$0xff]  ;;  %v6416_v55 = vld [vmem:[%s12106_s3 + $0x290] sm:$0xff]  ;;  %v3522_v18 = vld [vmem:[%s12106_s3 + $0x8] sm:$0xff] }
 0x309   : > { %6364 = vmatprep.mubr.msk.f32.mxu1 %vm3235_vm5, %v3661_v41  ;;  %3771 = vmatprep.subr.mxu1 %v3544_v35  ;;  %v6415_v3 = vld [vmem:[%s12106_s3 + $0x288] sm:$0xff]  ;;  %v3521_v43 = vld [vmem:[%s12106_s3] sm:$0xff]  ;;  %v3559_v59 = vld [vmem:[%s12106_s3 + $0x130] sm:$0xff] }
 0x30a   : > { %6410 = vmatprep.mubr.msk.f32.mxu0 %vm3235_vm5, %v3661_v41  ;;  %4129 = vmatprep.subr.mxu0 %v6437_v1  ;;  %v6414_v39 = vld [vmem:[%s12106_s3 + $0x280] sm:$0xff]  ;;  %v3560_v41 = vld [vmem:[%s12106_s3 + $0x138] sm:$0xff]  ;;  %v6452_v17 = vld [vmem:[%s12106_s3 + $0x3b0] sm:$0xff] }
 0x30b   : > { %3772 = vmatpush1.msra.mxu1 %v3543_v6  ;;  %4130 = vmatpush1.msra.mxu0 %v6436_v34  ;;  %v3558_v36 = vld [vmem:[%s12106_s3 + $0x128] sm:$0xff]  ;;  %v3557_v10 = vld [vmem:[%s12106_s3 + $0x120] sm:$0xff]  ;;  %v3556_v35 = vld [vmem:[%s12106_s3 + $0x118] sm:$0xff] }
 0x30c   : > { %3773 = vmatprep.subr.mxu1 %v3542_v52  ;;  %4131 = vmatprep.subr.mxu0 %v6435_v44  ;;  %v6451_v40 = vld [vmem:[%s12106_s3 + $0x3a8] sm:$0xff]  ;;  %v6450_v56 = vld [vmem:[%s12106_s3 + $0x3a0] sm:$0xff]  ;;  %v6449_v1 = vld [vmem:[%s12106_s3 + $0x398] sm:$0xff] }
 0x30d   : > { %3749 = vmatmul.mubr.f32.gmra.mxu1 %v3659_v26  ;;  %3964 = vmatmul.mubr.f32.gmra.mxu0 %v3659_v26  ;;  %v6453_v26 = vld [vmem:[%s12106_s3 + $0x3b8] sm:$0xff]  ;;  %v3555_v6 = vld [vmem:[%s12106_s3 + $0x110] sm:$0xff]  ;;  %v4056_v52 = vld [vmem:[#allocation3 + $0x28] sm:$0xf] }
 0x30e   : > { %3774 = vmatpush1.msra.mxu1 %v3541_v27  ;;  %4132 = vmatpush1.msra.mxu0 %v6434_v12  ;;  %v6448_v34 = vld [vmem:[%s12106_s3 + $0x390] sm:$0xff]  ;;  %v3554_v44 = vld [vmem:[%s12106_s3 + $0x108] sm:$0xff]  ;;  %v4053_v27 = vld [vmem:[#allocation3] sm:$0xfc] }
 0x30f   : > { %3775 = vmatprep.subr.mxu1 %v3540_v9  ;;  %6365 = vmatprep.mubr.msk.f32.mxu1 %vm3235_vm5, %v10828_v31  ;;  %v6447_v37 = vld [vmem:[%s12106_s3 + $0x388] sm:$0xff]  ;;  %v3553_v12 = vld [vmem:[%s12106_s3 + $0x100] sm:$0xff]  ;;  %v6313_v15 = vld [vmem:[%s12106_s3 + $0x4b8] sm:$0xff] }
 0x310   : > { %4133 = vmatprep.subr.mxu0 %v6433_v33  ;;  %6454 = vmatprep.mubr.msk.f32.mxu0 %vm3235_vm5, %v10841_v29  ;;  %v6446_v9 = vld [vmem:[%s12106_s3 + $0x380] sm:$0xff]  ;;  %v4103_v33 = vrot.slane %v10739_v0, 2 }
 0x311   : > { %3776 = vmatpush1.msra.mxu1 %v3539_v47  ;;  %4134 = vmatpush1.msra.mxu0 %v6432_v22  ;;  %v11005_v47 = vrot.slane %v4056_v52, 2  ;;  %v4102_v22 = vrot.slane %v4053_v27, 2  ;;  %v6485_v52 = vld [vmem:[%s12106_s3 + $0x720] sm:$0xff]  ;;  %v6482_v27 = vld [vmem:[%s12106_s3 + $0x708] sm:$0xff] }
 0x312   : > { %3777 = vmatprep.subr.mxu1 %v3538_v5  ;;  %4135 = vmatprep.subr.mxu0 %v6431_v13  ;;  %v4055_v5 = vld [vmem:[#allocation3 + $0x20] sm:$0xf] }
 0x313   : > { %3778 = vmatpush1.msra.mxu1 %v3537_v57  ;;  %4136 = vmatpush1.msra.mxu0 %v6430_v38  ;;  %v11007_v13 = vld [vmem:[#allocation3] sm:$0xff]  ;;  %v6312_v57 = vld [vmem:[%s12106_s3 + $0x4b0] sm:$0xff]  ;;  %v11014_v38 = vsel %vm1468_vm2, %v4102_v22, %v4103_v33 }
 0x314   : > { %3779 = vmatprep.subr.mxu1 %v3536_v4  ;;  %4137 = vmatprep.subr.mxu0 %v6429_v50  ;;  %v6311_v4 = vld [vmem:[%s12106_s3 + $0x4a8] sm:$0xff]  ;;  %v11026_v50 = vsel %vm1468_vm2, %v4106_v63, %v11005_v47  ;;  %v6308_v63 = vld [vmem:[%s12106_s3 + $0x490] sm:$0xff] }
 0x315   : > { %3780 = vmatpush1.msra.mxu1 %v3535_v2  ;;  %4138 = vmatpush1.msra.mxu0 %v6428_v28  ;;  %v6310_v2 = vld [vmem:[%s12106_s3 + $0x4a0] sm:$0xff]  ;;  %v11031_v28 = vrot.slane %v4055_v5, 2  ;;  %v6475_v22 = vld [vmem:[%s12106_s3 + $0x6d0] sm:$0xff]  ;;  %v6474_v5 = vld [vmem:[%s12106_s3 + $0x6c8] sm:$0xff] }
 0x316   : > { %3781 = vmatprep.subr.mxu1 %v3534_v8  ;;  %4139 = vmatprep.subr.mxu0 %v6427_v16  ;;  %v6309_v8 = vld [vmem:[%s12106_s3 + $0x498] sm:$0xff] }
 0x317   : > { %3782 = vmatpush1.msra.mxu1 %v3533_v54  ;;  %4140 = vmatpush1.msra.mxu0 %v6426_v11  ;;  %v11044_v16 = vsel %vm1468_vm2, %v4103_v33, %v11031_v28  ;;  %v11046_v54 = vld [vmem:[#allocation3 + $0x28] sm:$0x3]  ;;  %v6477_v33 = vld [vmem:[%s12106_s3 + $0x6e0] sm:$0xff] }
 0x318   : > { %3783 = vmatprep.subr.mxu1 %v3532_v23  ;;  %4141 = vmatprep.subr.mxu0 %v6425_v7  ;;  %v6307_v11 = vld [vmem:[%s12106_s3 + $0x488] sm:$0xff]  ;;  %v6306_v23 = vld [vmem:[%s12106_s3 + $0x480] sm:$0xff]  ;;  %v6305_v7 = vld [vmem:[%s12106_s3 + $0x478] sm:$0xff] }
 0x319   : > { %3784 = vmatpush1.msra.mxu1 %v3531_v46  ;;  %4142 = vmatpush1.msra.mxu0 %v6424_v21  ;;  %v6304_v46 = vld [vmem:[%s12106_s3 + $0x470] sm:$0xff]  ;;  %v11065_v21 = vld [vmem:[#allocation3 + $0x20] sm:$0x3] }
 0x31a   : > { %3785 = vmatprep.subr.mxu1 %v3530_v20  ;;  %4143 = vmatprep.subr.mxu0 %v6423_v58  ;;  %v6303_v20 = vld [vmem:[%s12106_s3 + $0x468] sm:$0xff]  ;;  %v6302_v58 = vld [vmem:[%s12106_s3 + $0x460] sm:$0xff] }
 0x31b   : > { %3786 = vmatpush1.msra.mxu1 %v3529_v14  ;;  %4144 = vmatpush1.msra.mxu0 %v6422_v45  ;;  %v6301_v14 = vld [vmem:[%s12106_s3 + $0x458] sm:$0xff]  ;;  %v6300_v45 = vld [vmem:[%s12106_s3 + $0x450] sm:$0xff] }
 0x31c   : > { %3787 = vmatprep.subr.mxu1 %v3528_v25  ;;  %4145 = vmatprep.subr.mxu0 %v6421_v48  ;;  %v6299_v25 = vld [vmem:[%s12106_s3 + $0x448] sm:$0xff]  ;;  %v6298_v48 = vld [vmem:[%s12106_s3 + $0x440] sm:$0xff] }
 0x31d   : > { %3788 = vmatpush1.msra.mxu1 %v3527_v32  ;;  %4146 = vmatpush1.msra.mxu0 %v6420_v30  ;;  %v6296_v32 = vld [vmem:[%s12106_s3 + $0x430] sm:$0xff]  ;;  %v6295_v30 = vld [vmem:[%s12106_s3 + $0x428] sm:$0xff] }
 0x31e   : > { %3789 = vmatprep.subr.mxu1 %v3526_v51  ;;  %4147 = vmatprep.subr.mxu0 %v6419_v60  ;;  %v6294_v51 = vld [vmem:[%s12106_s3 + $0x420] sm:$0xff]  ;;  %v6293_v60 = vld [vmem:[%s12106_s3 + $0x418] sm:$0xff] }
 0x31f   : > { %3790 = vmatpush1.msra.mxu1 %v3525_v19  ;;  %4148 = vmatpush1.msra.mxu0 %v6418_v62  ;;  %v6292_v19 = vld [vmem:[%s12106_s3 + $0x410] sm:$0xff]  ;;  %v6291_v62 = vld [vmem:[%s12106_s3 + $0x408] sm:$0xff] }
 0x320   : > { %3791 = vmatprep.subr.mxu1 %v3524_v24  ;;  %4149 = vmatprep.subr.mxu0 %v6417_v42  ;;  %v6290_v24 = vld [vmem:[%s12106_s3 + $0x400] sm:$0xff]  ;;  %v6289_v42 = vld [vmem:[%s12106_s3 + $0x3f8] sm:$0xff] }
 0x321   : > { %3792 = vmatpush1.msra.mxu1 %v3523_v61  ;;  %4150 = vmatpush1.msra.mxu0 %v6416_v55  ;;  %v6288_v61 = vld [vmem:[%s12106_s3 + $0x3f0] sm:$0xff]  ;;  %v6287_v55 = vld [vmem:[%s12106_s3 + $0x3e8] sm:$0xff] }
 0x322   : > { %3793 = vmatprep.subr.mxu1 %v3522_v18  ;;  %4151 = vmatprep.subr.mxu0 %v6415_v3  ;;  %v6286_v18 = vld [vmem:[%s12106_s3 + $0x3e0] sm:$0xff]  ;;  %v6285_v3 = vld [vmem:[%s12106_s3 + $0x3d8] sm:$0xff] }
 0x323   : > { %3794 = vmatpush1.msra.mxu1 %v3521_v43  ;;  %4152 = vmatpush1.msra.mxu0 %v6414_v39  ;;  %v6284_v43 = vld [vmem:[%s12106_s3 + $0x3d0] sm:$0xff]  ;;  %v6283_v39 = vld [vmem:[%s12106_s3 + $0x3c8] sm:$0xff] }
 0x324   : > { %3819 = vmatprep.subr.mxu1 %v3560_v41  ;;  %4177 = vmatprep.subr.mxu0 %v6453_v26  ;;  %v6282_v41 = vld [vmem:[%s12106_s3 + $0x3c0] sm:$0xff]  ;;  %v6321_v26 = vld [vmem:[%s12106_s3 + $0x4f8] sm:$0xff] }
 0x325   : > { %3820 = vmatpush2.msra.mxu1 %v3559_v59  ;;  %4178 = vmatpush2.msra.mxu0 %v6452_v17  ;;  %v6320_v59 = vld [vmem:[%s12106_s3 + $0x4f0] sm:$0xff]  ;;  %v6319_v17 = vld [vmem:[%s12106_s3 + $0x4e8] sm:$0xff] }
 0x326   : > { %3821 = vmatprep.subr.mxu1 %v3558_v36  ;;  %4179 = vmatprep.subr.mxu0 %v6451_v40  ;;  %v6318_v36 = vld [vmem:[%s12106_s3 + $0x4e0] sm:$0xff]  ;;  %v6317_v40 = vld [vmem:[%s12106_s3 + $0x4d8] sm:$0xff] }
 0x327   : > { %3822 = vmatpush2.msra.mxu1 %v3557_v10  ;;  %4180 = vmatpush2.msra.mxu0 %v6450_v56  ;;  %v6316_v10 = vld [vmem:[%s12106_s3 + $0x4d0] sm:$0xff]  ;;  %v6315_v56 = vld [vmem:[%s12106_s3 + $0x4c8] sm:$0xff] }
 0x328   : > { %3823 = vmatprep.subr.mxu1 %v3556_v35  ;;  %4181 = vmatprep.subr.mxu0 %v6449_v1  ;;  %v6314_v35 = vld [vmem:[%s12106_s3 + $0x4c0] sm:$0xff]  ;;  %v6488_v1 = vld [vmem:[%s12106_s3 + $0x738] sm:$0xff] }
 0x329   : > { %3824 = vmatpush2.msra.mxu1 %v3555_v6  ;;  %4182 = vmatpush2.msra.mxu0 %v6448_v34  ;;  %v6487_v6 = vld [vmem:[%s12106_s3 + $0x730] sm:$0xff]  ;;  %v6486_v34 = vld [vmem:[%s12106_s3 + $0x728] sm:$0xff] }
 0x32a   : > { %3825 = vmatprep.subr.mxu1 %v3554_v44  ;;  %4183 = vmatprep.subr.mxu0 %v6447_v37  ;;  %v6484_v44 = vld [vmem:[%s12106_s3 + $0x718] sm:$0xff]  ;;  %v6483_v37 = vld [vmem:[%s12106_s3 + $0x710] sm:$0xff] }
 0x32b   : > { %3826 = vmatpush2.msra.mxu1 %v3553_v12  ;;  %4184 = vmatpush2.msra.mxu0 %v6446_v9  ;;  %v6480_v12 = vld [vmem:[%s12106_s3 + $0x6f8] sm:$0xff]  ;;  %v6479_v9 = vld [vmem:[%s12106_s3 + $0x6f0] sm:$0xff] }
 0x32c   : > { %3828 = vmatmul.mubr.f32.vlgmr.msra.gmra.mxu1 %v11007_v13  ;;  %3970 = vmatprep.subr.mxu1 %v6313_v15  ;;  %v6476_v15 = vld [vmem:[%s12106_s3 + $0x6d8] sm:$0xff] }
 0x32d   : > { %4186 = vmatmul.mubr.f32.vlgmr.msra.gmra.mxu0 %v11014_v38  ;;  %6366 = vmatprep.mubr.msk.f32.mxu1 %vm3235_vm5, %v10737_v53 }
 0x32e   : > { %3971 = vmatpush1.msra.mxu1 %v6312_v57  ;;  %6455 = vmatprep.mubr.msk.f32.mxu0 %vm3235_vm5, %v11026_v50  ;;  %v6471_v57 = vld [vmem:[%s12106_s3 + $0x6b0] sm:$0xff] }
 0x32f   : > { %3972 = vmatprep.subr.mxu1 %v6311_v4  ;;  %v6470_v4 = vld [vmem:[%s12106_s3 + $0x6a8] sm:$0xff] }
 0x330   : > { %3973 = vmatpush1.msra.mxu1 %v6310_v2  ;;  %v6469_v2 = vld [vmem:[%s12106_s3 + $0x6a0] sm:$0xff] }
 0x331   : > { %3834 = vmatmul.mubr.f32.gmra.mxu1 %v10739_v0  ;;  %3974 = vmatprep.subr.mxu1 %v6309_v8  ;;  %v6468_v8 = vld [vmem:[%s12106_s3 + $0x698] sm:$0xff] }
 0x332   : > { %4192 = vmatmul.mubr.f32.gmra.mxu0 %v11044_v16  ;;  %6367 = vmatprep.mubr.msk.f32.mxu1 %vm3235_vm5, %v11046_v54 }
 0x333   : > { %3975 = vmatpush1.msra.mxu1 %v6308_v63  ;;  %6456 = vmatprep.mubr.msk.f32.mxu0 %vm3235_vm5, %v11005_v47  ;;  %v6467_v63 = vld [vmem:[%s12106_s3 + $0x690] sm:$0xff] }
 0x334   : > { %3976 = vmatprep.subr.mxu1 %v6307_v11  ;;  %v6465_v11 = vld [vmem:[%s12106_s3 + $0x680] sm:$0xff] }
 0x335   : > { %3977 = vmatpush1.msra.mxu1 %v6306_v23  ;;  %v6464_v23 = vld [vmem:[%s12106_s3 + $0x678] sm:$0xff] }
 0x336   : > { %3840 = vmatmul.mubr.f32.gmra.mxu1 %v11065_v21  ;;  %3978 = vmatprep.subr.mxu1 %v6305_v7  ;;  %v6463_v7 = vld [vmem:[%s12106_s3 + $0x670] sm:$0xff] }
 0x337   : > { %4198 = vmatmul.mubr.f32.gmra.mxu0 %v11031_v28  ;;  %3979 = vmatpush1.msra.mxu1 %v6304_v46  ;;  %v6462_v46 = vld [vmem:[%s12106_s3 + $0x668] sm:$0xff] }
 0x338   : > { %6411 = vmatprep.mubr.msk.f32.mxu1 %vm3235_vm5, %v10828_v31  ;;  %3980 = vmatprep.subr.mxu1 %v6303_v20  ;;  %v6297_v31 = vld [vmem:[%s12106_s3 + $0x438] sm:$0xff] }
 0x339   : > { %3981 = vmatpush1.msra.mxu1 %v6302_v58  ;;  %v6460_v20 = vld [vmem:[%s12106_s3 + $0x658] sm:$0xff]  ;;  %v6459_v58 = vld [vmem:[%s12106_s3 + $0x650] sm:$0xff] }
 0x33a   : > { %3982 = vmatprep.subr.mxu1 %v6301_v14  ;;  %v6458_v14 = vld [vmem:[%s12106_s3 + $0x648] sm:$0xff] }
 0x33b   : > { %3983 = vmatpush1.msra.mxu1 %v6300_v45  ;;  %v6457_v45 = vld [vmem:[%s12106_s3 + $0x640] sm:$0xff] }
 0x33c   : > { %3984 = vmatprep.subr.mxu1 %v6299_v25  ;;  %v6496_v25 = vld [vmem:[%s12106_s3 + $0x778] sm:$0xff] }
 0x33d   : > { %3985 = vmatpush1.msra.mxu1 %v6298_v48  ;;  %v6495_v48 = vld [vmem:[%s12106_s3 + $0x770] sm:$0xff] }
 0x33e   : > { %3986 = vmatprep.subr.mxu1 %v6297_v31  ;;  %v6494_v31 = vld [vmem:[%s12106_s3 + $0x768] sm:$0xff] }
 0x33f   : > { %3987 = vmatpush1.msra.mxu1 %v6296_v32  ;;  %v6493_v32 = vld [vmem:[%s12106_s3 + $0x760] sm:$0xff] }
 0x340   : > { %3988 = vmatprep.subr.mxu1 %v6295_v30  ;;  %v6492_v30 = vld [vmem:[%s12106_s3 + $0x758] sm:$0xff] }
 0x341   : > { %3989 = vmatpush1.msra.mxu1 %v6294_v51  ;;  %v6491_v51 = vld [vmem:[%s12106_s3 + $0x750] sm:$0xff] }
 0x342   : > { %3990 = vmatprep.subr.mxu1 %v6293_v60  ;;  %v6490_v60 = vld [vmem:[%s12106_s3 + $0x748] sm:$0xff] }
 0x343   : > { %3991 = vmatpush1.msra.mxu1 %v6292_v19  ;;  %v6489_v19 = vld [vmem:[%s12106_s3 + $0x740] sm:$0xff] }
 0x344   : > { %3992 = vmatprep.subr.mxu1 %v6291_v62  ;;  %v4377_v62 = vld [vmem:[%s12108_s5 + $0x78] sm:$0xff] }
 0x345   : > { %3993 = vmatpush1.msra.mxu1 %v6290_v24  ;;  %v6516_v24 = vld [vmem:[%s12108_s5 + $0x108] sm:$0xff] }
 0x346   : > { %3994 = vmatprep.subr.mxu1 %v6289_v42  ;;  %v6801_v42 = vmov 0.0  }
 0x347   : > { %3995 = vmatpush1.msra.mxu1 %v6288_v61  ;;  %4392 = vmatprep.subr.mxu0 %v6801_v42  ;;  %v6513_v61 = vld [vmem:[%s12108_s5 + $0xf0] sm:$0xff] }
 0x348   : > { %3996 = vmatprep.subr.mxu1 %v6287_v55  ;;  %4393 = vmatpush1.msra.mxu0 %v4377_v62  ;;  %v4373_v55 = vld [vmem:[%s12108_s5 + $0x58] sm:$0xff] }
 0x349   : > { %3997 = vmatpush1.msra.mxu1 %v6286_v18  ;;  %4394 = vmatprep.subr.mxu0 %v6801_v42  ;;  %v6512_v18 = vld [vmem:[%s12108_s5 + $0xe8] sm:$0xff] }
 0x34a   : > { %3998 = vmatprep.subr.mxu1 %v6285_v3  ;;  %v4372_v3 = vld [vmem:[%s12108_s5 + $0x50] sm:$0xff] }
 0x34b   : > { %3999 = vmatpush1.msra.mxu1 %v6284_v43  ;;  %v6511_v43 = vld [vmem:[%s12108_s5 + $0xe0] sm:$0xff] }
 0x34c   : > { %4000 = vmatprep.subr.mxu1 %v6283_v39  ;;  %v4371_v39 = vld [vmem:[%s12108_s5 + $0x48] sm:$0xff] }
 0x34d   : > { %4001 = vmatpush1.msra.mxu1 %v6282_v41  ;;  %v6510_v41 = vld [vmem:[%s12108_s5 + $0xd8] sm:$0xff] }
 0x34e   : > { %4026 = vmatprep.subr.mxu1 %v6321_v26  ;;  %v4370_v26 = vld [vmem:[%s12108_s5 + $0x40] sm:$0xff] }
 0x34f   : > { %4027 = vmatpush2.msra.mxu1 %v6320_v59  ;;  %v6509_v59 = vld [vmem:[%s12108_s5 + $0xd0] sm:$0xff] }
 0x350   : > { %4028 = vmatprep.subr.mxu1 %v6319_v17  ;;  %v4369_v17 = vld [vmem:[%s12108_s5 + $0x38] sm:$0xff] }
 0x351   : > { %4029 = vmatpush2.msra.mxu1 %v6318_v36  ;;  %v6508_v36 = vld [vmem:[%s12108_s5 + $0xc8] sm:$0xff] }
 0x352   : > { %4030 = vmatprep.subr.mxu1 %v6317_v40  ;;  %v4368_v40 = vld [vmem:[%s12108_s5 + $0x30] sm:$0xff] }
 0x353   : > { %4031 = vmatpush2.msra.mxu1 %v6316_v10  ;;  %v6507_v10 = vld [vmem:[%s12108_s5 + $0xc0] sm:$0xff] }
 0x354   : > { %4032 = vmatprep.subr.mxu1 %v6315_v56  ;;  %v4367_v56 = vld [vmem:[%s12108_s5 + $0x28] sm:$0xff] }
 0x355   : > { %4033 = vmatpush2.msra.mxu1 %v6314_v35  ;;  %v6506_v35 = vld [vmem:[%s12108_s5 + $0xb8] sm:$0xff] }
 0x356   : > { %4035 = vmatmul.mubr.f32.vlgmr.msra.gmra.mxu1 %v11007_v13  ;;  %4251 = vmatprep.subr.mxu1 %v6488_v1  ;;  %v6473_v13 = vld [vmem:[%s12106_s3 + $0x6c0] sm:$0xff] }
 0x357   : > { %6412 = vmatprep.mubr.msk.f32.mxu1 %vm3235_vm5, %v10737_v53  ;;  %4252 = vmatpush1.msra.mxu1 %v6487_v6  ;;  %v6481_v53 = vld [vmem:[%s12106_s3 + $0x700] sm:$0xff]  ;;  %v6505_v6 = vld [vmem:[%s12108_s5 + $0xb0] sm:$0xff] }
 0x358   : > { %4253 = vmatprep.subr.mxu1 %v6486_v34  ;;  %v4366_v1 = vld [vmem:[%s12108_s5 + $0x20] sm:$0xff]  ;;  %v4365_v34 = vld [vmem:[%s12108_s5 + $0x18] sm:$0xff] }
 0x359   : > { %4254 = vmatpush1.msra.mxu1 %v6485_v52  ;;  %v6504_v52 = vld [vmem:[%s12108_s5 + $0xa8] sm:$0xff] }
 0x35a   : > { %4041 = vmatmul.mubr.f32.gmra.mxu1 %v10739_v0  ;;  %4255 = vmatprep.subr.mxu1 %v6484_v44  ;;  %v6478_v0 = vld [vmem:[%s12106_s3 + $0x6e8] sm:$0xff]  ;;  %v4364_v44 = vld [vmem:[%s12108_s5 + $0x10] sm:$0xff] }
 0x35b   : > { %6413 = vmatprep.mubr.msk.f32.mxu1 %vm3235_vm5, %v11046_v54  ;;  %4256 = vmatpush1.msra.mxu1 %v6483_v37  ;;  %v6466_v54 = vld [vmem:[%s12106_s3 + $0x688] sm:$0xff]  ;;  %v6503_v37 = vld [vmem:[%s12108_s5 + $0xa0] sm:$0xff] }
 0x35c   : > { %4257 = vmatprep.subr.mxu1 %v6482_v27  ;;  %v4363_v27 = vld [vmem:[%s12108_s5 + $0x8] sm:$0xff] }
 0x35d   : > { %4258 = vmatpush1.msra.mxu1 %v6481_v53  ;;  %v6502_v53 = vld [vmem:[%s12108_s5 + $0x98] sm:$0xff] }
 0x35e   : > { %4047 = vmatmul.mubr.f32.gmra.mxu1 %v11065_v21  ;;  %4259 = vmatprep.subr.mxu1 %v6480_v12  ;;  %v6461_v21 = vld [vmem:[%s12106_s3 + $0x660] sm:$0xff] }
 0x35f   : > { %4260 = vmatpush1.msra.mxu1 %v6479_v9  ;;  %6497 = vmatprep.mubr.msk.f32.mxu1 %vm3235_vm5, %v10841_v29  ;;  %v6472_v29 = vld [vmem:[%s12106_s3 + $0x6b8] sm:$0xff]  ;;  %v4362_v12 = vld [vmem:[%s12108_s5] sm:$0xff]  ;;  %v6501_v9 = vld [vmem:[%s12108_s5 + $0x90] sm:$0xff] }
 0x360   : > { %4261 = vmatprep.subr.mxu1 %v6478_v0  ;;  %v4379_v0 = vld [vmem:[%s12108_s5 + $0x88] sm:$0xff] }
 0x361   : > { %4262 = vmatpush1.msra.mxu1 %v6477_v33  ;;  %v6518_v33 = vld [vmem:[%s12108_s5 + $0x118] sm:$0xff] }
 0x362   : > { %4263 = vmatprep.subr.mxu1 %v6476_v15  ;;  %v4378_v15 = vld [vmem:[%s12108_s5 + $0x80] sm:$0xff] }
 0x363   : > { %4264 = vmatpush1.msra.mxu1 %v6475_v22  ;;  %v6517_v22 = vld [vmem:[%s12108_s5 + $0x110] sm:$0xff] }
 0x364   : > { %4265 = vmatprep.subr.mxu1 %v6474_v5 }
 0x365   : > { %4266 = vmatpush1.msra.mxu1 %v6473_v13 }
 0x366   : > { %4267 = vmatprep.subr.mxu1 %v6472_v29 }
 0x367   : > { %4268 = vmatpush1.msra.mxu1 %v6471_v57 }
 0x368   : > { %4269 = vmatprep.subr.mxu1 %v6470_v4 }
 0x369   : > { %4270 = vmatpush1.msra.mxu1 %v6469_v2 }
 0x36a   : > { %4271 = vmatprep.subr.mxu1 %v6468_v8 }
 0x36b   : > { %4272 = vmatpush1.msra.mxu1 %v6467_v63 }
 0x36c   : > { %4273 = vmatprep.subr.mxu1 %v6466_v54 }
 0x36d   : > { %4274 = vmatpush1.msra.mxu1 %v6465_v11 }
 0x36e   : > { %4275 = vmatprep.subr.mxu1 %v6464_v23 }
 0x36f   : > { %4276 = vmatpush1.msra.mxu1 %v6463_v7 }
 0x370   : > { %4277 = vmatprep.subr.mxu1 %v6462_v46 }
 0x371   : > { %4278 = vmatpush1.msra.mxu1 %v6461_v21 }
 0x372   : > { %4279 = vmatprep.subr.mxu1 %v6460_v20 }
 0x373   : > { %4280 = vmatpush1.msra.mxu1 %v6459_v58 }
 0x374   : > { %4281 = vmatprep.subr.mxu1 %v6458_v14 }
 0x375   : > { %4282 = vmatpush1.msra.mxu1 %v6457_v45 }
 0x376   : > { %4307 = vmatprep.subr.mxu1 %v6496_v25 }
 0x377   : > { %4308 = vmatpush2.msra.mxu1 %v6495_v48 }
 0x378   : > { %4309 = vmatprep.subr.mxu1 %v6494_v31 }
 0x379   : > { %4310 = vmatpush2.msra.mxu1 %v6493_v32 }
 0x37a   : > { %4311 = vmatprep.subr.mxu1 %v6492_v30 }
 0x37b   : > { %4312 = vmatpush2.msra.mxu1 %v6491_v51 }
 0x37c   : > { %4313 = vmatprep.subr.mxu1 %v6490_v60 }
 0x37d   : > { %4314 = vmatpush2.msra.mxu1 %v6489_v19 }
 0x37e   : > { %4316 = vmatmul.mubr.f32.vlgmr.msra.gmra.mxu1 %v11014_v38  ;;  %4501 = vmatprep.subr.mxu1 %v6801_v42  ;;  %v4376_v38 = vld [vmem:[%s12108_s5 + $0x70] sm:$0xff] }
 0x37f   : > { %6498 = vmatprep.mubr.msk.f32.mxu1 %vm3235_vm5, %v11026_v50  ;;  %4502 = vmatpush1.msra.mxu1 %v6516_v24  ;;  %v4375_v50 = vld [vmem:[%s12108_s5 + $0x68] sm:$0xff] }
 0x380   : > { %4503 = vmatprep.subr.mxu1 %v6801_v42  ;;  %4395 = vmatpush1.msra.mxu0 %v4376_v38 }
 0x381   : > { %4396 = vmatprep.subr.mxu0 %v6801_v42 }
 0x382   : > { %4322 = vmatmul.mubr.f32.gmra.mxu1 %v11044_v16  ;;  %v4374_v16 = vld [vmem:[%s12108_s5 + $0x60] sm:$0xff]  ;;  %4397 = vmatpush1.msra.mxu0 %v4375_v50 }
 0x383   : > { %6499 = vmatprep.mubr.msk.f32.mxu1 %vm3235_vm5, %v11005_v47  ;;  %v6515_v47 = vld [vmem:[%s12108_s5 + $0x100] sm:$0xff]  ;;  %4398 = vmatprep.subr.mxu0 %v6801_v42 }
 0x384   : > { %4504 = vmatpush1.msra.mxu1 %v6515_v47  ;;  %4399 = vmatpush1.msra.mxu0 %v4374_v16 }
 0x385   : > { %4505 = vmatprep.subr.mxu1 %v6801_v42  ;;  %4400 = vmatprep.subr.mxu0 %v6801_v42 }
 0x386   : > { %4328 = vmatmul.mubr.f32.gmra.mxu1 %v11031_v28  ;;  %v6514_v28 = vld [vmem:[%s12108_s5 + $0xf8] sm:$0xff]  ;;  %4401 = vmatpush1.msra.mxu0 %v4373_v55 }
 0x387   : > { %4506 = vmatpush1.msra.mxu1 %v6514_v28  ;;  %4402 = vmatprep.subr.mxu0 %v6801_v42 }
 0x388   : > { %4507 = vmatprep.subr.mxu1 %v6801_v42  ;;  %4403 = vmatpush1.msra.mxu0 %v4372_v3 }
 0x389   : > { %4508 = vmatpush1.msra.mxu1 %v6513_v61  ;;  %4404 = vmatprep.subr.mxu0 %v6801_v42 }
 0x38a   : > { %4509 = vmatprep.subr.mxu1 %v6801_v42  ;;  %4405 = vmatpush1.msra.mxu0 %v4371_v39 }
 0x38b   : > { %4510 = vmatpush1.msra.mxu1 %v6512_v18  ;;  %4406 = vmatprep.subr.mxu0 %v6801_v42 }
 0x38c   : > { %4511 = vmatprep.subr.mxu1 %v6801_v42  ;;  %4407 = vmatpush1.msra.mxu0 %v4370_v26 }
 0x38d   : > { %4512 = vmatpush1.msra.mxu1 %v6511_v43  ;;  %4408 = vmatprep.subr.mxu0 %v6801_v42 }
 0x38e   : > { %4513 = vmatprep.subr.mxu1 %v6801_v42  ;;  %4409 = vmatpush1.msra.mxu0 %v4369_v17 }
 0x38f   : > { %4514 = vmatpush1.msra.mxu1 %v6510_v41  ;;  %4410 = vmatprep.subr.mxu0 %v6801_v42 }
 0x390   : > { %4515 = vmatprep.subr.mxu1 %v6801_v42  ;;  %4411 = vmatpush1.msra.mxu0 %v4368_v40 }
 0x391   : > { %4516 = vmatpush1.msra.mxu1 %v6509_v59  ;;  %4412 = vmatprep.subr.mxu0 %v6801_v42 }
 0x392   : > { %4517 = vmatprep.subr.mxu1 %v6801_v42  ;;  %4413 = vmatpush1.msra.mxu0 %v4367_v56 }
 0x393   : > { %4518 = vmatpush1.msra.mxu1 %v6508_v36  ;;  %4414 = vmatprep.subr.mxu0 %v6801_v42 }
 0x394   : > { %4519 = vmatprep.subr.mxu1 %v6801_v42  ;;  %4415 = vmatpush1.msra.mxu0 %v4366_v1 }
 0x395   : > { %4520 = vmatpush1.msra.mxu1 %v6507_v10  ;;  %4416 = vmatprep.subr.mxu0 %v6801_v42 }
 0x396   : > { %4521 = vmatprep.subr.mxu1 %v6801_v42  ;;  %4417 = vmatpush1.msra.mxu0 %v4365_v34 }
 0x397   : > { %4522 = vmatpush1.msra.mxu1 %v6506_v35  ;;  %4418 = vmatprep.subr.mxu0 %v6801_v42 }
 0x398   : > { %4523 = vmatprep.subr.mxu1 %v6801_v42  ;;  %4419 = vmatpush1.msra.mxu0 %v4364_v44 }
 0x399   : > { %4524 = vmatpush1.msra.mxu1 %v6505_v6  ;;  %4420 = vmatprep.subr.mxu0 %v6801_v42 }
 0x39a   : > { %4525 = vmatprep.subr.mxu1 %v6801_v42  ;;  %4421 = vmatpush1.msra.mxu0 %v4363_v27 }
 0x39b   : > { %4526 = vmatpush1.msra.mxu1 %v6504_v52  ;;  %4422 = vmatprep.subr.mxu0 %v6801_v42 }
 0x39c   : > { %4527 = vmatprep.subr.mxu1 %v6801_v42  ;;  %4423 = vmatpush1.msra.mxu0 %v4362_v12  ;;  %v4382_v12 = vshrl.u32 %v3262_v49, 7 }
 0x39d   : > { %4528 = vmatpush1.msra.mxu1 %v6503_v37  ;;  %4452 = vmatprep.subr.mxu0 %v6801_v42 }
 0x39e   : > { %4529 = vmatprep.subr.mxu1 %v6801_v42  ;;  %4453 = vmatpush2.msra.mxu0 %v4379_v0  ;;  %v11451_v49 = vsub.s32 0, %v4382_v12 }
 0x39f   : > { %4530 = vmatpush1.msra.mxu1 %v6502_v53  ;;  %4454 = vmatprep.subr.mxu0 %v6801_v42 }
 0x3a0   : > { %4531 = vmatprep.subr.mxu1 %v6801_v42  ;;  %4455 = vmatpush2.msra.mxu0 %v4378_v15 }
 0x3a1   : > { %4532 = vmatpush1.msra.mxu1 %v6501_v9  ;;  %4610 = vmatprep.subr.mxu0 %v6801_v42 }
 0x3a2   : > { %4561 = vmatprep.subr.mxu1 %v6801_v42 }
 0x3a3   : > { %4562 = vmatpush2.msra.mxu1 %v6518_v33 }
 0x3a4   : > { %4563 = vmatprep.subr.mxu1 %v6801_v42 }
 0x3a5   : > { %4564 = vmatpush2.msra.mxu1 %v6517_v22 }
 0x3a6   : > { %4719 = vmatprep.subr.mxu1 %v6801_v42 }
 0x3bf   : > { %v3738_v5 = vpop.f32.mrf.mxu1  ;;  %v3953_v23 = vpop.f32.mrf.mxu0 }
 0x3c1   : > { %v3740_v13 = vpop.f32.mrf.mxu1  ;;  %v3955_v46 = vpop.f32.mrf.mxu0 }
 0x3c7   : > { %v3744_v29 = vpop.f32.mrf.mxu1  ;;  %v3959_v21 = vpop.f32.mrf.mxu0 }
 0x3c9   : > { %v3746_v57 = vpop.f32.mrf.mxu1  ;;  %v3961_v14 = vpop.f32.mrf.mxu0 }
 0x3cd   : > { %v3750_v4 = vpop.f32.mrf.mxu1  ;;  %v3965_v25 = vpop.f32.mrf.mxu0 }
 0x3cf   : > { %v3752_v2 = vpop.f32.mrf.mxu1  ;;  %v3967_v31 = vpop.f32.mrf.mxu0 }
 0x3ec   : > { %v3829_v8 = vpop.f32.mrf.mxu1 }
 0x3ed   : > { %v4187_v32 = vpop.f32.mrf.mxu0  ;;  %v3830_v19 = vadd.f32 %v3829_v8, %v3738_v5  ;;  %v11453_v8 = vsub.s32 1, %v4382_v12 }
 0x3ee   : > { %v3831_v63 = vpop.f32.mrf.mxu1 }
 0x3ef   : > { %v4189_v51 = vpop.f32.mrf.mxu0  ;;  %v3832_v38 = vadd.f32 %v3831_v63, %v3740_v13  ;;  %v4204_v16 = vadd.f32 %v4187_v32, %v3830_v19 }
 0x3f1   : > { %v3835_v54 = vpop.f32.mrf.mxu1  ;;  %v4205_v39 = vadd.f32 %v4189_v51, %v3832_v38 }
 0x3f2   : > { %v4193_v62 = vpop.f32.mrf.mxu0  ;;  %v3836_v50 = vadd.f32 %v3835_v54, %v3744_v29 }
 0x3f3   : > { %v3837_v11 = vpop.f32.mrf.mxu1 }
 0x3f4   : > { %v3838_v18 = vadd.f32 %v3837_v11, %v3746_v57  ;;  %v4195_v3 = vpop.f32.mrf.mxu0  ;;  %v4206_v17 = vadd.f32 %v4193_v62, %v3836_v50 }
 0x3f6   : > { %v3841_v7 = vpop.f32.mrf.mxu1  ;;  %v4207_v1 = vadd.f32 %v4195_v3, %v3838_v18 }
 0x3f7   : > { %v3842_v40 = vadd.f32 %v3841_v7, %v3750_v4  ;;  %v4199_v6 = vpop.f32.mrf.mxu0 }
 0x3f8   : > { %v3843_v20 = vpop.f32.mrf.mxu1 }
 0x3f9   : > { %v3844_v52 = vadd.f32 %v3843_v20, %v3752_v2  ;;  %v4208_v9 = vadd.f32 %v4199_v6, %v3842_v40  ;;  %v4201_v22 = vpop.f32.mrf.mxu0  ;;  %v11449_v2 = vld [vmem:[%s12107_s4] sm:$0x3]  ;;  %v6552_v6 = vld [vmem:[%s12108_s5 + $0x218] sm:$0xff] }
 0x3fa   : > { %v6553_v40 = vld [vmem:[%s12108_s5 + $0x220] sm:$0xff] }
 0x3fb   : > { %v4209_v13 = vadd.f32 %v4201_v22, %v3844_v52  ;;  %v6532_v52 = vld [vmem:[%s12108_s5 + $0x180] sm:$0xff] }
 0x416   : > { %v4036_v58 = vpop.f32.mrf.mxu1 }
 0x417   : > { %v4037_v47 = vadd.f32 %v4036_v58, %v3953_v23 }
 0x418   : > { %v4038_v45 = vpop.f32.mrf.mxu1 }
 0x419   : > { %v4039_v61 = vadd.f32 %v4038_v45, %v3955_v46 }
 0x41a   : > { %v4042_v48 = vpop.f32.mrf.mxu1 }
 0x41b   : > { %v4043_v41 = vadd.f32 %v4042_v48, %v3959_v21 }
 0x41c   : > { %v4044_v30 = vpop.f32.mrf.mxu1 }
 0x41d   : > { %v4045_v10 = vadd.f32 %v4044_v30, %v3961_v14 }
 0x41e   : > { %v4048_v60 = vpop.f32.mrf.mxu1 }
 0x41f   : > { %v4049_v44 = vadd.f32 %v4048_v60, %v3965_v25 }
 0x420   : > { %v4050_v24 = vpop.f32.mrf.mxu1 }
 0x421   : > { %v4051_v0 = vadd.f32 %v4050_v24, %v3967_v31 }
 0x43e   : > { %v4317_v28 = vpop.f32.mrf.mxu1 }
 0x43f   : > { %v4334_v55 = vadd.f32 %v4317_v28, %v4037_v47  ;;  %v6535_v28 = vld [vmem:[%s12108_s5 + $0x198] sm:$0xff] }
 0x440   : > { %v4319_v43 = vpop.f32.mrf.mxu1 }
 0x441   : > { %v4340_v26 = vmax.f32 %v4204_v16, %v4334_v55  ;;  %v4335_v59 = vadd.f32 %v4319_v43, %v4039_v61  ;;  %v6554_v55 = vld [vmem:[%s12108_s5 + $0x228] sm:$0xff] }
 0x442   : > { %v4323_v36 = vpop.f32.mrf.mxu1 }
 0x443   : > { %4346 = vst [vmem:[#allocation4] sm:$0xff] %v4340_v26  ;;  %v4341_v56 = vmax.f32 %v4205_v39, %v4335_v59  ;;  %v4336_v35 = vadd.f32 %v4323_v36, %v4043_v41  ;;  %v6534_v26 = vld [vmem:[%s12108_s5 + $0x190] sm:$0xff] }
 0x444   : > { %v4325_v34 = vpop.f32.mrf.mxu1 }
 0x445   : > { %4348 = vst.msk [vmem:[#allocation4 + $0x8] sm:$0xff] %vm4347_vm8, %v4341_v56  ;;  %v4342_v37 = vmax.f32 %v4206_v17, %v4336_v35  ;;  %v4337_v27 = vadd.f32 %v4325_v34, %v4045_v10  ;;  %v6533_v35 = vld [vmem:[%s12108_s5 + $0x188] sm:$0xff] }
 0x446   : > { %v4329_v53 = vpop.f32.mrf.mxu1 }
 0x447   : > { %4349 = vst [vmem:[#allocation4 + $0x10] sm:$0xff] %v4342_v37  ;;  %v4343_v33 = vmax.f32 %v4207_v1, %v4337_v27  ;;  %v4338_v15 = vadd.f32 %v4329_v53, %v4049_v44  ;;  %v6551_v53 = vld [vmem:[%s12108_s5 + $0x210] sm:$0xff] }
 0x448   : > { %v4331_v5 = vpop.f32.mrf.mxu1 }
 0x449   : > { %4350 = vst.msk [vmem:[#allocation4 + $0x18] sm:$0xff] %vm4347_vm8, %v4343_v33  ;;  %v4344_v29 = vmax.f32 %v4208_v9, %v4338_v15  ;;  %v4339_v57 = vadd.f32 %v4331_v5, %v4051_v0  ;;  %v6531_v9 = vld [vmem:[%s12108_s5 + $0x178] sm:$0xff]  ;;  %v6550_v33 = vld [vmem:[%s12108_s5 + $0x208] sm:$0xff]  ;;  %v6530_v5 = vld [vmem:[%s12108_s5 + $0x170] sm:$0xff] }
 0x44b   : > { %4351 = vst [vmem:[#allocation4 + $0x20] sm:$0x3] %v4344_v29  ;;  %v4345_v4 = vmax.f32 %v4209_v13, %v4339_v57  ;;  %v6549_v57 = vld [vmem:[%s12108_s5 + $0x200] sm:$0xff] }
 0x44c   : > { %v4356_v63 = vld [vmem:[#allocation4] ss:$8 sm:$0x3]  ;;  %v4358_v54 = vld [vmem:[#allocation4 + $0x1] ss:$8 sm:$0x3] }
 0x44d   : > { %4353 = vst.msk [vmem:[#allocation4 + $0x28] sm:$0x3] %vm4352_vm9, %v4345_v4  ;;  %v4359_v11 = vmax.f32 %v4356_v63, %v4358_v54  ;;  %v4464_v23 = vld [vmem:[#allocation4 + $0x2] ss:$8 sm:$0x3]  ;;  %v6529_v4 = vld [vmem:[%s12108_s5 + $0x168] sm:$0xff] }
 0x44e   : > { %v4466_v7 = vld [vmem:[#allocation4 + $0x3] ss:$8 sm:$0x3]  ;;  %v4573_v21 = vld [vmem:[#allocation4 + $0x4] ss:$8 sm:$0x3] }
 0x44f   : > { %v4467_v46 = vmax.f32 %v4464_v23, %v4466_v7  ;;  %v4575_v20 = vld [vmem:[#allocation4 + $0x5] ss:$8 sm:$0x3]  ;;  %v4360_v58 = vadd.f32 %v4359_v11, %v11449_v2  ;;  %v4682_v45 = vld [vmem:[#allocation4 + $0x6] ss:$8 sm:$0x3] }
 0x450   : > { %v4576_v14 = vmax.f32 %v4573_v21, %v4575_v20  ;;  %v4684_v25 = vld [vmem:[#allocation4 + $0x7] ss:$8 sm:$0x3]  ;;  %v5009_v38 = vld [vmem:[#allocation4 + $0x14] ss:$8 sm:$0x3] }
 0x451   : > { %v4468_v48 = vadd.f32 %v4467_v46, %v11449_v2  ;;  %v4685_v31 = vmax.f32 %v4682_v45, %v4684_v25  ;;  %v4361_v32 = vmax.f32 %v4360_v58, 0.0  ;;  %v5011_v61 = vld [vmem:[#allocation4 + $0x15] ss:$8 sm:$0x3]  ;;  %v6548_v63 = vld [vmem:[%s12108_s5 + $0x1f8] sm:$0xff]  ;;  %v6547_v11 = vld [vmem:[%s12108_s5 + $0x1f0] sm:$0xff] }
 0x452   : > { %v11458_v30 = vadd.f32 %v4576_v14, %v11449_v2  ;;  %v5012_v18 = vmax.f32 %v5009_v38, %v5011_v61  ;;  %v5118_v3 = vld [vmem:[#allocation4 + $0x16] ss:$8 sm:$0x3]  ;;  %v5120_v43 = vld [vmem:[#allocation4 + $0x17] ss:$8 sm:$0x3] }
 0x453   : > { %v4469_v51 = vmax.f32 %v4468_v48, 0.0  ;;  %v11461_v60 = vadd.f32 %v4685_v31, %v11449_v2  ;;  %v4384_v19 = vrot.slane %v4361_v32, %v11451_v49  ;;  %v4388_v62 = vrot.slane %v4361_v32, %v11453_v8  ;;  %v6528_v54 = vld [vmem:[%s12108_s5 + $0x160] sm:$0xff]  ;;  %v6527_v23 = vld [vmem:[%s12108_s5 + $0x158] sm:$0xff]  ;;  %v6546_v7 = vld [vmem:[%s12108_s5 + $0x1e8] sm:$0xff] }
 0x454   : > { %v4578_v24 = vmax.f32 %v11458_v30, 0.0  ;;  %v5227_v39 = vld [vmem:[#allocation4 + $0x20] ss:$8 sm:$0x3]  ;;  %v5013_v59 = vadd.f32 %v5012_v18, %v11449_v2  ;;  %v5121_v10 = vmax.f32 %v5118_v3, %v5120_v43  ;;  %v6545_v21 = vld [vmem:[%s12108_s5 + $0x1e0] sm:$0xff]  ;;  %v6525_v20 = vld [vmem:[%s12108_s5 + $0x148] sm:$0xff] }
 0x455   : > { %v4493_v47 = vrot.slane %v4469_v51, %v11451_v49  ;;  %v4497_v50 = vrot.slane %v4469_v51, %v11453_v8  ;;  %v4687_v16 = vmax.f32 %v11461_v60, 0.0  ;;  %6500 = vmatprep.mubr.msk.f32.mxu0 %vm4347_vm8, %v4388_v62  ;;  %v5229_v17 = vld [vmem:[#allocation4 + $0x21] ss:$8 sm:$0x3]  ;;  %v6524_v14 = vld [vmem:[%s12108_s5 + $0x140] sm:$0xff]  ;;  %v6542_v48 = vld [vmem:[%s12108_s5 + $0x1c8] sm:$0xff] }
 0x456   : > { %4457 = vmatmul.mubr.f32.vlgmr.msra.gmra.mxu0 %v4384_v19  ;;  %v4606_v41 = vrot.slane %v4578_v24, %v11453_v8  ;;  %v5230_v56 = vmax.f32 %v5227_v39, %v5229_v17  ;;  %v5014_v1 = vmax.f32 %v5013_v59, 0.0  ;;  %v5122_v34 = vadd.f32 %v5121_v10, %v11449_v2  ;;  %v6526_v46 = vld [vmem:[%s12108_s5 + $0x150] sm:$0xff]  ;;  %v6544_v58 = vld [vmem:[%s12108_s5 + $0x1d8] sm:$0xff]  ;;  %v4791_v31 = vld [vmem:[#allocation4 + $0x10] ss:$8 sm:$0x3] }
 0x457   : > { %6519 = vmatprep.mubr.msk.f32.mxu1 %vm4347_vm8, %v4497_v50  ;;  %4611 = vmatpush1.msra.mxu0 %v6535_v28  ;;  %v4715_v36 = vrot.slane %v4687_v16, %v11453_v8  ;;  %v6543_v45 = vld [vmem:[%s12108_s5 + $0x1d0] sm:$0xff]  ;;  %v6523_v25 = vld [vmem:[%s12108_s5 + $0x138] sm:$0xff]  ;;  %v4793_v32 = vld [vmem:[#allocation4 + $0x11] ss:$8 sm:$0x3]  ;;  %v4602_v17 = vrot.slane %v4578_v24, %v11451_v49 }
 0x458   : > { %4566 = vmatmul.mubr.f32.vlgmr.msra.gmra.mxu1 %v4493_v47  ;;  %4612 = vmatprep.subr.mxu0 %v6801_v42  ;;  %v11506_v44 = vrot.slane %v5014_v1, %v11451_v49  ;;  %v11509_v37 = vrot.slane %v5014_v1, %v11453_v8  ;;  %v5231_v27 = vadd.f32 %v5230_v56, %v11449_v2  ;;  %v5123_v12 = vmax.f32 %v5122_v34, 0.0  ;;  %v4900_v51 = vld [vmem:[#allocation4 + $0x12] ss:$8 sm:$0x3]  ;;  %v6522_v62 = vld [vmem:[%s12108_s5 + $0x130] sm:$0xff]  ;;  %v6540_v61 = vld [vmem:[%s12108_s5 + $0x1b8] sm:$0xff] }
 0x459   : > { %4720 = vmatpush1.msra.mxu1 %v6554_v55  ;;  %6538 = vmatprep.mubr.msk.f32.mxu0 %vm4347_vm8, %v4606_v41  ;;  %v4902_v19 = vld [vmem:[#allocation4 + $0x13] ss:$8 sm:$0x3]  ;;  %v4794_v47 = vmax.f32 %v4791_v31, %v4793_v32  ;;  %v6539_v18 = vld [vmem:[%s12108_s5 + $0x1b0] sm:$0xff]  ;;  %v6556_v41 = vld [vmem:[%s12108_s5 + $0x238] sm:$0xff] }
 0x45a   : > { %4721 = vmatprep.subr.mxu1 %v6801_v42  ;;  %6557 = vmatprep.mubr.msk.f32.mxu1 %vm4347_vm8, %v4715_v36  ;;  %v5232_v0 = vmax.f32 %v5231_v27, 0.0  ;;  %v11525_v15 = vrot.slane %v5123_v12, %v11451_v49  ;;  %v11528_v22 = vrot.slane %v5123_v12, %v11453_v8  ;;  %v6541_v38 = vld [vmem:[%s12108_s5 + $0x1c0] sm:$0xff]  ;;  %v6521_v50 = vld [vmem:[%s12108_s5 + $0x128] sm:$0xff]  ;;  %v4903_v28 = vmax.f32 %v4900_v51, %v4902_v19  ;;  %v6573_v10 = vld [vmem:[%s12108_s5 + $0x2b8] sm:$0xff] }
 0x45b   : > { %4613 = vmatpush1.msra.mxu0 %v6534_v26  ;;  %4722 = vmatpush1.msra.mxu1 %v6553_v40  ;;  %v6520_v55 = vld [vmem:[%s12108_s5 + $0x120] sm:$0xff]  ;;  %v11625_v3 = vadd.f32 %v4794_v47, %v11449_v2  ;;  %v6537_v43 = vld [vmem:[%s12108_s5 + $0x1a8] sm:$0xff]  ;;  %v4711_v40 = vrot.slane %v4687_v16, %v11451_v49  ;;  %v6572_v16 = vld [vmem:[%s12108_s5 + $0x2b0] sm:$0xff] }
 0x45c   : > { %4614 = vmatprep.subr.mxu0 %v6801_v42  ;;  %4723 = vmatprep.subr.mxu1 %v6801_v42  ;;  %v11535_v13 = vrot.slane %v5232_v0, %v11451_v49  ;;  %v11538_v29 = vrot.slane %v5232_v0, %v11453_v8  ;;  %v11632_v39 = vadd.f32 %v4903_v28, %v11449_v2  ;;  %v6536_v26 = vld [vmem:[%s12108_s5 + $0x1a0] sm:$0xff]  ;;  %v6555_v2 = vld [vmem:[%s12108_s5 + $0x230] sm:$0xff]  ;;  %v6592_v30 = vld [vmem:[%s12108_s5 + $0x348] sm:$0xff] }
 0x45d   : > { %4615 = vmatpush1.msra.mxu0 %v6533_v35  ;;  %4724 = vmatpush1.msra.mxu1 %v6552_v6  ;;  %v4796_v59 = vmax.f32 %v11625_v3, 0.0  ;;  %v6591_v56 = vld [vmem:[%s12108_s5 + $0x340] sm:$0xff]  ;;  %v6571_v35 = vld [vmem:[%s12108_s5 + $0x2a8] sm:$0xff]  ;;  %v6589_v6 = vld [vmem:[%s12108_s5 + $0x330] sm:$0xff] }
 0x45e   : > { %4616 = vmatprep.subr.mxu0 %v6801_v42  ;;  %4725 = vmatprep.subr.mxu1 %v6801_v42  ;;  %v4905_v36 = vmax.f32 %v11632_v39, 0.0  ;;  %v6570_v1 = vld [vmem:[%s12108_s5 + $0x2a0] sm:$0xff]  ;;  %v6569_v34 = vld [vmem:[%s12108_s5 + $0x298] sm:$0xff]  ;;  %v6568_v27 = vld [vmem:[%s12108_s5 + $0x290] sm:$0xff] }
 0x45f   : > { %4617 = vmatpush1.msra.mxu0 %v6532_v52  ;;  %4726 = vmatpush1.msra.mxu1 %v6551_v53  ;;  %v4824_v60 = vrot.slane %v4796_v59, %v11453_v8  ;;  %v6588_v52 = vld [vmem:[%s12108_s5 + $0x328] sm:$0xff]  ;;  %v6587_v53 = vld [vmem:[%s12108_s5 + $0x320] sm:$0xff]  ;;  %v6594_v32 = vld [vmem:[%s12108_s5 + $0x358] sm:$0xff] }
 0x460   : > { %4618 = vmatprep.subr.mxu0 %v6801_v42  ;;  %4727 = vmatprep.subr.mxu1 %v6801_v42  ;;  %v4933_v24 = vrot.slane %v4905_v36, %v11453_v8  ;;  %v6590_v8 = vld [vmem:[%s12108_s5 + $0x338] sm:$0xff]  ;;  %v6567_v12 = vld [vmem:[%s12108_s5 + $0x288] sm:$0xff]  ;;  %v6566_v0 = vld [vmem:[%s12108_s5 + $0x280] sm:$0xff] }
 0x461   : > { %4619 = vmatpush1.msra.mxu0 %v6531_v9  ;;  %4728 = vmatpush1.msra.mxu1 %v6550_v33  ;;  %v6586_v9 = vld [vmem:[%s12108_s5 + $0x318] sm:$0xff]  ;;  %v6585_v33 = vld [vmem:[%s12108_s5 + $0x310] sm:$0xff]  ;;  %v6575_v31 = vld [vmem:[%s12108_s5 + $0x2c8] sm:$0xff] }
 0x462   : > { %4620 = vmatprep.subr.mxu0 %v6801_v42  ;;  %4729 = vmatprep.subr.mxu1 %v6801_v42  ;;  %v6574_v51 = vld [vmem:[%s12108_s5 + $0x2c0] sm:$0xff]  ;;  %v6593_v19 = vld [vmem:[%s12108_s5 + $0x350] sm:$0xff]  ;;  %v6611_v47 = vld [vmem:[%s12108_s5 + $0x3d8] sm:$0xff] }
 0x463   : > { %4621 = vmatpush1.msra.mxu0 %v6530_v5  ;;  %4730 = vmatpush1.msra.mxu1 %v6549_v57  ;;  %v6565_v5 = vld [vmem:[%s12108_s5 + $0x278] sm:$0xff]  ;;  %v6584_v57 = vld [vmem:[%s12108_s5 + $0x308] sm:$0xff]  ;;  %v6629_v28 = vld [vmem:[%s12108_s5 + $0x460] sm:$0xff] }
 0x464   : > { %4622 = vmatprep.subr.mxu0 %v6801_v42  ;;  %4731 = vmatprep.subr.mxu1 %v6801_v42  ;;  %v6626_v3 = vld [vmem:[%s12108_s5 + $0x448] sm:$0xff]  ;;  %v6625_v39 = vld [vmem:[%s12108_s5 + $0x440] sm:$0xff] }
 0x465   : > { %4623 = vmatpush1.msra.mxu0 %v6529_v4  ;;  %4732 = vmatpush1.msra.mxu1 %v6548_v63  ;;  %v6564_v4 = vld [vmem:[%s12108_s5 + $0x270] sm:$0xff]  ;;  %v6583_v63 = vld [vmem:[%s12108_s5 + $0x300] sm:$0xff] }
 0x466   : > { %4624 = vmatprep.subr.mxu0 %v6801_v42  ;;  %4733 = vmatprep.subr.mxu1 %v6801_v42 }
 0x467   : > { %4625 = vmatpush1.msra.mxu0 %v6528_v54  ;;  %4734 = vmatpush1.msra.mxu1 %v6547_v11  ;;  %v6563_v54 = vld [vmem:[%s12108_s5 + $0x268] sm:$0xff]  ;;  %v6582_v11 = vld [vmem:[%s12108_s5 + $0x2f8] sm:$0xff] }
 0x468   : > { %4626 = vmatprep.subr.mxu0 %v6801_v42  ;;  %4735 = vmatprep.subr.mxu1 %v6801_v42 }
 0x469   : > { %4627 = vmatpush1.msra.mxu0 %v6527_v23  ;;  %4736 = vmatpush1.msra.mxu1 %v6546_v7  ;;  %v6562_v23 = vld [vmem:[%s12108_s5 + $0x260] sm:$0xff]  ;;  %v6581_v7 = vld [vmem:[%s12108_s5 + $0x2f0] sm:$0xff] }
 0x46a   : > { %4628 = vmatprep.subr.mxu0 %v6801_v42  ;;  %4737 = vmatprep.subr.mxu1 %v6801_v42 }
 0x46b   : > { %4629 = vmatpush1.msra.mxu0 %v6526_v46  ;;  %4738 = vmatpush1.msra.mxu1 %v6545_v21  ;;  %v6561_v46 = vld [vmem:[%s12108_s5 + $0x258] sm:$0xff]  ;;  %v6580_v21 = vld [vmem:[%s12108_s5 + $0x2e8] sm:$0xff] }
 0x46c   : > { %4630 = vmatprep.subr.mxu0 %v6801_v42  ;;  %4739 = vmatprep.subr.mxu1 %v6801_v42 }
 0x46d   : > { %4631 = vmatpush1.msra.mxu0 %v6525_v20  ;;  %4740 = vmatpush1.msra.mxu1 %v6544_v58  ;;  %v6560_v20 = vld [vmem:[%s12108_s5 + $0x250] sm:$0xff]  ;;  %v6579_v58 = vld [vmem:[%s12108_s5 + $0x2e0] sm:$0xff] }
 0x46e   : > { %4632 = vmatprep.subr.mxu0 %v6801_v42  ;;  %4741 = vmatprep.subr.mxu1 %v6801_v42 }
 0x46f   : > { %4633 = vmatpush1.msra.mxu0 %v6524_v14  ;;  %4742 = vmatpush1.msra.mxu1 %v6543_v45  ;;  %v6559_v14 = vld [vmem:[%s12108_s5 + $0x248] sm:$0xff]  ;;  %v6578_v45 = vld [vmem:[%s12108_s5 + $0x2d8] sm:$0xff] }
 0x470   : > { %4634 = vmatprep.subr.mxu0 %v6801_v42  ;;  %4743 = vmatprep.subr.mxu1 %v6801_v42 }
 0x471   : > { %4635 = vmatpush1.msra.mxu0 %v6523_v25  ;;  %4744 = vmatpush1.msra.mxu1 %v6542_v48  ;;  %v6558_v25 = vld [vmem:[%s12108_s5 + $0x240] sm:$0xff]  ;;  %v6577_v48 = vld [vmem:[%s12108_s5 + $0x2d0] sm:$0xff] }
 0x472   : > { %4636 = vmatprep.subr.mxu0 %v6801_v42  ;;  %4745 = vmatprep.subr.mxu1 %v6801_v42 }
 0x473   : > { %4637 = vmatpush1.msra.mxu0 %v6522_v62  ;;  %4746 = vmatpush1.msra.mxu1 %v6541_v38  ;;  %v4820_v62 = vrot.slane %v4796_v59, %v11451_v49  ;;  %v4929_v38 = vrot.slane %v4905_v36, %v11451_v49  ;;  %v6610_v49 = vld [vmem:[%s12108_s5 + $0x3d0] sm:$0xff]  ;;  %v6622_v36 = vld [vmem:[%s12108_s5 + $0x428] sm:$0xff] }
 0x474   : > { %4638 = vmatprep.subr.mxu0 %v6801_v42  ;;  %4747 = vmatprep.subr.mxu1 %v6801_v42  ;;  %v6623_v59 = vld [vmem:[%s12108_s5 + $0x430] sm:$0xff] }
 0x475   : > { %4639 = vmatpush1.msra.mxu0 %v6521_v50  ;;  %4748 = vmatpush1.msra.mxu1 %v6540_v61  ;;  %v6630_v50 = vld [vmem:[%s12108_s5 + $0x468] sm:$0xff] }
 0x476   : > { %4640 = vmatprep.subr.mxu0 %v6801_v42  ;;  %4749 = vmatprep.subr.mxu1 %v6801_v42  ;;  %v6609_v61 = vld [vmem:[%s12108_s5 + $0x3c8] sm:$0xff] }
 0x477   : > { %4641 = vmatpush1.msra.mxu0 %v6520_v55  ;;  %4750 = vmatpush1.msra.mxu1 %v6539_v18  ;;  %v6627_v55 = vld [vmem:[%s12108_s5 + $0x450] sm:$0xff]  ;;  %v6607_v18 = vld [vmem:[%s12108_s5 + $0x3b8] sm:$0xff] }
 0x478   : > { %4670 = vmatprep.subr.mxu0 %v6801_v42  ;;  %4779 = vmatprep.subr.mxu1 %v6801_v42 }
 0x479   : > { %4671 = vmatpush2.msra.mxu0 %v6537_v43  ;;  %4780 = vmatpush2.msra.mxu1 %v6556_v41  ;;  %v6606_v43 = vld [vmem:[%s12108_s5 + $0x3b0] sm:$0xff]  ;;  %v6605_v41 = vld [vmem:[%s12108_s5 + $0x3a8] sm:$0xff] }
 0x47a   : > { %4672 = vmatprep.subr.mxu0 %v6801_v42  ;;  %4781 = vmatprep.subr.mxu1 %v6801_v42 }
 0x47b   : > { %4673 = vmatpush2.msra.mxu0 %v6536_v26  ;;  %4782 = vmatpush2.msra.mxu1 %v6555_v2  ;;  %v6624_v26 = vld [vmem:[%s12108_s5 + $0x438] sm:$0xff]  ;;  %v6604_v2 = vld [vmem:[%s12108_s5 + $0x3a0] sm:$0xff] }
 0x47c   : > { %4675 = vmatmul.mubr.f32.vlgmr.msra.gmra.mxu0 %v4602_v17  ;;  %4784 = vmatmul.mubr.f32.vlgmr.msra.gmra.mxu1 %v4711_v40  ;;  %v6603_v17 = vld [vmem:[%s12108_s5 + $0x398] sm:$0xff]  ;;  %v6602_v40 = vld [vmem:[%s12108_s5 + $0x390] sm:$0xff] }
 0x47d   : > { %4828 = vmatprep.subr.mxu0 %v6801_v42  ;;  %4937 = vmatprep.subr.mxu1 %v6801_v42 }
 0x47e   : > { %4829 = vmatpush1.msra.mxu0 %v6573_v10  ;;  %6576 = vmatprep.mubr.msk.f32.mxu0 %vm4347_vm8, %v4824_v60  ;;  %v6621_v10 = vld [vmem:[%s12108_s5 + $0x420] sm:$0xff]  ;;  %v6620_v60 = vld [vmem:[%s12108_s5 + $0x418] sm:$0xff] }
 0x47f   : > { %4938 = vmatpush1.msra.mxu1 %v6592_v30  ;;  %6595 = vmatprep.mubr.msk.f32.mxu1 %vm4347_vm8, %v4933_v24  ;;  %v6601_v30 = vld [vmem:[%s12108_s5 + $0x388] sm:$0xff]  ;;  %v6600_v24 = vld [vmem:[%s12108_s5 + $0x380] sm:$0xff] }
 0x480   : > { %4830 = vmatprep.subr.mxu0 %v6801_v42  ;;  %4939 = vmatprep.subr.mxu1 %v6801_v42 }
 0x481   : > { %4831 = vmatpush1.msra.mxu0 %v6572_v16  ;;  %4940 = vmatpush1.msra.mxu1 %v6591_v56  ;;  %v6619_v16 = vld [vmem:[%s12108_s5 + $0x410] sm:$0xff]  ;;  %v6599_v56 = vld [vmem:[%s12108_s5 + $0x378] sm:$0xff] }
 0x482   : > { %4832 = vmatprep.subr.mxu0 %v6801_v42  ;;  %4941 = vmatprep.subr.mxu1 %v6801_v42 }
 0x483   : > { %4833 = vmatpush1.msra.mxu0 %v6571_v35  ;;  %4942 = vmatpush1.msra.mxu1 %v6590_v8  ;;  %v6618_v35 = vld [vmem:[%s12108_s5 + $0x408] sm:$0xff]  ;;  %v6598_v8 = vld [vmem:[%s12108_s5 + $0x370] sm:$0xff] }
 0x484   : > { %4834 = vmatprep.subr.mxu0 %v6801_v42  ;;  %4943 = vmatprep.subr.mxu1 %v6801_v42 }
 0x485   : > { %4835 = vmatpush1.msra.mxu0 %v6570_v1  ;;  %4944 = vmatpush1.msra.mxu1 %v6589_v6  ;;  %v6617_v1 = vld [vmem:[%s12108_s5 + $0x400] sm:$0xff]  ;;  %v6597_v6 = vld [vmem:[%s12108_s5 + $0x368] sm:$0xff] }
 0x486   : > { %4836 = vmatprep.subr.mxu0 %v6801_v42  ;;  %4945 = vmatprep.subr.mxu1 %v6801_v42 }
 0x487   : > { %4837 = vmatpush1.msra.mxu0 %v6569_v34  ;;  %4946 = vmatpush1.msra.mxu1 %v6588_v52  ;;  %v6616_v34 = vld [vmem:[%s12108_s5 + $0x3f8] sm:$0xff]  ;;  %v6596_v52 = vld [vmem:[%s12108_s5 + $0x360] sm:$0xff] }
 0x488   : > { %4838 = vmatprep.subr.mxu0 %v6801_v42  ;;  %4947 = vmatprep.subr.mxu1 %v6801_v42 }
 0x489   : > { %4839 = vmatpush1.msra.mxu0 %v6568_v27  ;;  %4948 = vmatpush1.msra.mxu1 %v6587_v53  ;;  %v6615_v27 = vld [vmem:[%s12108_s5 + $0x3f0] sm:$0xff]  ;;  %v6613_v53 = vld [vmem:[%s12108_s5 + $0x3e8] sm:$0xff] }
 0x48a   : > { %4840 = vmatprep.subr.mxu0 %v6801_v42  ;;  %4949 = vmatprep.subr.mxu1 %v6801_v42 }
 0x48b   : > { %4841 = vmatpush1.msra.mxu0 %v6567_v12  ;;  %4950 = vmatpush1.msra.mxu1 %v6586_v9  ;;  %v6632_v12 = vld [vmem:[%s12108_s5 + $0x478] sm:$0xff]  ;;  %v6612_v9 = vld [vmem:[%s12108_s5 + $0x3e0] sm:$0xff] }
 0x48c   : > { %4842 = vmatprep.subr.mxu0 %v6801_v42  ;;  %4951 = vmatprep.subr.mxu1 %v6801_v42 }
 0x48d   : > { %4843 = vmatpush1.msra.mxu0 %v6566_v0  ;;  %4952 = vmatpush1.msra.mxu1 %v6585_v33  ;;  %v6631_v0 = vld [vmem:[%s12108_s5 + $0x470] sm:$0xff]  ;;  %v6649_v33 = vld [vmem:[%s12108_s5 + $0x4f8] sm:$0xff] }
 0x48e   : > { %4844 = vmatprep.subr.mxu0 %v6801_v42  ;;  %4953 = vmatprep.subr.mxu1 %v6801_v42 }
 0x48f   : > { %4845 = vmatpush1.msra.mxu0 %v6565_v5  ;;  %4954 = vmatpush1.msra.mxu1 %v6584_v57  ;;  %v6648_v5 = vld [vmem:[%s12108_s5 + $0x4f0] sm:$0xff]  ;;  %v6647_v57 = vld [vmem:[%s12108_s5 + $0x4e8] sm:$0xff] }
 0x490   : > { %4846 = vmatprep.subr.mxu0 %v6801_v42  ;;  %4955 = vmatprep.subr.mxu1 %v6801_v42 }
 0x491   : > { %4847 = vmatpush1.msra.mxu0 %v6564_v4  ;;  %4956 = vmatpush1.msra.mxu1 %v6583_v63  ;;  %v6643_v4 = vld [vmem:[%s12108_s5 + $0x4c8] sm:$0xff]  ;;  %v6642_v63 = vld [vmem:[%s12108_s5 + $0x4c0] sm:$0xff] }
 0x492   : > { %4848 = vmatprep.subr.mxu0 %v6801_v42  ;;  %4957 = vmatprep.subr.mxu1 %v6801_v42 }
 0x493   : > { %4849 = vmatpush1.msra.mxu0 %v6563_v54  ;;  %4958 = vmatpush1.msra.mxu1 %v6582_v11  ;;  %v6641_v54 = vld [vmem:[%s12108_s5 + $0x4b8] sm:$0xff]  ;;  %v6640_v11 = vld [vmem:[%s12108_s5 + $0x4b0] sm:$0xff] }
 0x494   : > { %4850 = vmatprep.subr.mxu0 %v6801_v42  ;;  %4959 = vmatprep.subr.mxu1 %v6801_v42 }
 0x495   : > { %4851 = vmatpush1.msra.mxu0 %v6562_v23  ;;  %4960 = vmatpush1.msra.mxu1 %v6581_v7  ;;  %v6639_v23 = vld [vmem:[%s12108_s5 + $0x4a8] sm:$0xff]  ;;  %v6638_v7 = vld [vmem:[%s12108_s5 + $0x4a0] sm:$0xff] }
 0x496   : > { %4852 = vmatprep.subr.mxu0 %v6801_v42  ;;  %4961 = vmatprep.subr.mxu1 %v6801_v42 }
 0x497   : > { %4853 = vmatpush1.msra.mxu0 %v6561_v46  ;;  %4962 = vmatpush1.msra.mxu1 %v6580_v21  ;;  %v6637_v46 = vld [vmem:[%s12108_s5 + $0x498] sm:$0xff]  ;;  %v6636_v21 = vld [vmem:[%s12108_s5 + $0x490] sm:$0xff] }
 0x498   : > { %4854 = vmatprep.subr.mxu0 %v6801_v42  ;;  %4963 = vmatprep.subr.mxu1 %v6801_v42 }
 0x499   : > { %4855 = vmatpush1.msra.mxu0 %v6560_v20  ;;  %4964 = vmatpush1.msra.mxu1 %v6579_v58  ;;  %v6635_v20 = vld [vmem:[%s12108_s5 + $0x488] sm:$0xff]  ;;  %v6634_v58 = vld [vmem:[%s12108_s5 + $0x480] sm:$0xff] }
 0x49a   : > { %4856 = vmatprep.subr.mxu0 %v6801_v42  ;;  %4965 = vmatprep.subr.mxu1 %v6801_v42 }
 0x49b   : > { %4857 = vmatpush1.msra.mxu0 %v6559_v14  ;;  %4966 = vmatpush1.msra.mxu1 %v6578_v45  ;;  %v6651_v14 = vld [vmem:[%s12108_s5 + $0x508] sm:$0xff]  ;;  %v6650_v45 = vld [vmem:[%s12108_s5 + $0x500] sm:$0xff] }
 0x49c   : > { %4858 = vmatprep.subr.mxu0 %v6801_v42  ;;  %4967 = vmatprep.subr.mxu1 %v6801_v42 }
 0x49d   : > { %4859 = vmatpush1.msra.mxu0 %v6558_v25  ;;  %4968 = vmatpush1.msra.mxu1 %v6577_v48  ;;  %v5339_v25 = vld [vmem:[%s12110_s7 + $0x18] sm:$0xff]  ;;  %v4355_v48 = vld [vmem:[%s12109_s6] sm:$0x1] }
 0x49e   : > { %4888 = vmatprep.subr.mxu0 %v6801_v42  ;;  %4997 = vmatprep.subr.mxu1 %v6801_v42 }
 0x49f   : > { %4889 = vmatpush2.msra.mxu0 %v6575_v31  ;;  %4998 = vmatpush2.msra.mxu1 %v6594_v32 }
 0x4a0   : > { %4890 = vmatprep.subr.mxu0 %v6801_v42  ;;  %4999 = vmatprep.subr.mxu1 %v6801_v42 }
 0x4a1   : > { %4891 = vmatpush2.msra.mxu0 %v6574_v51  ;;  %5000 = vmatpush2.msra.mxu1 %v6593_v19 }
 0x4a2   : > { %4893 = vmatmul.mubr.f32.vlgmr.msra.gmra.mxu0 %v4820_v62  ;;  %5002 = vmatmul.mubr.f32.vlgmr.msra.gmra.mxu1 %v4929_v38 }
 0x4a3   : > { %5046 = vmatprep.subr.mxu0 %v6801_v42  ;;  %5155 = vmatprep.subr.mxu1 %v6801_v42 }
 0x4a4   : > { %5047 = vmatpush1.msra.mxu0 %v6611_v47  ;;  %6614 = vmatprep.mubr.msk.f32.mxu0 %vm4347_vm8, %v11509_v37  ;;  %v6628_v37 = vld [vmem:[%s12108_s5 + $0x458] sm:$0xff]  ;;  %v5337_v47 = vld [vmem:[%s12110_s7 + $0x8] sm:$0xff] }
 0x4a5   : > { %5156 = vmatpush1.msra.mxu1 %v6630_v50  ;;  %6633 = vmatprep.mubr.msk.f32.mxu1 %vm4347_vm8, %v11528_v22  ;;  %v6608_v22 = vld [vmem:[%s12108_s5 + $0x3c0] sm:$0xff] }
 0x4a6   : > { %5048 = vmatprep.subr.mxu0 %v6801_v42  ;;  %5157 = vmatprep.subr.mxu1 %v6801_v42  ;;  %v5336_v50 = vld [vmem:[%s12110_s7] sm:$0xff] }
 0x4a7   : > { %5049 = vmatpush1.msra.mxu0 %v6610_v49  ;;  %5158 = vmatpush1.msra.mxu1 %v6629_v28 }
 0x4a8   : > { %5050 = vmatprep.subr.mxu0 %v6801_v42  ;;  %5159 = vmatprep.subr.mxu1 %v6801_v42 }
 0x4a9   : > { %5051 = vmatpush1.msra.mxu0 %v6609_v61  ;;  %5160 = vmatpush1.msra.mxu1 %v6628_v37 }
 0x4aa   : > { %5052 = vmatprep.subr.mxu0 %v6801_v42  ;;  %5161 = vmatprep.subr.mxu1 %v6801_v42 }
 0x4ab   : > { %5053 = vmatpush1.msra.mxu0 %v6608_v22  ;;  %5162 = vmatpush1.msra.mxu1 %v6627_v55 }
 0x4ac   : > { %5054 = vmatprep.subr.mxu0 %v6801_v42  ;;  %5163 = vmatprep.subr.mxu1 %v6801_v42 }
 0x4ad   : > { %5055 = vmatpush1.msra.mxu0 %v6607_v18  ;;  %5164 = vmatpush1.msra.mxu1 %v6626_v3 }
 0x4ae   : > { %5056 = vmatprep.subr.mxu0 %v6801_v42  ;;  %5165 = vmatprep.subr.mxu1 %v6801_v42 }
 0x4af   : > { %5057 = vmatpush1.msra.mxu0 %v6606_v43  ;;  %5166 = vmatpush1.msra.mxu1 %v6625_v39 }
 0x4b0   : > { %5058 = vmatprep.subr.mxu0 %v6801_v42  ;;  %5167 = vmatprep.subr.mxu1 %v6801_v42 }
 0x4b1   : > { %5059 = vmatpush1.msra.mxu0 %v6605_v41  ;;  %5168 = vmatpush1.msra.mxu1 %v6624_v26 }
 0x4b2   : > { %5060 = vmatprep.subr.mxu0 %v6801_v42  ;;  %5169 = vmatprep.subr.mxu1 %v6801_v42 }
 0x4b3   : > { %5061 = vmatpush1.msra.mxu0 %v6604_v2  ;;  %5170 = vmatpush1.msra.mxu1 %v6623_v59 }
 0x4b4   : > { %5062 = vmatprep.subr.mxu0 %v6801_v42  ;;  %5171 = vmatprep.subr.mxu1 %v6801_v42 }
 0x4b5   : > { %5063 = vmatpush1.msra.mxu0 %v6603_v17  ;;  %5172 = vmatpush1.msra.mxu1 %v6622_v36 }
 0x4b6   : > { %5064 = vmatprep.subr.mxu0 %v6801_v42  ;;  %5173 = vmatprep.subr.mxu1 %v6801_v42 }
 0x4b7   : > { %5065 = vmatpush1.msra.mxu0 %v6602_v40  ;;  %5174 = vmatpush1.msra.mxu1 %v6621_v10 }
 0x4b8   : > { %5066 = vmatprep.subr.mxu0 %v6801_v42  ;;  %5175 = vmatprep.subr.mxu1 %v6801_v42 }
 0x4b9   : > { %5067 = vmatpush1.msra.mxu0 %v6601_v30  ;;  %5176 = vmatpush1.msra.mxu1 %v6620_v60 }
 0x4ba   : > { %5068 = vmatprep.subr.mxu0 %v6801_v42  ;;  %5177 = vmatprep.subr.mxu1 %v6801_v42 }
 0x4bb   : > { %5069 = vmatpush1.msra.mxu0 %v6600_v24  ;;  %5178 = vmatpush1.msra.mxu1 %v6619_v16  ;;  %v5340_v16 = vld [vmem:[%s12111_s8] sm:$0x1] }
 0x4bc   : > { %5070 = vmatprep.subr.mxu0 %v6801_v42  ;;  %5179 = vmatprep.subr.mxu1 %v6801_v42 }
 0x4bd   : > { %5071 = vmatpush1.msra.mxu0 %v6599_v56  ;;  %5180 = vmatpush1.msra.mxu1 %v6618_v35 }
 0x4be   : > { %5072 = vmatprep.subr.mxu0 %v6801_v42  ;;  %5181 = vmatprep.subr.mxu1 %v6801_v42 }
 0x4bf   : > { %5073 = vmatpush1.msra.mxu0 %v6598_v8  ;;  %5182 = vmatpush1.msra.mxu1 %v6617_v1 }
 0x4c0   : > { %5074 = vmatprep.subr.mxu0 %v6801_v42  ;;  %5183 = vmatprep.subr.mxu1 %v6801_v42 }
 0x4c1   : > { %5075 = vmatpush1.msra.mxu0 %v6597_v6  ;;  %5184 = vmatpush1.msra.mxu1 %v6616_v34 }
 0x4c2   : > { %5076 = vmatprep.subr.mxu0 %v6801_v42  ;;  %5185 = vmatprep.subr.mxu1 %v6801_v42 }
 0x4c3   : > { %5077 = vmatpush1.msra.mxu0 %v6596_v52  ;;  %5186 = vmatpush1.msra.mxu1 %v6615_v27 }
 0x4c4   : > { %5106 = vmatprep.subr.mxu0 %v6801_v42  ;;  %5215 = vmatprep.subr.mxu1 %v6801_v42 }
 0x4c5   : > { %5107 = vmatpush2.msra.mxu0 %v6613_v53  ;;  %5216 = vmatpush2.msra.mxu1 %v6632_v12 }
 0x4c6   : > { %5108 = vmatprep.subr.mxu0 %v6801_v42  ;;  %5217 = vmatprep.subr.mxu1 %v6801_v42 }
 0x4c7   : > { %5109 = vmatpush2.msra.mxu0 %v6612_v9  ;;  %5218 = vmatpush2.msra.mxu1 %v6631_v0 }
 0x4c8   : > { %5111 = vmatmul.mubr.f32.vlgmr.msra.gmra.mxu0 %v11506_v44  ;;  %5220 = vmatmul.mubr.f32.vlgmr.msra.gmra.mxu1 %v11525_v15  ;;  %v6646_v44 = vld [vmem:[%s12108_s5 + $0x4e0] sm:$0xff]  ;;  %v6645_v15 = vld [vmem:[%s12108_s5 + $0x4d8] sm:$0xff] }
 0x4c9   : > { %5264 = vmatprep.subr.mxu0 %v6801_v42  ;;  %6652 = vmatprep.mubr.msk.f32.mxu0 %vm4347_vm8, %v11538_v29  ;;  %v6644_v29 = vld [vmem:[%s12108_s5 + $0x4d0] sm:$0xff] }
 0x4ca   : > { %5265 = vmatpush1.msra.mxu0 %v6649_v33  ;;  %6663 = vmatprep.subr.mxu1 %v6801_v42 }
 0x4cb   : > { %5266 = vmatprep.subr.mxu0 %v6801_v42  ;;  %6664 = vmatpush3.msra.mxu1 %v5339_v25 }
 0x4cc   : > { %5267 = vmatpush1.msra.mxu0 %v6648_v5  ;;  %6665 = vmatprep.subr.mxu1 %v6801_v42 }
 0x4cd   : > { %5268 = vmatprep.subr.mxu0 %v6801_v42  ;;  %6671 = vmatprep.mubr.msk.f32.mxu1 %vm6802_vm10, %v6801_v42 }
 0x4ce   : > { %5269 = vmatpush1.msra.mxu0 %v6647_v57 }
 0x4cf   : > { %5270 = vmatprep.subr.mxu0 %v6801_v42 }
 0x4d0   : > { %5271 = vmatpush1.msra.mxu0 %v6646_v44 }
 0x4d1   : > { %5272 = vmatprep.subr.mxu0 %v6801_v42 }
 0x4d2   : > { %5273 = vmatpush1.msra.mxu0 %v6645_v15 }
 0x4d3   : > { %5274 = vmatprep.subr.mxu0 %v6801_v42 }
 0x4d4   : > { %5275 = vmatpush1.msra.mxu0 %v6644_v29 }
 0x4d5   : > { %5276 = vmatprep.subr.mxu0 %v6801_v42 }
 0x4d6   : > { %5277 = vmatpush1.msra.mxu0 %v6643_v4 }
 0x4d7   : > { %5278 = vmatprep.subr.mxu0 %v6801_v42 }
 0x4d8   : > { %5279 = vmatpush1.msra.mxu0 %v6642_v63 }
 0x4d9   : > { %5280 = vmatprep.subr.mxu0 %v6801_v42 }
 0x4da   : > { %5281 = vmatpush1.msra.mxu0 %v6641_v54 }
 0x4db   : > { %5282 = vmatprep.subr.mxu0 %v6801_v42 }
 0x4dc   : > { %5283 = vmatpush1.msra.mxu0 %v6640_v11 }
 0x4dd   : > { %5284 = vmatprep.subr.mxu0 %v6801_v42 }
 0x4de   : > { %5285 = vmatpush1.msra.mxu0 %v6639_v23 }
 0x4df   : > { %5286 = vmatprep.subr.mxu0 %v6801_v42 }
 0x4e0   : > { %5287 = vmatpush1.msra.mxu0 %v6638_v7 }
 0x4e1   : > { %5288 = vmatprep.subr.mxu0 %v6801_v42 }
 0x4e2   : > { %5289 = vmatpush1.msra.mxu0 %v6637_v46 }
 0x4e3   : > { %5290 = vmatprep.subr.mxu0 %v6801_v42 }
 0x4e4   : > { %5291 = vmatpush1.msra.mxu0 %v6636_v21 }
 0x4e5   : > { %5292 = vmatprep.subr.mxu0 %v6801_v42 }
 0x4e6   : > { %5293 = vmatpush1.msra.mxu0 %v6635_v20 }
 0x4e7   : > { %5294 = vmatprep.subr.mxu0 %v6801_v42 }
 0x4e8   : > { %5295 = vmatpush1.msra.mxu0 %v6634_v58 }
 0x4e9   : > { %5324 = vmatprep.subr.mxu0 %v6801_v42 }
 0x4ea   : > { %5325 = vmatpush2.msra.mxu0 %v6651_v14 }
 0x4eb   : > { %5326 = vmatprep.subr.mxu0 %v6801_v42 }
 0x4ec   : > { %5327 = vmatpush2.msra.mxu0 %v6650_v45 }
 0x4ed   : > { %5329 = vmatmul.mubr.f32.vlgmr.msra.gmra.mxu0 %v11535_v13  ;;  %v5338_v13 = vld [vmem:[%s12110_s7 + $0x10] sm:$0xff] }
 0x4ee   : > { %6666 = vmatpush3.msra.mxu1 %v5338_v13 }
 0x4ef   : > { %6667 = vmatprep.subr.mxu1 %v6801_v42 }
 0x4f0   : > { %6668 = vmatpush3.msra.mxu1 %v5337_v47 }
 0x4f1   : > { %6669 = vmatprep.subr.mxu1 %v6801_v42 }
 0x4f2   : > { %6670 = vmatpush3.msra.mxu1 %v5336_v50 }
 0x516   : > { %v4458_v31 = vpop.f32.mrf.mxu0 }
 0x517   : > { %v4462_v32 = vadd.f32 %v4458_v31, %v4355_v48 }
 0x518   : > { %v4567_v51 = vpop.f32.mrf.mxu1  ;;  %v4460_v19 = vpop.f32.mrf.mxu0 }
 0x519   : > { %v4571_v62 = vadd.f32 %v4567_v51, %v4462_v32 }
 0x51a   : > { %v4569_v38 = vpop.f32.mrf.mxu1 }
 0x53c   : > { %v4676_v49 = vpop.f32.mrf.mxu0  ;;  %v4785_v61 = vpop.f32.mrf.mxu1 }
 0x53d   : > { %v4680_v28 = vadd.f32 %v4676_v49, %v4571_v62 }
 0x53e   : > { %v4678_v37 = vpop.f32.mrf.mxu0  ;;  %v4787_v55 = vpop.f32.mrf.mxu1 }
 0x53f   : > { %v4789_v22 = vadd.f32 %v4785_v61, %v4680_v28 }
 0x562   : > { %v4894_v18 = vpop.f32.mrf.mxu0  ;;  %v5003_v43 = vpop.f32.mrf.mxu1 }
 0x563   : > { %v4898_v3 = vadd.f32 %v4894_v18, %v4789_v22 }
 0x564   : > { %v4896_v39 = vpop.f32.mrf.mxu0  ;;  %v5005_v26 = vpop.f32.mrf.mxu1 }
 0x565   : > { %v5007_v41 = vadd.f32 %v5003_v43, %v4898_v3 }
 0x588   : > { %v5112_v2 = vpop.f32.mrf.mxu0  ;;  %v5221_v59 = vpop.f32.mrf.mxu1 }
 0x589   : > { %v5116_v40 = vadd.f32 %v5112_v2, %v5007_v41 }
 0x58a   : > { %v5114_v17 = vpop.f32.mrf.mxu0  ;;  %v5223_v36 = vpop.f32.mrf.mxu1 }
 0x58b   : > { %v5225_v42 = vadd.f32 %v5221_v59, %v5116_v40 }
 0x5ad   : > { %v5330_v10 = vpop.f32.mrf.mxu0 }
 0x5ae   : > { %v5334_v30 = vadd.f32 %v5330_v10, %v5225_v42 }
 0x5af   : > { %v5332_v60 = vpop.f32.mrf.mxu0 }
 0x5b0   : > { %v5335_v24 = vmax.f32 %v5334_v30, 0.0 }
 0x5b2   : > { %6672 = vmatmul.mubr.msk.f32.vlgmr.msra.gmra.mxu1 %vm3235_vm5, %v5335_v24 }
 0x672   : > { %v5410_v56 = vpop.f32.mrf.mxu1 }
 0x673   : > { %v5411_v35 = vadd.f32 %v5410_v56, %v5340_v16 }
 0x674   : > { %v6673_v8 = vpop.f32.mrf.mxu1 }
 0x675   : > { %5415 = vst.msk [vmem:[%s324_s26] sm:$0x1] %vm5414_vm11, %v5411_v35 }
 0x676   : > { %6752 = shalt.err (!%p6749_p3)
}
 0x677   : > { %s6753_s22 = scalar_lea.hbm %s12068_s29, 16  ;;  %s6757_s26 = scalar_lea.hbm %s12112_s9, 32 }
 0x678   : > { %p6754_p4 = scmp.ne.s32.totalorder %s12068_s29, %s6753_s22  ;;  %p6758_p9 = scmp.lt.s32.totalorder %s12068_s29, %s12112_s9 }
 0x679   : > { %p6759_p10 = scmp.lt.s32.totalorder %s6757_s26, %s6753_s22 }
 0x67a   : > { %p6755_p7 = pnand %p6754_p4, %p6892_p5 }
 0x67b   : > { %p6760_p11 = por %p6759_p10, %p6758_p9 }
 0x67c   : > { %p6756_p8 = pneg %p6755_p7 }
 0x67e   : > { %p6761_p12 = pnand %p6760_p11, %p6756_p8 }
 0x680   : > { %6764 = shalt.err (!%p6761_p12)
}
 0x681   : > { %6674 = dma.vmem_to_hbm [thread:$0]  (%p6892_p5), %s5430_s27, 16, %s12068_s29, %s5417_s16  }
 0x682 PF: > { %p6680_p13 = scmp.ge.s32.totalorder %s6799_s12, 2  ;;  %s5441_s23 = sand.u32 1, %s6787_s30  }
 0x683   : > { %s5442_s13 = scalar_lea.sflag [#allocation6], %s5441_s23 }
 0x684   : > { %p6677_p0 = pnand %p6680_p13, %p6896_p6 }
 0x686   : > { %p6678_p1 = pneg %p6677_p0 }
 0x688   : > { %6782 = dma.done.wait (%p6678_p1), %s5442_s13, 16  }
 0x689   : > { %6784 = vsyncadd (%p6678_p1), %s5442_s13, 4294967280  ;;  %p19_p2 = scmp.ge.s32.totalorder %s6879_s15, 4   ;;  %s12273_s30 = smov %s6791_s10 }
 0x68a   : > { %s12274_s10 = smov %s6795_s11  ;;  %s12275_s11 = smov %s6890_s18 }
 0x68b   : > { %s12276_s12 = smov %s6879_s15  ;;  %21 = sbr.rel (!%p19_p2) target bundleno = 3 (0x3), region = 213 }
 0x690   :  { %5446 = vsyncpa [#allocation6], 1 }
 0x691   :  { %5448 = vsyncpa [#allocation6 + $0x1], 1 }

</bundles_post_ra>
